<compile_context>
chip_gen: v7x
topology: tpu7x:2x2x1
jax: 0.10.0
libtpu: 0.0.40
codegen_flags: <defaults>
</compile_context>

<pallas_src>
import functools

import numpy as np
import jax
import jax.numpy as jnp
from jax.experimental import pallas as pl
from jax.experimental.pallas import tpu as pltpu


def _dequant_rows_into(scr_ref, q_ref, chunk=256):
    """int8 -> bf16 dequant of weight *values* (per-channel scale is applied
    post-dot).  Chunked along rows so the transient f32 buffer stays ~1 MiB."""
    k = scr_ref.shape[0]
    step = chunk if k % chunk == 0 else k
    for r in range(0, k, step):
        scr_ref[pl.ds(r, step), :] = (
            q_ref[pl.ds(r, step), :].astype(jnp.float32).astype(jnp.bfloat16))


def head_kernel(x_ref, w1_ref, w2q_ref, w3q_ref, sp_ref, o_ref,
                w2_scr, w3_scr, *, seg):
    """single_3FC forward (eval mode); one batch tile per grid step.

    w1 arrives as bf16, w2/w3 as int8 (dequantized once into bf16 scratch on
    the first grid step).  BN affines are pre-folded into the following
    Linear.  Activations are cast to bf16 right before each MXU dot;
    accumulation stays f32.  Dropout is the identity in eval mode.
    """
    bf16 = jnp.bfloat16

    def sp(name):
        s, n = seg[name]
        return sp_ref[:, pl.ds(s, n)]

    # Dequantize the int8 weights once; scratch persists across batch tiles.
    @pl.when(pl.program_id(0) == 0)
    def _():
        _dequant_rows_into(w2_scr, w2q_ref)
        _dequant_rows_into(w3_scr, w3q_ref)

    # FC1 -> ReLU          (BN1 is folded into FC2's weights/bias)
    h = jnp.dot(x_ref[...].astype(bf16), w1_ref[...],
                preferred_element_type=jnp.float32) + sp("b1")
    h = jnp.maximum(h, 0.0)

    # FC2 (BN1-folded, int8 weights; per-output-channel dequant scale applied
    # post-dot, which is exact) -> ReLU    (BN2 is folded into FC3)
    h = jnp.dot(h.astype(bf16), w2_scr[...],
                preferred_element_type=jnp.float32) * sp("s2") + sp("b2")
    h = jnp.maximum(h, 0.0)

    # FC3 (BN2-folded, int8 weights) -> ReLU
    h = jnp.dot(h.astype(bf16), w3_scr[...],
                preferred_element_type=jnp.float32) * sp("s3") + sp("b3")
    h = jnp.maximum(h, 0.0)

    # Final Linear(256 -> 1) as a per-row reduction (avoids a degenerate N=1
    # MXU matmul).  w4t is [1, 256] f32.
    o_ref[...] = (jnp.sum(h * sp("w4t"), axis=-1, keepdims=True)
                  + sp("b4")).astype(o_ref.dtype)


def head_single_3fc(x, q, *, batch_tile=256):
    """x: [B, C] float32.  q: params from prepare_params()."""
    B, C = x.shape

    TB = min(batch_tile, B)
    if TB < B:                          # multi-tile: keep tiles sublane-aligned
        TB = max(8, (TB // 8) * 8)
    Bp = ((B + TB - 1) // TB) * TB
    xp = x if Bp == B else jnp.pad(x, ((0, Bp - B), (0, 0)))
    n_tiles = Bp // TB

    kernel = functools.partial(head_kernel, seg=q["seg"])

    out = pl.pallas_call(
        kernel,
        out_shape=jax.ShapeDtypeStruct((Bp, 1), jnp.float32),
        grid=(n_tiles,),
        in_specs=[
            pl.BlockSpec((TB, C), lambda i: (i, 0)),            # x: streamed
            pl.BlockSpec(q["w1"].shape, lambda i: (0, 0)),      # resident bf16
            pl.BlockSpec(q["w2q"].shape, lambda i: (0, 0)),     # resident int8
            pl.BlockSpec(q["w3q"].shape, lambda i: (0, 0)),     # resident int8
            pl.BlockSpec(q["small"].shape, lambda i: (0, 0)),   # resident f32
        ],
        out_specs=pl.BlockSpec((TB, 1), lambda i: (i, 0)),
        scratch_shapes=[
            pltpu.VMEM(q["w2q"].shape, jnp.bfloat16),   # dequantized w2
            pltpu.VMEM(q["w3q"].shape, jnp.bfloat16),   # dequantized w3
        ],
        compiler_params=pltpu.CompilerParams(
            # "arbitrary": sequential execution so the pl.when(step==0)
            # dequant-into-scratch is observed by all later tiles; a megacore
            # split would leave the second core's scratch uninitialized and
            # would re-stream the weights per core anyway.
            dimension_semantics=("arbitrary",),
            vmem_limit_bytes=32 * 1024 * 1024,
        ),
    )(xp, q["w1"], q["w2q"], q["w3q"], q["small"])
    return out[:B]


def init_params(key, in_dim, hidden=2048):
    """Deterministic synthetic init mimicking the module's shapes (f32).

    Linear(i, o): W [i, o], b [1, o] (PyTorch-style uniform(-1/sqrt(i), 1/sqrt(i))).
    BatchNorm1d(o) (eval): folded into scale = gamma/sqrt(var+eps),
    shift = beta - mean*scale, each shaped [1, o].
    """
    dims = [(in_dim, hidden), (hidden, hidden // 2),
            (hidden // 2, hidden // 8), (hidden // 8, 1)]
    params = {}
    keys = jax.random.split(key, 16)
    ki = 0
    for li, (i, o) in enumerate(dims, start=1):
        bound = 1.0 / np.sqrt(i)
        params[f"w{li}"] = jax.random.uniform(keys[ki], (i, o), jnp.float32, -bound, bound); ki += 1
        params[f"b{li}"] = jax.random.uniform(keys[ki], (1, o), jnp.float32, -bound, bound); ki += 1
    eps = 1e-5
    for li, o in [(1, hidden), (2, hidden // 2)]:
        gamma = 1.0 + 0.1 * jax.random.normal(keys[ki], (1, o), jnp.float32); ki += 1
        beta = 0.1 * jax.random.normal(keys[ki], (1, o), jnp.float32); ki += 1
        mean = 0.1 * jax.random.normal(keys[ki], (1, o), jnp.float32); ki += 1
        var = jnp.abs(1.0 + 0.1 * jax.random.normal(keys[ki], (1, o), jnp.float32)); ki += 1
        scale = gamma / jnp.sqrt(var + eps)
        params[f"bn{li}_scale"] = scale
        params[f"bn{li}_shift"] = beta - mean * scale
    return params


def _quantize_per_out_channel(w):
    """Symmetric int8 quantization with one scale per output channel (column)."""
    amax = jnp.max(jnp.abs(w), axis=0, keepdims=True)            # [1, N]
    scale = jnp.where(amax > 0, amax / 127.0, 1.0)
    wq = jnp.clip(jnp.round(w / scale), -127, 127).astype(jnp.int8)
    return wq, scale.astype(jnp.float32)


def _pack_small(named_rows):
    """Pack [1, n] f32 rows into one lane-padded row; each segment starts at a
    128-aligned offset so in-kernel static slices are free full-tile views."""
    seg, cols, off = {}, [], 0
    for name, a in named_rows:
        n = int(a.shape[1])
        seg[name] = (off, n)
        pad = (-n) % 128
        if pad:
            a = jnp.pad(a, ((0, 0), (0, pad)))
        cols.append(a.astype(jnp.float32))
        off += n + pad
    return jnp.concatenate(cols, axis=1), seg


def prepare_params(p):
    """Fold eval-mode BN affines into the following Linear (exact, since BN
    sits between ReLU and the next Linear):
        w2' = diag(s1) @ w2,  b2' = t1 @ w2 + b2   (similarly for layer 3)
    then quantize w2'/w3' to int8 (per-output-channel scales), cast w1 to
    bf16, and pack all small f32 vectors into a single lane-aligned row."""
    w2f = p["w2"] * p["bn1_scale"].reshape(-1, 1)
    b2f = p["bn1_shift"] @ p["w2"] + p["b2"]
    w3f = p["w3"] * p["bn2_scale"].reshape(-1, 1)
    b3f = p["bn2_shift"] @ p["w3"] + p["b3"]

    w2q, s2 = _quantize_per_out_channel(w2f)
    w3q, s3 = _quantize_per_out_channel(w3f)

    small, seg = _pack_small([
        ("b1", p["b1"]), ("s2", s2), ("b2", b2f),
        ("s3", s3), ("b3", b3f),
        ("w4t", jnp.transpose(p["w4"])), ("b4", p["b4"]),
    ])
    return {
        "w1": p["w1"].astype(jnp.bfloat16),
        "w2q": w2q, "w3q": w3q,
        "small": small, "seg": seg,
    }


def _seg(q, name):
    s, n = q["seg"][name]
    return q["small"][:, s:s + n]


def reference_quantized(x, q):
    """Plain-JAX computation with the exact folded/quantized kernel params."""
    bf16 = jnp.bfloat16
    h = jnp.dot(x.astype(bf16), q["w1"],
                preferred_element_type=jnp.float32) + _seg(q, "b1")
    h = jnp.maximum(h, 0.0)
    w2 = q["w2q"].astype(jnp.float32).astype(bf16)
    h = (jnp.dot(h.astype(bf16), w2, preferred_element_type=jnp.float32)
         * _seg(q, "s2") + _seg(q, "b2"))
    h = jnp.maximum(h, 0.0)
    w3 = q["w3q"].astype(jnp.float32).astype(bf16)
    h = (jnp.dot(h.astype(bf16), w3, preferred_element_type=jnp.float32)
         * _seg(q, "s3") + _seg(q, "b3"))
    h = jnp.maximum(h, 0.0)
    return jnp.sum(h * _seg(q, "w4t"), axis=-1, keepdims=True) + _seg(q, "b4")


def reference_module(x, p):
    """Full-f32 reference matching the original PyTorch module (eval mode)."""
    h = jnp.maximum(x @ p["w1"] + p["b1"], 0.0) * p["bn1_scale"] + p["bn1_shift"]
    h = jnp.maximum(h @ p["w2"] + p["b2"], 0.0) * p["bn2_scale"] + p["bn2_shift"]
    h = jnp.maximum(h @ p["w3"] + p["b3"], 0.0)
    return h @ p["w4"] + p["b4"]


if __name__ == "__main__":
    key = jax.random.PRNGKey(0)
    k_feat, k_par = jax.random.split(key)

    num_channel = [16, 16]            # sum -> C = 32 input channels
    C = int(np.sum(num_channel))
    N_ROWS = 40                       # rows in `features`; [-C:] keeps last 32
    HIDDEN = 2048                     # block_3FC default x=2048

    features = jax.random.normal(k_feat, (N_ROWS, C), jnp.float32)
    params = init_params(k_par, C, HIDDEN)

    # Head.forward (single_3FC branch), exactly like the PyTorch code:
    # features = features[-np.sum(self.num_ch):]   (slice along dim 0)
    x = features[-C:]                 # -> [32, C]

    q = prepare_params(params)
    # batch_tile=16 -> grid=(2,): exercises the resident-weight batch grid and
    # the first-step dequant-into-scratch path.
    out = jax.block_until_ready(head_single_3fc(x, q, batch_tile=16))

    # Primary correctness check: kernel vs plain-JAX with identical folded /
    # quantized parameters (only accumulation-order differences remain).
    ref_q = reference_quantized(x, q)
    np.testing.assert_allclose(np.asarray(out), np.asarray(ref_q),
                               rtol=2e-3, atol=2e-3)

    # Sanity check vs the full-f32 original-module semantics (difference is
    # only bf16/int8 weight quantization of the memory-bound layers).
    ref = reference_module(x, params)
    np.testing.assert_allclose(np.asarray(out), np.asarray(ref),
                               rtol=5e-2, atol=1e-1)

    assert out.shape == (x.shape[0], 1)
    print("KERNEL_OK")
</pallas_src>

<mosaic_0001>
module attributes {stable_mosaic.version = 11 : i64} {
  func.func @head_kernel(%arg0: i32, %arg1: memref<16x32xf32, #tpu.memory_space<vmem>>, %arg2: memref<32x2048xbf16, #tpu.memory_space<vmem>>, %arg3: memref<2048x1024xi8, #tpu.memory_space<vmem>>, %arg4: memref<1024x256xi8, #tpu.memory_space<vmem>>, %arg5: memref<1x4992xf32, #tpu.memory_space<vmem>>, %arg6: memref<16x1xf32, #tpu.memory_space<vmem>>, %arg7: memref<2048x1024xbf16, #tpu.memory_space<vmem>>, %arg8: memref<1024x256xbf16, #tpu.memory_space<vmem>>) attributes {dimension_semantics = [#tpu.dimension_semantics<arbitrary>], iteration_bounds = array<i64: 2>, scalar_prefetch = 0 : i64, scratch_operands = 2 : i64, tpu.core_type = #tpu.core_type<tc>, window_params = [{transform_indices = @transform_0, window_bounds = array<i64: 16, 32>}, {pipeline_mode = #tpu.pipeline_mode<synchronous>, transform_indices = @transform_1, window_bounds = array<i64: 32, 2048>}, {pipeline_mode = #tpu.pipeline_mode<synchronous>, transform_indices = @transform_2, window_bounds = array<i64: 2048, 1024>}, {pipeline_mode = #tpu.pipeline_mode<synchronous>, transform_indices = @transform_3, window_bounds = array<i64: 1024, 256>}, {pipeline_mode = #tpu.pipeline_mode<synchronous>, transform_indices = @transform_4, window_bounds = array<i64: 1, 4992>}, {transform_indices = @transform_5, window_bounds = array<i64: 16, 1>}]} {
    %c0_i32 = arith.constant 0 : i32
    %0 = arith.cmpi eq, %arg0, %c0_i32 : i32
    %1 = arith.extui %0 : i1 to i32
    %c0_i32_0 = arith.constant 0 : i32
    %2 = arith.cmpi ne, %1, %c0_i32_0 : i32
    scf.if %2 {
      %c0_24 = arith.constant 0 : index
      %c0_25 = arith.constant 0 : index
      %43 = vector.load %arg3[%c0_24, %c0_25] : memref<2048x1024xi8, #tpu.memory_space<vmem>>, vector<256x1024xi8>
      %44 = arith.sitofp %43 : vector<256x1024xi8> to vector<256x1024xf32>
      %45 = arith.truncf %44 : vector<256x1024xf32> to vector<256x1024xbf16>
      %c0_26 = arith.constant 0 : index
      %c0_27 = arith.constant 0 : index
      %46 = vector.load %arg7[%c0_26, %c0_27] : memref<2048x1024xbf16, #tpu.memory_space<vmem>>, vector<256x1024xbf16>
      tpu.vector_store %arg7[%c0_26, %c0_27], %45 {strides = array<i32>} : memref<2048x1024xbf16, #tpu.memory_space<vmem>>, vector<256x1024xbf16>,
      %c256 = arith.constant 256 : index
      %c0_28 = arith.constant 0 : index
      %47 = vector.load %arg3[%c256, %c0_28] : memref<2048x1024xi8, #tpu.memory_space<vmem>>, vector<256x1024xi8>
      %48 = arith.sitofp %47 : vector<256x1024xi8> to vector<256x1024xf32>
      %49 = arith.truncf %48 : vector<256x1024xf32> to vector<256x1024xbf16>
      %c256_29 = arith.constant 256 : index
      %c0_30 = arith.constant 0 : index
      %50 = vector.load %arg7[%c256_29, %c0_30] : memref<2048x1024xbf16, #tpu.memory_space<vmem>>, vector<256x1024xbf16>
      tpu.vector_store %arg7[%c256_29, %c0_30], %49 {strides = array<i32>} : memref<2048x1024xbf16, #tpu.memory_space<vmem>>, vector<256x1024xbf16>,
      %c512 = arith.constant 512 : index
      %c0_31 = arith.constant 0 : index
      %51 = vector.load %arg3[%c512, %c0_31] : memref<2048x1024xi8, #tpu.memory_space<vmem>>, vector<256x1024xi8>
      %52 = arith.sitofp %51 : vector<256x1024xi8> to vector<256x1024xf32>
      %53 = arith.truncf %52 : vector<256x1024xf32> to vector<256x1024xbf16>
      %c512_32 = arith.constant 512 : index
      %c0_33 = arith.constant 0 : index
      %54 = vector.load %arg7[%c512_32, %c0_33] : memref<2048x1024xbf16, #tpu.memory_space<vmem>>, vector<256x1024xbf16>
      tpu.vector_store %arg7[%c512_32, %c0_33], %53 {strides = array<i32>} : memref<2048x1024xbf16, #tpu.memory_space<vmem>>, vector<256x1024xbf16>,
      %c768 = arith.constant 768 : index
      %c0_34 = arith.constant 0 : index
      %55 = vector.load %arg3[%c768, %c0_34] : memref<2048x1024xi8, #tpu.memory_space<vmem>>, vector<256x1024xi8>
      %56 = arith.sitofp %55 : vector<256x1024xi8> to vector<256x1024xf32>
      %57 = arith.truncf %56 : vector<256x1024xf32> to vector<256x1024xbf16>
      %c768_35 = arith.constant 768 : index
      %c0_36 = arith.constant 0 : index
      %58 = vector.load %arg7[%c768_35, %c0_36] : memref<2048x1024xbf16, #tpu.memory_space<vmem>>, vector<256x1024xbf16>
      tpu.vector_store %arg7[%c768_35, %c0_36], %57 {strides = array<i32>} : memref<2048x1024xbf16, #tpu.memory_space<vmem>>, vector<256x1024xbf16>,
      %c1024 = arith.constant 1024 : index
      %c0_37 = arith.constant 0 : index
      %59 = vector.load %arg3[%c1024, %c0_37] : memref<2048x1024xi8, #tpu.memory_space<vmem>>, vector<256x1024xi8>
      %60 = arith.sitofp %59 : vector<256x1024xi8> to vector<256x1024xf32>
      %61 = arith.truncf %60 : vector<256x1024xf32> to vector<256x1024xbf16>
      %c1024_38 = arith.constant 1024 : index
      %c0_39 = arith.constant 0 : index
      %62 = vector.load %arg7[%c1024_38, %c0_39] : memref<2048x1024xbf16, #tpu.memory_space<vmem>>, vector<256x1024xbf16>
      tpu.vector_store %arg7[%c1024_38, %c0_39], %61 {strides = array<i32>} : memref<2048x1024xbf16, #tpu.memory_space<vmem>>, vector<256x1024xbf16>,
      %c1280 = arith.constant 1280 : index
      %c0_40 = arith.constant 0 : index
      %63 = vector.load %arg3[%c1280, %c0_40] : memref<2048x1024xi8, #tpu.memory_space<vmem>>, vector<256x1024xi8>
      %64 = arith.sitofp %63 : vector<256x1024xi8> to vector<256x1024xf32>
      %65 = arith.truncf %64 : vector<256x1024xf32> to vector<256x1024xbf16>
      %c1280_41 = arith.constant 1280 : index
      %c0_42 = arith.constant 0 : index
      %66 = vector.load %arg7[%c1280_41, %c0_42] : memref<2048x1024xbf16, #tpu.memory_space<vmem>>, vector<256x1024xbf16>
      tpu.vector_store %arg7[%c1280_41, %c0_42], %65 {strides = array<i32>} : memref<2048x1024xbf16, #tpu.memory_space<vmem>>, vector<256x1024xbf16>,
      %c1536 = arith.constant 1536 : index
      %c0_43 = arith.constant 0 : index
      %67 = vector.load %arg3[%c1536, %c0_43] : memref<2048x1024xi8, #tpu.memory_space<vmem>>, vector<256x1024xi8>
      %68 = arith.sitofp %67 : vector<256x1024xi8> to vector<256x1024xf32>
      %69 = arith.truncf %68 : vector<256x1024xf32> to vector<256x1024xbf16>
      %c1536_44 = arith.constant 1536 : index
      %c0_45 = arith.constant 0 : index
      %70 = vector.load %arg7[%c1536_44, %c0_45] : memref<2048x1024xbf16, #tpu.memory_space<vmem>>, vector<256x1024xbf16>
      tpu.vector_store %arg7[%c1536_44, %c0_45], %69 {strides = array<i32>} : memref<2048x1024xbf16, #tpu.memory_space<vmem>>, vector<256x1024xbf16>,
      %c1792 = arith.constant 1792 : index
      %c0_46 = arith.constant 0 : index
      %71 = vector.load %arg3[%c1792, %c0_46] : memref<2048x1024xi8, #tpu.memory_space<vmem>>, vector<256x1024xi8>
      %72 = arith.sitofp %71 : vector<256x1024xi8> to vector<256x1024xf32>
      %73 = arith.truncf %72 : vector<256x1024xf32> to vector<256x1024xbf16>
      %c1792_47 = arith.constant 1792 : index
      %c0_48 = arith.constant 0 : index
      %74 = vector.load %arg7[%c1792_47, %c0_48] : memref<2048x1024xbf16, #tpu.memory_space<vmem>>, vector<256x1024xbf16>
      tpu.vector_store %arg7[%c1792_47, %c0_48], %73 {strides = array<i32>} : memref<2048x1024xbf16, #tpu.memory_space<vmem>>, vector<256x1024xbf16>,
      %c0_49 = arith.constant 0 : index
      %c0_50 = arith.constant 0 : index
      %75 = vector.load %arg4[%c0_49, %c0_50] : memref<1024x256xi8, #tpu.memory_space<vmem>>, vector<256x256xi8>
      %76 = arith.sitofp %75 : vector<256x256xi8> to vector<256x256xf32>
      %77 = arith.truncf %76 : vector<256x256xf32> to vector<256x256xbf16>
      %c0_51 = arith.constant 0 : index
      %c0_52 = arith.constant 0 : index
      %78 = vector.load %arg8[%c0_51, %c0_52] : memref<1024x256xbf16, #tpu.memory_space<vmem>>, vector<256x256xbf16>
      tpu.vector_store %arg8[%c0_51, %c0_52], %77 {strides = array<i32>} : memref<1024x256xbf16, #tpu.memory_space<vmem>>, vector<256x256xbf16>,
      %c256_53 = arith.constant 256 : index
      %c0_54 = arith.constant 0 : index
      %79 = vector.load %arg4[%c256_53, %c0_54] : memref<1024x256xi8, #tpu.memory_space<vmem>>, vector<256x256xi8>
      %80 = arith.sitofp %79 : vector<256x256xi8> to vector<256x256xf32>
      %81 = arith.truncf %80 : vector<256x256xf32> to vector<256x256xbf16>
      %c256_55 = arith.constant 256 : index
      %c0_56 = arith.constant 0 : index
      %82 = vector.load %arg8[%c256_55, %c0_56] : memref<1024x256xbf16, #tpu.memory_space<vmem>>, vector<256x256xbf16>
      tpu.vector_store %arg8[%c256_55, %c0_56], %81 {strides = array<i32>} : memref<1024x256xbf16, #tpu.memory_space<vmem>>, vector<256x256xbf16>,
      %c512_57 = arith.constant 512 : index
      %c0_58 = arith.constant 0 : index
      %83 = vector.load %arg4[%c512_57, %c0_58] : memref<1024x256xi8, #tpu.memory_space<vmem>>, vector<256x256xi8>
      %84 = arith.sitofp %83 : vector<256x256xi8> to vector<256x256xf32>
      %85 = arith.truncf %84 : vector<256x256xf32> to vector<256x256xbf16>
      %c512_59 = arith.constant 512 : index
      %c0_60 = arith.constant 0 : index
      %86 = vector.load %arg8[%c512_59, %c0_60] : memref<1024x256xbf16, #tpu.memory_space<vmem>>, vector<256x256xbf16>
      tpu.vector_store %arg8[%c512_59, %c0_60], %85 {strides = array<i32>} : memref<1024x256xbf16, #tpu.memory_space<vmem>>, vector<256x256xbf16>,
      %c768_61 = arith.constant 768 : index
      %c0_62 = arith.constant 0 : index
      %87 = vector.load %arg4[%c768_61, %c0_62] : memref<1024x256xi8, #tpu.memory_space<vmem>>, vector<256x256xi8>
      %88 = arith.sitofp %87 : vector<256x256xi8> to vector<256x256xf32>
      %89 = arith.truncf %88 : vector<256x256xf32> to vector<256x256xbf16>
      %c768_63 = arith.constant 768 : index
      %c0_64 = arith.constant 0 : index
      %90 = vector.load %arg8[%c768_63, %c0_64] : memref<1024x256xbf16, #tpu.memory_space<vmem>>, vector<256x256xbf16>
      tpu.vector_store %arg8[%c768_63, %c0_64], %89 {strides = array<i32>} : memref<1024x256xbf16, #tpu.memory_space<vmem>>, vector<256x256xbf16>,
    } else {
    }
    %c0 = arith.constant 0 : index
    %c0_1 = arith.constant 0 : index
    %3 = vector.load %arg1[%c0, %c0_1] : memref<16x32xf32, #tpu.memory_space<vmem>>, vector<16x32xf32>
    %4 = arith.truncf %3 : vector<16x32xf32> to vector<16x32xbf16>
    %c0_2 = arith.constant 0 : index
    %c0_3 = arith.constant 0 : index
    %5 = vector.load %arg2[%c0_2, %c0_3] : memref<32x2048xbf16, #tpu.memory_space<vmem>>, vector<32x2048xbf16>
    %cst = arith.constant dense<0.000000e+00> : vector<16x2048xf32>
    %6 = tpu.matmul %4, %5, %cst {dimension_numbers = #tpu.dot_dimension_numbers<[1], [0], [0], [1], [0, 0, 1, 1], [], []>} : vector<16x32xbf16>, vector<32x2048xbf16>, vector<16x2048xf32> -> vector<16x2048xf32>
    %c0_4 = arith.constant 0 : index
    %c0_5 = arith.constant 0 : index
    %7 = vector.load %arg5[%c0_4, %c0_5] : memref<1x4992xf32, #tpu.memory_space<vmem>>, vector<1x2048xf32>
    %8 = vector.broadcast %7 : vector<1x2048xf32> to vector<16x2048xf32>
    %9 = arith.addf %6, %8 : vector<16x2048xf32>
    %cst_6 = arith.constant 0.000000e+00 : f32
    %10 = vector.broadcast %cst_6 : f32 to vector<16x2048xf32>
    %11 = arith.maximumf %9, %10 : vector<16x2048xf32>
    %12 = arith.truncf %11 : vector<16x2048xf32> to vector<16x2048xbf16>
    %c0_7 = arith.constant 0 : index
    %c0_8 = arith.constant 0 : index
    %13 = vector.load %arg7[%c0_7, %c0_8] : memref<2048x1024xbf16, #tpu.memory_space<vmem>>, vector<2048x1024xbf16>
    %cst_9 = arith.constant dense<0.000000e+00> : vector<16x1024xf32>
    %14 = tpu.matmul %12, %13, %cst_9 {dimension_numbers = #tpu.dot_dimension_numbers<[1], [0], [0], [1], [0, 0, 1, 1], [], []>} : vector<16x2048xbf16>, vector<2048x1024xbf16>, vector<16x1024xf32> -> vector<16x1024xf32>
    %c0_10 = arith.constant 0 : index
    %c2048 = arith.constant 2048 : index
    %15 = vector.load %arg5[%c0_10, %c2048] : memref<1x4992xf32, #tpu.memory_space<vmem>>, vector<1x1024xf32>
    %16 = vector.broadcast %15 : vector<1x1024xf32> to vector<16x1024xf32>
    %17 = arith.mulf %14, %16 : vector<16x1024xf32>
    %c0_11 = arith.constant 0 : index
    %c3072 = arith.constant 3072 : index
    %18 = vector.load %arg5[%c0_11, %c3072] : memref<1x4992xf32, #tpu.memory_space<vmem>>, vector<1x1024xf32>
    %19 = vector.broadcast %18 : vector<1x1024xf32> to vector<16x1024xf32>
    %20 = arith.addf %17, %19 : vector<16x1024xf32>
    %cst_12 = arith.constant 0.000000e+00 : f32
    %21 = vector.broadcast %cst_12 : f32 to vector<16x1024xf32>
    %22 = arith.maximumf %20, %21 : vector<16x1024xf32>
    %23 = arith.truncf %22 : vector<16x1024xf32> to vector<16x1024xbf16>
    %c0_13 = arith.constant 0 : index
    %c0_14 = arith.constant 0 : index
    %24 = vector.load %arg8[%c0_13, %c0_14] : memref<1024x256xbf16, #tpu.memory_space<vmem>>, vector<1024x256xbf16>
    %cst_15 = arith.constant dense<0.000000e+00> : vector<16x256xf32>
    %25 = tpu.matmul %23, %24, %cst_15 {dimension_numbers = #tpu.dot_dimension_numbers<[1], [0], [0], [1], [0, 0, 1, 1], [], []>} : vector<16x1024xbf16>, vector<1024x256xbf16>, vector<16x256xf32> -> vector<16x256xf32>
    %c0_16 = arith.constant 0 : index
    %c4096 = arith.constant 4096 : index
    %26 = vector.load %arg5[%c0_16, %c4096] : memref<1x4992xf32, #tpu.memory_space<vmem>>, vector<1x256xf32>
    %27 = vector.broadcast %26 : vector<1x256xf32> to vector<16x256xf32>
    %28 = arith.mulf %25, %27 : vector<16x256xf32>
    %c0_17 = arith.constant 0 : index
    %c4352 = arith.constant 4352 : index
    %29 = vector.load %arg5[%c0_17, %c4352] : memref<1x4992xf32, #tpu.memory_space<vmem>>, vector<1x256xf32>
    %30 = vector.broadcast %29 : vector<1x256xf32> to vector<16x256xf32>
    %31 = arith.addf %28, %30 : vector<16x256xf32>
    %cst_18 = arith.constant 0.000000e+00 : f32
    %32 = vector.broadcast %cst_18 : f32 to vector<16x256xf32>
    %33 = arith.maximumf %31, %32 : vector<16x256xf32>
    %c0_19 = arith.constant 0 : index
    %c4608 = arith.constant 4608 : index
    %34 = vector.load %arg5[%c0_19, %c4608] : memref<1x4992xf32, #tpu.memory_space<vmem>>, vector<1x256xf32>
    %35 = vector.broadcast %34 : vector<1x256xf32> to vector<16x256xf32>
    %36 = arith.mulf %33, %35 : vector<16x256xf32>
    %cst_20 = arith.constant dense<0.000000e+00> : vector<16xf32>
    %37 = vector.multi_reduction <add>, %36, %cst_20 [1] : vector<16x256xf32> to vector<16xf32>
    %38 = vector.shape_cast %37 : vector<16xf32> to vector<16x1xf32>
    %c0_21 = arith.constant 0 : index
    %c4864 = arith.constant 4864 : index
    %39 = vector.load %arg5[%c0_21, %c4864] : memref<1x4992xf32, #tpu.memory_space<vmem>>, vector<1x1xf32>
    %40 = vector.broadcast %39 : vector<1x1xf32> to vector<16x1xf32>
    %41 = arith.addf %38, %40 : vector<16x1xf32>
    %c0_22 = arith.constant 0 : index
    %c0_23 = arith.constant 0 : index
    %42 = vector.load %arg6[%c0_22, %c0_23] : memref<16x1xf32, #tpu.memory_space<vmem>>, vector<16x1xf32>
    tpu.vector_store %arg6[%c0_22, %c0_23], %41 {strides = array<i32>} : memref<16x1xf32, #tpu.memory_space<vmem>>, vector<16x1xf32>,
    return
  }
  func.func @transform_0(%arg0: i32) -> (i32, i32) {
    %c0_i32 = arith.constant 0 : i32
    %c0_i32_0 = arith.constant 0 : i32
    return %arg0, %c0_i32 : i32, i32
  }
  func.func @transform_1(%arg0: i32) -> (i32, i32) {
    %c0_i32 = arith.constant 0 : i32
    %c0_i32_0 = arith.constant 0 : i32
    %c0_i32_1 = arith.constant 0 : i32
    return %c0_i32, %c0_i32_0 : i32, i32
  }
  func.func @transform_2(%arg0: i32) -> (i32, i32) {
    %c0_i32 = arith.constant 0 : i32
    %c0_i32_0 = arith.constant 0 : i32
    %c0_i32_1 = arith.constant 0 : i32
    return %c0_i32, %c0_i32_0 : i32, i32
  }
  func.func @transform_3(%arg0: i32) -> (i32, i32) {
    %c0_i32 = arith.constant 0 : i32
    %c0_i32_0 = arith.constant 0 : i32
    %c0_i32_1 = arith.constant 0 : i32
    return %c0_i32, %c0_i32_0 : i32, i32
  }
  func.func @transform_4(%arg0: i32) -> (i32, i32) {
    %c0_i32 = arith.constant 0 : i32
    %c0_i32_0 = arith.constant 0 : i32
    %c0_i32_1 = arith.constant 0 : i32
    return %c0_i32, %c0_i32_0 : i32, i32
  }
  func.func @transform_5(%arg0: i32) -> (i32, i32) {
    %c0_i32 = arith.constant 0 : i32
    %c0_i32_0 = arith.constant 0 : i32
    return %arg0, %c0_i32 : i32, i32
  }
}

</mosaic_0001>

<bundles_post_ra>
// kernel: tpu_custom_call.1
= control target key start
LH: loop header
LB: loop body
LE: loop exit
PB: predicated region body
PF: predicated region fallthrough
CT: control target
= control target key end

     0   :  { %10 = vsyncpa [#allocation5], 0  ;;  %s9085_s0 = inlined_call_operand.hbm [shape: f32[32,32], index: 0, kind: input, shape index: {}]   ;;  %s9086_s1 = inlined_call_operand.hbm [shape: bf16[32,2048], index: 1, kind: input, shape index: {}]   ;;  %s9087_s2 = inlined_call_operand.hbm [shape: s8[2048,1024], index: 2, kind: input, shape index: {}]   ;;  %s9088_s3 = inlined_call_operand.hbm [shape: s8[1024,256], index: 3, kind: input, shape index: {}]   ;;  %s9089_s4 = inlined_call_operand.hbm [shape: f32[1,4992], index: 4, kind: input, shape index: {}]   ;;  %s9090_s5 = inlined_call_operand.vmem [shape: f32[32,1], index: 5, kind: output, shape index: {}]  }
   0x1   :  { %12 = vsyncpa [#allocation5 + $0x1], 0 }
   0x2   :  { %13 = vsyncpa [#allocation7], 0 }
   0x3   :  { %14 = vsyncpa [#allocation10], 0  ;;  %s7385_s18 = smov 0   ;;  %s7387_s19 = smov 0  }
   0x4   :  { %s7389_s20 = smov 0   ;;  %s7391_s21 = smov 0  }
   0x5 LB: > { %s7404_s22 = sadd.s32 4294967295, %s7341_s21   ;;  %p40_p0 = scmp.ne.s32.totalorder %s7333_s19, %s7329_s18  ;;  %s7341_s21 = sphi %s7391_s21, %s9109_s21   ;;  %s7337_s20 = sphi %s7389_s20, %s9108_s20   ;;  %s7333_s19 = sphi %s7387_s19, %s9107_s19   ;;  %s7329_s18 = sphi %s7385_s18, %s9106_s18  }
   0x6   : > { %p9091_p1 = scmp.eq.s32.totalorder %s7404_s22, 0  ;;  %p6880_p2 = scmp.ge.s32.totalorder %s7341_s21, 1 }
   0x7   : > { %p161_p3 = scmp.lt.s32.totalorder %s7341_s21, 3  ;;  %s7343_s25 = smov [#allocation6]  }
   0x8   : > { %p7413_p5 = por %p9091_p1, %p40_p0  ;;  %s173_s26 = sshll.u32 %s7343_s25, 4  ;;  %s174_s26 = int_to_ptr.vmem [resolvable:$true] %s173_s26 }
   0x9   : > { %p7417_p6 = pnand %p6880_p2, %p161_p3  ;;  %s7344_s28 = smov [#allocation9]  }
   0xa   : > { %s9094_s23 = scalar_select %p7413_p5, 1, 0 }
   0xb   : > { %s9095_s24 = scalar_select %p7417_p6, 1, 0 }
   0xc   : > { %p7084_p7 = pneg %p7417_p6  ;;  %s199_s29 = sshll.u32 %s7344_s28, 4  ;;  %s7429_s29 = int_to_ptr.vmem [resolvable:$true] %s199_s29 }
   0xd   : > { %s7157_s7 = scalar_lea.hbm %s9086_s1, 4096 }
   0xe   : > { %p7425_p8 = pnand %p7084_p7, %p9091_p1  ;;  %p7158_p9 = scmp.ne.s32.totalorder %s9086_s1, %s7157_s7 }
   0xf   : > { %p7164_p13 = scmp.lt.u32.totalorder %s7157_s7, %s9086_s1 }
  0x10   : > { %p7439_p10 = pneg %p7425_p8 }
  0x12   : > { %p7160_p11 = pnand %p7439_p10, %p7158_p9 }
  0x14   : > { %p7161_p12 = pneg %p7160_p11 }
  0x16   : > { %p7166_p0 = pnand %p7164_p13, %p7161_p12 }
  0x18   : > { %7169 = shalt.err (!%p7166_p0)
}
  0x19   : > { %s7170_s13 = scalar_lea.vmem %s174_s26, 4096  ;;  %p7178_p4 = scmp.lt.s32.totalorder %s174_s26, %s174_s26 }
  0x1a   : > { %p7171_p2 = scmp.ne.s32.totalorder %s174_s26, %s7170_s13  ;;  %p7179_p1 = scmp.lt.s32.totalorder %s7170_s13, %s7170_s13 }
  0x1c   : > { %p7173_p3 = pnand %p7171_p2, %p7439_p10  ;;  %p7180_p5 = por %p7179_p1, %p7178_p4 }
  0x1e   : > { %p7174_p7 = pneg %p7173_p3 }
  0x20   : > { %p7181_p6 = pnand %p7180_p5, %p7174_p7 }
  0x22   : > { %7184 = shalt.err (!%p7181_p6)
}
  0x23   : > { %s7345_s14 = smov 1024   ;;  %s7346_s15 = smov 64  }
  0x24   : > { %7087 = dma.hbm_to_vmem [thread:$0]  (!%p7425_p8), %s9086_s1, 4096, %s174_s26, [#allocation7], %s7345_s14, %s7345_s14, %s7346_s15  }
  0x25   : > { %s7185_s28 = scalar_lea.hbm %s9088_s3, 8192 }
  0x26   : > { %p7186_p1 = scmp.ne.s32.totalorder %s9088_s3, %s7185_s28  ;;  %p7192_p6 = scmp.lt.u32.totalorder %s7185_s28, %s9088_s3 }
  0x28   : > { %p7188_p4 = pnand %p7186_p1, %p7439_p10 }
  0x2a   : > { %p7189_p5 = pneg %p7188_p4 }
  0x2c   : > { %p7194_p9 = pnand %p7192_p6, %p7189_p5 }
  0x2e   : > { %7197 = shalt.err (!%p7194_p9)
}
  0x2f   : > { %s7198_s26 = scalar_lea.vmem %s7429_s29, 8192  ;;  %p7206_p0 = scmp.lt.s32.totalorder %s7429_s29, %s7429_s29 }
  0x30   : > { %p7199_p11 = scmp.ne.s32.totalorder %s7429_s29, %s7198_s26  ;;  %p7207_p2 = scmp.lt.s32.totalorder %s7198_s26, %s7198_s26 }
  0x32   : > { %p7201_p12 = pnand %p7199_p11, %p7439_p10  ;;  %p7208_p3 = por %p7207_p2, %p7206_p0 }
  0x34   : > { %p7202_p13 = pneg %p7201_p12 }
  0x36   : > { %p7209_p7 = pnand %p7208_p3, %p7202_p13 }
  0x38   : > { %7212 = shalt.err (!%p7209_p7)
}
  0x39   : > { %s7347_s9 = smov 256   ;;  %s7348_s11 = smov 16  }
  0x3a   : > { %7093 = dma.hbm_to_vmem [thread:$0]  (!%p7425_p8), %s9088_s3, 8192, %s7429_s29, [#allocation10], %s7347_s9, %s7347_s9, %s7348_s11  }
  0x3b   : > { %s7349_s16 = smov [#allocation8]   ;;  %s7350_s18 = smov [#allocation11]  }
  0x3c   : > { %s186_s17 = sshll.u32 %s7349_s16, 4  ;;  %s213_s25 = sshll.u32 %s7350_s18, 4  ;;  %s187_s17 = int_to_ptr.vmem [resolvable:$true] %s186_s17  ;;  %s7481_s25 = int_to_ptr.vmem [resolvable:$true] %s213_s25 }
  0x3d   : > { %s7213_s6 = scalar_lea.hbm %s9087_s2, 65536 }
  0x3e   : > { %p7214_p1 = scmp.ne.s32.totalorder %s9087_s2, %s7213_s6  ;;  %p7220_p6 = scmp.lt.u32.totalorder %s7213_s6, %s9087_s2 }
  0x40   : > { %p7216_p4 = pnand %p7214_p1, %p7439_p10 }
  0x42   : > { %p7217_p5 = pneg %p7216_p4 }
  0x44   : > { %p7222_p9 = pnand %p7220_p6, %p7217_p5 }
  0x46   : > { %7225 = shalt.err (!%p7222_p9)
}
  0x47   : > { %s7226_s9 = scalar_lea.vmem %s187_s17, 65536  ;;  %p7234_p0 = scmp.lt.s32.totalorder %s187_s17, %s187_s17 }
  0x48   : > { %p7227_p11 = scmp.ne.s32.totalorder %s187_s17, %s7226_s9  ;;  %p7235_p2 = scmp.lt.s32.totalorder %s7226_s9, %s7226_s9 }
  0x4a   : > { %p7229_p12 = pnand %p7227_p11, %p7439_p10  ;;  %p7236_p3 = por %p7235_p2, %p7234_p0 }
  0x4c   : > { %p7230_p13 = pneg %p7229_p12 }
  0x4e   : > { %p7237_p7 = pnand %p7236_p3, %p7230_p13 }
  0x50   : > { %7240 = shalt.err (!%p7237_p7)
}
  0x51   : > { %7090 = dma.hbm_to_vmem [thread:$0]  (!%p7425_p8), %s9087_s2, 65536, %s187_s17, [#allocation7], %s7345_s14, %s7345_s14, %s7346_s15  }
  0x52   : > { %s7241_s18 = scalar_lea.hbm %s9089_s4, 624 }
  0x53   : > { %p7242_p1 = scmp.ne.s32.totalorder %s9089_s4, %s7241_s18  ;;  %p7248_p6 = scmp.lt.u32.totalorder %s7241_s18, %s9089_s4 }
  0x55   : > { %p7244_p4 = pnand %p7242_p1, %p7439_p10 }
  0x57   : > { %p7245_p5 = pneg %p7244_p4 }
  0x59   : > { %p7250_p9 = pnand %p7248_p6, %p7245_p5 }
  0x5b   : > { %7253 = shalt.err (!%p7250_p9)
}
  0x5c   : > { %s7254_s14 = scalar_lea.vmem %s7481_s25, 624  ;;  %s7261_s15 = scalar_lea.vmem %s7481_s25, 640 }
  0x5d   : > { %p7255_p11 = scmp.ne.s32.totalorder %s7481_s25, %s7254_s14  ;;  %p7262_p0 = scmp.lt.s32.totalorder %s7481_s25, %s7481_s25 }
  0x5e   : > { %p7263_p2 = scmp.lt.s32.totalorder %s7261_s15, %s7254_s14 }
  0x5f   : > { %p7257_p12 = pnand %p7255_p11, %p7439_p10 }
  0x60   : > { %p7264_p3 = por %p7263_p2, %p7262_p0 }
  0x61   : > { %p7258_p13 = pneg %p7257_p12 }
  0x63   : > { %p7265_p7 = pnand %p7264_p3, %p7258_p13 }
  0x65   : > { %7268 = shalt.err (!%p7265_p7)
}
  0x66   : > { %7096 = dma.hbm_to_vmem [thread:$0]  (!%p7425_p8), %s9089_s4, 624, %s7481_s25, [#allocation10]  }
  0x67   : > { %s7529_s10 = sadd.s32 1, %s7341_s21   ;;  %s27_s27 = sadd.s32 1, %s7337_s20 }
  0x68   : > { %s24_s26 = ssub.s32 %s7341_s21, %s7529_s10  ;;  %p34_p1 = scmp.ne.s32.totalorder %s7337_s20, %s7333_s19 }
  0x69   : > { %p25_p10 = scmp.eq.s32.totalorder %s24_s26, 0  ;;  %p35_p4 = scmp.eq.s32.totalorder %s7341_s21, 0 }
  0x6a   : > { %p7105_p6 = scmp.lt.s32.totalorder %s7341_s21, 2  ;;  %s224_s9 = sand.u32 1, %s7337_s20  }
  0x6b   : > { %s7538_s29 = scalar_select %p25_p10, %s7337_s20, %s27_s27  }
  0x6c   : > { %p36_p5 = por %p35_p4, %p34_p1  ;;  %s6941_s11 = sshll.u32 %s7341_s21, 8 }
  0x6d   : > { %s6886_s12 = sshll.u32 %s224_s9, 4  ;;  %s7546_s18 = scalar_lea.hbm %s9085_s0, %s6941_s11 }
  0x6e   : > { %s228_s25 = scalar_lea.vmem [#allocation4], %s6886_s12  ;;  %p7548_p8 = pnand %p7105_p6, %p36_p5 }
  0x6f   : > { %s235_s28 = sshll.u32 %s228_s25, 4  ;;  %s7554_s21 = scalar_lea.sflag [#allocation5], %s224_s9  ;;  %s7552_s28 = int_to_ptr.vmem [resolvable:$true] %s235_s28 }
  0x70   : > { %s7269_s6 = scalar_lea.hbm %s7546_s18, 256  ;;  %p7271_p11 = pneg %p7548_p8 }
  0x71   : > { %p7270_p9 = scmp.ne.s32.totalorder %s7546_s18, %s7269_s6  ;;  %s7274_s15 = scalar_lea.hbm %s9085_s0, 512 }
  0x72   : > { %p7275_p0 = scmp.lt.u32.totalorder %s7546_s18, %s9085_s0  ;;  %p7276_p2 = scmp.lt.u32.totalorder %s7274_s15, %s7269_s6 }
  0x73   : > { %p7272_p12 = pnand %p7271_p11, %p7270_p9  ;;  %p7278_p7 = scmp.lt.u32.totalorder %s7269_s6, %s7546_s18 }
  0x74   : > { %p7277_p3 = por %p7276_p2, %p7275_p0 }
  0x75   : > { %p7273_p13 = pneg %p7272_p12 }
  0x76   : > { %p7279_p10 = por %p7278_p7, %p7277_p3 }
  0x78   : > { %p7280_p1 = pnand %p7279_p10, %p7273_p13 }
  0x7a   : > { %7283 = shalt.err (!%p7280_p1)
}
  0x7b   : > { %s7284_s26 = scalar_lea.vmem %s7552_s28, 256  ;;  %s7351_s27 = smov [#allocation4]  }
  0x7c   : > { %p7285_p4 = scmp.ne.s32.totalorder %s7552_s28, %s7284_s26  ;;  %s7289_s9 = sshll.u32 %s7351_s27, 4  ;;  %s7290_s9 = int_to_ptr.vmem [resolvable:$false] %s7289_s9 }
  0x7d   : > { %s7291_s11 = scalar_lea.vmem %s7290_s9, 512  ;;  %p7292_p9 = scmp.lt.s32.totalorder %s7552_s28, %s7290_s9 }
  0x7e   : > { %p7287_p5 = pnand %p7285_p4, %p7271_p11  ;;  %p7293_p12 = scmp.lt.s32.totalorder %s7291_s11, %s7284_s26 }
  0x80   : > { %p7288_p6 = pneg %p7287_p5  ;;  %p7294_p0 = por %p7293_p12, %p7292_p9 }
  0x82   : > { %p7295_p2 = pnand %p7294_p0, %p7288_p6 }
  0x84   : > { %7298 = shalt.err (!%p7295_p2)
}
  0x85   : > { %s7352_s12 = smov 128   ;;  %s7353_s13 = smov 8  }
  0x86   : > { %7100 = dma.hbm_to_vmem [thread:$0]  (!%p7548_p8), %s7546_s18, 256, %s7552_s28, %s7554_s21, %s7352_s12, %s7352_s12, %s7353_s13  }
  0x87   : > { %p9099_p11 = scmp.ne.s32.totalorder %s9095_s24, 0 }
  0x88   : > { %s249_s16 = sand.u32 (!%p9099_p11), 1, %s7333_s19   ;;  %p9100_p13 = scmp.ne.s32.totalorder (!%p9099_p11), %s9094_s23, 0 }
  0x89   : > { %247 = sbr.rel (%p9099_p11) target bundleno = 2650 (0xa5a), region = 40  ;;  %s7585_s25 = sshll.u32 (!%p9099_p11), %s249_s16, 4 }
  0x8a   : > { %s250_s6 = scalar_lea.sflag (!%p9099_p11), [#allocation5], %s249_s16  ;;  %s253_s7 = scalar_lea.vmem (!%p9099_p11), [#allocation4], %s7585_s25 }
  0x90   : > { %7316 = dma.done.wait (%p9100_p13), %s250_s6, 256  }
  0x91   : > { %7318 = vsyncadd (%p9100_p13), %s250_s6, 4294967040  ;;  %p9101_p3 = scmp.eq.s32.totalorder %s7404_s22, 0 }
  0x93   : > { %7320 = dma.done.wait (%p9101_p3), [#allocation7], 69632   ;;  %p9102_p8 = pmov %p9101_p3 }
  0x94   : > { %p9103_p7 = pmov %p9101_p3 }
  0x95   : > { %7322 = vsyncadd (%p9102_p8), [#allocation7], 4294897664 }
  0x96   : > { %7324 = dma.done.wait (%p9103_p7), [#allocation10], 8816   ;;  %p9104_p10 = pmov %p9101_p3 }
  0x97   : > { %s6895_s24 = sshll.u32 %s7404_s22, 1  ;;  %p9105_p4 = scmp.ne.s32.totalorder %s7404_s22, 0 }
  0x98   : > { %7326 = vsyncadd (%p9104_p10), [#allocation10], 4294958480  ;;  %p298_p1 = scmp.lt.s32.totalorder %s6895_s24, 3  ;;  %v308_v0 = vld [vmem:[#allocation8] sm:$0xff] (!%p9105_p4)  ;;  %v309_v1 = vld [vmem:[#allocation8 + $0x8] sm:$0xff] (!%p9105_p4) }
  0x99   : > { %307 = sbr.rel (%p9105_p4) target bundleno = 731 (0x2db), region = 64  ;;  %v310_v2 = vld [vmem:[#allocation8 + $0x10] sm:$0xff] (!%p9105_p4)  ;;  %v372_v3 = vunpack.c.l.s8.bf16 (!%p9105_p4), %v308_v0  ;;  %v373_v4 = vunpack.c.l.s8.bf16 (!%p9105_p4), %v309_v1  ;;  %v311_v6 = vld [vmem:[#allocation8 + $0x18] sm:$0xff] (!%p9105_p4)  ;;  %v312_v7 = vld [vmem:[#allocation8 + $0x20] sm:$0xff] (!%p9105_p4)  ;;  %v380_v9 = vunpack.c.h.s8.bf16 (!%p9105_p4), %v308_v0  ;;  %v381_v15 = vunpack.c.h.s8.bf16 (!%p9105_p4), %v309_v1 }
  0x9a   : > { %s9111_s24 = smov (!%p298_p1, %s6895_s24), 3  ;;  %v374_v5 = vunpack.c.l.s8.bf16 (!%p9105_p4), %v310_v2  ;;  %v313_v8 = vld [vmem:[#allocation8 + $0x28] sm:$0xff] (!%p9105_p4)  ;;  %v375_v10 = vunpack.c.l.s8.bf16 (!%p9105_p4), %v311_v6  ;;  %v376_v11 = vunpack.c.l.s8.bf16 (!%p9105_p4), %v312_v7  ;;  %v314_v13 = vld [vmem:[#allocation8 + $0x30] sm:$0xff] (!%p9105_p4)  ;;  %v315_v14 = vld [vmem:[#allocation8 + $0x38] sm:$0xff] (!%p9105_p4)  ;;  %v382_v19 = vunpack.c.h.s8.bf16 (!%p9105_p4), %v310_v2 }
  0x9b   : > { %s6896_s18 = sshll.u32 %s9111_s24, 3  ;;  %v377_v12 = vunpack.c.l.s8.bf16 (!%p9105_p4), %v313_v8  ;;  %v7608_v16 = vld [vmem:[#allocation8 + $0x40] sm:$0xff] (!%p9105_p4)  ;;  %500 = vst [vmem:[#allocation2] sm:$0xff] (!%p9105_p4), %v372_v3  ;;  %501 = vst [vmem:[#allocation2 + $0x8] sm:$0xff] (!%p9105_p4), %v373_v4  ;;  %v378_v17 = vunpack.c.l.s8.bf16 (!%p9105_p4), %v314_v13  ;;  %v379_v18 = vunpack.c.l.s8.bf16 (!%p9105_p4), %v315_v14  ;;  %v383_v20 = vunpack.c.h.s8.bf16 (!%p9105_p4), %v311_v6  ;;  %v317_v21 = vld [vmem:[#allocation8 + $0x48] sm:$0xff] (!%p9105_p4) }
  0x9c   : > { %s7604_s30 = scalar_lea.vmem %s9090_s5, %s6896_s18  ;;  %502 = vst [vmem:[#allocation2 + $0x10] sm:$0xff] (!%p9105_p4), %v374_v5  ;;  %508 = vst [vmem:[#allocation2 + $0x40] sm:$0xff] (!%p9105_p4), %v380_v9  ;;  %v318_v22 = vld [vmem:[#allocation8 + $0x50] sm:$0xff] (!%p9105_p4)  ;;  %v319_v23 = vld [vmem:[#allocation8 + $0x58] sm:$0xff] (!%p9105_p4)  ;;  %v384_v24 = vunpack.c.h.s8.bf16 (!%p9105_p4), %v312_v7  ;;  %v385_v25 = vunpack.c.h.s8.bf16 (!%p9105_p4), %v313_v8  ;;  %v386_v26 = vunpack.c.h.s8.bf16 (!%p9105_p4), %v314_v13  ;;  %v387_v27 = vunpack.c.h.s8.bf16 (!%p9105_p4), %v315_v14 }
  0x9d   : > { %503 = vst [vmem:[#allocation2 + $0x18] sm:$0xff] (!%p9105_p4), %v375_v10  ;;  %504 = vst [vmem:[#allocation2 + $0x20] sm:$0xff] (!%p9105_p4), %v376_v11  ;;  %v320_v28 = vld [vmem:[#allocation8 + $0x60] sm:$0xff] (!%p9105_p4)  ;;  %v321_v29 = vld [vmem:[#allocation8 + $0x68] sm:$0xff] (!%p9105_p4)  ;;  %v388_v31 = vunpack.c.l.s8.bf16 (!%p9105_p4), %v7608_v16  ;;  %v389_v32 = vunpack.c.l.s8.bf16 (!%p9105_p4), %v317_v21  ;;  %v390_v33 = vunpack.c.l.s8.bf16 (!%p9105_p4), %v318_v22  ;;  %v391_v34 = vunpack.c.l.s8.bf16 (!%p9105_p4), %v319_v23 }
  0x9e   : > { %505 = vst [vmem:[#allocation2 + $0x28] sm:$0xff] (!%p9105_p4), %v377_v12  ;;  %509 = vst [vmem:[#allocation2 + $0x48] sm:$0xff] (!%p9105_p4), %v381_v15  ;;  %v322_v30 = vld [vmem:[#allocation8 + $0x70] sm:$0xff] (!%p9105_p4)  ;;  %v323_v35 = vld [vmem:[#allocation8 + $0x78] sm:$0xff] (!%p9105_p4)  ;;  %v392_v38 = vunpack.c.l.s8.bf16 (!%p9105_p4), %v320_v28  ;;  %v393_v39 = vunpack.c.l.s8.bf16 (!%p9105_p4), %v321_v29  ;;  %v396_v45 = vunpack.c.h.s8.bf16 (!%p9105_p4), %v7608_v16  ;;  %v397_v46 = vunpack.c.h.s8.bf16 (!%p9105_p4), %v317_v21 }
  0x9f   : > { %506 = vst [vmem:[#allocation2 + $0x30] sm:$0xff] (!%p9105_p4), %v378_v17  ;;  %507 = vst [vmem:[#allocation2 + $0x38] sm:$0xff] (!%p9105_p4), %v379_v18  ;;  %v7611_v36 = vld [vmem:[#allocation8 + $0x80] sm:$0xff] (!%p9105_p4)  ;;  %v7613_v37 = vld [vmem:[#allocation8 + $0x88] sm:$0xff] (!%p9105_p4)  ;;  %v394_v40 = vunpack.c.l.s8.bf16 (!%p9105_p4), %v322_v30  ;;  %v395_v41 = vunpack.c.l.s8.bf16 (!%p9105_p4), %v323_v35  ;;  %v398_v47 = vunpack.c.h.s8.bf16 (!%p9105_p4), %v318_v22  ;;  %v399_v48 = vunpack.c.h.s8.bf16 (!%p9105_p4), %v319_v23 }
  0xa0   : > { %510 = vst [vmem:[#allocation2 + $0x50] sm:$0xff] %v382_v19  ;;  %511 = vst [vmem:[#allocation2 + $0x58] sm:$0xff] %v383_v20  ;;  %v7615_v42 = vld [vmem:[#allocation8 + $0x90] sm:$0xff]  ;;  %v7617_v43 = vld [vmem:[#allocation8 + $0x98] sm:$0xff]  ;;  %v400_v52 = vunpack.c.h.s8.bf16 %v320_v28  ;;  %v401_v53 = vunpack.c.h.s8.bf16 %v321_v29  ;;  %v402_v54 = vunpack.c.h.s8.bf16 %v322_v30  ;;  %v403_v55 = vunpack.c.h.s8.bf16 %v323_v35 }
  0xa1   : > { %512 = vst [vmem:[#allocation2 + $0x60] sm:$0xff] %v384_v24  ;;  %513 = vst [vmem:[#allocation2 + $0x68] sm:$0xff] %v385_v25  ;;  %v7619_v44 = vld [vmem:[#allocation8 + $0xa0] sm:$0xff]  ;;  %v329_v49 = vld [vmem:[#allocation8 + $0xa8] sm:$0xff]  ;;  %v404_v56 = vunpack.c.l.s8.bf16 %v7611_v36  ;;  %v405_v57 = vunpack.c.l.s8.bf16 %v7613_v37  ;;  %v406_v58 = vunpack.c.l.s8.bf16 %v7615_v42  ;;  %v407_v59 = vunpack.c.l.s8.bf16 %v7617_v43 }
  0xa2   : > { %514 = vst [vmem:[#allocation2 + $0x70] sm:$0xff] %v386_v26  ;;  %515 = vst [vmem:[#allocation2 + $0x78] sm:$0xff] %v387_v27  ;;  %v330_v50 = vld [vmem:[#allocation8 + $0xb0] sm:$0xff]  ;;  %v331_v51 = vld [vmem:[#allocation8 + $0xb8] sm:$0xff]  ;;  %v408_v62 = vunpack.c.l.s8.bf16 %v7619_v44  ;;  %v409_v63 = vunpack.c.l.s8.bf16 %v329_v49  ;;  %v412_v5 = vunpack.c.h.s8.bf16 %v7611_v36  ;;  %v413_v6 = vunpack.c.h.s8.bf16 %v7613_v37 }
  0xa3   : > { %516 = vst [vmem:[#allocation2 + $0x80] sm:$0xff] %v388_v31  ;;  %517 = vst [vmem:[#allocation2 + $0x88] sm:$0xff] %v389_v32  ;;  %v7626_v60 = vld [vmem:[#allocation8 + $0xc0] sm:$0xff]  ;;  %v7628_v61 = vld [vmem:[#allocation8 + $0xc8] sm:$0xff]  ;;  %v410_v0 = vunpack.c.l.s8.bf16 %v330_v50  ;;  %v411_v1 = vunpack.c.l.s8.bf16 %v331_v51  ;;  %v414_v7 = vunpack.c.h.s8.bf16 %v7615_v42  ;;  %v415_v8 = vunpack.c.h.s8.bf16 %v7617_v43 }
  0xa4   : > { %518 = vst [vmem:[#allocation2 + $0x90] sm:$0xff] %v390_v33  ;;  %519 = vst [vmem:[#allocation2 + $0x98] sm:$0xff] %v391_v34  ;;  %v7631_v2 = vld [vmem:[#allocation8 + $0xd0] sm:$0xff]  ;;  %v7633_v3 = vld [vmem:[#allocation8 + $0xd8] sm:$0xff]  ;;  %v416_v12 = vunpack.c.h.s8.bf16 %v7619_v44  ;;  %v417_v13 = vunpack.c.h.s8.bf16 %v329_v49  ;;  %v418_v14 = vunpack.c.h.s8.bf16 %v330_v50  ;;  %v419_v15 = vunpack.c.h.s8.bf16 %v331_v51 }
  0xa5   : > { %520 = vst [vmem:[#allocation2 + $0xa0] sm:$0xff] %v392_v38  ;;  %521 = vst [vmem:[#allocation2 + $0xa8] sm:$0xff] %v393_v39  ;;  %v7635_v4 = vld [vmem:[#allocation8 + $0xe0] sm:$0xff]  ;;  %v337_v9 = vld [vmem:[#allocation8 + $0xe8] sm:$0xff]  ;;  %v420_v16 = vunpack.c.l.s8.bf16 %v7626_v60  ;;  %v421_v17 = vunpack.c.l.s8.bf16 %v7628_v61  ;;  %v422_v18 = vunpack.c.l.s8.bf16 %v7631_v2  ;;  %v423_v19 = vunpack.c.l.s8.bf16 %v7633_v3 }
  0xa6   : > { %522 = vst [vmem:[#allocation2 + $0xb0] sm:$0xff] %v394_v40  ;;  %523 = vst [vmem:[#allocation2 + $0xb8] sm:$0xff] %v395_v41  ;;  %v338_v10 = vld [vmem:[#allocation8 + $0xf0] sm:$0xff]  ;;  %v339_v11 = vld [vmem:[#allocation8 + $0xf8] sm:$0xff]  ;;  %v424_v22 = vunpack.c.l.s8.bf16 %v7635_v4  ;;  %v425_v23 = vunpack.c.l.s8.bf16 %v337_v9  ;;  %v428_v29 = vunpack.c.h.s8.bf16 %v7626_v60  ;;  %v429_v30 = vunpack.c.h.s8.bf16 %v7628_v61 }
  0xa7   : > { %524 = vst [vmem:[#allocation2 + $0xc0] sm:$0xff] %v396_v45  ;;  %525 = vst [vmem:[#allocation2 + $0xc8] sm:$0xff] %v397_v46  ;;  %v7646_v20 = vld [vmem:[#allocation8 + $0x100] sm:$0xff]  ;;  %v7648_v21 = vld [vmem:[#allocation8 + $0x108] sm:$0xff]  ;;  %v426_v24 = vunpack.c.l.s8.bf16 %v338_v10  ;;  %v427_v25 = vunpack.c.l.s8.bf16 %v339_v11  ;;  %v430_v31 = vunpack.c.h.s8.bf16 %v7631_v2  ;;  %v431_v32 = vunpack.c.h.s8.bf16 %v7633_v3 }
  0xa8   : > { %526 = vst [vmem:[#allocation2 + $0xd0] sm:$0xff] %v398_v47  ;;  %527 = vst [vmem:[#allocation2 + $0xd8] sm:$0xff] %v399_v48  ;;  %v7651_v26 = vld [vmem:[#allocation8 + $0x110] sm:$0xff]  ;;  %v7653_v27 = vld [vmem:[#allocation8 + $0x118] sm:$0xff]  ;;  %v432_v36 = vunpack.c.h.s8.bf16 %v7635_v4  ;;  %v433_v37 = vunpack.c.h.s8.bf16 %v337_v9  ;;  %v434_v38 = vunpack.c.h.s8.bf16 %v338_v10  ;;  %v435_v39 = vunpack.c.h.s8.bf16 %v339_v11 }
  0xa9   : > { %528 = vst [vmem:[#allocation2 + $0xe0] sm:$0xff] %v400_v52  ;;  %529 = vst [vmem:[#allocation2 + $0xe8] sm:$0xff] %v401_v53  ;;  %v7655_v28 = vld [vmem:[#allocation8 + $0x120] sm:$0xff]  ;;  %v345_v33 = vld [vmem:[#allocation8 + $0x128] sm:$0xff]  ;;  %v436_v40 = vunpack.c.l.s8.bf16 %v7646_v20  ;;  %v437_v41 = vunpack.c.l.s8.bf16 %v7648_v21  ;;  %v438_v42 = vunpack.c.l.s8.bf16 %v7651_v26  ;;  %v439_v43 = vunpack.c.l.s8.bf16 %v7653_v27 }
  0xaa   : > { %530 = vst [vmem:[#allocation2 + $0xf0] sm:$0xff] %v402_v54  ;;  %531 = vst [vmem:[#allocation2 + $0xf8] sm:$0xff] %v403_v55  ;;  %v346_v34 = vld [vmem:[#allocation8 + $0x130] sm:$0xff]  ;;  %v347_v35 = vld [vmem:[#allocation8 + $0x138] sm:$0xff]  ;;  %v440_v46 = vunpack.c.l.s8.bf16 %v7655_v28  ;;  %v441_v47 = vunpack.c.l.s8.bf16 %v345_v33  ;;  %v444_v53 = vunpack.c.h.s8.bf16 %v7646_v20  ;;  %v445_v54 = vunpack.c.h.s8.bf16 %v7648_v21 }
  0xab   : > { %532 = vst [vmem:[#allocation2 + $0x100] sm:$0xff] %v404_v56  ;;  %533 = vst [vmem:[#allocation2 + $0x108] sm:$0xff] %v405_v57  ;;  %v7666_v44 = vld [vmem:[#allocation8 + $0x140] sm:$0xff]  ;;  %v7668_v45 = vld [vmem:[#allocation8 + $0x148] sm:$0xff]  ;;  %v442_v48 = vunpack.c.l.s8.bf16 %v346_v34  ;;  %v443_v49 = vunpack.c.l.s8.bf16 %v347_v35  ;;  %v446_v55 = vunpack.c.h.s8.bf16 %v7651_v26  ;;  %v447_v56 = vunpack.c.h.s8.bf16 %v7653_v27 }
  0xac   : > { %534 = vst [vmem:[#allocation2 + $0x110] sm:$0xff] %v406_v58  ;;  %535 = vst [vmem:[#allocation2 + $0x118] sm:$0xff] %v407_v59  ;;  %v7671_v50 = vld [vmem:[#allocation8 + $0x150] sm:$0xff]  ;;  %v7673_v51 = vld [vmem:[#allocation8 + $0x158] sm:$0xff]  ;;  %v448_v60 = vunpack.c.h.s8.bf16 %v7655_v28  ;;  %v449_v61 = vunpack.c.h.s8.bf16 %v345_v33 }
  0xad   : > { %536 = vst [vmem:[#allocation2 + $0x120] sm:$0xff] %v408_v62  ;;  %537 = vst [vmem:[#allocation2 + $0x128] sm:$0xff] %v409_v63  ;;  %v7675_v52 = vld [vmem:[#allocation8 + $0x160] sm:$0xff]  ;;  %v353_v57 = vld [vmem:[#allocation8 + $0x168] sm:$0xff]  ;;  %v450_v62 = vunpack.c.h.s8.bf16 %v346_v34  ;;  %v451_v63 = vunpack.c.h.s8.bf16 %v347_v35  ;;  %v454_v2 = vunpack.c.l.s8.bf16 %v7671_v50  ;;  %v455_v3 = vunpack.c.l.s8.bf16 %v7673_v51 }
  0xae   : > { %538 = vst [vmem:[#allocation2 + $0x130] sm:$0xff] %v410_v0  ;;  %539 = vst [vmem:[#allocation2 + $0x138] sm:$0xff] %v411_v1  ;;  %v354_v58 = vld [vmem:[#allocation8 + $0x170] sm:$0xff]  ;;  %v355_v59 = vld [vmem:[#allocation8 + $0x178] sm:$0xff]  ;;  %v452_v0 = vunpack.c.l.s8.bf16 %v7666_v44  ;;  %v453_v1 = vunpack.c.l.s8.bf16 %v7668_v45  ;;  %v464_v20 = vunpack.c.h.s8.bf16 %v7675_v52  ;;  %v465_v21 = vunpack.c.h.s8.bf16 %v353_v57 }
  0xaf   : > { %540 = vst [vmem:[#allocation2 + $0x140] sm:$0xff] %v412_v5  ;;  %541 = vst [vmem:[#allocation2 + $0x148] sm:$0xff] %v413_v6  ;;  %v7686_v4 = vld [vmem:[#allocation8 + $0x180] sm:$0xff]  ;;  %v7688_v5 = vld [vmem:[#allocation8 + $0x188] sm:$0xff]  ;;  %v456_v6 = vunpack.c.l.s8.bf16 %v7675_v52  ;;  %v459_v9 = vunpack.c.l.s8.bf16 %v355_v59 }
  0xb0   : > { %542 = vst [vmem:[#allocation2 + $0x150] sm:$0xff] %v414_v7  ;;  %543 = vst [vmem:[#allocation2 + $0x158] sm:$0xff] %v415_v8  ;;  %v457_v7 = vunpack.c.l.s8.bf16 %v353_v57  ;;  %v458_v8 = vunpack.c.l.s8.bf16 %v354_v58  ;;  %v7691_v10 = vld [vmem:[#allocation8 + $0x190] sm:$0xff]  ;;  %v7693_v11 = vld [vmem:[#allocation8 + $0x198] sm:$0xff] }
  0xb1   : > { %544 = vst [vmem:[#allocation2 + $0x160] sm:$0xff] %v416_v12  ;;  %545 = vst [vmem:[#allocation2 + $0x168] sm:$0xff] %v417_v13  ;;  %v7695_v12 = vld [vmem:[#allocation8 + $0x1a0] sm:$0xff]  ;;  %v460_v13 = vunpack.c.h.s8.bf16 %v7666_v44  ;;  %v470_v26 = vunpack.c.l.s8.bf16 %v7691_v10  ;;  %v471_v27 = vunpack.c.l.s8.bf16 %v7693_v11  ;;  %v7711_v34 = vld [vmem:[#allocation8 + $0x1d0] sm:$0xff] }
  0xb2   : > { %546 = vst [vmem:[#allocation2 + $0x170] sm:$0xff] %v418_v14  ;;  %547 = vst [vmem:[#allocation2 + $0x178] sm:$0xff] %v419_v15  ;;  %v461_v14 = vunpack.c.h.s8.bf16 %v7668_v45  ;;  %v462_v15 = vunpack.c.h.s8.bf16 %v7671_v50  ;;  %v7706_v28 = vld [vmem:[#allocation8 + $0x1c0] sm:$0xff]  ;;  %v7713_v35 = vld [vmem:[#allocation8 + $0x1d8] sm:$0xff]  ;;  %v480_v44 = vunpack.c.h.s8.bf16 %v7695_v12  ;;  %v486_v50 = vunpack.c.l.s8.bf16 %v7711_v34 }
  0xb3   : > { %548 = vst [vmem:[#allocation2 + $0x180] sm:$0xff] %v420_v16  ;;  %549 = vst [vmem:[#allocation2 + $0x188] sm:$0xff] %v421_v17  ;;  %v463_v16 = vunpack.c.h.s8.bf16 %v7673_v51  ;;  %v361_v17 = vld [vmem:[#allocation8 + $0x1a8] sm:$0xff]  ;;  %v487_v51 = vunpack.c.l.s8.bf16 %v7713_v35  ;;  %v7726_v52 = vld [vmem:[#allocation8 + $0x200] sm:$0xff] }
  0xb4   : > { %550 = vst [vmem:[#allocation2 + $0x190] sm:$0xff] %v422_v18  ;;  %551 = vst [vmem:[#allocation2 + $0x198] sm:$0xff] %v423_v19  ;;  %v362_v18 = vld [vmem:[#allocation8 + $0x1b0] sm:$0xff]  ;;  %v363_v19 = vld [vmem:[#allocation8 + $0x1b8] sm:$0xff]  ;;  %v481_v45 = vunpack.c.h.s8.bf16 %v361_v17 }
  0xb5   : > { %552 = vst [vmem:[#allocation2 + $0x1a0] sm:$0xff] %v424_v22  ;;  %553 = vst [vmem:[#allocation2 + $0x1a8] sm:$0xff] %v425_v23  ;;  %v466_v22 = vunpack.c.h.s8.bf16 %v354_v58  ;;  %v467_v23 = vunpack.c.h.s8.bf16 %v355_v59  ;;  %v475_v33 = vunpack.c.l.s8.bf16 %v363_v19  ;;  %v7731_v58 = vld [vmem:[#allocation8 + $0x210] sm:$0xff]  ;;  %v7733_v59 = vld [vmem:[#allocation8 + $0x218] sm:$0xff] }
  0xb6   : > { %554 = vst [vmem:[#allocation2 + $0x1b0] sm:$0xff] %v426_v24  ;;  %555 = vst [vmem:[#allocation2 + $0x1b8] sm:$0xff] %v427_v25  ;;  %v468_v24 = vunpack.c.l.s8.bf16 %v7686_v4  ;;  %v469_v25 = vunpack.c.l.s8.bf16 %v7688_v5 }
  0xb7   : > { %556 = vst [vmem:[#allocation2 + $0x1c0] sm:$0xff] %v428_v29  ;;  %557 = vst [vmem:[#allocation2 + $0x1c8] sm:$0xff] %v429_v30  ;;  %v7708_v29 = vld [vmem:[#allocation8 + $0x1c8] sm:$0xff]  ;;  %v472_v30 = vunpack.c.l.s8.bf16 %v7695_v12  ;;  %v7746_v12 = vld [vmem:[#allocation8 + $0x240] sm:$0xff] }
  0xb8   : > { %558 = vst [vmem:[#allocation2 + $0x1d0] sm:$0xff] %v430_v31  ;;  %559 = vst [vmem:[#allocation2 + $0x1d8] sm:$0xff] %v431_v32  ;;  %v473_v31 = vunpack.c.l.s8.bf16 %v361_v17  ;;  %v474_v32 = vunpack.c.l.s8.bf16 %v362_v18 }
  0xb9   : > { %560 = vst [vmem:[#allocation2 + $0x1e0] sm:$0xff] %v432_v36  ;;  %561 = vst [vmem:[#allocation2 + $0x1e8] sm:$0xff] %v433_v37  ;;  %v7715_v36 = vld [vmem:[#allocation8 + $0x1e0] sm:$0xff]  ;;  %v476_v37 = vunpack.c.h.s8.bf16 %v7686_v4 }
  0xba   : > { %562 = vst [vmem:[#allocation2 + $0x1f0] sm:$0xff] %v434_v38  ;;  %563 = vst [vmem:[#allocation2 + $0x1f8] sm:$0xff] %v435_v39  ;;  %v477_v38 = vunpack.c.h.s8.bf16 %v7688_v5  ;;  %v478_v39 = vunpack.c.h.s8.bf16 %v7691_v10  ;;  %v496_v4 = vunpack.c.h.s8.bf16 %v7715_v36  ;;  %v694_v10 = vunpack.c.l.s8.bf16 %v7731_v58 }
  0xbb   : > { %564 = vst [vmem:[#allocation2 + $0x200] sm:$0xff] %v436_v40  ;;  %565 = vst [vmem:[#allocation2 + $0x208] sm:$0xff] %v437_v41  ;;  %v479_v40 = vunpack.c.h.s8.bf16 %v7693_v11  ;;  %v369_v41 = vld [vmem:[#allocation8 + $0x1e8] sm:$0xff]  ;;  %v695_v11 = vunpack.c.l.s8.bf16 %v7733_v59 }
  0xbc   : > { %566 = vst [vmem:[#allocation2 + $0x210] sm:$0xff] %v438_v42  ;;  %567 = vst [vmem:[#allocation2 + $0x218] sm:$0xff] %v439_v43  ;;  %v370_v42 = vld [vmem:[#allocation8 + $0x1f0] sm:$0xff]  ;;  %v371_v43 = vld [vmem:[#allocation8 + $0x1f8] sm:$0xff]  ;;  %v497_v5 = vunpack.c.h.s8.bf16 %v369_v41 }
  0xbd   : > { %568 = vst [vmem:[#allocation2 + $0x220] sm:$0xff] %v440_v46  ;;  %569 = vst [vmem:[#allocation2 + $0x228] sm:$0xff] %v441_v47  ;;  %v482_v46 = vunpack.c.h.s8.bf16 %v362_v18  ;;  %v483_v47 = vunpack.c.h.s8.bf16 %v363_v19  ;;  %v491_v57 = vunpack.c.l.s8.bf16 %v371_v43  ;;  %v7751_v18 = vld [vmem:[#allocation8 + $0x250] sm:$0xff]  ;;  %v7753_v19 = vld [vmem:[#allocation8 + $0x258] sm:$0xff] }
  0xbe   : > { %570 = vst [vmem:[#allocation2 + $0x230] sm:$0xff] %v442_v48  ;;  %571 = vst [vmem:[#allocation2 + $0x238] sm:$0xff] %v443_v49  ;;  %v484_v48 = vunpack.c.l.s8.bf16 %v7706_v28  ;;  %v485_v49 = vunpack.c.l.s8.bf16 %v7708_v29 }
  0xbf   : > { %572 = vst [vmem:[#allocation2 + $0x240] sm:$0xff] %v444_v53  ;;  %573 = vst [vmem:[#allocation2 + $0x248] sm:$0xff] %v445_v54  ;;  %v7728_v53 = vld [vmem:[#allocation8 + $0x208] sm:$0xff]  ;;  %v488_v54 = vunpack.c.l.s8.bf16 %v7715_v36  ;;  %v7766_v36 = vld [vmem:[#allocation8 + $0x280] sm:$0xff] }
  0xc0   : > { %574 = vst [vmem:[#allocation2 + $0x250] sm:$0xff] %v446_v55  ;;  %575 = vst [vmem:[#allocation2 + $0x258] sm:$0xff] %v447_v56  ;;  %v489_v55 = vunpack.c.l.s8.bf16 %v369_v41  ;;  %v490_v56 = vunpack.c.l.s8.bf16 %v370_v42 }
  0xc1   : > { %576 = vst [vmem:[#allocation2 + $0x260] sm:$0xff] %v448_v60  ;;  %577 = vst [vmem:[#allocation2 + $0x268] sm:$0xff] %v449_v61  ;;  %v7735_v60 = vld [vmem:[#allocation8 + $0x220] sm:$0xff]  ;;  %v492_v61 = vunpack.c.h.s8.bf16 %v7706_v28 }
  0xc2   : > { %578 = vst [vmem:[#allocation2 + $0x270] sm:$0xff] %v450_v62  ;;  %579 = vst [vmem:[#allocation2 + $0x278] sm:$0xff] %v451_v63  ;;  %v493_v62 = vunpack.c.h.s8.bf16 %v7708_v29  ;;  %v494_v63 = vunpack.c.h.s8.bf16 %v7711_v34  ;;  %v704_v28 = vunpack.c.h.s8.bf16 %v7735_v60  ;;  %v710_v34 = vunpack.c.l.s8.bf16 %v7751_v18 }
  0xc3   : > { %580 = vst [vmem:[#allocation2 + $0x280] sm:$0xff] %v452_v0  ;;  %581 = vst [vmem:[#allocation2 + $0x288] sm:$0xff] %v453_v1  ;;  %v495_v0 = vunpack.c.h.s8.bf16 %v7713_v35  ;;  %v633_v1 = vld [vmem:[#allocation8 + $0x228] sm:$0xff]  ;;  %v711_v35 = vunpack.c.l.s8.bf16 %v7753_v19 }
  0xc4   : > { %582 = vst [vmem:[#allocation2 + $0x290] sm:$0xff] %v454_v2  ;;  %583 = vst [vmem:[#allocation2 + $0x298] sm:$0xff] %v455_v3  ;;  %v634_v2 = vld [vmem:[#allocation8 + $0x230] sm:$0xff]  ;;  %v635_v3 = vld [vmem:[#allocation8 + $0x238] sm:$0xff]  ;;  %v705_v29 = vunpack.c.h.s8.bf16 %v633_v1 }
  0xc5   : > { %584 = vst [vmem:[#allocation2 + $0x2a0] sm:$0xff] %v456_v6  ;;  %585 = vst [vmem:[#allocation2 + $0x2a8] sm:$0xff] %v457_v7  ;;  %v498_v6 = vunpack.c.h.s8.bf16 %v370_v42  ;;  %v499_v7 = vunpack.c.h.s8.bf16 %v371_v43  ;;  %v699_v17 = vunpack.c.l.s8.bf16 %v635_v3  ;;  %v7771_v42 = vld [vmem:[#allocation8 + $0x290] sm:$0xff]  ;;  %v7773_v43 = vld [vmem:[#allocation8 + $0x298] sm:$0xff] }
  0xc6   : > { %586 = vst [vmem:[#allocation2 + $0x2b0] sm:$0xff] %v458_v8  ;;  %587 = vst [vmem:[#allocation2 + $0x2b8] sm:$0xff] %v459_v9  ;;  %v692_v8 = vunpack.c.l.s8.bf16 %v7726_v52  ;;  %v693_v9 = vunpack.c.l.s8.bf16 %v7728_v53 }
  0xc7   : > { %588 = vst [vmem:[#allocation2 + $0x2c0] sm:$0xff] %v460_v13  ;;  %589 = vst [vmem:[#allocation2 + $0x2c8] sm:$0xff] %v461_v14  ;;  %v7748_v13 = vld [vmem:[#allocation8 + $0x248] sm:$0xff]  ;;  %v696_v14 = vunpack.c.l.s8.bf16 %v7735_v60  ;;  %v7786_v60 = vld [vmem:[#allocation8 + $0x2c0] sm:$0xff] }
  0xc8   : > { %590 = vst [vmem:[#allocation2 + $0x2d0] sm:$0xff] %v462_v15  ;;  %591 = vst [vmem:[#allocation2 + $0x2d8] sm:$0xff] %v463_v16  ;;  %v697_v15 = vunpack.c.l.s8.bf16 %v633_v1  ;;  %v698_v16 = vunpack.c.l.s8.bf16 %v634_v2 }
  0xc9   : > { %592 = vst [vmem:[#allocation2 + $0x2e0] sm:$0xff] %v464_v20  ;;  %593 = vst [vmem:[#allocation2 + $0x2e8] sm:$0xff] %v465_v21  ;;  %v7755_v20 = vld [vmem:[#allocation8 + $0x260] sm:$0xff]  ;;  %v700_v21 = vunpack.c.h.s8.bf16 %v7726_v52 }
  0xca   : > { %594 = vst [vmem:[#allocation2 + $0x2f0] sm:$0xff] %v466_v22  ;;  %595 = vst [vmem:[#allocation2 + $0x2f8] sm:$0xff] %v467_v23  ;;  %v701_v22 = vunpack.c.h.s8.bf16 %v7728_v53  ;;  %v702_v23 = vunpack.c.h.s8.bf16 %v7731_v58  ;;  %v720_v52 = vunpack.c.h.s8.bf16 %v7755_v20  ;;  %v726_v58 = vunpack.c.l.s8.bf16 %v7771_v42 }
  0xcb   : > { %596 = vst [vmem:[#allocation2 + $0x300] sm:$0xff] %v468_v24  ;;  %597 = vst [vmem:[#allocation2 + $0x308] sm:$0xff] %v469_v25  ;;  %v703_v24 = vunpack.c.h.s8.bf16 %v7733_v59  ;;  %v641_v25 = vld [vmem:[#allocation8 + $0x268] sm:$0xff]  ;;  %v727_v59 = vunpack.c.l.s8.bf16 %v7773_v43 }
  0xcc   : > { %598 = vst [vmem:[#allocation2 + $0x310] sm:$0xff] %v470_v26  ;;  %599 = vst [vmem:[#allocation2 + $0x318] sm:$0xff] %v471_v27  ;;  %v642_v26 = vld [vmem:[#allocation8 + $0x270] sm:$0xff]  ;;  %v643_v27 = vld [vmem:[#allocation8 + $0x278] sm:$0xff]  ;;  %v721_v53 = vunpack.c.h.s8.bf16 %v641_v25 }
  0xcd   : > { %600 = vst [vmem:[#allocation2 + $0x320] sm:$0xff] %v472_v30  ;;  %601 = vst [vmem:[#allocation2 + $0x328] sm:$0xff] %v473_v31  ;;  %v706_v30 = vunpack.c.h.s8.bf16 %v634_v2  ;;  %v707_v31 = vunpack.c.h.s8.bf16 %v635_v3  ;;  %v715_v41 = vunpack.c.l.s8.bf16 %v643_v27  ;;  %v7791_v2 = vld [vmem:[#allocation8 + $0x2d0] sm:$0xff]  ;;  %v7793_v3 = vld [vmem:[#allocation8 + $0x2d8] sm:$0xff] }
  0xce   : > { %602 = vst [vmem:[#allocation2 + $0x330] sm:$0xff] %v474_v32  ;;  %603 = vst [vmem:[#allocation2 + $0x338] sm:$0xff] %v475_v33  ;;  %v708_v32 = vunpack.c.l.s8.bf16 %v7746_v12  ;;  %v709_v33 = vunpack.c.l.s8.bf16 %v7748_v13 }
  0xcf   : > { %604 = vst [vmem:[#allocation2 + $0x340] sm:$0xff] %v476_v37  ;;  %605 = vst [vmem:[#allocation2 + $0x348] sm:$0xff] %v477_v38  ;;  %v7768_v37 = vld [vmem:[#allocation8 + $0x288] sm:$0xff]  ;;  %v712_v38 = vunpack.c.l.s8.bf16 %v7755_v20  ;;  %v7806_v20 = vld [vmem:[#allocation8 + $0x300] sm:$0xff] }
  0xd0   : > { %606 = vst [vmem:[#allocation2 + $0x350] sm:$0xff] %v478_v39  ;;  %607 = vst [vmem:[#allocation2 + $0x358] sm:$0xff] %v479_v40  ;;  %v713_v39 = vunpack.c.l.s8.bf16 %v641_v25  ;;  %v714_v40 = vunpack.c.l.s8.bf16 %v642_v26 }
  0xd1   : > { %608 = vst [vmem:[#allocation2 + $0x360] sm:$0xff] %v480_v44  ;;  %609 = vst [vmem:[#allocation2 + $0x368] sm:$0xff] %v481_v45  ;;  %v7775_v44 = vld [vmem:[#allocation8 + $0x2a0] sm:$0xff]  ;;  %v716_v45 = vunpack.c.h.s8.bf16 %v7746_v12 }
  0xd2   : > { %610 = vst [vmem:[#allocation2 + $0x370] sm:$0xff] %v482_v46  ;;  %611 = vst [vmem:[#allocation2 + $0x378] sm:$0xff] %v483_v47  ;;  %v717_v46 = vunpack.c.h.s8.bf16 %v7748_v13  ;;  %v718_v47 = vunpack.c.h.s8.bf16 %v7751_v18  ;;  %v736_v12 = vunpack.c.h.s8.bf16 %v7775_v44  ;;  %v742_v18 = vunpack.c.l.s8.bf16 %v7791_v2 }
  0xd3   : > { %612 = vst [vmem:[#allocation2 + $0x380] sm:$0xff] %v484_v48  ;;  %613 = vst [vmem:[#allocation2 + $0x388] sm:$0xff] %v485_v49  ;;  %v719_v48 = vunpack.c.h.s8.bf16 %v7753_v19  ;;  %v649_v49 = vld [vmem:[#allocation8 + $0x2a8] sm:$0xff]  ;;  %v743_v19 = vunpack.c.l.s8.bf16 %v7793_v3 }
  0xd4   : > { %614 = vst [vmem:[#allocation2 + $0x390] sm:$0xff] %v486_v50  ;;  %615 = vst [vmem:[#allocation2 + $0x398] sm:$0xff] %v487_v51  ;;  %v650_v50 = vld [vmem:[#allocation8 + $0x2b0] sm:$0xff]  ;;  %v651_v51 = vld [vmem:[#allocation8 + $0x2b8] sm:$0xff]  ;;  %v737_v13 = vunpack.c.h.s8.bf16 %v649_v49 }
  0xd5   : > { %616 = vst [vmem:[#allocation2 + $0x3a0] sm:$0xff] %v488_v54  ;;  %617 = vst [vmem:[#allocation2 + $0x3a8] sm:$0xff] %v489_v55  ;;  %v722_v54 = vunpack.c.h.s8.bf16 %v642_v26  ;;  %v723_v55 = vunpack.c.h.s8.bf16 %v643_v27  ;;  %v731_v1 = vunpack.c.l.s8.bf16 %v651_v51  ;;  %v7811_v26 = vld [vmem:[#allocation8 + $0x310] sm:$0xff]  ;;  %v7813_v27 = vld [vmem:[#allocation8 + $0x318] sm:$0xff] }
  0xd6   : > { %618 = vst [vmem:[#allocation2 + $0x3b0] sm:$0xff] %v490_v56  ;;  %619 = vst [vmem:[#allocation2 + $0x3b8] sm:$0xff] %v491_v57  ;;  %v724_v56 = vunpack.c.l.s8.bf16 %v7766_v36  ;;  %v725_v57 = vunpack.c.l.s8.bf16 %v7768_v37 }
  0xd7   : > { %620 = vst [vmem:[#allocation2 + $0x3c0] sm:$0xff] %v492_v61  ;;  %621 = vst [vmem:[#allocation2 + $0x3c8] sm:$0xff] %v493_v62  ;;  %v7788_v61 = vld [vmem:[#allocation8 + $0x2c8] sm:$0xff]  ;;  %v728_v62 = vunpack.c.l.s8.bf16 %v7775_v44  ;;  %v7826_v44 = vld [vmem:[#allocation8 + $0x340] sm:$0xff] }
  0xd8   : > { %622 = vst [vmem:[#allocation2 + $0x3d0] sm:$0xff] %v494_v63  ;;  %623 = vst [vmem:[#allocation2 + $0x3d8] sm:$0xff] %v495_v0  ;;  %v729_v63 = vunpack.c.l.s8.bf16 %v649_v49  ;;  %v730_v0 = vunpack.c.l.s8.bf16 %v650_v50 }
  0xd9   : > { %624 = vst [vmem:[#allocation2 + $0x3e0] sm:$0xff] %v496_v4  ;;  %625 = vst [vmem:[#allocation2 + $0x3e8] sm:$0xff] %v497_v5  ;;  %v7795_v4 = vld [vmem:[#allocation8 + $0x2e0] sm:$0xff]  ;;  %v732_v5 = vunpack.c.h.s8.bf16 %v7766_v36 }
  0xda   : > { %626 = vst [vmem:[#allocation2 + $0x3f0] sm:$0xff] %v498_v6  ;;  %627 = vst [vmem:[#allocation2 + $0x3f8] sm:$0xff] %v499_v7  ;;  %v733_v6 = vunpack.c.h.s8.bf16 %v7768_v37  ;;  %v734_v7 = vunpack.c.h.s8.bf16 %v7771_v42  ;;  %v752_v36 = vunpack.c.h.s8.bf16 %v7795_v4  ;;  %v758_v42 = vunpack.c.l.s8.bf16 %v7811_v26 }
  0xdb   : > { %820 = vst [vmem:[#allocation2 + $0x400] sm:$0xff] %v692_v8  ;;  %821 = vst [vmem:[#allocation2 + $0x408] sm:$0xff] %v693_v9  ;;  %v735_v8 = vunpack.c.h.s8.bf16 %v7773_v43  ;;  %v657_v9 = vld [vmem:[#allocation8 + $0x2e8] sm:$0xff]  ;;  %v759_v43 = vunpack.c.l.s8.bf16 %v7813_v27 }
  0xdc   : > { %822 = vst [vmem:[#allocation2 + $0x410] sm:$0xff] %v694_v10  ;;  %823 = vst [vmem:[#allocation2 + $0x418] sm:$0xff] %v695_v11  ;;  %v658_v10 = vld [vmem:[#allocation8 + $0x2f0] sm:$0xff]  ;;  %v659_v11 = vld [vmem:[#allocation8 + $0x2f8] sm:$0xff]  ;;  %v753_v37 = vunpack.c.h.s8.bf16 %v657_v9 }
  0xdd   : > { %824 = vst [vmem:[#allocation2 + $0x420] sm:$0xff] %v696_v14  ;;  %825 = vst [vmem:[#allocation2 + $0x428] sm:$0xff] %v697_v15  ;;  %v738_v14 = vunpack.c.h.s8.bf16 %v650_v50  ;;  %v739_v15 = vunpack.c.h.s8.bf16 %v651_v51  ;;  %v747_v25 = vunpack.c.l.s8.bf16 %v659_v11  ;;  %v7831_v50 = vld [vmem:[#allocation8 + $0x350] sm:$0xff]  ;;  %v7833_v51 = vld [vmem:[#allocation8 + $0x358] sm:$0xff] }
  0xde   : > { %826 = vst [vmem:[#allocation2 + $0x430] sm:$0xff] %v698_v16  ;;  %827 = vst [vmem:[#allocation2 + $0x438] sm:$0xff] %v699_v17  ;;  %v740_v16 = vunpack.c.l.s8.bf16 %v7786_v60  ;;  %v741_v17 = vunpack.c.l.s8.bf16 %v7788_v61 }
  0xdf   : > { %828 = vst [vmem:[#allocation2 + $0x440] sm:$0xff] %v700_v21  ;;  %829 = vst [vmem:[#allocation2 + $0x448] sm:$0xff] %v701_v22  ;;  %v7808_v21 = vld [vmem:[#allocation8 + $0x308] sm:$0xff]  ;;  %v744_v22 = vunpack.c.l.s8.bf16 %v7795_v4  ;;  %v7846_v4 = vld [vmem:[#allocation8 + $0x380] sm:$0xff] }
  0xe0   : > { %830 = vst [vmem:[#allocation2 + $0x450] sm:$0xff] %v702_v23  ;;  %831 = vst [vmem:[#allocation2 + $0x458] sm:$0xff] %v703_v24  ;;  %v745_v23 = vunpack.c.l.s8.bf16 %v657_v9  ;;  %v746_v24 = vunpack.c.l.s8.bf16 %v658_v10 }
  0xe1   : > { %832 = vst [vmem:[#allocation2 + $0x460] sm:$0xff] %v704_v28  ;;  %833 = vst [vmem:[#allocation2 + $0x468] sm:$0xff] %v705_v29  ;;  %v7815_v28 = vld [vmem:[#allocation8 + $0x320] sm:$0xff]  ;;  %v748_v29 = vunpack.c.h.s8.bf16 %v7786_v60 }
  0xe2   : > { %834 = vst [vmem:[#allocation2 + $0x470] sm:$0xff] %v706_v30  ;;  %835 = vst [vmem:[#allocation2 + $0x478] sm:$0xff] %v707_v31  ;;  %v749_v30 = vunpack.c.h.s8.bf16 %v7788_v61  ;;  %v750_v31 = vunpack.c.h.s8.bf16 %v7791_v2  ;;  %v768_v60 = vunpack.c.h.s8.bf16 %v7815_v28  ;;  %v774_v2 = vunpack.c.l.s8.bf16 %v7831_v50 }
  0xe3   : > { %836 = vst [vmem:[#allocation2 + $0x480] sm:$0xff] %v708_v32  ;;  %837 = vst [vmem:[#allocation2 + $0x488] sm:$0xff] %v709_v33  ;;  %v751_v32 = vunpack.c.h.s8.bf16 %v7793_v3  ;;  %v665_v33 = vld [vmem:[#allocation8 + $0x328] sm:$0xff]  ;;  %v775_v3 = vunpack.c.l.s8.bf16 %v7833_v51 }
  0xe4   : > { %838 = vst [vmem:[#allocation2 + $0x490] sm:$0xff] %v710_v34  ;;  %839 = vst [vmem:[#allocation2 + $0x498] sm:$0xff] %v711_v35  ;;  %v666_v34 = vld [vmem:[#allocation8 + $0x330] sm:$0xff]  ;;  %v667_v35 = vld [vmem:[#allocation8 + $0x338] sm:$0xff]  ;;  %v769_v61 = vunpack.c.h.s8.bf16 %v665_v33 }
  0xe5   : > { %840 = vst [vmem:[#allocation2 + $0x4a0] sm:$0xff] %v712_v38  ;;  %841 = vst [vmem:[#allocation2 + $0x4a8] sm:$0xff] %v713_v39  ;;  %v754_v38 = vunpack.c.h.s8.bf16 %v658_v10  ;;  %v755_v39 = vunpack.c.h.s8.bf16 %v659_v11  ;;  %v763_v49 = vunpack.c.l.s8.bf16 %v667_v35  ;;  %v7851_v10 = vld [vmem:[#allocation8 + $0x390] sm:$0xff]  ;;  %v7853_v11 = vld [vmem:[#allocation8 + $0x398] sm:$0xff] }
  0xe6   : > { %842 = vst [vmem:[#allocation2 + $0x4b0] sm:$0xff] %v714_v40  ;;  %843 = vst [vmem:[#allocation2 + $0x4b8] sm:$0xff] %v715_v41  ;;  %v756_v40 = vunpack.c.l.s8.bf16 %v7806_v20  ;;  %v757_v41 = vunpack.c.l.s8.bf16 %v7808_v21 }
  0xe7   : > { %844 = vst [vmem:[#allocation2 + $0x4c0] sm:$0xff] %v716_v45  ;;  %845 = vst [vmem:[#allocation2 + $0x4c8] sm:$0xff] %v717_v46  ;;  %v7828_v45 = vld [vmem:[#allocation8 + $0x348] sm:$0xff]  ;;  %v760_v46 = vunpack.c.l.s8.bf16 %v7815_v28  ;;  %v7866_v28 = vld [vmem:[#allocation8 + $0x3c0] sm:$0xff] }
  0xe8   : > { %846 = vst [vmem:[#allocation2 + $0x4d0] sm:$0xff] %v718_v47  ;;  %847 = vst [vmem:[#allocation2 + $0x4d8] sm:$0xff] %v719_v48  ;;  %v761_v47 = vunpack.c.l.s8.bf16 %v665_v33  ;;  %v762_v48 = vunpack.c.l.s8.bf16 %v666_v34 }
  0xe9   : > { %848 = vst [vmem:[#allocation2 + $0x4e0] sm:$0xff] %v720_v52  ;;  %849 = vst [vmem:[#allocation2 + $0x4e8] sm:$0xff] %v721_v53  ;;  %v7835_v52 = vld [vmem:[#allocation8 + $0x360] sm:$0xff]  ;;  %v764_v53 = vunpack.c.h.s8.bf16 %v7806_v20 }
  0xea   : > { %850 = vst [vmem:[#allocation2 + $0x4f0] sm:$0xff] %v722_v54  ;;  %851 = vst [vmem:[#allocation2 + $0x4f8] sm:$0xff] %v723_v55  ;;  %v765_v54 = vunpack.c.h.s8.bf16 %v7808_v21  ;;  %v766_v55 = vunpack.c.h.s8.bf16 %v7811_v26  ;;  %v784_v20 = vunpack.c.h.s8.bf16 %v7835_v52  ;;  %v790_v26 = vunpack.c.l.s8.bf16 %v7851_v10 }
  0xeb   : > { %852 = vst [vmem:[#allocation2 + $0x500] sm:$0xff] %v724_v56  ;;  %853 = vst [vmem:[#allocation2 + $0x508] sm:$0xff] %v725_v57  ;;  %v767_v56 = vunpack.c.h.s8.bf16 %v7813_v27  ;;  %v673_v57 = vld [vmem:[#allocation8 + $0x368] sm:$0xff]  ;;  %v791_v27 = vunpack.c.l.s8.bf16 %v7853_v11 }
  0xec   : > { %854 = vst [vmem:[#allocation2 + $0x510] sm:$0xff] %v726_v58  ;;  %855 = vst [vmem:[#allocation2 + $0x518] sm:$0xff] %v727_v59  ;;  %v674_v58 = vld [vmem:[#allocation8 + $0x370] sm:$0xff]  ;;  %v675_v59 = vld [vmem:[#allocation8 + $0x378] sm:$0xff]  ;;  %v785_v21 = vunpack.c.h.s8.bf16 %v673_v57 }
  0xed   : > { %856 = vst [vmem:[#allocation2 + $0x520] sm:$0xff] %v728_v62  ;;  %857 = vst [vmem:[#allocation2 + $0x528] sm:$0xff] %v729_v63  ;;  %v770_v62 = vunpack.c.h.s8.bf16 %v666_v34  ;;  %v771_v63 = vunpack.c.h.s8.bf16 %v667_v35  ;;  %v779_v9 = vunpack.c.l.s8.bf16 %v675_v59  ;;  %v7871_v34 = vld [vmem:[#allocation8 + $0x3d0] sm:$0xff]  ;;  %v7873_v35 = vld [vmem:[#allocation8 + $0x3d8] sm:$0xff] }
  0xee   : > { %858 = vst [vmem:[#allocation2 + $0x530] sm:$0xff] %v730_v0  ;;  %859 = vst [vmem:[#allocation2 + $0x538] sm:$0xff] %v731_v1  ;;  %v772_v0 = vunpack.c.l.s8.bf16 %v7826_v44  ;;  %v773_v1 = vunpack.c.l.s8.bf16 %v7828_v45 }
  0xef   : > { %860 = vst [vmem:[#allocation2 + $0x540] sm:$0xff] %v732_v5  ;;  %861 = vst [vmem:[#allocation2 + $0x548] sm:$0xff] %v733_v6  ;;  %v7848_v5 = vld [vmem:[#allocation8 + $0x388] sm:$0xff]  ;;  %v776_v6 = vunpack.c.l.s8.bf16 %v7835_v52  ;;  %v7886_v52 = vld [vmem:[#allocation8 + $0x400] sm:$0xff] }
  0xf0   : > { %862 = vst [vmem:[#allocation2 + $0x550] sm:$0xff] %v734_v7  ;;  %863 = vst [vmem:[#allocation2 + $0x558] sm:$0xff] %v735_v8  ;;  %v777_v7 = vunpack.c.l.s8.bf16 %v673_v57  ;;  %v778_v8 = vunpack.c.l.s8.bf16 %v674_v58 }
  0xf1   : > { %864 = vst [vmem:[#allocation2 + $0x560] sm:$0xff] %v736_v12  ;;  %865 = vst [vmem:[#allocation2 + $0x568] sm:$0xff] %v737_v13  ;;  %v7855_v12 = vld [vmem:[#allocation8 + $0x3a0] sm:$0xff]  ;;  %v780_v13 = vunpack.c.h.s8.bf16 %v7826_v44 }
  0xf2   : > { %866 = vst [vmem:[#allocation2 + $0x570] sm:$0xff] %v738_v14  ;;  %867 = vst [vmem:[#allocation2 + $0x578] sm:$0xff] %v739_v15  ;;  %v781_v14 = vunpack.c.h.s8.bf16 %v7828_v45  ;;  %v782_v15 = vunpack.c.h.s8.bf16 %v7831_v50  ;;  %v800_v44 = vunpack.c.h.s8.bf16 %v7855_v12  ;;  %v806_v50 = vunpack.c.l.s8.bf16 %v7871_v34 }
  0xf3   : > { %868 = vst [vmem:[#allocation2 + $0x580] sm:$0xff] %v740_v16  ;;  %869 = vst [vmem:[#allocation2 + $0x588] sm:$0xff] %v741_v17  ;;  %v783_v16 = vunpack.c.h.s8.bf16 %v7833_v51  ;;  %v681_v17 = vld [vmem:[#allocation8 + $0x3a8] sm:$0xff]  ;;  %v807_v51 = vunpack.c.l.s8.bf16 %v7873_v35 }
  0xf4   : > { %870 = vst [vmem:[#allocation2 + $0x590] sm:$0xff] %v742_v18  ;;  %871 = vst [vmem:[#allocation2 + $0x598] sm:$0xff] %v743_v19  ;;  %v682_v18 = vld [vmem:[#allocation8 + $0x3b0] sm:$0xff]  ;;  %v683_v19 = vld [vmem:[#allocation8 + $0x3b8] sm:$0xff]  ;;  %v801_v45 = vunpack.c.h.s8.bf16 %v681_v17 }
  0xf5   : > { %872 = vst [vmem:[#allocation2 + $0x5a0] sm:$0xff] %v744_v22  ;;  %873 = vst [vmem:[#allocation2 + $0x5a8] sm:$0xff] %v745_v23  ;;  %v786_v22 = vunpack.c.h.s8.bf16 %v674_v58  ;;  %v787_v23 = vunpack.c.h.s8.bf16 %v675_v59  ;;  %v795_v33 = vunpack.c.l.s8.bf16 %v683_v19  ;;  %v7891_v58 = vld [vmem:[#allocation8 + $0x410] sm:$0xff]  ;;  %v7893_v59 = vld [vmem:[#allocation8 + $0x418] sm:$0xff] }
  0xf6   : > { %874 = vst [vmem:[#allocation2 + $0x5b0] sm:$0xff] %v746_v24  ;;  %875 = vst [vmem:[#allocation2 + $0x5b8] sm:$0xff] %v747_v25  ;;  %v788_v24 = vunpack.c.l.s8.bf16 %v7846_v4  ;;  %v789_v25 = vunpack.c.l.s8.bf16 %v7848_v5 }
  0xf7   : > { %876 = vst [vmem:[#allocation2 + $0x5c0] sm:$0xff] %v748_v29  ;;  %877 = vst [vmem:[#allocation2 + $0x5c8] sm:$0xff] %v749_v30  ;;  %v7868_v29 = vld [vmem:[#allocation8 + $0x3c8] sm:$0xff]  ;;  %v792_v30 = vunpack.c.l.s8.bf16 %v7855_v12  ;;  %v7906_v12 = vld [vmem:[#allocation8 + $0x440] sm:$0xff] }
  0xf8   : > { %878 = vst [vmem:[#allocation2 + $0x5d0] sm:$0xff] %v750_v31  ;;  %879 = vst [vmem:[#allocation2 + $0x5d8] sm:$0xff] %v751_v32  ;;  %v793_v31 = vunpack.c.l.s8.bf16 %v681_v17  ;;  %v794_v32 = vunpack.c.l.s8.bf16 %v682_v18 }
  0xf9   : > { %880 = vst [vmem:[#allocation2 + $0x5e0] sm:$0xff] %v752_v36  ;;  %881 = vst [vmem:[#allocation2 + $0x5e8] sm:$0xff] %v753_v37  ;;  %v7875_v36 = vld [vmem:[#allocation8 + $0x3e0] sm:$0xff]  ;;  %v796_v37 = vunpack.c.h.s8.bf16 %v7846_v4 }
  0xfa   : > { %882 = vst [vmem:[#allocation2 + $0x5f0] sm:$0xff] %v754_v38  ;;  %883 = vst [vmem:[#allocation2 + $0x5f8] sm:$0xff] %v755_v39  ;;  %v797_v38 = vunpack.c.h.s8.bf16 %v7848_v5  ;;  %v798_v39 = vunpack.c.h.s8.bf16 %v7851_v10  ;;  %v816_v4 = vunpack.c.h.s8.bf16 %v7875_v36  ;;  %v1014_v10 = vunpack.c.l.s8.bf16 %v7891_v58 }
  0xfb   : > { %884 = vst [vmem:[#allocation2 + $0x600] sm:$0xff] %v756_v40  ;;  %885 = vst [vmem:[#allocation2 + $0x608] sm:$0xff] %v757_v41  ;;  %v799_v40 = vunpack.c.h.s8.bf16 %v7853_v11  ;;  %v689_v41 = vld [vmem:[#allocation8 + $0x3e8] sm:$0xff]  ;;  %v1015_v11 = vunpack.c.l.s8.bf16 %v7893_v59 }
  0xfc   : > { %886 = vst [vmem:[#allocation2 + $0x610] sm:$0xff] %v758_v42  ;;  %887 = vst [vmem:[#allocation2 + $0x618] sm:$0xff] %v759_v43  ;;  %v690_v42 = vld [vmem:[#allocation8 + $0x3f0] sm:$0xff]  ;;  %v691_v43 = vld [vmem:[#allocation8 + $0x3f8] sm:$0xff]  ;;  %v817_v5 = vunpack.c.h.s8.bf16 %v689_v41 }
  0xfd   : > { %888 = vst [vmem:[#allocation2 + $0x620] sm:$0xff] %v760_v46  ;;  %889 = vst [vmem:[#allocation2 + $0x628] sm:$0xff] %v761_v47  ;;  %v802_v46 = vunpack.c.h.s8.bf16 %v682_v18  ;;  %v803_v47 = vunpack.c.h.s8.bf16 %v683_v19  ;;  %v811_v57 = vunpack.c.l.s8.bf16 %v691_v43  ;;  %v7911_v18 = vld [vmem:[#allocation8 + $0x450] sm:$0xff]  ;;  %v7913_v19 = vld [vmem:[#allocation8 + $0x458] sm:$0xff] }
  0xfe   : > { %890 = vst [vmem:[#allocation2 + $0x630] sm:$0xff] %v762_v48  ;;  %891 = vst [vmem:[#allocation2 + $0x638] sm:$0xff] %v763_v49  ;;  %v804_v48 = vunpack.c.l.s8.bf16 %v7866_v28  ;;  %v805_v49 = vunpack.c.l.s8.bf16 %v7868_v29 }
  0xff   : > { %892 = vst [vmem:[#allocation2 + $0x640] sm:$0xff] %v764_v53  ;;  %893 = vst [vmem:[#allocation2 + $0x648] sm:$0xff] %v765_v54  ;;  %v7888_v53 = vld [vmem:[#allocation8 + $0x408] sm:$0xff]  ;;  %v808_v54 = vunpack.c.l.s8.bf16 %v7875_v36  ;;  %v7926_v36 = vld [vmem:[#allocation8 + $0x480] sm:$0xff] }
 0x100   : > { %894 = vst [vmem:[#allocation2 + $0x650] sm:$0xff] %v766_v55  ;;  %895 = vst [vmem:[#allocation2 + $0x658] sm:$0xff] %v767_v56  ;;  %v809_v55 = vunpack.c.l.s8.bf16 %v689_v41  ;;  %v810_v56 = vunpack.c.l.s8.bf16 %v690_v42 }
 0x101   : > { %896 = vst [vmem:[#allocation2 + $0x660] sm:$0xff] %v768_v60  ;;  %897 = vst [vmem:[#allocation2 + $0x668] sm:$0xff] %v769_v61  ;;  %v7895_v60 = vld [vmem:[#allocation8 + $0x420] sm:$0xff]  ;;  %v812_v61 = vunpack.c.h.s8.bf16 %v7866_v28 }
 0x102   : > { %898 = vst [vmem:[#allocation2 + $0x670] sm:$0xff] %v770_v62  ;;  %899 = vst [vmem:[#allocation2 + $0x678] sm:$0xff] %v771_v63  ;;  %v813_v62 = vunpack.c.h.s8.bf16 %v7868_v29  ;;  %v814_v63 = vunpack.c.h.s8.bf16 %v7871_v34  ;;  %v1024_v28 = vunpack.c.h.s8.bf16 %v7895_v60  ;;  %v1030_v34 = vunpack.c.l.s8.bf16 %v7911_v18 }
 0x103   : > { %900 = vst [vmem:[#allocation2 + $0x680] sm:$0xff] %v772_v0  ;;  %901 = vst [vmem:[#allocation2 + $0x688] sm:$0xff] %v773_v1  ;;  %v815_v0 = vunpack.c.h.s8.bf16 %v7873_v35  ;;  %v953_v1 = vld [vmem:[#allocation8 + $0x428] sm:$0xff]  ;;  %v1031_v35 = vunpack.c.l.s8.bf16 %v7913_v19 }
 0x104   : > { %902 = vst [vmem:[#allocation2 + $0x690] sm:$0xff] %v774_v2  ;;  %903 = vst [vmem:[#allocation2 + $0x698] sm:$0xff] %v775_v3  ;;  %v954_v2 = vld [vmem:[#allocation8 + $0x430] sm:$0xff]  ;;  %v955_v3 = vld [vmem:[#allocation8 + $0x438] sm:$0xff]  ;;  %v1025_v29 = vunpack.c.h.s8.bf16 %v953_v1 }
 0x105   : > { %904 = vst [vmem:[#allocation2 + $0x6a0] sm:$0xff] %v776_v6  ;;  %905 = vst [vmem:[#allocation2 + $0x6a8] sm:$0xff] %v777_v7  ;;  %v818_v6 = vunpack.c.h.s8.bf16 %v690_v42  ;;  %v819_v7 = vunpack.c.h.s8.bf16 %v691_v43  ;;  %v1019_v17 = vunpack.c.l.s8.bf16 %v955_v3  ;;  %v7931_v42 = vld [vmem:[#allocation8 + $0x490] sm:$0xff]  ;;  %v7933_v43 = vld [vmem:[#allocation8 + $0x498] sm:$0xff] }
 0x106   : > { %906 = vst [vmem:[#allocation2 + $0x6b0] sm:$0xff] %v778_v8  ;;  %907 = vst [vmem:[#allocation2 + $0x6b8] sm:$0xff] %v779_v9  ;;  %v1012_v8 = vunpack.c.l.s8.bf16 %v7886_v52  ;;  %v1013_v9 = vunpack.c.l.s8.bf16 %v7888_v53 }
 0x107   : > { %908 = vst [vmem:[#allocation2 + $0x6c0] sm:$0xff] %v780_v13  ;;  %909 = vst [vmem:[#allocation2 + $0x6c8] sm:$0xff] %v781_v14  ;;  %v7908_v13 = vld [vmem:[#allocation8 + $0x448] sm:$0xff]  ;;  %v1016_v14 = vunpack.c.l.s8.bf16 %v7895_v60  ;;  %v7946_v60 = vld [vmem:[#allocation8 + $0x4c0] sm:$0xff] }
 0x108   : > { %910 = vst [vmem:[#allocation2 + $0x6d0] sm:$0xff] %v782_v15  ;;  %911 = vst [vmem:[#allocation2 + $0x6d8] sm:$0xff] %v783_v16  ;;  %v1017_v15 = vunpack.c.l.s8.bf16 %v953_v1  ;;  %v1018_v16 = vunpack.c.l.s8.bf16 %v954_v2 }
 0x109   : > { %912 = vst [vmem:[#allocation2 + $0x6e0] sm:$0xff] %v784_v20  ;;  %913 = vst [vmem:[#allocation2 + $0x6e8] sm:$0xff] %v785_v21  ;;  %v7915_v20 = vld [vmem:[#allocation8 + $0x460] sm:$0xff]  ;;  %v1020_v21 = vunpack.c.h.s8.bf16 %v7886_v52 }
 0x10a   : > { %914 = vst [vmem:[#allocation2 + $0x6f0] sm:$0xff] %v786_v22  ;;  %915 = vst [vmem:[#allocation2 + $0x6f8] sm:$0xff] %v787_v23  ;;  %v1021_v22 = vunpack.c.h.s8.bf16 %v7888_v53  ;;  %v1022_v23 = vunpack.c.h.s8.bf16 %v7891_v58  ;;  %v1040_v52 = vunpack.c.h.s8.bf16 %v7915_v20  ;;  %v1046_v58 = vunpack.c.l.s8.bf16 %v7931_v42 }
 0x10b   : > { %916 = vst [vmem:[#allocation2 + $0x700] sm:$0xff] %v788_v24  ;;  %917 = vst [vmem:[#allocation2 + $0x708] sm:$0xff] %v789_v25  ;;  %v1023_v24 = vunpack.c.h.s8.bf16 %v7893_v59  ;;  %v961_v25 = vld [vmem:[#allocation8 + $0x468] sm:$0xff]  ;;  %v1047_v59 = vunpack.c.l.s8.bf16 %v7933_v43 }
 0x10c   : > { %918 = vst [vmem:[#allocation2 + $0x710] sm:$0xff] %v790_v26  ;;  %919 = vst [vmem:[#allocation2 + $0x718] sm:$0xff] %v791_v27  ;;  %v962_v26 = vld [vmem:[#allocation8 + $0x470] sm:$0xff]  ;;  %v963_v27 = vld [vmem:[#allocation8 + $0x478] sm:$0xff]  ;;  %v1041_v53 = vunpack.c.h.s8.bf16 %v961_v25 }
 0x10d   : > { %920 = vst [vmem:[#allocation2 + $0x720] sm:$0xff] %v792_v30  ;;  %921 = vst [vmem:[#allocation2 + $0x728] sm:$0xff] %v793_v31  ;;  %v1026_v30 = vunpack.c.h.s8.bf16 %v954_v2  ;;  %v1027_v31 = vunpack.c.h.s8.bf16 %v955_v3  ;;  %v1035_v41 = vunpack.c.l.s8.bf16 %v963_v27  ;;  %v7951_v2 = vld [vmem:[#allocation8 + $0x4d0] sm:$0xff]  ;;  %v7953_v3 = vld [vmem:[#allocation8 + $0x4d8] sm:$0xff] }
 0x10e   : > { %922 = vst [vmem:[#allocation2 + $0x730] sm:$0xff] %v794_v32  ;;  %923 = vst [vmem:[#allocation2 + $0x738] sm:$0xff] %v795_v33  ;;  %v1028_v32 = vunpack.c.l.s8.bf16 %v7906_v12  ;;  %v1029_v33 = vunpack.c.l.s8.bf16 %v7908_v13 }
 0x10f   : > { %924 = vst [vmem:[#allocation2 + $0x740] sm:$0xff] %v796_v37  ;;  %925 = vst [vmem:[#allocation2 + $0x748] sm:$0xff] %v797_v38  ;;  %v7928_v37 = vld [vmem:[#allocation8 + $0x488] sm:$0xff]  ;;  %v1032_v38 = vunpack.c.l.s8.bf16 %v7915_v20  ;;  %v7966_v20 = vld [vmem:[#allocation8 + $0x500] sm:$0xff] }
 0x110   : > { %926 = vst [vmem:[#allocation2 + $0x750] sm:$0xff] %v798_v39  ;;  %927 = vst [vmem:[#allocation2 + $0x758] sm:$0xff] %v799_v40  ;;  %v1033_v39 = vunpack.c.l.s8.bf16 %v961_v25  ;;  %v1034_v40 = vunpack.c.l.s8.bf16 %v962_v26 }
 0x111   : > { %928 = vst [vmem:[#allocation2 + $0x760] sm:$0xff] %v800_v44  ;;  %929 = vst [vmem:[#allocation2 + $0x768] sm:$0xff] %v801_v45  ;;  %v7935_v44 = vld [vmem:[#allocation8 + $0x4a0] sm:$0xff]  ;;  %v1036_v45 = vunpack.c.h.s8.bf16 %v7906_v12 }
 0x112   : > { %930 = vst [vmem:[#allocation2 + $0x770] sm:$0xff] %v802_v46  ;;  %931 = vst [vmem:[#allocation2 + $0x778] sm:$0xff] %v803_v47  ;;  %v1037_v46 = vunpack.c.h.s8.bf16 %v7908_v13  ;;  %v1038_v47 = vunpack.c.h.s8.bf16 %v7911_v18  ;;  %v1056_v12 = vunpack.c.h.s8.bf16 %v7935_v44  ;;  %v1062_v18 = vunpack.c.l.s8.bf16 %v7951_v2 }
 0x113   : > { %932 = vst [vmem:[#allocation2 + $0x780] sm:$0xff] %v804_v48  ;;  %933 = vst [vmem:[#allocation2 + $0x788] sm:$0xff] %v805_v49  ;;  %v1039_v48 = vunpack.c.h.s8.bf16 %v7913_v19  ;;  %v969_v49 = vld [vmem:[#allocation8 + $0x4a8] sm:$0xff]  ;;  %v1063_v19 = vunpack.c.l.s8.bf16 %v7953_v3 }
 0x114   : > { %934 = vst [vmem:[#allocation2 + $0x790] sm:$0xff] %v806_v50  ;;  %935 = vst [vmem:[#allocation2 + $0x798] sm:$0xff] %v807_v51  ;;  %v970_v50 = vld [vmem:[#allocation8 + $0x4b0] sm:$0xff]  ;;  %v971_v51 = vld [vmem:[#allocation8 + $0x4b8] sm:$0xff]  ;;  %v1057_v13 = vunpack.c.h.s8.bf16 %v969_v49 }
 0x115   : > { %936 = vst [vmem:[#allocation2 + $0x7a0] sm:$0xff] %v808_v54  ;;  %937 = vst [vmem:[#allocation2 + $0x7a8] sm:$0xff] %v809_v55  ;;  %v1042_v54 = vunpack.c.h.s8.bf16 %v962_v26  ;;  %v1043_v55 = vunpack.c.h.s8.bf16 %v963_v27  ;;  %v1051_v1 = vunpack.c.l.s8.bf16 %v971_v51  ;;  %v7971_v26 = vld [vmem:[#allocation8 + $0x510] sm:$0xff]  ;;  %v7973_v27 = vld [vmem:[#allocation8 + $0x518] sm:$0xff] }
 0x116   : > { %938 = vst [vmem:[#allocation2 + $0x7b0] sm:$0xff] %v810_v56  ;;  %939 = vst [vmem:[#allocation2 + $0x7b8] sm:$0xff] %v811_v57  ;;  %v1044_v56 = vunpack.c.l.s8.bf16 %v7926_v36  ;;  %v1045_v57 = vunpack.c.l.s8.bf16 %v7928_v37 }
 0x117   : > { %940 = vst [vmem:[#allocation2 + $0x7c0] sm:$0xff] %v812_v61  ;;  %941 = vst [vmem:[#allocation2 + $0x7c8] sm:$0xff] %v813_v62  ;;  %v7948_v61 = vld [vmem:[#allocation8 + $0x4c8] sm:$0xff]  ;;  %v1048_v62 = vunpack.c.l.s8.bf16 %v7935_v44  ;;  %v7986_v44 = vld [vmem:[#allocation8 + $0x540] sm:$0xff] }
 0x118   : > { %942 = vst [vmem:[#allocation2 + $0x7d0] sm:$0xff] %v814_v63  ;;  %943 = vst [vmem:[#allocation2 + $0x7d8] sm:$0xff] %v815_v0  ;;  %v1049_v63 = vunpack.c.l.s8.bf16 %v969_v49  ;;  %v1050_v0 = vunpack.c.l.s8.bf16 %v970_v50 }
 0x119   : > { %944 = vst [vmem:[#allocation2 + $0x7e0] sm:$0xff] %v816_v4  ;;  %945 = vst [vmem:[#allocation2 + $0x7e8] sm:$0xff] %v817_v5  ;;  %v7955_v4 = vld [vmem:[#allocation8 + $0x4e0] sm:$0xff]  ;;  %v1052_v5 = vunpack.c.h.s8.bf16 %v7926_v36 }
 0x11a   : > { %946 = vst [vmem:[#allocation2 + $0x7f0] sm:$0xff] %v818_v6  ;;  %947 = vst [vmem:[#allocation2 + $0x7f8] sm:$0xff] %v819_v7  ;;  %v1053_v6 = vunpack.c.h.s8.bf16 %v7928_v37  ;;  %v1054_v7 = vunpack.c.h.s8.bf16 %v7931_v42  ;;  %v1072_v36 = vunpack.c.h.s8.bf16 %v7955_v4  ;;  %v1078_v42 = vunpack.c.l.s8.bf16 %v7971_v26 }
 0x11b   : > { %1140 = vst [vmem:[#allocation2 + $0x800] sm:$0xff] %v1012_v8  ;;  %1141 = vst [vmem:[#allocation2 + $0x808] sm:$0xff] %v1013_v9  ;;  %v1055_v8 = vunpack.c.h.s8.bf16 %v7933_v43  ;;  %v977_v9 = vld [vmem:[#allocation8 + $0x4e8] sm:$0xff]  ;;  %v1079_v43 = vunpack.c.l.s8.bf16 %v7973_v27 }
 0x11c   : > { %1142 = vst [vmem:[#allocation2 + $0x810] sm:$0xff] %v1014_v10  ;;  %1143 = vst [vmem:[#allocation2 + $0x818] sm:$0xff] %v1015_v11  ;;  %v978_v10 = vld [vmem:[#allocation8 + $0x4f0] sm:$0xff]  ;;  %v979_v11 = vld [vmem:[#allocation8 + $0x4f8] sm:$0xff]  ;;  %v1073_v37 = vunpack.c.h.s8.bf16 %v977_v9 }
 0x11d   : > { %1144 = vst [vmem:[#allocation2 + $0x820] sm:$0xff] %v1016_v14  ;;  %1145 = vst [vmem:[#allocation2 + $0x828] sm:$0xff] %v1017_v15  ;;  %v1058_v14 = vunpack.c.h.s8.bf16 %v970_v50  ;;  %v1059_v15 = vunpack.c.h.s8.bf16 %v971_v51  ;;  %v1067_v25 = vunpack.c.l.s8.bf16 %v979_v11  ;;  %v7991_v50 = vld [vmem:[#allocation8 + $0x550] sm:$0xff]  ;;  %v7993_v51 = vld [vmem:[#allocation8 + $0x558] sm:$0xff] }
 0x11e   : > { %1146 = vst [vmem:[#allocation2 + $0x830] sm:$0xff] %v1018_v16  ;;  %1147 = vst [vmem:[#allocation2 + $0x838] sm:$0xff] %v1019_v17  ;;  %v1060_v16 = vunpack.c.l.s8.bf16 %v7946_v60  ;;  %v1061_v17 = vunpack.c.l.s8.bf16 %v7948_v61 }
 0x11f   : > { %1148 = vst [vmem:[#allocation2 + $0x840] sm:$0xff] %v1020_v21  ;;  %1149 = vst [vmem:[#allocation2 + $0x848] sm:$0xff] %v1021_v22  ;;  %v7968_v21 = vld [vmem:[#allocation8 + $0x508] sm:$0xff]  ;;  %v1064_v22 = vunpack.c.l.s8.bf16 %v7955_v4  ;;  %v8006_v4 = vld [vmem:[#allocation8 + $0x580] sm:$0xff] }
 0x120   : > { %1150 = vst [vmem:[#allocation2 + $0x850] sm:$0xff] %v1022_v23  ;;  %1151 = vst [vmem:[#allocation2 + $0x858] sm:$0xff] %v1023_v24  ;;  %v1065_v23 = vunpack.c.l.s8.bf16 %v977_v9  ;;  %v1066_v24 = vunpack.c.l.s8.bf16 %v978_v10 }
 0x121   : > { %1152 = vst [vmem:[#allocation2 + $0x860] sm:$0xff] %v1024_v28  ;;  %1153 = vst [vmem:[#allocation2 + $0x868] sm:$0xff] %v1025_v29  ;;  %v7975_v28 = vld [vmem:[#allocation8 + $0x520] sm:$0xff]  ;;  %v1068_v29 = vunpack.c.h.s8.bf16 %v7946_v60 }
 0x122   : > { %1154 = vst [vmem:[#allocation2 + $0x870] sm:$0xff] %v1026_v30  ;;  %1155 = vst [vmem:[#allocation2 + $0x878] sm:$0xff] %v1027_v31  ;;  %v1069_v30 = vunpack.c.h.s8.bf16 %v7948_v61  ;;  %v1070_v31 = vunpack.c.h.s8.bf16 %v7951_v2  ;;  %v1088_v60 = vunpack.c.h.s8.bf16 %v7975_v28  ;;  %v1094_v2 = vunpack.c.l.s8.bf16 %v7991_v50 }
 0x123   : > { %1156 = vst [vmem:[#allocation2 + $0x880] sm:$0xff] %v1028_v32  ;;  %1157 = vst [vmem:[#allocation2 + $0x888] sm:$0xff] %v1029_v33  ;;  %v1071_v32 = vunpack.c.h.s8.bf16 %v7953_v3  ;;  %v985_v33 = vld [vmem:[#allocation8 + $0x528] sm:$0xff]  ;;  %v1095_v3 = vunpack.c.l.s8.bf16 %v7993_v51 }
 0x124   : > { %1158 = vst [vmem:[#allocation2 + $0x890] sm:$0xff] %v1030_v34  ;;  %1159 = vst [vmem:[#allocation2 + $0x898] sm:$0xff] %v1031_v35  ;;  %v986_v34 = vld [vmem:[#allocation8 + $0x530] sm:$0xff]  ;;  %v987_v35 = vld [vmem:[#allocation8 + $0x538] sm:$0xff]  ;;  %v1089_v61 = vunpack.c.h.s8.bf16 %v985_v33 }
 0x125   : > { %1160 = vst [vmem:[#allocation2 + $0x8a0] sm:$0xff] %v1032_v38  ;;  %1161 = vst [vmem:[#allocation2 + $0x8a8] sm:$0xff] %v1033_v39  ;;  %v1074_v38 = vunpack.c.h.s8.bf16 %v978_v10  ;;  %v1075_v39 = vunpack.c.h.s8.bf16 %v979_v11  ;;  %v1083_v49 = vunpack.c.l.s8.bf16 %v987_v35  ;;  %v8011_v10 = vld [vmem:[#allocation8 + $0x590] sm:$0xff]  ;;  %v8013_v11 = vld [vmem:[#allocation8 + $0x598] sm:$0xff] }
 0x126   : > { %1162 = vst [vmem:[#allocation2 + $0x8b0] sm:$0xff] %v1034_v40  ;;  %1163 = vst [vmem:[#allocation2 + $0x8b8] sm:$0xff] %v1035_v41  ;;  %v1076_v40 = vunpack.c.l.s8.bf16 %v7966_v20  ;;  %v1077_v41 = vunpack.c.l.s8.bf16 %v7968_v21 }
 0x127   : > { %1164 = vst [vmem:[#allocation2 + $0x8c0] sm:$0xff] %v1036_v45  ;;  %1165 = vst [vmem:[#allocation2 + $0x8c8] sm:$0xff] %v1037_v46  ;;  %v7988_v45 = vld [vmem:[#allocation8 + $0x548] sm:$0xff]  ;;  %v1080_v46 = vunpack.c.l.s8.bf16 %v7975_v28  ;;  %v8026_v28 = vld [vmem:[#allocation8 + $0x5c0] sm:$0xff] }
 0x128   : > { %1166 = vst [vmem:[#allocation2 + $0x8d0] sm:$0xff] %v1038_v47  ;;  %1167 = vst [vmem:[#allocation2 + $0x8d8] sm:$0xff] %v1039_v48  ;;  %v1081_v47 = vunpack.c.l.s8.bf16 %v985_v33  ;;  %v1082_v48 = vunpack.c.l.s8.bf16 %v986_v34 }
 0x129   : > { %1168 = vst [vmem:[#allocation2 + $0x8e0] sm:$0xff] %v1040_v52  ;;  %1169 = vst [vmem:[#allocation2 + $0x8e8] sm:$0xff] %v1041_v53  ;;  %v7995_v52 = vld [vmem:[#allocation8 + $0x560] sm:$0xff]  ;;  %v1084_v53 = vunpack.c.h.s8.bf16 %v7966_v20 }
 0x12a   : > { %1170 = vst [vmem:[#allocation2 + $0x8f0] sm:$0xff] %v1042_v54  ;;  %1171 = vst [vmem:[#allocation2 + $0x8f8] sm:$0xff] %v1043_v55  ;;  %v1085_v54 = vunpack.c.h.s8.bf16 %v7968_v21  ;;  %v1086_v55 = vunpack.c.h.s8.bf16 %v7971_v26  ;;  %v1104_v20 = vunpack.c.h.s8.bf16 %v7995_v52  ;;  %v1110_v26 = vunpack.c.l.s8.bf16 %v8011_v10 }
 0x12b   : > { %1172 = vst [vmem:[#allocation2 + $0x900] sm:$0xff] %v1044_v56  ;;  %1173 = vst [vmem:[#allocation2 + $0x908] sm:$0xff] %v1045_v57  ;;  %v1087_v56 = vunpack.c.h.s8.bf16 %v7973_v27  ;;  %v993_v57 = vld [vmem:[#allocation8 + $0x568] sm:$0xff]  ;;  %v1111_v27 = vunpack.c.l.s8.bf16 %v8013_v11 }
 0x12c   : > { %1174 = vst [vmem:[#allocation2 + $0x910] sm:$0xff] %v1046_v58  ;;  %1175 = vst [vmem:[#allocation2 + $0x918] sm:$0xff] %v1047_v59  ;;  %v994_v58 = vld [vmem:[#allocation8 + $0x570] sm:$0xff]  ;;  %v995_v59 = vld [vmem:[#allocation8 + $0x578] sm:$0xff]  ;;  %v1105_v21 = vunpack.c.h.s8.bf16 %v993_v57 }
 0x12d   : > { %1176 = vst [vmem:[#allocation2 + $0x920] sm:$0xff] %v1048_v62  ;;  %1177 = vst [vmem:[#allocation2 + $0x928] sm:$0xff] %v1049_v63  ;;  %v1090_v62 = vunpack.c.h.s8.bf16 %v986_v34  ;;  %v1091_v63 = vunpack.c.h.s8.bf16 %v987_v35  ;;  %v1099_v9 = vunpack.c.l.s8.bf16 %v995_v59  ;;  %v8031_v34 = vld [vmem:[#allocation8 + $0x5d0] sm:$0xff]  ;;  %v8033_v35 = vld [vmem:[#allocation8 + $0x5d8] sm:$0xff] }
 0x12e   : > { %1178 = vst [vmem:[#allocation2 + $0x930] sm:$0xff] %v1050_v0  ;;  %1179 = vst [vmem:[#allocation2 + $0x938] sm:$0xff] %v1051_v1  ;;  %v1092_v0 = vunpack.c.l.s8.bf16 %v7986_v44  ;;  %v1093_v1 = vunpack.c.l.s8.bf16 %v7988_v45 }
 0x12f   : > { %1180 = vst [vmem:[#allocation2 + $0x940] sm:$0xff] %v1052_v5  ;;  %1181 = vst [vmem:[#allocation2 + $0x948] sm:$0xff] %v1053_v6  ;;  %v8008_v5 = vld [vmem:[#allocation8 + $0x588] sm:$0xff]  ;;  %v1096_v6 = vunpack.c.l.s8.bf16 %v7995_v52  ;;  %v8046_v52 = vld [vmem:[#allocation8 + $0x600] sm:$0xff] }
 0x130   : > { %1182 = vst [vmem:[#allocation2 + $0x950] sm:$0xff] %v1054_v7  ;;  %1183 = vst [vmem:[#allocation2 + $0x958] sm:$0xff] %v1055_v8  ;;  %v1097_v7 = vunpack.c.l.s8.bf16 %v993_v57  ;;  %v1098_v8 = vunpack.c.l.s8.bf16 %v994_v58 }
 0x131   : > { %1184 = vst [vmem:[#allocation2 + $0x960] sm:$0xff] %v1056_v12  ;;  %1185 = vst [vmem:[#allocation2 + $0x968] sm:$0xff] %v1057_v13  ;;  %v8015_v12 = vld [vmem:[#allocation8 + $0x5a0] sm:$0xff]  ;;  %v1100_v13 = vunpack.c.h.s8.bf16 %v7986_v44 }
 0x132   : > { %1186 = vst [vmem:[#allocation2 + $0x970] sm:$0xff] %v1058_v14  ;;  %1187 = vst [vmem:[#allocation2 + $0x978] sm:$0xff] %v1059_v15  ;;  %v1101_v14 = vunpack.c.h.s8.bf16 %v7988_v45  ;;  %v1102_v15 = vunpack.c.h.s8.bf16 %v7991_v50  ;;  %v1120_v44 = vunpack.c.h.s8.bf16 %v8015_v12  ;;  %v1126_v50 = vunpack.c.l.s8.bf16 %v8031_v34 }
 0x133   : > { %1188 = vst [vmem:[#allocation2 + $0x980] sm:$0xff] %v1060_v16  ;;  %1189 = vst [vmem:[#allocation2 + $0x988] sm:$0xff] %v1061_v17  ;;  %v1103_v16 = vunpack.c.h.s8.bf16 %v7993_v51  ;;  %v1001_v17 = vld [vmem:[#allocation8 + $0x5a8] sm:$0xff]  ;;  %v1127_v51 = vunpack.c.l.s8.bf16 %v8033_v35 }
 0x134   : > { %1190 = vst [vmem:[#allocation2 + $0x990] sm:$0xff] %v1062_v18  ;;  %1191 = vst [vmem:[#allocation2 + $0x998] sm:$0xff] %v1063_v19  ;;  %v1002_v18 = vld [vmem:[#allocation8 + $0x5b0] sm:$0xff]  ;;  %v1003_v19 = vld [vmem:[#allocation8 + $0x5b8] sm:$0xff]  ;;  %v1121_v45 = vunpack.c.h.s8.bf16 %v1001_v17 }
 0x135   : > { %1192 = vst [vmem:[#allocation2 + $0x9a0] sm:$0xff] %v1064_v22  ;;  %1193 = vst [vmem:[#allocation2 + $0x9a8] sm:$0xff] %v1065_v23  ;;  %v1106_v22 = vunpack.c.h.s8.bf16 %v994_v58  ;;  %v1107_v23 = vunpack.c.h.s8.bf16 %v995_v59  ;;  %v1115_v33 = vunpack.c.l.s8.bf16 %v1003_v19  ;;  %v8051_v58 = vld [vmem:[#allocation8 + $0x610] sm:$0xff]  ;;  %v8053_v59 = vld [vmem:[#allocation8 + $0x618] sm:$0xff] }
 0x136   : > { %1194 = vst [vmem:[#allocation2 + $0x9b0] sm:$0xff] %v1066_v24  ;;  %1195 = vst [vmem:[#allocation2 + $0x9b8] sm:$0xff] %v1067_v25  ;;  %v1108_v24 = vunpack.c.l.s8.bf16 %v8006_v4  ;;  %v1109_v25 = vunpack.c.l.s8.bf16 %v8008_v5 }
 0x137   : > { %1196 = vst [vmem:[#allocation2 + $0x9c0] sm:$0xff] %v1068_v29  ;;  %1197 = vst [vmem:[#allocation2 + $0x9c8] sm:$0xff] %v1069_v30  ;;  %v8028_v29 = vld [vmem:[#allocation8 + $0x5c8] sm:$0xff]  ;;  %v1112_v30 = vunpack.c.l.s8.bf16 %v8015_v12  ;;  %v8066_v12 = vld [vmem:[#allocation8 + $0x640] sm:$0xff] }
 0x138   : > { %1198 = vst [vmem:[#allocation2 + $0x9d0] sm:$0xff] %v1070_v31  ;;  %1199 = vst [vmem:[#allocation2 + $0x9d8] sm:$0xff] %v1071_v32  ;;  %v1113_v31 = vunpack.c.l.s8.bf16 %v1001_v17  ;;  %v1114_v32 = vunpack.c.l.s8.bf16 %v1002_v18 }
 0x139   : > { %1200 = vst [vmem:[#allocation2 + $0x9e0] sm:$0xff] %v1072_v36  ;;  %1201 = vst [vmem:[#allocation2 + $0x9e8] sm:$0xff] %v1073_v37  ;;  %v8035_v36 = vld [vmem:[#allocation8 + $0x5e0] sm:$0xff]  ;;  %v1116_v37 = vunpack.c.h.s8.bf16 %v8006_v4 }
 0x13a   : > { %1202 = vst [vmem:[#allocation2 + $0x9f0] sm:$0xff] %v1074_v38  ;;  %1203 = vst [vmem:[#allocation2 + $0x9f8] sm:$0xff] %v1075_v39  ;;  %v1117_v38 = vunpack.c.h.s8.bf16 %v8008_v5  ;;  %v1118_v39 = vunpack.c.h.s8.bf16 %v8011_v10  ;;  %v1136_v4 = vunpack.c.h.s8.bf16 %v8035_v36  ;;  %v1334_v10 = vunpack.c.l.s8.bf16 %v8051_v58 }
 0x13b   : > { %1204 = vst [vmem:[#allocation2 + $0xa00] sm:$0xff] %v1076_v40  ;;  %1205 = vst [vmem:[#allocation2 + $0xa08] sm:$0xff] %v1077_v41  ;;  %v1119_v40 = vunpack.c.h.s8.bf16 %v8013_v11  ;;  %v1009_v41 = vld [vmem:[#allocation8 + $0x5e8] sm:$0xff]  ;;  %v1335_v11 = vunpack.c.l.s8.bf16 %v8053_v59 }
 0x13c   : > { %1206 = vst [vmem:[#allocation2 + $0xa10] sm:$0xff] %v1078_v42  ;;  %1207 = vst [vmem:[#allocation2 + $0xa18] sm:$0xff] %v1079_v43  ;;  %v1010_v42 = vld [vmem:[#allocation8 + $0x5f0] sm:$0xff]  ;;  %v1011_v43 = vld [vmem:[#allocation8 + $0x5f8] sm:$0xff]  ;;  %v1137_v5 = vunpack.c.h.s8.bf16 %v1009_v41 }
 0x13d   : > { %1208 = vst [vmem:[#allocation2 + $0xa20] sm:$0xff] %v1080_v46  ;;  %1209 = vst [vmem:[#allocation2 + $0xa28] sm:$0xff] %v1081_v47  ;;  %v1122_v46 = vunpack.c.h.s8.bf16 %v1002_v18  ;;  %v1123_v47 = vunpack.c.h.s8.bf16 %v1003_v19  ;;  %v1131_v57 = vunpack.c.l.s8.bf16 %v1011_v43  ;;  %v8071_v18 = vld [vmem:[#allocation8 + $0x650] sm:$0xff]  ;;  %v8073_v19 = vld [vmem:[#allocation8 + $0x658] sm:$0xff] }
 0x13e   : > { %1210 = vst [vmem:[#allocation2 + $0xa30] sm:$0xff] %v1082_v48  ;;  %1211 = vst [vmem:[#allocation2 + $0xa38] sm:$0xff] %v1083_v49  ;;  %v1124_v48 = vunpack.c.l.s8.bf16 %v8026_v28  ;;  %v1125_v49 = vunpack.c.l.s8.bf16 %v8028_v29 }
 0x13f   : > { %1212 = vst [vmem:[#allocation2 + $0xa40] sm:$0xff] %v1084_v53  ;;  %1213 = vst [vmem:[#allocation2 + $0xa48] sm:$0xff] %v1085_v54  ;;  %v8048_v53 = vld [vmem:[#allocation8 + $0x608] sm:$0xff]  ;;  %v1128_v54 = vunpack.c.l.s8.bf16 %v8035_v36  ;;  %v8086_v36 = vld [vmem:[#allocation8 + $0x680] sm:$0xff] }
 0x140   : > { %1214 = vst [vmem:[#allocation2 + $0xa50] sm:$0xff] %v1086_v55  ;;  %1215 = vst [vmem:[#allocation2 + $0xa58] sm:$0xff] %v1087_v56  ;;  %v1129_v55 = vunpack.c.l.s8.bf16 %v1009_v41  ;;  %v1130_v56 = vunpack.c.l.s8.bf16 %v1010_v42 }
 0x141   : > { %1216 = vst [vmem:[#allocation2 + $0xa60] sm:$0xff] %v1088_v60  ;;  %1217 = vst [vmem:[#allocation2 + $0xa68] sm:$0xff] %v1089_v61  ;;  %v8055_v60 = vld [vmem:[#allocation8 + $0x620] sm:$0xff]  ;;  %v1132_v61 = vunpack.c.h.s8.bf16 %v8026_v28 }
 0x142   : > { %1218 = vst [vmem:[#allocation2 + $0xa70] sm:$0xff] %v1090_v62  ;;  %1219 = vst [vmem:[#allocation2 + $0xa78] sm:$0xff] %v1091_v63  ;;  %v1133_v62 = vunpack.c.h.s8.bf16 %v8028_v29  ;;  %v1134_v63 = vunpack.c.h.s8.bf16 %v8031_v34  ;;  %v1344_v28 = vunpack.c.h.s8.bf16 %v8055_v60  ;;  %v1350_v34 = vunpack.c.l.s8.bf16 %v8071_v18 }
 0x143   : > { %1220 = vst [vmem:[#allocation2 + $0xa80] sm:$0xff] %v1092_v0  ;;  %1221 = vst [vmem:[#allocation2 + $0xa88] sm:$0xff] %v1093_v1  ;;  %v1135_v0 = vunpack.c.h.s8.bf16 %v8033_v35  ;;  %v1273_v1 = vld [vmem:[#allocation8 + $0x628] sm:$0xff]  ;;  %v1351_v35 = vunpack.c.l.s8.bf16 %v8073_v19 }
 0x144   : > { %1222 = vst [vmem:[#allocation2 + $0xa90] sm:$0xff] %v1094_v2  ;;  %1223 = vst [vmem:[#allocation2 + $0xa98] sm:$0xff] %v1095_v3  ;;  %v1274_v2 = vld [vmem:[#allocation8 + $0x630] sm:$0xff]  ;;  %v1275_v3 = vld [vmem:[#allocation8 + $0x638] sm:$0xff]  ;;  %v1345_v29 = vunpack.c.h.s8.bf16 %v1273_v1 }
 0x145   : > { %1224 = vst [vmem:[#allocation2 + $0xaa0] sm:$0xff] %v1096_v6  ;;  %1225 = vst [vmem:[#allocation2 + $0xaa8] sm:$0xff] %v1097_v7  ;;  %v1138_v6 = vunpack.c.h.s8.bf16 %v1010_v42  ;;  %v1139_v7 = vunpack.c.h.s8.bf16 %v1011_v43  ;;  %v1339_v17 = vunpack.c.l.s8.bf16 %v1275_v3  ;;  %v8091_v42 = vld [vmem:[#allocation8 + $0x690] sm:$0xff]  ;;  %v8093_v43 = vld [vmem:[#allocation8 + $0x698] sm:$0xff] }
 0x146   : > { %1226 = vst [vmem:[#allocation2 + $0xab0] sm:$0xff] %v1098_v8  ;;  %1227 = vst [vmem:[#allocation2 + $0xab8] sm:$0xff] %v1099_v9  ;;  %v1332_v8 = vunpack.c.l.s8.bf16 %v8046_v52  ;;  %v1333_v9 = vunpack.c.l.s8.bf16 %v8048_v53 }
 0x147   : > { %1228 = vst [vmem:[#allocation2 + $0xac0] sm:$0xff] %v1100_v13  ;;  %1229 = vst [vmem:[#allocation2 + $0xac8] sm:$0xff] %v1101_v14  ;;  %v8068_v13 = vld [vmem:[#allocation8 + $0x648] sm:$0xff]  ;;  %v1336_v14 = vunpack.c.l.s8.bf16 %v8055_v60  ;;  %v8106_v60 = vld [vmem:[#allocation8 + $0x6c0] sm:$0xff] }
 0x148   : > { %1230 = vst [vmem:[#allocation2 + $0xad0] sm:$0xff] %v1102_v15  ;;  %1231 = vst [vmem:[#allocation2 + $0xad8] sm:$0xff] %v1103_v16  ;;  %v1337_v15 = vunpack.c.l.s8.bf16 %v1273_v1  ;;  %v1338_v16 = vunpack.c.l.s8.bf16 %v1274_v2 }
 0x149   : > { %1232 = vst [vmem:[#allocation2 + $0xae0] sm:$0xff] %v1104_v20  ;;  %1233 = vst [vmem:[#allocation2 + $0xae8] sm:$0xff] %v1105_v21  ;;  %v8075_v20 = vld [vmem:[#allocation8 + $0x660] sm:$0xff]  ;;  %v1340_v21 = vunpack.c.h.s8.bf16 %v8046_v52 }
 0x14a   : > { %1234 = vst [vmem:[#allocation2 + $0xaf0] sm:$0xff] %v1106_v22  ;;  %1235 = vst [vmem:[#allocation2 + $0xaf8] sm:$0xff] %v1107_v23  ;;  %v1341_v22 = vunpack.c.h.s8.bf16 %v8048_v53  ;;  %v1342_v23 = vunpack.c.h.s8.bf16 %v8051_v58  ;;  %v1360_v52 = vunpack.c.h.s8.bf16 %v8075_v20  ;;  %v1366_v58 = vunpack.c.l.s8.bf16 %v8091_v42 }
 0x14b   : > { %1236 = vst [vmem:[#allocation2 + $0xb00] sm:$0xff] %v1108_v24  ;;  %1237 = vst [vmem:[#allocation2 + $0xb08] sm:$0xff] %v1109_v25  ;;  %v1343_v24 = vunpack.c.h.s8.bf16 %v8053_v59  ;;  %v1281_v25 = vld [vmem:[#allocation8 + $0x668] sm:$0xff]  ;;  %v1367_v59 = vunpack.c.l.s8.bf16 %v8093_v43 }
 0x14c   : > { %1238 = vst [vmem:[#allocation2 + $0xb10] sm:$0xff] %v1110_v26  ;;  %1239 = vst [vmem:[#allocation2 + $0xb18] sm:$0xff] %v1111_v27  ;;  %v1282_v26 = vld [vmem:[#allocation8 + $0x670] sm:$0xff]  ;;  %v1283_v27 = vld [vmem:[#allocation8 + $0x678] sm:$0xff]  ;;  %v1361_v53 = vunpack.c.h.s8.bf16 %v1281_v25 }
 0x14d   : > { %1240 = vst [vmem:[#allocation2 + $0xb20] sm:$0xff] %v1112_v30  ;;  %1241 = vst [vmem:[#allocation2 + $0xb28] sm:$0xff] %v1113_v31  ;;  %v1346_v30 = vunpack.c.h.s8.bf16 %v1274_v2  ;;  %v1347_v31 = vunpack.c.h.s8.bf16 %v1275_v3  ;;  %v1355_v41 = vunpack.c.l.s8.bf16 %v1283_v27  ;;  %v8111_v2 = vld [vmem:[#allocation8 + $0x6d0] sm:$0xff]  ;;  %v8113_v3 = vld [vmem:[#allocation8 + $0x6d8] sm:$0xff] }
 0x14e   : > { %1242 = vst [vmem:[#allocation2 + $0xb30] sm:$0xff] %v1114_v32  ;;  %1243 = vst [vmem:[#allocation2 + $0xb38] sm:$0xff] %v1115_v33  ;;  %v1348_v32 = vunpack.c.l.s8.bf16 %v8066_v12  ;;  %v1349_v33 = vunpack.c.l.s8.bf16 %v8068_v13 }
 0x14f   : > { %1244 = vst [vmem:[#allocation2 + $0xb40] sm:$0xff] %v1116_v37  ;;  %1245 = vst [vmem:[#allocation2 + $0xb48] sm:$0xff] %v1117_v38  ;;  %v8088_v37 = vld [vmem:[#allocation8 + $0x688] sm:$0xff]  ;;  %v1352_v38 = vunpack.c.l.s8.bf16 %v8075_v20  ;;  %v8126_v20 = vld [vmem:[#allocation8 + $0x700] sm:$0xff] }
 0x150   : > { %1246 = vst [vmem:[#allocation2 + $0xb50] sm:$0xff] %v1118_v39  ;;  %1247 = vst [vmem:[#allocation2 + $0xb58] sm:$0xff] %v1119_v40  ;;  %v1353_v39 = vunpack.c.l.s8.bf16 %v1281_v25  ;;  %v1354_v40 = vunpack.c.l.s8.bf16 %v1282_v26 }
 0x151   : > { %1248 = vst [vmem:[#allocation2 + $0xb60] sm:$0xff] %v1120_v44  ;;  %1249 = vst [vmem:[#allocation2 + $0xb68] sm:$0xff] %v1121_v45  ;;  %v8095_v44 = vld [vmem:[#allocation8 + $0x6a0] sm:$0xff]  ;;  %v1356_v45 = vunpack.c.h.s8.bf16 %v8066_v12 }
 0x152   : > { %1250 = vst [vmem:[#allocation2 + $0xb70] sm:$0xff] %v1122_v46  ;;  %1251 = vst [vmem:[#allocation2 + $0xb78] sm:$0xff] %v1123_v47  ;;  %v1357_v46 = vunpack.c.h.s8.bf16 %v8068_v13  ;;  %v1358_v47 = vunpack.c.h.s8.bf16 %v8071_v18  ;;  %v1376_v12 = vunpack.c.h.s8.bf16 %v8095_v44  ;;  %v1382_v18 = vunpack.c.l.s8.bf16 %v8111_v2 }
 0x153   : > { %1252 = vst [vmem:[#allocation2 + $0xb80] sm:$0xff] %v1124_v48  ;;  %1253 = vst [vmem:[#allocation2 + $0xb88] sm:$0xff] %v1125_v49  ;;  %v1359_v48 = vunpack.c.h.s8.bf16 %v8073_v19  ;;  %v1289_v49 = vld [vmem:[#allocation8 + $0x6a8] sm:$0xff]  ;;  %v1383_v19 = vunpack.c.l.s8.bf16 %v8113_v3 }
 0x154   : > { %1254 = vst [vmem:[#allocation2 + $0xb90] sm:$0xff] %v1126_v50  ;;  %1255 = vst [vmem:[#allocation2 + $0xb98] sm:$0xff] %v1127_v51  ;;  %v1290_v50 = vld [vmem:[#allocation8 + $0x6b0] sm:$0xff]  ;;  %v1291_v51 = vld [vmem:[#allocation8 + $0x6b8] sm:$0xff]  ;;  %v1377_v13 = vunpack.c.h.s8.bf16 %v1289_v49 }
 0x155   : > { %1256 = vst [vmem:[#allocation2 + $0xba0] sm:$0xff] %v1128_v54  ;;  %1257 = vst [vmem:[#allocation2 + $0xba8] sm:$0xff] %v1129_v55  ;;  %v1362_v54 = vunpack.c.h.s8.bf16 %v1282_v26  ;;  %v1363_v55 = vunpack.c.h.s8.bf16 %v1283_v27  ;;  %v1371_v1 = vunpack.c.l.s8.bf16 %v1291_v51  ;;  %v8131_v26 = vld [vmem:[#allocation8 + $0x710] sm:$0xff]  ;;  %v8133_v27 = vld [vmem:[#allocation8 + $0x718] sm:$0xff] }
 0x156   : > { %1258 = vst [vmem:[#allocation2 + $0xbb0] sm:$0xff] %v1130_v56  ;;  %1259 = vst [vmem:[#allocation2 + $0xbb8] sm:$0xff] %v1131_v57  ;;  %v1364_v56 = vunpack.c.l.s8.bf16 %v8086_v36  ;;  %v1365_v57 = vunpack.c.l.s8.bf16 %v8088_v37 }
 0x157   : > { %1260 = vst [vmem:[#allocation2 + $0xbc0] sm:$0xff] %v1132_v61  ;;  %1261 = vst [vmem:[#allocation2 + $0xbc8] sm:$0xff] %v1133_v62  ;;  %v8108_v61 = vld [vmem:[#allocation8 + $0x6c8] sm:$0xff]  ;;  %v1368_v62 = vunpack.c.l.s8.bf16 %v8095_v44  ;;  %v8146_v44 = vld [vmem:[#allocation8 + $0x740] sm:$0xff] }
 0x158   : > { %1262 = vst [vmem:[#allocation2 + $0xbd0] sm:$0xff] %v1134_v63  ;;  %1263 = vst [vmem:[#allocation2 + $0xbd8] sm:$0xff] %v1135_v0  ;;  %v1369_v63 = vunpack.c.l.s8.bf16 %v1289_v49  ;;  %v1370_v0 = vunpack.c.l.s8.bf16 %v1290_v50 }
 0x159   : > { %1264 = vst [vmem:[#allocation2 + $0xbe0] sm:$0xff] %v1136_v4  ;;  %1265 = vst [vmem:[#allocation2 + $0xbe8] sm:$0xff] %v1137_v5  ;;  %v8115_v4 = vld [vmem:[#allocation8 + $0x6e0] sm:$0xff]  ;;  %v1372_v5 = vunpack.c.h.s8.bf16 %v8086_v36 }
 0x15a   : > { %1266 = vst [vmem:[#allocation2 + $0xbf0] sm:$0xff] %v1138_v6  ;;  %1267 = vst [vmem:[#allocation2 + $0xbf8] sm:$0xff] %v1139_v7  ;;  %v1373_v6 = vunpack.c.h.s8.bf16 %v8088_v37  ;;  %v1374_v7 = vunpack.c.h.s8.bf16 %v8091_v42  ;;  %v1392_v36 = vunpack.c.h.s8.bf16 %v8115_v4  ;;  %v1398_v42 = vunpack.c.l.s8.bf16 %v8131_v26 }
 0x15b   : > { %1460 = vst [vmem:[#allocation2 + $0xc00] sm:$0xff] %v1332_v8  ;;  %1461 = vst [vmem:[#allocation2 + $0xc08] sm:$0xff] %v1333_v9  ;;  %v1375_v8 = vunpack.c.h.s8.bf16 %v8093_v43  ;;  %v1297_v9 = vld [vmem:[#allocation8 + $0x6e8] sm:$0xff]  ;;  %v1399_v43 = vunpack.c.l.s8.bf16 %v8133_v27 }
 0x15c   : > { %1462 = vst [vmem:[#allocation2 + $0xc10] sm:$0xff] %v1334_v10  ;;  %1463 = vst [vmem:[#allocation2 + $0xc18] sm:$0xff] %v1335_v11  ;;  %v1298_v10 = vld [vmem:[#allocation8 + $0x6f0] sm:$0xff]  ;;  %v1299_v11 = vld [vmem:[#allocation8 + $0x6f8] sm:$0xff]  ;;  %v1393_v37 = vunpack.c.h.s8.bf16 %v1297_v9 }
 0x15d   : > { %1464 = vst [vmem:[#allocation2 + $0xc20] sm:$0xff] %v1336_v14  ;;  %1465 = vst [vmem:[#allocation2 + $0xc28] sm:$0xff] %v1337_v15  ;;  %v1378_v14 = vunpack.c.h.s8.bf16 %v1290_v50  ;;  %v1379_v15 = vunpack.c.h.s8.bf16 %v1291_v51  ;;  %v1387_v25 = vunpack.c.l.s8.bf16 %v1299_v11  ;;  %v8151_v50 = vld [vmem:[#allocation8 + $0x750] sm:$0xff]  ;;  %v8153_v51 = vld [vmem:[#allocation8 + $0x758] sm:$0xff] }
 0x15e   : > { %1466 = vst [vmem:[#allocation2 + $0xc30] sm:$0xff] %v1338_v16  ;;  %1467 = vst [vmem:[#allocation2 + $0xc38] sm:$0xff] %v1339_v17  ;;  %v1380_v16 = vunpack.c.l.s8.bf16 %v8106_v60  ;;  %v1381_v17 = vunpack.c.l.s8.bf16 %v8108_v61 }
 0x15f   : > { %1468 = vst [vmem:[#allocation2 + $0xc40] sm:$0xff] %v1340_v21  ;;  %1469 = vst [vmem:[#allocation2 + $0xc48] sm:$0xff] %v1341_v22  ;;  %v8128_v21 = vld [vmem:[#allocation8 + $0x708] sm:$0xff]  ;;  %v1384_v22 = vunpack.c.l.s8.bf16 %v8115_v4  ;;  %v8166_v4 = vld [vmem:[#allocation8 + $0x780] sm:$0xff] }
 0x160   : > { %1470 = vst [vmem:[#allocation2 + $0xc50] sm:$0xff] %v1342_v23  ;;  %1471 = vst [vmem:[#allocation2 + $0xc58] sm:$0xff] %v1343_v24  ;;  %v1385_v23 = vunpack.c.l.s8.bf16 %v1297_v9  ;;  %v1386_v24 = vunpack.c.l.s8.bf16 %v1298_v10 }
 0x161   : > { %1472 = vst [vmem:[#allocation2 + $0xc60] sm:$0xff] %v1344_v28  ;;  %1473 = vst [vmem:[#allocation2 + $0xc68] sm:$0xff] %v1345_v29  ;;  %v8135_v28 = vld [vmem:[#allocation8 + $0x720] sm:$0xff]  ;;  %v1388_v29 = vunpack.c.h.s8.bf16 %v8106_v60 }
 0x162   : > { %1474 = vst [vmem:[#allocation2 + $0xc70] sm:$0xff] %v1346_v30  ;;  %1475 = vst [vmem:[#allocation2 + $0xc78] sm:$0xff] %v1347_v31  ;;  %v1389_v30 = vunpack.c.h.s8.bf16 %v8108_v61  ;;  %v1390_v31 = vunpack.c.h.s8.bf16 %v8111_v2  ;;  %v1408_v60 = vunpack.c.h.s8.bf16 %v8135_v28  ;;  %v1414_v2 = vunpack.c.l.s8.bf16 %v8151_v50 }
 0x163   : > { %1476 = vst [vmem:[#allocation2 + $0xc80] sm:$0xff] %v1348_v32  ;;  %1477 = vst [vmem:[#allocation2 + $0xc88] sm:$0xff] %v1349_v33  ;;  %v1391_v32 = vunpack.c.h.s8.bf16 %v8113_v3  ;;  %v1305_v33 = vld [vmem:[#allocation8 + $0x728] sm:$0xff]  ;;  %v1415_v3 = vunpack.c.l.s8.bf16 %v8153_v51 }
 0x164   : > { %1478 = vst [vmem:[#allocation2 + $0xc90] sm:$0xff] %v1350_v34  ;;  %1479 = vst [vmem:[#allocation2 + $0xc98] sm:$0xff] %v1351_v35  ;;  %v1306_v34 = vld [vmem:[#allocation8 + $0x730] sm:$0xff]  ;;  %v1307_v35 = vld [vmem:[#allocation8 + $0x738] sm:$0xff]  ;;  %v1409_v61 = vunpack.c.h.s8.bf16 %v1305_v33 }
 0x165   : > { %1480 = vst [vmem:[#allocation2 + $0xca0] sm:$0xff] %v1352_v38  ;;  %1481 = vst [vmem:[#allocation2 + $0xca8] sm:$0xff] %v1353_v39  ;;  %v1394_v38 = vunpack.c.h.s8.bf16 %v1298_v10  ;;  %v1395_v39 = vunpack.c.h.s8.bf16 %v1299_v11  ;;  %v1403_v49 = vunpack.c.l.s8.bf16 %v1307_v35  ;;  %v8171_v10 = vld [vmem:[#allocation8 + $0x790] sm:$0xff]  ;;  %v8173_v11 = vld [vmem:[#allocation8 + $0x798] sm:$0xff] }
 0x166   : > { %1482 = vst [vmem:[#allocation2 + $0xcb0] sm:$0xff] %v1354_v40  ;;  %1483 = vst [vmem:[#allocation2 + $0xcb8] sm:$0xff] %v1355_v41  ;;  %v1396_v40 = vunpack.c.l.s8.bf16 %v8126_v20  ;;  %v1397_v41 = vunpack.c.l.s8.bf16 %v8128_v21 }
 0x167   : > { %1484 = vst [vmem:[#allocation2 + $0xcc0] sm:$0xff] %v1356_v45  ;;  %1485 = vst [vmem:[#allocation2 + $0xcc8] sm:$0xff] %v1357_v46  ;;  %v8148_v45 = vld [vmem:[#allocation8 + $0x748] sm:$0xff]  ;;  %v1400_v46 = vunpack.c.l.s8.bf16 %v8135_v28  ;;  %v8186_v28 = vld [vmem:[#allocation8 + $0x7c0] sm:$0xff] }
 0x168   : > { %1486 = vst [vmem:[#allocation2 + $0xcd0] sm:$0xff] %v1358_v47  ;;  %1487 = vst [vmem:[#allocation2 + $0xcd8] sm:$0xff] %v1359_v48  ;;  %v1401_v47 = vunpack.c.l.s8.bf16 %v1305_v33  ;;  %v1402_v48 = vunpack.c.l.s8.bf16 %v1306_v34 }
 0x169   : > { %1488 = vst [vmem:[#allocation2 + $0xce0] sm:$0xff] %v1360_v52  ;;  %1489 = vst [vmem:[#allocation2 + $0xce8] sm:$0xff] %v1361_v53  ;;  %v8155_v52 = vld [vmem:[#allocation8 + $0x760] sm:$0xff]  ;;  %v1404_v53 = vunpack.c.h.s8.bf16 %v8126_v20 }
 0x16a   : > { %1490 = vst [vmem:[#allocation2 + $0xcf0] sm:$0xff] %v1362_v54  ;;  %1491 = vst [vmem:[#allocation2 + $0xcf8] sm:$0xff] %v1363_v55  ;;  %v1405_v54 = vunpack.c.h.s8.bf16 %v8128_v21  ;;  %v1406_v55 = vunpack.c.h.s8.bf16 %v8131_v26  ;;  %v1424_v20 = vunpack.c.h.s8.bf16 %v8155_v52  ;;  %v1430_v26 = vunpack.c.l.s8.bf16 %v8171_v10 }
 0x16b   : > { %1492 = vst [vmem:[#allocation2 + $0xd00] sm:$0xff] %v1364_v56  ;;  %1493 = vst [vmem:[#allocation2 + $0xd08] sm:$0xff] %v1365_v57  ;;  %v1407_v56 = vunpack.c.h.s8.bf16 %v8133_v27  ;;  %v1313_v57 = vld [vmem:[#allocation8 + $0x768] sm:$0xff]  ;;  %v1431_v27 = vunpack.c.l.s8.bf16 %v8173_v11 }
 0x16c   : > { %1494 = vst [vmem:[#allocation2 + $0xd10] sm:$0xff] %v1366_v58  ;;  %1495 = vst [vmem:[#allocation2 + $0xd18] sm:$0xff] %v1367_v59  ;;  %v1314_v58 = vld [vmem:[#allocation8 + $0x770] sm:$0xff]  ;;  %v1315_v59 = vld [vmem:[#allocation8 + $0x778] sm:$0xff]  ;;  %v1425_v21 = vunpack.c.h.s8.bf16 %v1313_v57 }
 0x16d   : > { %1496 = vst [vmem:[#allocation2 + $0xd20] sm:$0xff] %v1368_v62  ;;  %1497 = vst [vmem:[#allocation2 + $0xd28] sm:$0xff] %v1369_v63  ;;  %v1410_v62 = vunpack.c.h.s8.bf16 %v1306_v34  ;;  %v1411_v63 = vunpack.c.h.s8.bf16 %v1307_v35  ;;  %v1419_v9 = vunpack.c.l.s8.bf16 %v1315_v59  ;;  %v8191_v34 = vld [vmem:[#allocation8 + $0x7d0] sm:$0xff]  ;;  %v8193_v35 = vld [vmem:[#allocation8 + $0x7d8] sm:$0xff] }
 0x16e   : > { %1498 = vst [vmem:[#allocation2 + $0xd30] sm:$0xff] %v1370_v0  ;;  %1499 = vst [vmem:[#allocation2 + $0xd38] sm:$0xff] %v1371_v1  ;;  %v1412_v0 = vunpack.c.l.s8.bf16 %v8146_v44  ;;  %v1413_v1 = vunpack.c.l.s8.bf16 %v8148_v45 }
 0x16f   : > { %1500 = vst [vmem:[#allocation2 + $0xd40] sm:$0xff] %v1372_v5  ;;  %1501 = vst [vmem:[#allocation2 + $0xd48] sm:$0xff] %v1373_v6  ;;  %v8168_v5 = vld [vmem:[#allocation8 + $0x788] sm:$0xff]  ;;  %v1416_v6 = vunpack.c.l.s8.bf16 %v8155_v52  ;;  %v8206_v52 = vld [vmem:[#allocation8 + $0x800] sm:$0xff] }
 0x170   : > { %1502 = vst [vmem:[#allocation2 + $0xd50] sm:$0xff] %v1374_v7  ;;  %1503 = vst [vmem:[#allocation2 + $0xd58] sm:$0xff] %v1375_v8  ;;  %v1417_v7 = vunpack.c.l.s8.bf16 %v1313_v57  ;;  %v1418_v8 = vunpack.c.l.s8.bf16 %v1314_v58 }
 0x171   : > { %1504 = vst [vmem:[#allocation2 + $0xd60] sm:$0xff] %v1376_v12  ;;  %1505 = vst [vmem:[#allocation2 + $0xd68] sm:$0xff] %v1377_v13  ;;  %v8175_v12 = vld [vmem:[#allocation8 + $0x7a0] sm:$0xff]  ;;  %v1420_v13 = vunpack.c.h.s8.bf16 %v8146_v44 }
 0x172   : > { %1506 = vst [vmem:[#allocation2 + $0xd70] sm:$0xff] %v1378_v14  ;;  %1507 = vst [vmem:[#allocation2 + $0xd78] sm:$0xff] %v1379_v15  ;;  %v1421_v14 = vunpack.c.h.s8.bf16 %v8148_v45  ;;  %v1422_v15 = vunpack.c.h.s8.bf16 %v8151_v50  ;;  %v1440_v44 = vunpack.c.h.s8.bf16 %v8175_v12  ;;  %v1446_v50 = vunpack.c.l.s8.bf16 %v8191_v34 }
 0x173   : > { %1508 = vst [vmem:[#allocation2 + $0xd80] sm:$0xff] %v1380_v16  ;;  %1509 = vst [vmem:[#allocation2 + $0xd88] sm:$0xff] %v1381_v17  ;;  %v1423_v16 = vunpack.c.h.s8.bf16 %v8153_v51  ;;  %v1321_v17 = vld [vmem:[#allocation8 + $0x7a8] sm:$0xff]  ;;  %v1447_v51 = vunpack.c.l.s8.bf16 %v8193_v35 }
 0x174   : > { %1510 = vst [vmem:[#allocation2 + $0xd90] sm:$0xff] %v1382_v18  ;;  %1511 = vst [vmem:[#allocation2 + $0xd98] sm:$0xff] %v1383_v19  ;;  %v1322_v18 = vld [vmem:[#allocation8 + $0x7b0] sm:$0xff]  ;;  %v1323_v19 = vld [vmem:[#allocation8 + $0x7b8] sm:$0xff]  ;;  %v1441_v45 = vunpack.c.h.s8.bf16 %v1321_v17 }
 0x175   : > { %1512 = vst [vmem:[#allocation2 + $0xda0] sm:$0xff] %v1384_v22  ;;  %1513 = vst [vmem:[#allocation2 + $0xda8] sm:$0xff] %v1385_v23  ;;  %v1426_v22 = vunpack.c.h.s8.bf16 %v1314_v58  ;;  %v1427_v23 = vunpack.c.h.s8.bf16 %v1315_v59  ;;  %v1435_v33 = vunpack.c.l.s8.bf16 %v1323_v19  ;;  %v8211_v58 = vld [vmem:[#allocation8 + $0x810] sm:$0xff]  ;;  %v8213_v59 = vld [vmem:[#allocation8 + $0x818] sm:$0xff] }
 0x176   : > { %1514 = vst [vmem:[#allocation2 + $0xdb0] sm:$0xff] %v1386_v24  ;;  %1515 = vst [vmem:[#allocation2 + $0xdb8] sm:$0xff] %v1387_v25  ;;  %v1428_v24 = vunpack.c.l.s8.bf16 %v8166_v4  ;;  %v1429_v25 = vunpack.c.l.s8.bf16 %v8168_v5 }
 0x177   : > { %1516 = vst [vmem:[#allocation2 + $0xdc0] sm:$0xff] %v1388_v29  ;;  %1517 = vst [vmem:[#allocation2 + $0xdc8] sm:$0xff] %v1389_v30  ;;  %v8188_v29 = vld [vmem:[#allocation8 + $0x7c8] sm:$0xff]  ;;  %v1432_v30 = vunpack.c.l.s8.bf16 %v8175_v12  ;;  %v8226_v12 = vld [vmem:[#allocation8 + $0x840] sm:$0xff] }
 0x178   : > { %1518 = vst [vmem:[#allocation2 + $0xdd0] sm:$0xff] %v1390_v31  ;;  %1519 = vst [vmem:[#allocation2 + $0xdd8] sm:$0xff] %v1391_v32  ;;  %v1433_v31 = vunpack.c.l.s8.bf16 %v1321_v17  ;;  %v1434_v32 = vunpack.c.l.s8.bf16 %v1322_v18 }
 0x179   : > { %1520 = vst [vmem:[#allocation2 + $0xde0] sm:$0xff] %v1392_v36  ;;  %1521 = vst [vmem:[#allocation2 + $0xde8] sm:$0xff] %v1393_v37  ;;  %v8195_v36 = vld [vmem:[#allocation8 + $0x7e0] sm:$0xff]  ;;  %v1436_v37 = vunpack.c.h.s8.bf16 %v8166_v4 }
 0x17a   : > { %1522 = vst [vmem:[#allocation2 + $0xdf0] sm:$0xff] %v1394_v38  ;;  %1523 = vst [vmem:[#allocation2 + $0xdf8] sm:$0xff] %v1395_v39  ;;  %v1437_v38 = vunpack.c.h.s8.bf16 %v8168_v5  ;;  %v1438_v39 = vunpack.c.h.s8.bf16 %v8171_v10  ;;  %v1456_v4 = vunpack.c.h.s8.bf16 %v8195_v36  ;;  %v1654_v10 = vunpack.c.l.s8.bf16 %v8211_v58 }
 0x17b   : > { %1524 = vst [vmem:[#allocation2 + $0xe00] sm:$0xff] %v1396_v40  ;;  %1525 = vst [vmem:[#allocation2 + $0xe08] sm:$0xff] %v1397_v41  ;;  %v1439_v40 = vunpack.c.h.s8.bf16 %v8173_v11  ;;  %v1329_v41 = vld [vmem:[#allocation8 + $0x7e8] sm:$0xff]  ;;  %v1655_v11 = vunpack.c.l.s8.bf16 %v8213_v59 }
 0x17c   : > { %1526 = vst [vmem:[#allocation2 + $0xe10] sm:$0xff] %v1398_v42  ;;  %1527 = vst [vmem:[#allocation2 + $0xe18] sm:$0xff] %v1399_v43  ;;  %v1330_v42 = vld [vmem:[#allocation8 + $0x7f0] sm:$0xff]  ;;  %v1331_v43 = vld [vmem:[#allocation8 + $0x7f8] sm:$0xff]  ;;  %v1457_v5 = vunpack.c.h.s8.bf16 %v1329_v41 }
 0x17d   : > { %1528 = vst [vmem:[#allocation2 + $0xe20] sm:$0xff] %v1400_v46  ;;  %1529 = vst [vmem:[#allocation2 + $0xe28] sm:$0xff] %v1401_v47  ;;  %v1442_v46 = vunpack.c.h.s8.bf16 %v1322_v18  ;;  %v1443_v47 = vunpack.c.h.s8.bf16 %v1323_v19  ;;  %v1451_v57 = vunpack.c.l.s8.bf16 %v1331_v43  ;;  %v8231_v18 = vld [vmem:[#allocation8 + $0x850] sm:$0xff]  ;;  %v8233_v19 = vld [vmem:[#allocation8 + $0x858] sm:$0xff] }
 0x17e   : > { %1530 = vst [vmem:[#allocation2 + $0xe30] sm:$0xff] %v1402_v48  ;;  %1531 = vst [vmem:[#allocation2 + $0xe38] sm:$0xff] %v1403_v49  ;;  %v1444_v48 = vunpack.c.l.s8.bf16 %v8186_v28  ;;  %v1445_v49 = vunpack.c.l.s8.bf16 %v8188_v29 }
 0x17f   : > { %1532 = vst [vmem:[#allocation2 + $0xe40] sm:$0xff] %v1404_v53  ;;  %1533 = vst [vmem:[#allocation2 + $0xe48] sm:$0xff] %v1405_v54  ;;  %v8208_v53 = vld [vmem:[#allocation8 + $0x808] sm:$0xff]  ;;  %v1448_v54 = vunpack.c.l.s8.bf16 %v8195_v36  ;;  %v8246_v36 = vld [vmem:[#allocation8 + $0x880] sm:$0xff] }
 0x180   : > { %1534 = vst [vmem:[#allocation2 + $0xe50] sm:$0xff] %v1406_v55  ;;  %1535 = vst [vmem:[#allocation2 + $0xe58] sm:$0xff] %v1407_v56  ;;  %v1449_v55 = vunpack.c.l.s8.bf16 %v1329_v41  ;;  %v1450_v56 = vunpack.c.l.s8.bf16 %v1330_v42 }
 0x181   : > { %1536 = vst [vmem:[#allocation2 + $0xe60] sm:$0xff] %v1408_v60  ;;  %1537 = vst [vmem:[#allocation2 + $0xe68] sm:$0xff] %v1409_v61  ;;  %v8215_v60 = vld [vmem:[#allocation8 + $0x820] sm:$0xff]  ;;  %v1452_v61 = vunpack.c.h.s8.bf16 %v8186_v28 }
 0x182   : > { %1538 = vst [vmem:[#allocation2 + $0xe70] sm:$0xff] %v1410_v62  ;;  %1539 = vst [vmem:[#allocation2 + $0xe78] sm:$0xff] %v1411_v63  ;;  %v1453_v62 = vunpack.c.h.s8.bf16 %v8188_v29  ;;  %v1454_v63 = vunpack.c.h.s8.bf16 %v8191_v34  ;;  %v1664_v28 = vunpack.c.h.s8.bf16 %v8215_v60  ;;  %v1670_v34 = vunpack.c.l.s8.bf16 %v8231_v18 }
 0x183   : > { %1540 = vst [vmem:[#allocation2 + $0xe80] sm:$0xff] %v1412_v0  ;;  %1541 = vst [vmem:[#allocation2 + $0xe88] sm:$0xff] %v1413_v1  ;;  %v1455_v0 = vunpack.c.h.s8.bf16 %v8193_v35  ;;  %v1593_v1 = vld [vmem:[#allocation8 + $0x828] sm:$0xff]  ;;  %v1671_v35 = vunpack.c.l.s8.bf16 %v8233_v19 }
 0x184   : > { %1542 = vst [vmem:[#allocation2 + $0xe90] sm:$0xff] %v1414_v2  ;;  %1543 = vst [vmem:[#allocation2 + $0xe98] sm:$0xff] %v1415_v3  ;;  %v1594_v2 = vld [vmem:[#allocation8 + $0x830] sm:$0xff]  ;;  %v1595_v3 = vld [vmem:[#allocation8 + $0x838] sm:$0xff]  ;;  %v1665_v29 = vunpack.c.h.s8.bf16 %v1593_v1 }
 0x185   : > { %1544 = vst [vmem:[#allocation2 + $0xea0] sm:$0xff] %v1416_v6  ;;  %1545 = vst [vmem:[#allocation2 + $0xea8] sm:$0xff] %v1417_v7  ;;  %v1458_v6 = vunpack.c.h.s8.bf16 %v1330_v42  ;;  %v1459_v7 = vunpack.c.h.s8.bf16 %v1331_v43  ;;  %v1659_v17 = vunpack.c.l.s8.bf16 %v1595_v3  ;;  %v8251_v42 = vld [vmem:[#allocation8 + $0x890] sm:$0xff]  ;;  %v8253_v43 = vld [vmem:[#allocation8 + $0x898] sm:$0xff] }
 0x186   : > { %1546 = vst [vmem:[#allocation2 + $0xeb0] sm:$0xff] %v1418_v8  ;;  %1547 = vst [vmem:[#allocation2 + $0xeb8] sm:$0xff] %v1419_v9  ;;  %v1652_v8 = vunpack.c.l.s8.bf16 %v8206_v52  ;;  %v1653_v9 = vunpack.c.l.s8.bf16 %v8208_v53 }
 0x187   : > { %1548 = vst [vmem:[#allocation2 + $0xec0] sm:$0xff] %v1420_v13  ;;  %1549 = vst [vmem:[#allocation2 + $0xec8] sm:$0xff] %v1421_v14  ;;  %v8228_v13 = vld [vmem:[#allocation8 + $0x848] sm:$0xff]  ;;  %v1656_v14 = vunpack.c.l.s8.bf16 %v8215_v60  ;;  %v8266_v60 = vld [vmem:[#allocation8 + $0x8c0] sm:$0xff] }
 0x188   : > { %1550 = vst [vmem:[#allocation2 + $0xed0] sm:$0xff] %v1422_v15  ;;  %1551 = vst [vmem:[#allocation2 + $0xed8] sm:$0xff] %v1423_v16  ;;  %v1657_v15 = vunpack.c.l.s8.bf16 %v1593_v1  ;;  %v1658_v16 = vunpack.c.l.s8.bf16 %v1594_v2 }
 0x189   : > { %1552 = vst [vmem:[#allocation2 + $0xee0] sm:$0xff] %v1424_v20  ;;  %1553 = vst [vmem:[#allocation2 + $0xee8] sm:$0xff] %v1425_v21  ;;  %v8235_v20 = vld [vmem:[#allocation8 + $0x860] sm:$0xff]  ;;  %v1660_v21 = vunpack.c.h.s8.bf16 %v8206_v52 }
 0x18a   : > { %1554 = vst [vmem:[#allocation2 + $0xef0] sm:$0xff] %v1426_v22  ;;  %1555 = vst [vmem:[#allocation2 + $0xef8] sm:$0xff] %v1427_v23  ;;  %v1661_v22 = vunpack.c.h.s8.bf16 %v8208_v53  ;;  %v1662_v23 = vunpack.c.h.s8.bf16 %v8211_v58  ;;  %v1680_v52 = vunpack.c.h.s8.bf16 %v8235_v20  ;;  %v1686_v58 = vunpack.c.l.s8.bf16 %v8251_v42 }
 0x18b   : > { %1556 = vst [vmem:[#allocation2 + $0xf00] sm:$0xff] %v1428_v24  ;;  %1557 = vst [vmem:[#allocation2 + $0xf08] sm:$0xff] %v1429_v25  ;;  %v1663_v24 = vunpack.c.h.s8.bf16 %v8213_v59  ;;  %v1601_v25 = vld [vmem:[#allocation8 + $0x868] sm:$0xff]  ;;  %v1687_v59 = vunpack.c.l.s8.bf16 %v8253_v43 }
 0x18c   : > { %1558 = vst [vmem:[#allocation2 + $0xf10] sm:$0xff] %v1430_v26  ;;  %1559 = vst [vmem:[#allocation2 + $0xf18] sm:$0xff] %v1431_v27  ;;  %v1602_v26 = vld [vmem:[#allocation8 + $0x870] sm:$0xff]  ;;  %v1603_v27 = vld [vmem:[#allocation8 + $0x878] sm:$0xff]  ;;  %v1681_v53 = vunpack.c.h.s8.bf16 %v1601_v25 }
 0x18d   : > { %1560 = vst [vmem:[#allocation2 + $0xf20] sm:$0xff] %v1432_v30  ;;  %1561 = vst [vmem:[#allocation2 + $0xf28] sm:$0xff] %v1433_v31  ;;  %v1666_v30 = vunpack.c.h.s8.bf16 %v1594_v2  ;;  %v1667_v31 = vunpack.c.h.s8.bf16 %v1595_v3  ;;  %v1675_v41 = vunpack.c.l.s8.bf16 %v1603_v27  ;;  %v8271_v2 = vld [vmem:[#allocation8 + $0x8d0] sm:$0xff]  ;;  %v8273_v3 = vld [vmem:[#allocation8 + $0x8d8] sm:$0xff] }
 0x18e   : > { %1562 = vst [vmem:[#allocation2 + $0xf30] sm:$0xff] %v1434_v32  ;;  %1563 = vst [vmem:[#allocation2 + $0xf38] sm:$0xff] %v1435_v33  ;;  %v1668_v32 = vunpack.c.l.s8.bf16 %v8226_v12  ;;  %v1669_v33 = vunpack.c.l.s8.bf16 %v8228_v13 }
 0x18f   : > { %1564 = vst [vmem:[#allocation2 + $0xf40] sm:$0xff] %v1436_v37  ;;  %1565 = vst [vmem:[#allocation2 + $0xf48] sm:$0xff] %v1437_v38  ;;  %v8248_v37 = vld [vmem:[#allocation8 + $0x888] sm:$0xff]  ;;  %v1672_v38 = vunpack.c.l.s8.bf16 %v8235_v20  ;;  %v8286_v20 = vld [vmem:[#allocation8 + $0x900] sm:$0xff] }
 0x190   : > { %1566 = vst [vmem:[#allocation2 + $0xf50] sm:$0xff] %v1438_v39  ;;  %1567 = vst [vmem:[#allocation2 + $0xf58] sm:$0xff] %v1439_v40  ;;  %v1673_v39 = vunpack.c.l.s8.bf16 %v1601_v25  ;;  %v1674_v40 = vunpack.c.l.s8.bf16 %v1602_v26 }
 0x191   : > { %1568 = vst [vmem:[#allocation2 + $0xf60] sm:$0xff] %v1440_v44  ;;  %1569 = vst [vmem:[#allocation2 + $0xf68] sm:$0xff] %v1441_v45  ;;  %v8255_v44 = vld [vmem:[#allocation8 + $0x8a0] sm:$0xff]  ;;  %v1676_v45 = vunpack.c.h.s8.bf16 %v8226_v12 }
 0x192   : > { %1570 = vst [vmem:[#allocation2 + $0xf70] sm:$0xff] %v1442_v46  ;;  %1571 = vst [vmem:[#allocation2 + $0xf78] sm:$0xff] %v1443_v47  ;;  %v1677_v46 = vunpack.c.h.s8.bf16 %v8228_v13  ;;  %v1678_v47 = vunpack.c.h.s8.bf16 %v8231_v18  ;;  %v1696_v12 = vunpack.c.h.s8.bf16 %v8255_v44  ;;  %v1702_v18 = vunpack.c.l.s8.bf16 %v8271_v2 }
 0x193   : > { %1572 = vst [vmem:[#allocation2 + $0xf80] sm:$0xff] %v1444_v48  ;;  %1573 = vst [vmem:[#allocation2 + $0xf88] sm:$0xff] %v1445_v49  ;;  %v1679_v48 = vunpack.c.h.s8.bf16 %v8233_v19  ;;  %v1609_v49 = vld [vmem:[#allocation8 + $0x8a8] sm:$0xff]  ;;  %v1703_v19 = vunpack.c.l.s8.bf16 %v8273_v3 }
 0x194   : > { %1574 = vst [vmem:[#allocation2 + $0xf90] sm:$0xff] %v1446_v50  ;;  %1575 = vst [vmem:[#allocation2 + $0xf98] sm:$0xff] %v1447_v51  ;;  %v1610_v50 = vld [vmem:[#allocation8 + $0x8b0] sm:$0xff]  ;;  %v1611_v51 = vld [vmem:[#allocation8 + $0x8b8] sm:$0xff]  ;;  %v1697_v13 = vunpack.c.h.s8.bf16 %v1609_v49 }
 0x195   : > { %1576 = vst [vmem:[#allocation2 + $0xfa0] sm:$0xff] %v1448_v54  ;;  %1577 = vst [vmem:[#allocation2 + $0xfa8] sm:$0xff] %v1449_v55  ;;  %v1682_v54 = vunpack.c.h.s8.bf16 %v1602_v26  ;;  %v1683_v55 = vunpack.c.h.s8.bf16 %v1603_v27  ;;  %v1691_v1 = vunpack.c.l.s8.bf16 %v1611_v51  ;;  %v8291_v26 = vld [vmem:[#allocation8 + $0x910] sm:$0xff]  ;;  %v8293_v27 = vld [vmem:[#allocation8 + $0x918] sm:$0xff] }
 0x196   : > { %1578 = vst [vmem:[#allocation2 + $0xfb0] sm:$0xff] %v1450_v56  ;;  %1579 = vst [vmem:[#allocation2 + $0xfb8] sm:$0xff] %v1451_v57  ;;  %v1684_v56 = vunpack.c.l.s8.bf16 %v8246_v36  ;;  %v1685_v57 = vunpack.c.l.s8.bf16 %v8248_v37 }
 0x197   : > { %1580 = vst [vmem:[#allocation2 + $0xfc0] sm:$0xff] %v1452_v61  ;;  %1581 = vst [vmem:[#allocation2 + $0xfc8] sm:$0xff] %v1453_v62  ;;  %v8268_v61 = vld [vmem:[#allocation8 + $0x8c8] sm:$0xff]  ;;  %v1688_v62 = vunpack.c.l.s8.bf16 %v8255_v44  ;;  %v8306_v44 = vld [vmem:[#allocation8 + $0x940] sm:$0xff] }
 0x198   : > { %1582 = vst [vmem:[#allocation2 + $0xfd0] sm:$0xff] %v1454_v63  ;;  %1583 = vst [vmem:[#allocation2 + $0xfd8] sm:$0xff] %v1455_v0  ;;  %v1689_v63 = vunpack.c.l.s8.bf16 %v1609_v49  ;;  %v1690_v0 = vunpack.c.l.s8.bf16 %v1610_v50 }
 0x199   : > { %1584 = vst [vmem:[#allocation2 + $0xfe0] sm:$0xff] %v1456_v4  ;;  %1585 = vst [vmem:[#allocation2 + $0xfe8] sm:$0xff] %v1457_v5  ;;  %v8275_v4 = vld [vmem:[#allocation8 + $0x8e0] sm:$0xff]  ;;  %v1692_v5 = vunpack.c.h.s8.bf16 %v8246_v36 }
 0x19a   : > { %1586 = vst [vmem:[#allocation2 + $0xff0] sm:$0xff] %v1458_v6  ;;  %1587 = vst [vmem:[#allocation2 + $0xff8] sm:$0xff] %v1459_v7  ;;  %v1693_v6 = vunpack.c.h.s8.bf16 %v8248_v37  ;;  %v1694_v7 = vunpack.c.h.s8.bf16 %v8251_v42  ;;  %v1712_v36 = vunpack.c.h.s8.bf16 %v8275_v4  ;;  %v1718_v42 = vunpack.c.l.s8.bf16 %v8291_v26 }
 0x19b   : > { %1780 = vst [vmem:[#allocation2 + $0x1000] sm:$0xff] %v1652_v8  ;;  %1781 = vst [vmem:[#allocation2 + $0x1008] sm:$0xff] %v1653_v9  ;;  %v1695_v8 = vunpack.c.h.s8.bf16 %v8253_v43  ;;  %v1617_v9 = vld [vmem:[#allocation8 + $0x8e8] sm:$0xff]  ;;  %v1719_v43 = vunpack.c.l.s8.bf16 %v8293_v27 }
 0x19c   : > { %1782 = vst [vmem:[#allocation2 + $0x1010] sm:$0xff] %v1654_v10  ;;  %1783 = vst [vmem:[#allocation2 + $0x1018] sm:$0xff] %v1655_v11  ;;  %v1618_v10 = vld [vmem:[#allocation8 + $0x8f0] sm:$0xff]  ;;  %v1619_v11 = vld [vmem:[#allocation8 + $0x8f8] sm:$0xff]  ;;  %v1713_v37 = vunpack.c.h.s8.bf16 %v1617_v9 }
 0x19d   : > { %1784 = vst [vmem:[#allocation2 + $0x1020] sm:$0xff] %v1656_v14  ;;  %1785 = vst [vmem:[#allocation2 + $0x1028] sm:$0xff] %v1657_v15  ;;  %v1698_v14 = vunpack.c.h.s8.bf16 %v1610_v50  ;;  %v1699_v15 = vunpack.c.h.s8.bf16 %v1611_v51  ;;  %v1707_v25 = vunpack.c.l.s8.bf16 %v1619_v11  ;;  %v8311_v50 = vld [vmem:[#allocation8 + $0x950] sm:$0xff]  ;;  %v8313_v51 = vld [vmem:[#allocation8 + $0x958] sm:$0xff] }
 0x19e   : > { %1786 = vst [vmem:[#allocation2 + $0x1030] sm:$0xff] %v1658_v16  ;;  %1787 = vst [vmem:[#allocation2 + $0x1038] sm:$0xff] %v1659_v17  ;;  %v1700_v16 = vunpack.c.l.s8.bf16 %v8266_v60  ;;  %v1701_v17 = vunpack.c.l.s8.bf16 %v8268_v61 }
 0x19f   : > { %1788 = vst [vmem:[#allocation2 + $0x1040] sm:$0xff] %v1660_v21  ;;  %1789 = vst [vmem:[#allocation2 + $0x1048] sm:$0xff] %v1661_v22  ;;  %v8288_v21 = vld [vmem:[#allocation8 + $0x908] sm:$0xff]  ;;  %v1704_v22 = vunpack.c.l.s8.bf16 %v8275_v4  ;;  %v8326_v4 = vld [vmem:[#allocation8 + $0x980] sm:$0xff] }
 0x1a0   : > { %1790 = vst [vmem:[#allocation2 + $0x1050] sm:$0xff] %v1662_v23  ;;  %1791 = vst [vmem:[#allocation2 + $0x1058] sm:$0xff] %v1663_v24  ;;  %v1705_v23 = vunpack.c.l.s8.bf16 %v1617_v9  ;;  %v1706_v24 = vunpack.c.l.s8.bf16 %v1618_v10 }
 0x1a1   : > { %1792 = vst [vmem:[#allocation2 + $0x1060] sm:$0xff] %v1664_v28  ;;  %1793 = vst [vmem:[#allocation2 + $0x1068] sm:$0xff] %v1665_v29  ;;  %v8295_v28 = vld [vmem:[#allocation8 + $0x920] sm:$0xff]  ;;  %v1708_v29 = vunpack.c.h.s8.bf16 %v8266_v60 }
 0x1a2   : > { %1794 = vst [vmem:[#allocation2 + $0x1070] sm:$0xff] %v1666_v30  ;;  %1795 = vst [vmem:[#allocation2 + $0x1078] sm:$0xff] %v1667_v31  ;;  %v1709_v30 = vunpack.c.h.s8.bf16 %v8268_v61  ;;  %v1710_v31 = vunpack.c.h.s8.bf16 %v8271_v2  ;;  %v1728_v60 = vunpack.c.h.s8.bf16 %v8295_v28  ;;  %v1734_v2 = vunpack.c.l.s8.bf16 %v8311_v50 }
 0x1a3   : > { %1796 = vst [vmem:[#allocation2 + $0x1080] sm:$0xff] %v1668_v32  ;;  %1797 = vst [vmem:[#allocation2 + $0x1088] sm:$0xff] %v1669_v33  ;;  %v1711_v32 = vunpack.c.h.s8.bf16 %v8273_v3  ;;  %v1625_v33 = vld [vmem:[#allocation8 + $0x928] sm:$0xff]  ;;  %v1735_v3 = vunpack.c.l.s8.bf16 %v8313_v51 }
 0x1a4   : > { %1798 = vst [vmem:[#allocation2 + $0x1090] sm:$0xff] %v1670_v34  ;;  %1799 = vst [vmem:[#allocation2 + $0x1098] sm:$0xff] %v1671_v35  ;;  %v1626_v34 = vld [vmem:[#allocation8 + $0x930] sm:$0xff]  ;;  %v1627_v35 = vld [vmem:[#allocation8 + $0x938] sm:$0xff]  ;;  %v1729_v61 = vunpack.c.h.s8.bf16 %v1625_v33 }
 0x1a5   : > { %1800 = vst [vmem:[#allocation2 + $0x10a0] sm:$0xff] %v1672_v38  ;;  %1801 = vst [vmem:[#allocation2 + $0x10a8] sm:$0xff] %v1673_v39  ;;  %v1714_v38 = vunpack.c.h.s8.bf16 %v1618_v10  ;;  %v1715_v39 = vunpack.c.h.s8.bf16 %v1619_v11  ;;  %v1723_v49 = vunpack.c.l.s8.bf16 %v1627_v35  ;;  %v8331_v10 = vld [vmem:[#allocation8 + $0x990] sm:$0xff]  ;;  %v8333_v11 = vld [vmem:[#allocation8 + $0x998] sm:$0xff] }
 0x1a6   : > { %1802 = vst [vmem:[#allocation2 + $0x10b0] sm:$0xff] %v1674_v40  ;;  %1803 = vst [vmem:[#allocation2 + $0x10b8] sm:$0xff] %v1675_v41  ;;  %v1716_v40 = vunpack.c.l.s8.bf16 %v8286_v20  ;;  %v1717_v41 = vunpack.c.l.s8.bf16 %v8288_v21 }
 0x1a7   : > { %1804 = vst [vmem:[#allocation2 + $0x10c0] sm:$0xff] %v1676_v45  ;;  %1805 = vst [vmem:[#allocation2 + $0x10c8] sm:$0xff] %v1677_v46  ;;  %v8308_v45 = vld [vmem:[#allocation8 + $0x948] sm:$0xff]  ;;  %v1720_v46 = vunpack.c.l.s8.bf16 %v8295_v28  ;;  %v8346_v28 = vld [vmem:[#allocation8 + $0x9c0] sm:$0xff] }
 0x1a8   : > { %1806 = vst [vmem:[#allocation2 + $0x10d0] sm:$0xff] %v1678_v47  ;;  %1807 = vst [vmem:[#allocation2 + $0x10d8] sm:$0xff] %v1679_v48  ;;  %v1721_v47 = vunpack.c.l.s8.bf16 %v1625_v33  ;;  %v1722_v48 = vunpack.c.l.s8.bf16 %v1626_v34 }
 0x1a9   : > { %1808 = vst [vmem:[#allocation2 + $0x10e0] sm:$0xff] %v1680_v52  ;;  %1809 = vst [vmem:[#allocation2 + $0x10e8] sm:$0xff] %v1681_v53  ;;  %v8315_v52 = vld [vmem:[#allocation8 + $0x960] sm:$0xff]  ;;  %v1724_v53 = vunpack.c.h.s8.bf16 %v8286_v20 }
 0x1aa   : > { %1810 = vst [vmem:[#allocation2 + $0x10f0] sm:$0xff] %v1682_v54  ;;  %1811 = vst [vmem:[#allocation2 + $0x10f8] sm:$0xff] %v1683_v55  ;;  %v1725_v54 = vunpack.c.h.s8.bf16 %v8288_v21  ;;  %v1726_v55 = vunpack.c.h.s8.bf16 %v8291_v26  ;;  %v1744_v20 = vunpack.c.h.s8.bf16 %v8315_v52  ;;  %v1750_v26 = vunpack.c.l.s8.bf16 %v8331_v10 }
 0x1ab   : > { %1812 = vst [vmem:[#allocation2 + $0x1100] sm:$0xff] %v1684_v56  ;;  %1813 = vst [vmem:[#allocation2 + $0x1108] sm:$0xff] %v1685_v57  ;;  %v1727_v56 = vunpack.c.h.s8.bf16 %v8293_v27  ;;  %v1633_v57 = vld [vmem:[#allocation8 + $0x968] sm:$0xff]  ;;  %v1751_v27 = vunpack.c.l.s8.bf16 %v8333_v11 }
 0x1ac   : > { %1814 = vst [vmem:[#allocation2 + $0x1110] sm:$0xff] %v1686_v58  ;;  %1815 = vst [vmem:[#allocation2 + $0x1118] sm:$0xff] %v1687_v59  ;;  %v1634_v58 = vld [vmem:[#allocation8 + $0x970] sm:$0xff]  ;;  %v1635_v59 = vld [vmem:[#allocation8 + $0x978] sm:$0xff]  ;;  %v1745_v21 = vunpack.c.h.s8.bf16 %v1633_v57 }
 0x1ad   : > { %1816 = vst [vmem:[#allocation2 + $0x1120] sm:$0xff] %v1688_v62  ;;  %1817 = vst [vmem:[#allocation2 + $0x1128] sm:$0xff] %v1689_v63  ;;  %v1730_v62 = vunpack.c.h.s8.bf16 %v1626_v34  ;;  %v1731_v63 = vunpack.c.h.s8.bf16 %v1627_v35  ;;  %v1739_v9 = vunpack.c.l.s8.bf16 %v1635_v59  ;;  %v8351_v34 = vld [vmem:[#allocation8 + $0x9d0] sm:$0xff]  ;;  %v8353_v35 = vld [vmem:[#allocation8 + $0x9d8] sm:$0xff] }
 0x1ae   : > { %1818 = vst [vmem:[#allocation2 + $0x1130] sm:$0xff] %v1690_v0  ;;  %1819 = vst [vmem:[#allocation2 + $0x1138] sm:$0xff] %v1691_v1  ;;  %v1732_v0 = vunpack.c.l.s8.bf16 %v8306_v44  ;;  %v1733_v1 = vunpack.c.l.s8.bf16 %v8308_v45 }
 0x1af   : > { %1820 = vst [vmem:[#allocation2 + $0x1140] sm:$0xff] %v1692_v5  ;;  %1821 = vst [vmem:[#allocation2 + $0x1148] sm:$0xff] %v1693_v6  ;;  %v8328_v5 = vld [vmem:[#allocation8 + $0x988] sm:$0xff]  ;;  %v1736_v6 = vunpack.c.l.s8.bf16 %v8315_v52  ;;  %v8366_v52 = vld [vmem:[#allocation8 + $0xa00] sm:$0xff] }
 0x1b0   : > { %1822 = vst [vmem:[#allocation2 + $0x1150] sm:$0xff] %v1694_v7  ;;  %1823 = vst [vmem:[#allocation2 + $0x1158] sm:$0xff] %v1695_v8  ;;  %v1737_v7 = vunpack.c.l.s8.bf16 %v1633_v57  ;;  %v1738_v8 = vunpack.c.l.s8.bf16 %v1634_v58 }
 0x1b1   : > { %1824 = vst [vmem:[#allocation2 + $0x1160] sm:$0xff] %v1696_v12  ;;  %1825 = vst [vmem:[#allocation2 + $0x1168] sm:$0xff] %v1697_v13  ;;  %v8335_v12 = vld [vmem:[#allocation8 + $0x9a0] sm:$0xff]  ;;  %v1740_v13 = vunpack.c.h.s8.bf16 %v8306_v44 }
 0x1b2   : > { %1826 = vst [vmem:[#allocation2 + $0x1170] sm:$0xff] %v1698_v14  ;;  %1827 = vst [vmem:[#allocation2 + $0x1178] sm:$0xff] %v1699_v15  ;;  %v1741_v14 = vunpack.c.h.s8.bf16 %v8308_v45  ;;  %v1742_v15 = vunpack.c.h.s8.bf16 %v8311_v50  ;;  %v1760_v44 = vunpack.c.h.s8.bf16 %v8335_v12  ;;  %v1766_v50 = vunpack.c.l.s8.bf16 %v8351_v34 }
 0x1b3   : > { %1828 = vst [vmem:[#allocation2 + $0x1180] sm:$0xff] %v1700_v16  ;;  %1829 = vst [vmem:[#allocation2 + $0x1188] sm:$0xff] %v1701_v17  ;;  %v1743_v16 = vunpack.c.h.s8.bf16 %v8313_v51  ;;  %v1641_v17 = vld [vmem:[#allocation8 + $0x9a8] sm:$0xff]  ;;  %v1767_v51 = vunpack.c.l.s8.bf16 %v8353_v35 }
 0x1b4   : > { %1830 = vst [vmem:[#allocation2 + $0x1190] sm:$0xff] %v1702_v18  ;;  %1831 = vst [vmem:[#allocation2 + $0x1198] sm:$0xff] %v1703_v19  ;;  %v1642_v18 = vld [vmem:[#allocation8 + $0x9b0] sm:$0xff]  ;;  %v1643_v19 = vld [vmem:[#allocation8 + $0x9b8] sm:$0xff]  ;;  %v1761_v45 = vunpack.c.h.s8.bf16 %v1641_v17 }
 0x1b5   : > { %1832 = vst [vmem:[#allocation2 + $0x11a0] sm:$0xff] %v1704_v22  ;;  %1833 = vst [vmem:[#allocation2 + $0x11a8] sm:$0xff] %v1705_v23  ;;  %v1746_v22 = vunpack.c.h.s8.bf16 %v1634_v58  ;;  %v1747_v23 = vunpack.c.h.s8.bf16 %v1635_v59  ;;  %v1755_v33 = vunpack.c.l.s8.bf16 %v1643_v19  ;;  %v8371_v58 = vld [vmem:[#allocation8 + $0xa10] sm:$0xff]  ;;  %v8373_v59 = vld [vmem:[#allocation8 + $0xa18] sm:$0xff] }
 0x1b6   : > { %1834 = vst [vmem:[#allocation2 + $0x11b0] sm:$0xff] %v1706_v24  ;;  %1835 = vst [vmem:[#allocation2 + $0x11b8] sm:$0xff] %v1707_v25  ;;  %v1748_v24 = vunpack.c.l.s8.bf16 %v8326_v4  ;;  %v1749_v25 = vunpack.c.l.s8.bf16 %v8328_v5 }
 0x1b7   : > { %1836 = vst [vmem:[#allocation2 + $0x11c0] sm:$0xff] %v1708_v29  ;;  %1837 = vst [vmem:[#allocation2 + $0x11c8] sm:$0xff] %v1709_v30  ;;  %v8348_v29 = vld [vmem:[#allocation8 + $0x9c8] sm:$0xff]  ;;  %v1752_v30 = vunpack.c.l.s8.bf16 %v8335_v12  ;;  %v8386_v12 = vld [vmem:[#allocation8 + $0xa40] sm:$0xff] }
 0x1b8   : > { %1838 = vst [vmem:[#allocation2 + $0x11d0] sm:$0xff] %v1710_v31  ;;  %1839 = vst [vmem:[#allocation2 + $0x11d8] sm:$0xff] %v1711_v32  ;;  %v1753_v31 = vunpack.c.l.s8.bf16 %v1641_v17  ;;  %v1754_v32 = vunpack.c.l.s8.bf16 %v1642_v18 }
 0x1b9   : > { %1840 = vst [vmem:[#allocation2 + $0x11e0] sm:$0xff] %v1712_v36  ;;  %1841 = vst [vmem:[#allocation2 + $0x11e8] sm:$0xff] %v1713_v37  ;;  %v8355_v36 = vld [vmem:[#allocation8 + $0x9e0] sm:$0xff]  ;;  %v1756_v37 = vunpack.c.h.s8.bf16 %v8326_v4 }
 0x1ba   : > { %1842 = vst [vmem:[#allocation2 + $0x11f0] sm:$0xff] %v1714_v38  ;;  %1843 = vst [vmem:[#allocation2 + $0x11f8] sm:$0xff] %v1715_v39  ;;  %v1757_v38 = vunpack.c.h.s8.bf16 %v8328_v5  ;;  %v1758_v39 = vunpack.c.h.s8.bf16 %v8331_v10  ;;  %v1776_v4 = vunpack.c.h.s8.bf16 %v8355_v36  ;;  %v1974_v10 = vunpack.c.l.s8.bf16 %v8371_v58 }
 0x1bb   : > { %1844 = vst [vmem:[#allocation2 + $0x1200] sm:$0xff] %v1716_v40  ;;  %1845 = vst [vmem:[#allocation2 + $0x1208] sm:$0xff] %v1717_v41  ;;  %v1759_v40 = vunpack.c.h.s8.bf16 %v8333_v11  ;;  %v1649_v41 = vld [vmem:[#allocation8 + $0x9e8] sm:$0xff]  ;;  %v1975_v11 = vunpack.c.l.s8.bf16 %v8373_v59 }
 0x1bc   : > { %1846 = vst [vmem:[#allocation2 + $0x1210] sm:$0xff] %v1718_v42  ;;  %1847 = vst [vmem:[#allocation2 + $0x1218] sm:$0xff] %v1719_v43  ;;  %v1650_v42 = vld [vmem:[#allocation8 + $0x9f0] sm:$0xff]  ;;  %v1651_v43 = vld [vmem:[#allocation8 + $0x9f8] sm:$0xff]  ;;  %v1777_v5 = vunpack.c.h.s8.bf16 %v1649_v41 }
 0x1bd   : > { %1848 = vst [vmem:[#allocation2 + $0x1220] sm:$0xff] %v1720_v46  ;;  %1849 = vst [vmem:[#allocation2 + $0x1228] sm:$0xff] %v1721_v47  ;;  %v1762_v46 = vunpack.c.h.s8.bf16 %v1642_v18  ;;  %v1763_v47 = vunpack.c.h.s8.bf16 %v1643_v19  ;;  %v1771_v57 = vunpack.c.l.s8.bf16 %v1651_v43  ;;  %v8391_v18 = vld [vmem:[#allocation8 + $0xa50] sm:$0xff]  ;;  %v8393_v19 = vld [vmem:[#allocation8 + $0xa58] sm:$0xff] }
 0x1be   : > { %1850 = vst [vmem:[#allocation2 + $0x1230] sm:$0xff] %v1722_v48  ;;  %1851 = vst [vmem:[#allocation2 + $0x1238] sm:$0xff] %v1723_v49  ;;  %v1764_v48 = vunpack.c.l.s8.bf16 %v8346_v28  ;;  %v1765_v49 = vunpack.c.l.s8.bf16 %v8348_v29 }
 0x1bf   : > { %1852 = vst [vmem:[#allocation2 + $0x1240] sm:$0xff] %v1724_v53  ;;  %1853 = vst [vmem:[#allocation2 + $0x1248] sm:$0xff] %v1725_v54  ;;  %v8368_v53 = vld [vmem:[#allocation8 + $0xa08] sm:$0xff]  ;;  %v1768_v54 = vunpack.c.l.s8.bf16 %v8355_v36  ;;  %v8406_v36 = vld [vmem:[#allocation8 + $0xa80] sm:$0xff] }
 0x1c0   : > { %1854 = vst [vmem:[#allocation2 + $0x1250] sm:$0xff] %v1726_v55  ;;  %1855 = vst [vmem:[#allocation2 + $0x1258] sm:$0xff] %v1727_v56  ;;  %v1769_v55 = vunpack.c.l.s8.bf16 %v1649_v41  ;;  %v1770_v56 = vunpack.c.l.s8.bf16 %v1650_v42 }
 0x1c1   : > { %1856 = vst [vmem:[#allocation2 + $0x1260] sm:$0xff] %v1728_v60  ;;  %1857 = vst [vmem:[#allocation2 + $0x1268] sm:$0xff] %v1729_v61  ;;  %v8375_v60 = vld [vmem:[#allocation8 + $0xa20] sm:$0xff]  ;;  %v1772_v61 = vunpack.c.h.s8.bf16 %v8346_v28 }
 0x1c2   : > { %1858 = vst [vmem:[#allocation2 + $0x1270] sm:$0xff] %v1730_v62  ;;  %1859 = vst [vmem:[#allocation2 + $0x1278] sm:$0xff] %v1731_v63  ;;  %v1773_v62 = vunpack.c.h.s8.bf16 %v8348_v29  ;;  %v1774_v63 = vunpack.c.h.s8.bf16 %v8351_v34  ;;  %v1984_v28 = vunpack.c.h.s8.bf16 %v8375_v60  ;;  %v1990_v34 = vunpack.c.l.s8.bf16 %v8391_v18 }
 0x1c3   : > { %1860 = vst [vmem:[#allocation2 + $0x1280] sm:$0xff] %v1732_v0  ;;  %1861 = vst [vmem:[#allocation2 + $0x1288] sm:$0xff] %v1733_v1  ;;  %v1775_v0 = vunpack.c.h.s8.bf16 %v8353_v35  ;;  %v1913_v1 = vld [vmem:[#allocation8 + $0xa28] sm:$0xff]  ;;  %v1991_v35 = vunpack.c.l.s8.bf16 %v8393_v19 }
 0x1c4   : > { %1862 = vst [vmem:[#allocation2 + $0x1290] sm:$0xff] %v1734_v2  ;;  %1863 = vst [vmem:[#allocation2 + $0x1298] sm:$0xff] %v1735_v3  ;;  %v1914_v2 = vld [vmem:[#allocation8 + $0xa30] sm:$0xff]  ;;  %v1915_v3 = vld [vmem:[#allocation8 + $0xa38] sm:$0xff]  ;;  %v1985_v29 = vunpack.c.h.s8.bf16 %v1913_v1 }
 0x1c5   : > { %1864 = vst [vmem:[#allocation2 + $0x12a0] sm:$0xff] %v1736_v6  ;;  %1865 = vst [vmem:[#allocation2 + $0x12a8] sm:$0xff] %v1737_v7  ;;  %v1778_v6 = vunpack.c.h.s8.bf16 %v1650_v42  ;;  %v1779_v7 = vunpack.c.h.s8.bf16 %v1651_v43  ;;  %v1979_v17 = vunpack.c.l.s8.bf16 %v1915_v3  ;;  %v8411_v42 = vld [vmem:[#allocation8 + $0xa90] sm:$0xff]  ;;  %v8413_v43 = vld [vmem:[#allocation8 + $0xa98] sm:$0xff] }
 0x1c6   : > { %1866 = vst [vmem:[#allocation2 + $0x12b0] sm:$0xff] %v1738_v8  ;;  %1867 = vst [vmem:[#allocation2 + $0x12b8] sm:$0xff] %v1739_v9  ;;  %v1972_v8 = vunpack.c.l.s8.bf16 %v8366_v52  ;;  %v1973_v9 = vunpack.c.l.s8.bf16 %v8368_v53 }
 0x1c7   : > { %1868 = vst [vmem:[#allocation2 + $0x12c0] sm:$0xff] %v1740_v13  ;;  %1869 = vst [vmem:[#allocation2 + $0x12c8] sm:$0xff] %v1741_v14  ;;  %v8388_v13 = vld [vmem:[#allocation8 + $0xa48] sm:$0xff]  ;;  %v1976_v14 = vunpack.c.l.s8.bf16 %v8375_v60  ;;  %v8426_v60 = vld [vmem:[#allocation8 + $0xac0] sm:$0xff] }
 0x1c8   : > { %1870 = vst [vmem:[#allocation2 + $0x12d0] sm:$0xff] %v1742_v15  ;;  %1871 = vst [vmem:[#allocation2 + $0x12d8] sm:$0xff] %v1743_v16  ;;  %v1977_v15 = vunpack.c.l.s8.bf16 %v1913_v1  ;;  %v1978_v16 = vunpack.c.l.s8.bf16 %v1914_v2 }
 0x1c9   : > { %1872 = vst [vmem:[#allocation2 + $0x12e0] sm:$0xff] %v1744_v20  ;;  %1873 = vst [vmem:[#allocation2 + $0x12e8] sm:$0xff] %v1745_v21  ;;  %v8395_v20 = vld [vmem:[#allocation8 + $0xa60] sm:$0xff]  ;;  %v1980_v21 = vunpack.c.h.s8.bf16 %v8366_v52 }
 0x1ca   : > { %1874 = vst [vmem:[#allocation2 + $0x12f0] sm:$0xff] %v1746_v22  ;;  %1875 = vst [vmem:[#allocation2 + $0x12f8] sm:$0xff] %v1747_v23  ;;  %v1981_v22 = vunpack.c.h.s8.bf16 %v8368_v53  ;;  %v1982_v23 = vunpack.c.h.s8.bf16 %v8371_v58  ;;  %v2000_v52 = vunpack.c.h.s8.bf16 %v8395_v20  ;;  %v2006_v58 = vunpack.c.l.s8.bf16 %v8411_v42 }
 0x1cb   : > { %1876 = vst [vmem:[#allocation2 + $0x1300] sm:$0xff] %v1748_v24  ;;  %1877 = vst [vmem:[#allocation2 + $0x1308] sm:$0xff] %v1749_v25  ;;  %v1983_v24 = vunpack.c.h.s8.bf16 %v8373_v59  ;;  %v1921_v25 = vld [vmem:[#allocation8 + $0xa68] sm:$0xff]  ;;  %v2007_v59 = vunpack.c.l.s8.bf16 %v8413_v43 }
 0x1cc   : > { %1878 = vst [vmem:[#allocation2 + $0x1310] sm:$0xff] %v1750_v26  ;;  %1879 = vst [vmem:[#allocation2 + $0x1318] sm:$0xff] %v1751_v27  ;;  %v1922_v26 = vld [vmem:[#allocation8 + $0xa70] sm:$0xff]  ;;  %v1923_v27 = vld [vmem:[#allocation8 + $0xa78] sm:$0xff]  ;;  %v2001_v53 = vunpack.c.h.s8.bf16 %v1921_v25 }
 0x1cd   : > { %1880 = vst [vmem:[#allocation2 + $0x1320] sm:$0xff] %v1752_v30  ;;  %1881 = vst [vmem:[#allocation2 + $0x1328] sm:$0xff] %v1753_v31  ;;  %v1986_v30 = vunpack.c.h.s8.bf16 %v1914_v2  ;;  %v1987_v31 = vunpack.c.h.s8.bf16 %v1915_v3  ;;  %v1995_v41 = vunpack.c.l.s8.bf16 %v1923_v27  ;;  %v8431_v2 = vld [vmem:[#allocation8 + $0xad0] sm:$0xff]  ;;  %v8433_v3 = vld [vmem:[#allocation8 + $0xad8] sm:$0xff] }
 0x1ce   : > { %1882 = vst [vmem:[#allocation2 + $0x1330] sm:$0xff] %v1754_v32  ;;  %1883 = vst [vmem:[#allocation2 + $0x1338] sm:$0xff] %v1755_v33  ;;  %v1988_v32 = vunpack.c.l.s8.bf16 %v8386_v12  ;;  %v1989_v33 = vunpack.c.l.s8.bf16 %v8388_v13 }
 0x1cf   : > { %1884 = vst [vmem:[#allocation2 + $0x1340] sm:$0xff] %v1756_v37  ;;  %1885 = vst [vmem:[#allocation2 + $0x1348] sm:$0xff] %v1757_v38  ;;  %v8408_v37 = vld [vmem:[#allocation8 + $0xa88] sm:$0xff]  ;;  %v1992_v38 = vunpack.c.l.s8.bf16 %v8395_v20  ;;  %v8446_v20 = vld [vmem:[#allocation8 + $0xb00] sm:$0xff] }
 0x1d0   : > { %1886 = vst [vmem:[#allocation2 + $0x1350] sm:$0xff] %v1758_v39  ;;  %1887 = vst [vmem:[#allocation2 + $0x1358] sm:$0xff] %v1759_v40  ;;  %v1993_v39 = vunpack.c.l.s8.bf16 %v1921_v25  ;;  %v1994_v40 = vunpack.c.l.s8.bf16 %v1922_v26 }
 0x1d1   : > { %1888 = vst [vmem:[#allocation2 + $0x1360] sm:$0xff] %v1760_v44  ;;  %1889 = vst [vmem:[#allocation2 + $0x1368] sm:$0xff] %v1761_v45  ;;  %v8415_v44 = vld [vmem:[#allocation8 + $0xaa0] sm:$0xff]  ;;  %v1996_v45 = vunpack.c.h.s8.bf16 %v8386_v12 }
 0x1d2   : > { %1890 = vst [vmem:[#allocation2 + $0x1370] sm:$0xff] %v1762_v46  ;;  %1891 = vst [vmem:[#allocation2 + $0x1378] sm:$0xff] %v1763_v47  ;;  %v1997_v46 = vunpack.c.h.s8.bf16 %v8388_v13  ;;  %v1998_v47 = vunpack.c.h.s8.bf16 %v8391_v18  ;;  %v2016_v12 = vunpack.c.h.s8.bf16 %v8415_v44  ;;  %v2022_v18 = vunpack.c.l.s8.bf16 %v8431_v2 }
 0x1d3   : > { %1892 = vst [vmem:[#allocation2 + $0x1380] sm:$0xff] %v1764_v48  ;;  %1893 = vst [vmem:[#allocation2 + $0x1388] sm:$0xff] %v1765_v49  ;;  %v1999_v48 = vunpack.c.h.s8.bf16 %v8393_v19  ;;  %v1929_v49 = vld [vmem:[#allocation8 + $0xaa8] sm:$0xff]  ;;  %v2023_v19 = vunpack.c.l.s8.bf16 %v8433_v3 }
 0x1d4   : > { %1894 = vst [vmem:[#allocation2 + $0x1390] sm:$0xff] %v1766_v50  ;;  %1895 = vst [vmem:[#allocation2 + $0x1398] sm:$0xff] %v1767_v51  ;;  %v1930_v50 = vld [vmem:[#allocation8 + $0xab0] sm:$0xff]  ;;  %v1931_v51 = vld [vmem:[#allocation8 + $0xab8] sm:$0xff]  ;;  %v2017_v13 = vunpack.c.h.s8.bf16 %v1929_v49 }
 0x1d5   : > { %1896 = vst [vmem:[#allocation2 + $0x13a0] sm:$0xff] %v1768_v54  ;;  %1897 = vst [vmem:[#allocation2 + $0x13a8] sm:$0xff] %v1769_v55  ;;  %v2002_v54 = vunpack.c.h.s8.bf16 %v1922_v26  ;;  %v2003_v55 = vunpack.c.h.s8.bf16 %v1923_v27  ;;  %v2011_v1 = vunpack.c.l.s8.bf16 %v1931_v51  ;;  %v8451_v26 = vld [vmem:[#allocation8 + $0xb10] sm:$0xff]  ;;  %v8453_v27 = vld [vmem:[#allocation8 + $0xb18] sm:$0xff] }
 0x1d6   : > { %1898 = vst [vmem:[#allocation2 + $0x13b0] sm:$0xff] %v1770_v56  ;;  %1899 = vst [vmem:[#allocation2 + $0x13b8] sm:$0xff] %v1771_v57  ;;  %v2004_v56 = vunpack.c.l.s8.bf16 %v8406_v36  ;;  %v2005_v57 = vunpack.c.l.s8.bf16 %v8408_v37 }
 0x1d7   : > { %1900 = vst [vmem:[#allocation2 + $0x13c0] sm:$0xff] %v1772_v61  ;;  %1901 = vst [vmem:[#allocation2 + $0x13c8] sm:$0xff] %v1773_v62  ;;  %v8428_v61 = vld [vmem:[#allocation8 + $0xac8] sm:$0xff]  ;;  %v2008_v62 = vunpack.c.l.s8.bf16 %v8415_v44  ;;  %v8466_v44 = vld [vmem:[#allocation8 + $0xb40] sm:$0xff] }
 0x1d8   : > { %1902 = vst [vmem:[#allocation2 + $0x13d0] sm:$0xff] %v1774_v63  ;;  %1903 = vst [vmem:[#allocation2 + $0x13d8] sm:$0xff] %v1775_v0  ;;  %v2009_v63 = vunpack.c.l.s8.bf16 %v1929_v49  ;;  %v2010_v0 = vunpack.c.l.s8.bf16 %v1930_v50 }
 0x1d9   : > { %1904 = vst [vmem:[#allocation2 + $0x13e0] sm:$0xff] %v1776_v4  ;;  %1905 = vst [vmem:[#allocation2 + $0x13e8] sm:$0xff] %v1777_v5  ;;  %v8435_v4 = vld [vmem:[#allocation8 + $0xae0] sm:$0xff]  ;;  %v2012_v5 = vunpack.c.h.s8.bf16 %v8406_v36 }
 0x1da   : > { %1906 = vst [vmem:[#allocation2 + $0x13f0] sm:$0xff] %v1778_v6  ;;  %1907 = vst [vmem:[#allocation2 + $0x13f8] sm:$0xff] %v1779_v7  ;;  %v2013_v6 = vunpack.c.h.s8.bf16 %v8408_v37  ;;  %v2014_v7 = vunpack.c.h.s8.bf16 %v8411_v42  ;;  %v2032_v36 = vunpack.c.h.s8.bf16 %v8435_v4  ;;  %v2038_v42 = vunpack.c.l.s8.bf16 %v8451_v26 }
 0x1db   : > { %2100 = vst [vmem:[#allocation2 + $0x1400] sm:$0xff] %v1972_v8  ;;  %2101 = vst [vmem:[#allocation2 + $0x1408] sm:$0xff] %v1973_v9  ;;  %v2015_v8 = vunpack.c.h.s8.bf16 %v8413_v43  ;;  %v1937_v9 = vld [vmem:[#allocation8 + $0xae8] sm:$0xff]  ;;  %v2039_v43 = vunpack.c.l.s8.bf16 %v8453_v27 }
 0x1dc   : > { %2102 = vst [vmem:[#allocation2 + $0x1410] sm:$0xff] %v1974_v10  ;;  %2103 = vst [vmem:[#allocation2 + $0x1418] sm:$0xff] %v1975_v11  ;;  %v1938_v10 = vld [vmem:[#allocation8 + $0xaf0] sm:$0xff]  ;;  %v1939_v11 = vld [vmem:[#allocation8 + $0xaf8] sm:$0xff]  ;;  %v2033_v37 = vunpack.c.h.s8.bf16 %v1937_v9 }
 0x1dd   : > { %2104 = vst [vmem:[#allocation2 + $0x1420] sm:$0xff] %v1976_v14  ;;  %2105 = vst [vmem:[#allocation2 + $0x1428] sm:$0xff] %v1977_v15  ;;  %v2018_v14 = vunpack.c.h.s8.bf16 %v1930_v50  ;;  %v2019_v15 = vunpack.c.h.s8.bf16 %v1931_v51  ;;  %v2027_v25 = vunpack.c.l.s8.bf16 %v1939_v11  ;;  %v8471_v50 = vld [vmem:[#allocation8 + $0xb50] sm:$0xff]  ;;  %v8473_v51 = vld [vmem:[#allocation8 + $0xb58] sm:$0xff] }
 0x1de   : > { %2106 = vst [vmem:[#allocation2 + $0x1430] sm:$0xff] %v1978_v16  ;;  %2107 = vst [vmem:[#allocation2 + $0x1438] sm:$0xff] %v1979_v17  ;;  %v2020_v16 = vunpack.c.l.s8.bf16 %v8426_v60  ;;  %v2021_v17 = vunpack.c.l.s8.bf16 %v8428_v61 }
 0x1df   : > { %2108 = vst [vmem:[#allocation2 + $0x1440] sm:$0xff] %v1980_v21  ;;  %2109 = vst [vmem:[#allocation2 + $0x1448] sm:$0xff] %v1981_v22  ;;  %v8448_v21 = vld [vmem:[#allocation8 + $0xb08] sm:$0xff]  ;;  %v2024_v22 = vunpack.c.l.s8.bf16 %v8435_v4  ;;  %v8486_v4 = vld [vmem:[#allocation8 + $0xb80] sm:$0xff] }
 0x1e0   : > { %2110 = vst [vmem:[#allocation2 + $0x1450] sm:$0xff] %v1982_v23  ;;  %2111 = vst [vmem:[#allocation2 + $0x1458] sm:$0xff] %v1983_v24  ;;  %v2025_v23 = vunpack.c.l.s8.bf16 %v1937_v9  ;;  %v2026_v24 = vunpack.c.l.s8.bf16 %v1938_v10 }
 0x1e1   : > { %2112 = vst [vmem:[#allocation2 + $0x1460] sm:$0xff] %v1984_v28  ;;  %2113 = vst [vmem:[#allocation2 + $0x1468] sm:$0xff] %v1985_v29  ;;  %v8455_v28 = vld [vmem:[#allocation8 + $0xb20] sm:$0xff]  ;;  %v2028_v29 = vunpack.c.h.s8.bf16 %v8426_v60 }
 0x1e2   : > { %2114 = vst [vmem:[#allocation2 + $0x1470] sm:$0xff] %v1986_v30  ;;  %2115 = vst [vmem:[#allocation2 + $0x1478] sm:$0xff] %v1987_v31  ;;  %v2029_v30 = vunpack.c.h.s8.bf16 %v8428_v61  ;;  %v2030_v31 = vunpack.c.h.s8.bf16 %v8431_v2  ;;  %v2048_v60 = vunpack.c.h.s8.bf16 %v8455_v28  ;;  %v2054_v2 = vunpack.c.l.s8.bf16 %v8471_v50 }
 0x1e3   : > { %2116 = vst [vmem:[#allocation2 + $0x1480] sm:$0xff] %v1988_v32  ;;  %2117 = vst [vmem:[#allocation2 + $0x1488] sm:$0xff] %v1989_v33  ;;  %v2031_v32 = vunpack.c.h.s8.bf16 %v8433_v3  ;;  %v1945_v33 = vld [vmem:[#allocation8 + $0xb28] sm:$0xff]  ;;  %v2055_v3 = vunpack.c.l.s8.bf16 %v8473_v51 }
 0x1e4   : > { %2118 = vst [vmem:[#allocation2 + $0x1490] sm:$0xff] %v1990_v34  ;;  %2119 = vst [vmem:[#allocation2 + $0x1498] sm:$0xff] %v1991_v35  ;;  %v1946_v34 = vld [vmem:[#allocation8 + $0xb30] sm:$0xff]  ;;  %v1947_v35 = vld [vmem:[#allocation8 + $0xb38] sm:$0xff]  ;;  %v2049_v61 = vunpack.c.h.s8.bf16 %v1945_v33 }
 0x1e5   : > { %2120 = vst [vmem:[#allocation2 + $0x14a0] sm:$0xff] %v1992_v38  ;;  %2121 = vst [vmem:[#allocation2 + $0x14a8] sm:$0xff] %v1993_v39  ;;  %v2034_v38 = vunpack.c.h.s8.bf16 %v1938_v10  ;;  %v2035_v39 = vunpack.c.h.s8.bf16 %v1939_v11  ;;  %v2043_v49 = vunpack.c.l.s8.bf16 %v1947_v35  ;;  %v8491_v10 = vld [vmem:[#allocation8 + $0xb90] sm:$0xff]  ;;  %v8493_v11 = vld [vmem:[#allocation8 + $0xb98] sm:$0xff] }
 0x1e6   : > { %2122 = vst [vmem:[#allocation2 + $0x14b0] sm:$0xff] %v1994_v40  ;;  %2123 = vst [vmem:[#allocation2 + $0x14b8] sm:$0xff] %v1995_v41  ;;  %v2036_v40 = vunpack.c.l.s8.bf16 %v8446_v20  ;;  %v2037_v41 = vunpack.c.l.s8.bf16 %v8448_v21 }
 0x1e7   : > { %2124 = vst [vmem:[#allocation2 + $0x14c0] sm:$0xff] %v1996_v45  ;;  %2125 = vst [vmem:[#allocation2 + $0x14c8] sm:$0xff] %v1997_v46  ;;  %v8468_v45 = vld [vmem:[#allocation8 + $0xb48] sm:$0xff]  ;;  %v2040_v46 = vunpack.c.l.s8.bf16 %v8455_v28  ;;  %v8506_v28 = vld [vmem:[#allocation8 + $0xbc0] sm:$0xff] }
 0x1e8   : > { %2126 = vst [vmem:[#allocation2 + $0x14d0] sm:$0xff] %v1998_v47  ;;  %2127 = vst [vmem:[#allocation2 + $0x14d8] sm:$0xff] %v1999_v48  ;;  %v2041_v47 = vunpack.c.l.s8.bf16 %v1945_v33  ;;  %v2042_v48 = vunpack.c.l.s8.bf16 %v1946_v34 }
 0x1e9   : > { %2128 = vst [vmem:[#allocation2 + $0x14e0] sm:$0xff] %v2000_v52  ;;  %2129 = vst [vmem:[#allocation2 + $0x14e8] sm:$0xff] %v2001_v53  ;;  %v8475_v52 = vld [vmem:[#allocation8 + $0xb60] sm:$0xff]  ;;  %v2044_v53 = vunpack.c.h.s8.bf16 %v8446_v20 }
 0x1ea   : > { %2130 = vst [vmem:[#allocation2 + $0x14f0] sm:$0xff] %v2002_v54  ;;  %2131 = vst [vmem:[#allocation2 + $0x14f8] sm:$0xff] %v2003_v55  ;;  %v2045_v54 = vunpack.c.h.s8.bf16 %v8448_v21  ;;  %v2046_v55 = vunpack.c.h.s8.bf16 %v8451_v26  ;;  %v2064_v20 = vunpack.c.h.s8.bf16 %v8475_v52  ;;  %v2070_v26 = vunpack.c.l.s8.bf16 %v8491_v10 }
 0x1eb   : > { %2132 = vst [vmem:[#allocation2 + $0x1500] sm:$0xff] %v2004_v56  ;;  %2133 = vst [vmem:[#allocation2 + $0x1508] sm:$0xff] %v2005_v57  ;;  %v2047_v56 = vunpack.c.h.s8.bf16 %v8453_v27  ;;  %v1953_v57 = vld [vmem:[#allocation8 + $0xb68] sm:$0xff]  ;;  %v2071_v27 = vunpack.c.l.s8.bf16 %v8493_v11 }
 0x1ec   : > { %2134 = vst [vmem:[#allocation2 + $0x1510] sm:$0xff] %v2006_v58  ;;  %2135 = vst [vmem:[#allocation2 + $0x1518] sm:$0xff] %v2007_v59  ;;  %v1954_v58 = vld [vmem:[#allocation8 + $0xb70] sm:$0xff]  ;;  %v1955_v59 = vld [vmem:[#allocation8 + $0xb78] sm:$0xff]  ;;  %v2065_v21 = vunpack.c.h.s8.bf16 %v1953_v57 }
 0x1ed   : > { %2136 = vst [vmem:[#allocation2 + $0x1520] sm:$0xff] %v2008_v62  ;;  %2137 = vst [vmem:[#allocation2 + $0x1528] sm:$0xff] %v2009_v63  ;;  %v2050_v62 = vunpack.c.h.s8.bf16 %v1946_v34  ;;  %v2051_v63 = vunpack.c.h.s8.bf16 %v1947_v35  ;;  %v2059_v9 = vunpack.c.l.s8.bf16 %v1955_v59  ;;  %v8511_v34 = vld [vmem:[#allocation8 + $0xbd0] sm:$0xff]  ;;  %v8513_v35 = vld [vmem:[#allocation8 + $0xbd8] sm:$0xff] }
 0x1ee   : > { %2138 = vst [vmem:[#allocation2 + $0x1530] sm:$0xff] %v2010_v0  ;;  %2139 = vst [vmem:[#allocation2 + $0x1538] sm:$0xff] %v2011_v1  ;;  %v2052_v0 = vunpack.c.l.s8.bf16 %v8466_v44  ;;  %v2053_v1 = vunpack.c.l.s8.bf16 %v8468_v45 }
 0x1ef   : > { %2140 = vst [vmem:[#allocation2 + $0x1540] sm:$0xff] %v2012_v5  ;;  %2141 = vst [vmem:[#allocation2 + $0x1548] sm:$0xff] %v2013_v6  ;;  %v8488_v5 = vld [vmem:[#allocation8 + $0xb88] sm:$0xff]  ;;  %v2056_v6 = vunpack.c.l.s8.bf16 %v8475_v52  ;;  %v8526_v52 = vld [vmem:[#allocation8 + $0xc00] sm:$0xff] }
 0x1f0   : > { %2142 = vst [vmem:[#allocation2 + $0x1550] sm:$0xff] %v2014_v7  ;;  %2143 = vst [vmem:[#allocation2 + $0x1558] sm:$0xff] %v2015_v8  ;;  %v2057_v7 = vunpack.c.l.s8.bf16 %v1953_v57  ;;  %v2058_v8 = vunpack.c.l.s8.bf16 %v1954_v58 }
 0x1f1   : > { %2144 = vst [vmem:[#allocation2 + $0x1560] sm:$0xff] %v2016_v12  ;;  %2145 = vst [vmem:[#allocation2 + $0x1568] sm:$0xff] %v2017_v13  ;;  %v8495_v12 = vld [vmem:[#allocation8 + $0xba0] sm:$0xff]  ;;  %v2060_v13 = vunpack.c.h.s8.bf16 %v8466_v44 }
 0x1f2   : > { %2146 = vst [vmem:[#allocation2 + $0x1570] sm:$0xff] %v2018_v14  ;;  %2147 = vst [vmem:[#allocation2 + $0x1578] sm:$0xff] %v2019_v15  ;;  %v2061_v14 = vunpack.c.h.s8.bf16 %v8468_v45  ;;  %v2062_v15 = vunpack.c.h.s8.bf16 %v8471_v50  ;;  %v2080_v44 = vunpack.c.h.s8.bf16 %v8495_v12  ;;  %v2086_v50 = vunpack.c.l.s8.bf16 %v8511_v34 }
 0x1f3   : > { %2148 = vst [vmem:[#allocation2 + $0x1580] sm:$0xff] %v2020_v16  ;;  %2149 = vst [vmem:[#allocation2 + $0x1588] sm:$0xff] %v2021_v17  ;;  %v2063_v16 = vunpack.c.h.s8.bf16 %v8473_v51  ;;  %v1961_v17 = vld [vmem:[#allocation8 + $0xba8] sm:$0xff]  ;;  %v2087_v51 = vunpack.c.l.s8.bf16 %v8513_v35 }
 0x1f4   : > { %2150 = vst [vmem:[#allocation2 + $0x1590] sm:$0xff] %v2022_v18  ;;  %2151 = vst [vmem:[#allocation2 + $0x1598] sm:$0xff] %v2023_v19  ;;  %v1962_v18 = vld [vmem:[#allocation8 + $0xbb0] sm:$0xff]  ;;  %v1963_v19 = vld [vmem:[#allocation8 + $0xbb8] sm:$0xff]  ;;  %v2081_v45 = vunpack.c.h.s8.bf16 %v1961_v17 }
 0x1f5   : > { %2152 = vst [vmem:[#allocation2 + $0x15a0] sm:$0xff] %v2024_v22  ;;  %2153 = vst [vmem:[#allocation2 + $0x15a8] sm:$0xff] %v2025_v23  ;;  %v2066_v22 = vunpack.c.h.s8.bf16 %v1954_v58  ;;  %v2067_v23 = vunpack.c.h.s8.bf16 %v1955_v59  ;;  %v2075_v33 = vunpack.c.l.s8.bf16 %v1963_v19  ;;  %v8531_v58 = vld [vmem:[#allocation8 + $0xc10] sm:$0xff]  ;;  %v8533_v59 = vld [vmem:[#allocation8 + $0xc18] sm:$0xff] }
 0x1f6   : > { %2154 = vst [vmem:[#allocation2 + $0x15b0] sm:$0xff] %v2026_v24  ;;  %2155 = vst [vmem:[#allocation2 + $0x15b8] sm:$0xff] %v2027_v25  ;;  %v2068_v24 = vunpack.c.l.s8.bf16 %v8486_v4  ;;  %v2069_v25 = vunpack.c.l.s8.bf16 %v8488_v5 }
 0x1f7   : > { %2156 = vst [vmem:[#allocation2 + $0x15c0] sm:$0xff] %v2028_v29  ;;  %2157 = vst [vmem:[#allocation2 + $0x15c8] sm:$0xff] %v2029_v30  ;;  %v8508_v29 = vld [vmem:[#allocation8 + $0xbc8] sm:$0xff]  ;;  %v2072_v30 = vunpack.c.l.s8.bf16 %v8495_v12  ;;  %v8546_v12 = vld [vmem:[#allocation8 + $0xc40] sm:$0xff] }
 0x1f8   : > { %2158 = vst [vmem:[#allocation2 + $0x15d0] sm:$0xff] %v2030_v31  ;;  %2159 = vst [vmem:[#allocation2 + $0x15d8] sm:$0xff] %v2031_v32  ;;  %v2073_v31 = vunpack.c.l.s8.bf16 %v1961_v17  ;;  %v2074_v32 = vunpack.c.l.s8.bf16 %v1962_v18 }
 0x1f9   : > { %2160 = vst [vmem:[#allocation2 + $0x15e0] sm:$0xff] %v2032_v36  ;;  %2161 = vst [vmem:[#allocation2 + $0x15e8] sm:$0xff] %v2033_v37  ;;  %v8515_v36 = vld [vmem:[#allocation8 + $0xbe0] sm:$0xff]  ;;  %v2076_v37 = vunpack.c.h.s8.bf16 %v8486_v4 }
 0x1fa   : > { %2162 = vst [vmem:[#allocation2 + $0x15f0] sm:$0xff] %v2034_v38  ;;  %2163 = vst [vmem:[#allocation2 + $0x15f8] sm:$0xff] %v2035_v39  ;;  %v2077_v38 = vunpack.c.h.s8.bf16 %v8488_v5  ;;  %v2078_v39 = vunpack.c.h.s8.bf16 %v8491_v10  ;;  %v2096_v4 = vunpack.c.h.s8.bf16 %v8515_v36  ;;  %v2294_v10 = vunpack.c.l.s8.bf16 %v8531_v58 }
 0x1fb   : > { %2164 = vst [vmem:[#allocation2 + $0x1600] sm:$0xff] %v2036_v40  ;;  %2165 = vst [vmem:[#allocation2 + $0x1608] sm:$0xff] %v2037_v41  ;;  %v2079_v40 = vunpack.c.h.s8.bf16 %v8493_v11  ;;  %v1969_v41 = vld [vmem:[#allocation8 + $0xbe8] sm:$0xff]  ;;  %v2295_v11 = vunpack.c.l.s8.bf16 %v8533_v59 }
 0x1fc   : > { %2166 = vst [vmem:[#allocation2 + $0x1610] sm:$0xff] %v2038_v42  ;;  %2167 = vst [vmem:[#allocation2 + $0x1618] sm:$0xff] %v2039_v43  ;;  %v1970_v42 = vld [vmem:[#allocation8 + $0xbf0] sm:$0xff]  ;;  %v1971_v43 = vld [vmem:[#allocation8 + $0xbf8] sm:$0xff]  ;;  %v2097_v5 = vunpack.c.h.s8.bf16 %v1969_v41 }
 0x1fd   : > { %2168 = vst [vmem:[#allocation2 + $0x1620] sm:$0xff] %v2040_v46  ;;  %2169 = vst [vmem:[#allocation2 + $0x1628] sm:$0xff] %v2041_v47  ;;  %v2082_v46 = vunpack.c.h.s8.bf16 %v1962_v18  ;;  %v2083_v47 = vunpack.c.h.s8.bf16 %v1963_v19  ;;  %v2091_v57 = vunpack.c.l.s8.bf16 %v1971_v43  ;;  %v8551_v18 = vld [vmem:[#allocation8 + $0xc50] sm:$0xff]  ;;  %v8553_v19 = vld [vmem:[#allocation8 + $0xc58] sm:$0xff] }
 0x1fe   : > { %2170 = vst [vmem:[#allocation2 + $0x1630] sm:$0xff] %v2042_v48  ;;  %2171 = vst [vmem:[#allocation2 + $0x1638] sm:$0xff] %v2043_v49  ;;  %v2084_v48 = vunpack.c.l.s8.bf16 %v8506_v28  ;;  %v2085_v49 = vunpack.c.l.s8.bf16 %v8508_v29 }
 0x1ff   : > { %2172 = vst [vmem:[#allocation2 + $0x1640] sm:$0xff] %v2044_v53  ;;  %2173 = vst [vmem:[#allocation2 + $0x1648] sm:$0xff] %v2045_v54  ;;  %v8528_v53 = vld [vmem:[#allocation8 + $0xc08] sm:$0xff]  ;;  %v2088_v54 = vunpack.c.l.s8.bf16 %v8515_v36  ;;  %v8566_v36 = vld [vmem:[#allocation8 + $0xc80] sm:$0xff] }
 0x200   : > { %2174 = vst [vmem:[#allocation2 + $0x1650] sm:$0xff] %v2046_v55  ;;  %2175 = vst [vmem:[#allocation2 + $0x1658] sm:$0xff] %v2047_v56  ;;  %v2089_v55 = vunpack.c.l.s8.bf16 %v1969_v41  ;;  %v2090_v56 = vunpack.c.l.s8.bf16 %v1970_v42 }
 0x201   : > { %2176 = vst [vmem:[#allocation2 + $0x1660] sm:$0xff] %v2048_v60  ;;  %2177 = vst [vmem:[#allocation2 + $0x1668] sm:$0xff] %v2049_v61  ;;  %v8535_v60 = vld [vmem:[#allocation8 + $0xc20] sm:$0xff]  ;;  %v2092_v61 = vunpack.c.h.s8.bf16 %v8506_v28 }
 0x202   : > { %2178 = vst [vmem:[#allocation2 + $0x1670] sm:$0xff] %v2050_v62  ;;  %2179 = vst [vmem:[#allocation2 + $0x1678] sm:$0xff] %v2051_v63  ;;  %v2093_v62 = vunpack.c.h.s8.bf16 %v8508_v29  ;;  %v2094_v63 = vunpack.c.h.s8.bf16 %v8511_v34  ;;  %v2304_v28 = vunpack.c.h.s8.bf16 %v8535_v60  ;;  %v2310_v34 = vunpack.c.l.s8.bf16 %v8551_v18 }
 0x203   : > { %2180 = vst [vmem:[#allocation2 + $0x1680] sm:$0xff] %v2052_v0  ;;  %2181 = vst [vmem:[#allocation2 + $0x1688] sm:$0xff] %v2053_v1  ;;  %v2095_v0 = vunpack.c.h.s8.bf16 %v8513_v35  ;;  %v2233_v1 = vld [vmem:[#allocation8 + $0xc28] sm:$0xff]  ;;  %v2311_v35 = vunpack.c.l.s8.bf16 %v8553_v19 }
 0x204   : > { %2182 = vst [vmem:[#allocation2 + $0x1690] sm:$0xff] %v2054_v2  ;;  %2183 = vst [vmem:[#allocation2 + $0x1698] sm:$0xff] %v2055_v3  ;;  %v2234_v2 = vld [vmem:[#allocation8 + $0xc30] sm:$0xff]  ;;  %v2235_v3 = vld [vmem:[#allocation8 + $0xc38] sm:$0xff]  ;;  %v2305_v29 = vunpack.c.h.s8.bf16 %v2233_v1 }
 0x205   : > { %2184 = vst [vmem:[#allocation2 + $0x16a0] sm:$0xff] %v2056_v6  ;;  %2185 = vst [vmem:[#allocation2 + $0x16a8] sm:$0xff] %v2057_v7  ;;  %v2098_v6 = vunpack.c.h.s8.bf16 %v1970_v42  ;;  %v2099_v7 = vunpack.c.h.s8.bf16 %v1971_v43  ;;  %v2299_v17 = vunpack.c.l.s8.bf16 %v2235_v3  ;;  %v8571_v42 = vld [vmem:[#allocation8 + $0xc90] sm:$0xff]  ;;  %v8573_v43 = vld [vmem:[#allocation8 + $0xc98] sm:$0xff] }
 0x206   : > { %2186 = vst [vmem:[#allocation2 + $0x16b0] sm:$0xff] %v2058_v8  ;;  %2187 = vst [vmem:[#allocation2 + $0x16b8] sm:$0xff] %v2059_v9  ;;  %v2292_v8 = vunpack.c.l.s8.bf16 %v8526_v52  ;;  %v2293_v9 = vunpack.c.l.s8.bf16 %v8528_v53 }
 0x207   : > { %2188 = vst [vmem:[#allocation2 + $0x16c0] sm:$0xff] %v2060_v13  ;;  %2189 = vst [vmem:[#allocation2 + $0x16c8] sm:$0xff] %v2061_v14  ;;  %v8548_v13 = vld [vmem:[#allocation8 + $0xc48] sm:$0xff]  ;;  %v2296_v14 = vunpack.c.l.s8.bf16 %v8535_v60  ;;  %v8586_v60 = vld [vmem:[#allocation8 + $0xcc0] sm:$0xff] }
 0x208   : > { %2190 = vst [vmem:[#allocation2 + $0x16d0] sm:$0xff] %v2062_v15  ;;  %2191 = vst [vmem:[#allocation2 + $0x16d8] sm:$0xff] %v2063_v16  ;;  %v2297_v15 = vunpack.c.l.s8.bf16 %v2233_v1  ;;  %v2298_v16 = vunpack.c.l.s8.bf16 %v2234_v2 }
 0x209   : > { %2192 = vst [vmem:[#allocation2 + $0x16e0] sm:$0xff] %v2064_v20  ;;  %2193 = vst [vmem:[#allocation2 + $0x16e8] sm:$0xff] %v2065_v21  ;;  %v8555_v20 = vld [vmem:[#allocation8 + $0xc60] sm:$0xff]  ;;  %v2300_v21 = vunpack.c.h.s8.bf16 %v8526_v52 }
 0x20a   : > { %2194 = vst [vmem:[#allocation2 + $0x16f0] sm:$0xff] %v2066_v22  ;;  %2195 = vst [vmem:[#allocation2 + $0x16f8] sm:$0xff] %v2067_v23  ;;  %v2301_v22 = vunpack.c.h.s8.bf16 %v8528_v53  ;;  %v2302_v23 = vunpack.c.h.s8.bf16 %v8531_v58  ;;  %v2320_v52 = vunpack.c.h.s8.bf16 %v8555_v20  ;;  %v2326_v58 = vunpack.c.l.s8.bf16 %v8571_v42 }
 0x20b   : > { %2196 = vst [vmem:[#allocation2 + $0x1700] sm:$0xff] %v2068_v24  ;;  %2197 = vst [vmem:[#allocation2 + $0x1708] sm:$0xff] %v2069_v25  ;;  %v2303_v24 = vunpack.c.h.s8.bf16 %v8533_v59  ;;  %v2241_v25 = vld [vmem:[#allocation8 + $0xc68] sm:$0xff]  ;;  %v2327_v59 = vunpack.c.l.s8.bf16 %v8573_v43 }
 0x20c   : > { %2198 = vst [vmem:[#allocation2 + $0x1710] sm:$0xff] %v2070_v26  ;;  %2199 = vst [vmem:[#allocation2 + $0x1718] sm:$0xff] %v2071_v27  ;;  %v2242_v26 = vld [vmem:[#allocation8 + $0xc70] sm:$0xff]  ;;  %v2243_v27 = vld [vmem:[#allocation8 + $0xc78] sm:$0xff]  ;;  %v2321_v53 = vunpack.c.h.s8.bf16 %v2241_v25 }
 0x20d   : > { %2200 = vst [vmem:[#allocation2 + $0x1720] sm:$0xff] %v2072_v30  ;;  %2201 = vst [vmem:[#allocation2 + $0x1728] sm:$0xff] %v2073_v31  ;;  %v2306_v30 = vunpack.c.h.s8.bf16 %v2234_v2  ;;  %v2307_v31 = vunpack.c.h.s8.bf16 %v2235_v3  ;;  %v2315_v41 = vunpack.c.l.s8.bf16 %v2243_v27  ;;  %v8591_v2 = vld [vmem:[#allocation8 + $0xcd0] sm:$0xff]  ;;  %v8593_v3 = vld [vmem:[#allocation8 + $0xcd8] sm:$0xff] }
 0x20e   : > { %2202 = vst [vmem:[#allocation2 + $0x1730] sm:$0xff] %v2074_v32  ;;  %2203 = vst [vmem:[#allocation2 + $0x1738] sm:$0xff] %v2075_v33  ;;  %v2308_v32 = vunpack.c.l.s8.bf16 %v8546_v12  ;;  %v2309_v33 = vunpack.c.l.s8.bf16 %v8548_v13 }
 0x20f   : > { %2204 = vst [vmem:[#allocation2 + $0x1740] sm:$0xff] %v2076_v37  ;;  %2205 = vst [vmem:[#allocation2 + $0x1748] sm:$0xff] %v2077_v38  ;;  %v8568_v37 = vld [vmem:[#allocation8 + $0xc88] sm:$0xff]  ;;  %v2312_v38 = vunpack.c.l.s8.bf16 %v8555_v20  ;;  %v8606_v20 = vld [vmem:[#allocation8 + $0xd00] sm:$0xff] }
 0x210   : > { %2206 = vst [vmem:[#allocation2 + $0x1750] sm:$0xff] %v2078_v39  ;;  %2207 = vst [vmem:[#allocation2 + $0x1758] sm:$0xff] %v2079_v40  ;;  %v2313_v39 = vunpack.c.l.s8.bf16 %v2241_v25  ;;  %v2314_v40 = vunpack.c.l.s8.bf16 %v2242_v26 }
 0x211   : > { %2208 = vst [vmem:[#allocation2 + $0x1760] sm:$0xff] %v2080_v44  ;;  %2209 = vst [vmem:[#allocation2 + $0x1768] sm:$0xff] %v2081_v45  ;;  %v8575_v44 = vld [vmem:[#allocation8 + $0xca0] sm:$0xff]  ;;  %v2316_v45 = vunpack.c.h.s8.bf16 %v8546_v12 }
 0x212   : > { %2210 = vst [vmem:[#allocation2 + $0x1770] sm:$0xff] %v2082_v46  ;;  %2211 = vst [vmem:[#allocation2 + $0x1778] sm:$0xff] %v2083_v47  ;;  %v2317_v46 = vunpack.c.h.s8.bf16 %v8548_v13  ;;  %v2318_v47 = vunpack.c.h.s8.bf16 %v8551_v18  ;;  %v2336_v12 = vunpack.c.h.s8.bf16 %v8575_v44  ;;  %v2342_v18 = vunpack.c.l.s8.bf16 %v8591_v2 }
 0x213   : > { %2212 = vst [vmem:[#allocation2 + $0x1780] sm:$0xff] %v2084_v48  ;;  %2213 = vst [vmem:[#allocation2 + $0x1788] sm:$0xff] %v2085_v49  ;;  %v2319_v48 = vunpack.c.h.s8.bf16 %v8553_v19  ;;  %v2249_v49 = vld [vmem:[#allocation8 + $0xca8] sm:$0xff]  ;;  %v2343_v19 = vunpack.c.l.s8.bf16 %v8593_v3 }
 0x214   : > { %2214 = vst [vmem:[#allocation2 + $0x1790] sm:$0xff] %v2086_v50  ;;  %2215 = vst [vmem:[#allocation2 + $0x1798] sm:$0xff] %v2087_v51  ;;  %v2250_v50 = vld [vmem:[#allocation8 + $0xcb0] sm:$0xff]  ;;  %v2251_v51 = vld [vmem:[#allocation8 + $0xcb8] sm:$0xff]  ;;  %v2337_v13 = vunpack.c.h.s8.bf16 %v2249_v49 }
 0x215   : > { %2216 = vst [vmem:[#allocation2 + $0x17a0] sm:$0xff] %v2088_v54  ;;  %2217 = vst [vmem:[#allocation2 + $0x17a8] sm:$0xff] %v2089_v55  ;;  %v2322_v54 = vunpack.c.h.s8.bf16 %v2242_v26  ;;  %v2323_v55 = vunpack.c.h.s8.bf16 %v2243_v27  ;;  %v2331_v1 = vunpack.c.l.s8.bf16 %v2251_v51  ;;  %v8611_v26 = vld [vmem:[#allocation8 + $0xd10] sm:$0xff]  ;;  %v8613_v27 = vld [vmem:[#allocation8 + $0xd18] sm:$0xff] }
 0x216   : > { %2218 = vst [vmem:[#allocation2 + $0x17b0] sm:$0xff] %v2090_v56  ;;  %2219 = vst [vmem:[#allocation2 + $0x17b8] sm:$0xff] %v2091_v57  ;;  %v2324_v56 = vunpack.c.l.s8.bf16 %v8566_v36  ;;  %v2325_v57 = vunpack.c.l.s8.bf16 %v8568_v37 }
 0x217   : > { %2220 = vst [vmem:[#allocation2 + $0x17c0] sm:$0xff] %v2092_v61  ;;  %2221 = vst [vmem:[#allocation2 + $0x17c8] sm:$0xff] %v2093_v62  ;;  %v8588_v61 = vld [vmem:[#allocation8 + $0xcc8] sm:$0xff]  ;;  %v2328_v62 = vunpack.c.l.s8.bf16 %v8575_v44  ;;  %v8626_v44 = vld [vmem:[#allocation8 + $0xd40] sm:$0xff] }
 0x218   : > { %2222 = vst [vmem:[#allocation2 + $0x17d0] sm:$0xff] %v2094_v63  ;;  %2223 = vst [vmem:[#allocation2 + $0x17d8] sm:$0xff] %v2095_v0  ;;  %v2329_v63 = vunpack.c.l.s8.bf16 %v2249_v49  ;;  %v2330_v0 = vunpack.c.l.s8.bf16 %v2250_v50 }
 0x219   : > { %2224 = vst [vmem:[#allocation2 + $0x17e0] sm:$0xff] %v2096_v4  ;;  %2225 = vst [vmem:[#allocation2 + $0x17e8] sm:$0xff] %v2097_v5  ;;  %v8595_v4 = vld [vmem:[#allocation8 + $0xce0] sm:$0xff]  ;;  %v2332_v5 = vunpack.c.h.s8.bf16 %v8566_v36 }
 0x21a   : > { %2226 = vst [vmem:[#allocation2 + $0x17f0] sm:$0xff] %v2098_v6  ;;  %2227 = vst [vmem:[#allocation2 + $0x17f8] sm:$0xff] %v2099_v7  ;;  %v2333_v6 = vunpack.c.h.s8.bf16 %v8568_v37  ;;  %v2334_v7 = vunpack.c.h.s8.bf16 %v8571_v42  ;;  %v2352_v36 = vunpack.c.h.s8.bf16 %v8595_v4  ;;  %v2358_v42 = vunpack.c.l.s8.bf16 %v8611_v26 }
 0x21b   : > { %2420 = vst [vmem:[#allocation2 + $0x1800] sm:$0xff] %v2292_v8  ;;  %2421 = vst [vmem:[#allocation2 + $0x1808] sm:$0xff] %v2293_v9  ;;  %v2335_v8 = vunpack.c.h.s8.bf16 %v8573_v43  ;;  %v2257_v9 = vld [vmem:[#allocation8 + $0xce8] sm:$0xff]  ;;  %v2359_v43 = vunpack.c.l.s8.bf16 %v8613_v27 }
 0x21c   : > { %2422 = vst [vmem:[#allocation2 + $0x1810] sm:$0xff] %v2294_v10  ;;  %2423 = vst [vmem:[#allocation2 + $0x1818] sm:$0xff] %v2295_v11  ;;  %v2258_v10 = vld [vmem:[#allocation8 + $0xcf0] sm:$0xff]  ;;  %v2259_v11 = vld [vmem:[#allocation8 + $0xcf8] sm:$0xff]  ;;  %v2353_v37 = vunpack.c.h.s8.bf16 %v2257_v9 }
 0x21d   : > { %2424 = vst [vmem:[#allocation2 + $0x1820] sm:$0xff] %v2296_v14  ;;  %2425 = vst [vmem:[#allocation2 + $0x1828] sm:$0xff] %v2297_v15  ;;  %v2338_v14 = vunpack.c.h.s8.bf16 %v2250_v50  ;;  %v2339_v15 = vunpack.c.h.s8.bf16 %v2251_v51  ;;  %v2347_v25 = vunpack.c.l.s8.bf16 %v2259_v11  ;;  %v8631_v50 = vld [vmem:[#allocation8 + $0xd50] sm:$0xff]  ;;  %v8633_v51 = vld [vmem:[#allocation8 + $0xd58] sm:$0xff] }
 0x21e   : > { %2426 = vst [vmem:[#allocation2 + $0x1830] sm:$0xff] %v2298_v16  ;;  %2427 = vst [vmem:[#allocation2 + $0x1838] sm:$0xff] %v2299_v17  ;;  %v2340_v16 = vunpack.c.l.s8.bf16 %v8586_v60  ;;  %v2341_v17 = vunpack.c.l.s8.bf16 %v8588_v61 }
 0x21f   : > { %2428 = vst [vmem:[#allocation2 + $0x1840] sm:$0xff] %v2300_v21  ;;  %2429 = vst [vmem:[#allocation2 + $0x1848] sm:$0xff] %v2301_v22  ;;  %v8608_v21 = vld [vmem:[#allocation8 + $0xd08] sm:$0xff]  ;;  %v2344_v22 = vunpack.c.l.s8.bf16 %v8595_v4  ;;  %v8646_v4 = vld [vmem:[#allocation8 + $0xd80] sm:$0xff] }
 0x220   : > { %2430 = vst [vmem:[#allocation2 + $0x1850] sm:$0xff] %v2302_v23  ;;  %2431 = vst [vmem:[#allocation2 + $0x1858] sm:$0xff] %v2303_v24  ;;  %v2345_v23 = vunpack.c.l.s8.bf16 %v2257_v9  ;;  %v2346_v24 = vunpack.c.l.s8.bf16 %v2258_v10 }
 0x221   : > { %2432 = vst [vmem:[#allocation2 + $0x1860] sm:$0xff] %v2304_v28  ;;  %2433 = vst [vmem:[#allocation2 + $0x1868] sm:$0xff] %v2305_v29  ;;  %v8615_v28 = vld [vmem:[#allocation8 + $0xd20] sm:$0xff]  ;;  %v2348_v29 = vunpack.c.h.s8.bf16 %v8586_v60 }
 0x222   : > { %2434 = vst [vmem:[#allocation2 + $0x1870] sm:$0xff] %v2306_v30  ;;  %2435 = vst [vmem:[#allocation2 + $0x1878] sm:$0xff] %v2307_v31  ;;  %v2349_v30 = vunpack.c.h.s8.bf16 %v8588_v61  ;;  %v2350_v31 = vunpack.c.h.s8.bf16 %v8591_v2  ;;  %v2368_v60 = vunpack.c.h.s8.bf16 %v8615_v28  ;;  %v2374_v2 = vunpack.c.l.s8.bf16 %v8631_v50 }
 0x223   : > { %2436 = vst [vmem:[#allocation2 + $0x1880] sm:$0xff] %v2308_v32  ;;  %2437 = vst [vmem:[#allocation2 + $0x1888] sm:$0xff] %v2309_v33  ;;  %v2351_v32 = vunpack.c.h.s8.bf16 %v8593_v3  ;;  %v2265_v33 = vld [vmem:[#allocation8 + $0xd28] sm:$0xff]  ;;  %v2375_v3 = vunpack.c.l.s8.bf16 %v8633_v51 }
 0x224   : > { %2438 = vst [vmem:[#allocation2 + $0x1890] sm:$0xff] %v2310_v34  ;;  %2439 = vst [vmem:[#allocation2 + $0x1898] sm:$0xff] %v2311_v35  ;;  %v2266_v34 = vld [vmem:[#allocation8 + $0xd30] sm:$0xff]  ;;  %v2267_v35 = vld [vmem:[#allocation8 + $0xd38] sm:$0xff]  ;;  %v2369_v61 = vunpack.c.h.s8.bf16 %v2265_v33 }
 0x225   : > { %2440 = vst [vmem:[#allocation2 + $0x18a0] sm:$0xff] %v2312_v38  ;;  %2441 = vst [vmem:[#allocation2 + $0x18a8] sm:$0xff] %v2313_v39  ;;  %v2354_v38 = vunpack.c.h.s8.bf16 %v2258_v10  ;;  %v2355_v39 = vunpack.c.h.s8.bf16 %v2259_v11  ;;  %v2363_v49 = vunpack.c.l.s8.bf16 %v2267_v35  ;;  %v8651_v10 = vld [vmem:[#allocation8 + $0xd90] sm:$0xff]  ;;  %v8653_v11 = vld [vmem:[#allocation8 + $0xd98] sm:$0xff] }
 0x226   : > { %2442 = vst [vmem:[#allocation2 + $0x18b0] sm:$0xff] %v2314_v40  ;;  %2443 = vst [vmem:[#allocation2 + $0x18b8] sm:$0xff] %v2315_v41  ;;  %v2356_v40 = vunpack.c.l.s8.bf16 %v8606_v20  ;;  %v2357_v41 = vunpack.c.l.s8.bf16 %v8608_v21 }
 0x227   : > { %2444 = vst [vmem:[#allocation2 + $0x18c0] sm:$0xff] %v2316_v45  ;;  %2445 = vst [vmem:[#allocation2 + $0x18c8] sm:$0xff] %v2317_v46  ;;  %v8628_v45 = vld [vmem:[#allocation8 + $0xd48] sm:$0xff]  ;;  %v2360_v46 = vunpack.c.l.s8.bf16 %v8615_v28  ;;  %v8666_v28 = vld [vmem:[#allocation8 + $0xdc0] sm:$0xff] }
 0x228   : > { %2446 = vst [vmem:[#allocation2 + $0x18d0] sm:$0xff] %v2318_v47  ;;  %2447 = vst [vmem:[#allocation2 + $0x18d8] sm:$0xff] %v2319_v48  ;;  %v2361_v47 = vunpack.c.l.s8.bf16 %v2265_v33  ;;  %v2362_v48 = vunpack.c.l.s8.bf16 %v2266_v34 }
 0x229   : > { %2448 = vst [vmem:[#allocation2 + $0x18e0] sm:$0xff] %v2320_v52  ;;  %2449 = vst [vmem:[#allocation2 + $0x18e8] sm:$0xff] %v2321_v53  ;;  %v8635_v52 = vld [vmem:[#allocation8 + $0xd60] sm:$0xff]  ;;  %v2364_v53 = vunpack.c.h.s8.bf16 %v8606_v20 }
 0x22a   : > { %2450 = vst [vmem:[#allocation2 + $0x18f0] sm:$0xff] %v2322_v54  ;;  %2451 = vst [vmem:[#allocation2 + $0x18f8] sm:$0xff] %v2323_v55  ;;  %v2365_v54 = vunpack.c.h.s8.bf16 %v8608_v21  ;;  %v2366_v55 = vunpack.c.h.s8.bf16 %v8611_v26  ;;  %v2384_v20 = vunpack.c.h.s8.bf16 %v8635_v52  ;;  %v2390_v26 = vunpack.c.l.s8.bf16 %v8651_v10 }
 0x22b   : > { %2452 = vst [vmem:[#allocation2 + $0x1900] sm:$0xff] %v2324_v56  ;;  %2453 = vst [vmem:[#allocation2 + $0x1908] sm:$0xff] %v2325_v57  ;;  %v2367_v56 = vunpack.c.h.s8.bf16 %v8613_v27  ;;  %v2273_v57 = vld [vmem:[#allocation8 + $0xd68] sm:$0xff]  ;;  %v2391_v27 = vunpack.c.l.s8.bf16 %v8653_v11 }
 0x22c   : > { %2454 = vst [vmem:[#allocation2 + $0x1910] sm:$0xff] %v2326_v58  ;;  %2455 = vst [vmem:[#allocation2 + $0x1918] sm:$0xff] %v2327_v59  ;;  %v2274_v58 = vld [vmem:[#allocation8 + $0xd70] sm:$0xff]  ;;  %v2275_v59 = vld [vmem:[#allocation8 + $0xd78] sm:$0xff]  ;;  %v2385_v21 = vunpack.c.h.s8.bf16 %v2273_v57 }
 0x22d   : > { %2456 = vst [vmem:[#allocation2 + $0x1920] sm:$0xff] %v2328_v62  ;;  %2457 = vst [vmem:[#allocation2 + $0x1928] sm:$0xff] %v2329_v63  ;;  %v2370_v62 = vunpack.c.h.s8.bf16 %v2266_v34  ;;  %v2371_v63 = vunpack.c.h.s8.bf16 %v2267_v35  ;;  %v2379_v9 = vunpack.c.l.s8.bf16 %v2275_v59  ;;  %v8671_v34 = vld [vmem:[#allocation8 + $0xdd0] sm:$0xff]  ;;  %v8673_v35 = vld [vmem:[#allocation8 + $0xdd8] sm:$0xff] }
 0x22e   : > { %2458 = vst [vmem:[#allocation2 + $0x1930] sm:$0xff] %v2330_v0  ;;  %2459 = vst [vmem:[#allocation2 + $0x1938] sm:$0xff] %v2331_v1  ;;  %v2372_v0 = vunpack.c.l.s8.bf16 %v8626_v44  ;;  %v2373_v1 = vunpack.c.l.s8.bf16 %v8628_v45 }
 0x22f   : > { %2460 = vst [vmem:[#allocation2 + $0x1940] sm:$0xff] %v2332_v5  ;;  %2461 = vst [vmem:[#allocation2 + $0x1948] sm:$0xff] %v2333_v6  ;;  %v8648_v5 = vld [vmem:[#allocation8 + $0xd88] sm:$0xff]  ;;  %v2376_v6 = vunpack.c.l.s8.bf16 %v8635_v52  ;;  %v8686_v52 = vld [vmem:[#allocation8 + $0xe00] sm:$0xff] }
 0x230   : > { %2462 = vst [vmem:[#allocation2 + $0x1950] sm:$0xff] %v2334_v7  ;;  %2463 = vst [vmem:[#allocation2 + $0x1958] sm:$0xff] %v2335_v8  ;;  %v2377_v7 = vunpack.c.l.s8.bf16 %v2273_v57  ;;  %v2378_v8 = vunpack.c.l.s8.bf16 %v2274_v58 }
 0x231   : > { %2464 = vst [vmem:[#allocation2 + $0x1960] sm:$0xff] %v2336_v12  ;;  %2465 = vst [vmem:[#allocation2 + $0x1968] sm:$0xff] %v2337_v13  ;;  %v8655_v12 = vld [vmem:[#allocation8 + $0xda0] sm:$0xff]  ;;  %v2380_v13 = vunpack.c.h.s8.bf16 %v8626_v44 }
 0x232   : > { %2466 = vst [vmem:[#allocation2 + $0x1970] sm:$0xff] %v2338_v14  ;;  %2467 = vst [vmem:[#allocation2 + $0x1978] sm:$0xff] %v2339_v15  ;;  %v2381_v14 = vunpack.c.h.s8.bf16 %v8628_v45  ;;  %v2382_v15 = vunpack.c.h.s8.bf16 %v8631_v50  ;;  %v2400_v44 = vunpack.c.h.s8.bf16 %v8655_v12  ;;  %v2406_v50 = vunpack.c.l.s8.bf16 %v8671_v34 }
 0x233   : > { %2468 = vst [vmem:[#allocation2 + $0x1980] sm:$0xff] %v2340_v16  ;;  %2469 = vst [vmem:[#allocation2 + $0x1988] sm:$0xff] %v2341_v17  ;;  %v2383_v16 = vunpack.c.h.s8.bf16 %v8633_v51  ;;  %v2281_v17 = vld [vmem:[#allocation8 + $0xda8] sm:$0xff]  ;;  %v2407_v51 = vunpack.c.l.s8.bf16 %v8673_v35 }
 0x234   : > { %2470 = vst [vmem:[#allocation2 + $0x1990] sm:$0xff] %v2342_v18  ;;  %2471 = vst [vmem:[#allocation2 + $0x1998] sm:$0xff] %v2343_v19  ;;  %v2282_v18 = vld [vmem:[#allocation8 + $0xdb0] sm:$0xff]  ;;  %v2283_v19 = vld [vmem:[#allocation8 + $0xdb8] sm:$0xff]  ;;  %v2401_v45 = vunpack.c.h.s8.bf16 %v2281_v17 }
 0x235   : > { %2472 = vst [vmem:[#allocation2 + $0x19a0] sm:$0xff] %v2344_v22  ;;  %2473 = vst [vmem:[#allocation2 + $0x19a8] sm:$0xff] %v2345_v23  ;;  %v2386_v22 = vunpack.c.h.s8.bf16 %v2274_v58  ;;  %v2387_v23 = vunpack.c.h.s8.bf16 %v2275_v59  ;;  %v2395_v33 = vunpack.c.l.s8.bf16 %v2283_v19  ;;  %v8691_v58 = vld [vmem:[#allocation8 + $0xe10] sm:$0xff]  ;;  %v8693_v59 = vld [vmem:[#allocation8 + $0xe18] sm:$0xff] }
 0x236   : > { %2474 = vst [vmem:[#allocation2 + $0x19b0] sm:$0xff] %v2346_v24  ;;  %2475 = vst [vmem:[#allocation2 + $0x19b8] sm:$0xff] %v2347_v25  ;;  %v2388_v24 = vunpack.c.l.s8.bf16 %v8646_v4  ;;  %v2389_v25 = vunpack.c.l.s8.bf16 %v8648_v5 }
 0x237   : > { %2476 = vst [vmem:[#allocation2 + $0x19c0] sm:$0xff] %v2348_v29  ;;  %2477 = vst [vmem:[#allocation2 + $0x19c8] sm:$0xff] %v2349_v30  ;;  %v8668_v29 = vld [vmem:[#allocation8 + $0xdc8] sm:$0xff]  ;;  %v2392_v30 = vunpack.c.l.s8.bf16 %v8655_v12  ;;  %v8706_v12 = vld [vmem:[#allocation8 + $0xe40] sm:$0xff] }
 0x238   : > { %2478 = vst [vmem:[#allocation2 + $0x19d0] sm:$0xff] %v2350_v31  ;;  %2479 = vst [vmem:[#allocation2 + $0x19d8] sm:$0xff] %v2351_v32  ;;  %v2393_v31 = vunpack.c.l.s8.bf16 %v2281_v17  ;;  %v2394_v32 = vunpack.c.l.s8.bf16 %v2282_v18 }
 0x239   : > { %2480 = vst [vmem:[#allocation2 + $0x19e0] sm:$0xff] %v2352_v36  ;;  %2481 = vst [vmem:[#allocation2 + $0x19e8] sm:$0xff] %v2353_v37  ;;  %v8675_v36 = vld [vmem:[#allocation8 + $0xde0] sm:$0xff]  ;;  %v2396_v37 = vunpack.c.h.s8.bf16 %v8646_v4 }
 0x23a   : > { %2482 = vst [vmem:[#allocation2 + $0x19f0] sm:$0xff] %v2354_v38  ;;  %2483 = vst [vmem:[#allocation2 + $0x19f8] sm:$0xff] %v2355_v39  ;;  %v2397_v38 = vunpack.c.h.s8.bf16 %v8648_v5  ;;  %v2398_v39 = vunpack.c.h.s8.bf16 %v8651_v10  ;;  %v2416_v4 = vunpack.c.h.s8.bf16 %v8675_v36  ;;  %v2614_v10 = vunpack.c.l.s8.bf16 %v8691_v58 }
 0x23b   : > { %2484 = vst [vmem:[#allocation2 + $0x1a00] sm:$0xff] %v2356_v40  ;;  %2485 = vst [vmem:[#allocation2 + $0x1a08] sm:$0xff] %v2357_v41  ;;  %v2399_v40 = vunpack.c.h.s8.bf16 %v8653_v11  ;;  %v2289_v41 = vld [vmem:[#allocation8 + $0xde8] sm:$0xff]  ;;  %v2615_v11 = vunpack.c.l.s8.bf16 %v8693_v59 }
 0x23c   : > { %2486 = vst [vmem:[#allocation2 + $0x1a10] sm:$0xff] %v2358_v42  ;;  %2487 = vst [vmem:[#allocation2 + $0x1a18] sm:$0xff] %v2359_v43  ;;  %v2290_v42 = vld [vmem:[#allocation8 + $0xdf0] sm:$0xff]  ;;  %v2291_v43 = vld [vmem:[#allocation8 + $0xdf8] sm:$0xff]  ;;  %v2417_v5 = vunpack.c.h.s8.bf16 %v2289_v41 }
 0x23d   : > { %2488 = vst [vmem:[#allocation2 + $0x1a20] sm:$0xff] %v2360_v46  ;;  %2489 = vst [vmem:[#allocation2 + $0x1a28] sm:$0xff] %v2361_v47  ;;  %v2402_v46 = vunpack.c.h.s8.bf16 %v2282_v18  ;;  %v2403_v47 = vunpack.c.h.s8.bf16 %v2283_v19  ;;  %v2411_v57 = vunpack.c.l.s8.bf16 %v2291_v43  ;;  %v8711_v18 = vld [vmem:[#allocation8 + $0xe50] sm:$0xff]  ;;  %v8713_v19 = vld [vmem:[#allocation8 + $0xe58] sm:$0xff] }
 0x23e   : > { %2490 = vst [vmem:[#allocation2 + $0x1a30] sm:$0xff] %v2362_v48  ;;  %2491 = vst [vmem:[#allocation2 + $0x1a38] sm:$0xff] %v2363_v49  ;;  %v2404_v48 = vunpack.c.l.s8.bf16 %v8666_v28  ;;  %v2405_v49 = vunpack.c.l.s8.bf16 %v8668_v29 }
 0x23f   : > { %2492 = vst [vmem:[#allocation2 + $0x1a40] sm:$0xff] %v2364_v53  ;;  %2493 = vst [vmem:[#allocation2 + $0x1a48] sm:$0xff] %v2365_v54  ;;  %v8688_v53 = vld [vmem:[#allocation8 + $0xe08] sm:$0xff]  ;;  %v2408_v54 = vunpack.c.l.s8.bf16 %v8675_v36  ;;  %v8726_v36 = vld [vmem:[#allocation8 + $0xe80] sm:$0xff] }
 0x240   : > { %2494 = vst [vmem:[#allocation2 + $0x1a50] sm:$0xff] %v2366_v55  ;;  %2495 = vst [vmem:[#allocation2 + $0x1a58] sm:$0xff] %v2367_v56  ;;  %v2409_v55 = vunpack.c.l.s8.bf16 %v2289_v41  ;;  %v2410_v56 = vunpack.c.l.s8.bf16 %v2290_v42 }
 0x241   : > { %2496 = vst [vmem:[#allocation2 + $0x1a60] sm:$0xff] %v2368_v60  ;;  %2497 = vst [vmem:[#allocation2 + $0x1a68] sm:$0xff] %v2369_v61  ;;  %v8695_v60 = vld [vmem:[#allocation8 + $0xe20] sm:$0xff]  ;;  %v2412_v61 = vunpack.c.h.s8.bf16 %v8666_v28 }
 0x242   : > { %2498 = vst [vmem:[#allocation2 + $0x1a70] sm:$0xff] %v2370_v62  ;;  %2499 = vst [vmem:[#allocation2 + $0x1a78] sm:$0xff] %v2371_v63  ;;  %v2413_v62 = vunpack.c.h.s8.bf16 %v8668_v29  ;;  %v2414_v63 = vunpack.c.h.s8.bf16 %v8671_v34  ;;  %v2624_v28 = vunpack.c.h.s8.bf16 %v8695_v60  ;;  %v2630_v34 = vunpack.c.l.s8.bf16 %v8711_v18 }
 0x243   : > { %2500 = vst [vmem:[#allocation2 + $0x1a80] sm:$0xff] %v2372_v0  ;;  %2501 = vst [vmem:[#allocation2 + $0x1a88] sm:$0xff] %v2373_v1  ;;  %v2415_v0 = vunpack.c.h.s8.bf16 %v8673_v35  ;;  %v2553_v1 = vld [vmem:[#allocation8 + $0xe28] sm:$0xff]  ;;  %v2631_v35 = vunpack.c.l.s8.bf16 %v8713_v19 }
 0x244   : > { %2502 = vst [vmem:[#allocation2 + $0x1a90] sm:$0xff] %v2374_v2  ;;  %2503 = vst [vmem:[#allocation2 + $0x1a98] sm:$0xff] %v2375_v3  ;;  %v2554_v2 = vld [vmem:[#allocation8 + $0xe30] sm:$0xff]  ;;  %v2555_v3 = vld [vmem:[#allocation8 + $0xe38] sm:$0xff]  ;;  %v2625_v29 = vunpack.c.h.s8.bf16 %v2553_v1 }
 0x245   : > { %2504 = vst [vmem:[#allocation2 + $0x1aa0] sm:$0xff] %v2376_v6  ;;  %2505 = vst [vmem:[#allocation2 + $0x1aa8] sm:$0xff] %v2377_v7  ;;  %v2418_v6 = vunpack.c.h.s8.bf16 %v2290_v42  ;;  %v2419_v7 = vunpack.c.h.s8.bf16 %v2291_v43  ;;  %v2619_v17 = vunpack.c.l.s8.bf16 %v2555_v3  ;;  %v8731_v42 = vld [vmem:[#allocation8 + $0xe90] sm:$0xff]  ;;  %v8733_v43 = vld [vmem:[#allocation8 + $0xe98] sm:$0xff] }
 0x246   : > { %2506 = vst [vmem:[#allocation2 + $0x1ab0] sm:$0xff] %v2378_v8  ;;  %2507 = vst [vmem:[#allocation2 + $0x1ab8] sm:$0xff] %v2379_v9  ;;  %v2612_v8 = vunpack.c.l.s8.bf16 %v8686_v52  ;;  %v2613_v9 = vunpack.c.l.s8.bf16 %v8688_v53 }
 0x247   : > { %2508 = vst [vmem:[#allocation2 + $0x1ac0] sm:$0xff] %v2380_v13  ;;  %2509 = vst [vmem:[#allocation2 + $0x1ac8] sm:$0xff] %v2381_v14  ;;  %v8708_v13 = vld [vmem:[#allocation8 + $0xe48] sm:$0xff]  ;;  %v2616_v14 = vunpack.c.l.s8.bf16 %v8695_v60  ;;  %v8746_v60 = vld [vmem:[#allocation8 + $0xec0] sm:$0xff] }
 0x248   : > { %2510 = vst [vmem:[#allocation2 + $0x1ad0] sm:$0xff] %v2382_v15  ;;  %2511 = vst [vmem:[#allocation2 + $0x1ad8] sm:$0xff] %v2383_v16  ;;  %v2617_v15 = vunpack.c.l.s8.bf16 %v2553_v1  ;;  %v2618_v16 = vunpack.c.l.s8.bf16 %v2554_v2 }
 0x249   : > { %2512 = vst [vmem:[#allocation2 + $0x1ae0] sm:$0xff] %v2384_v20  ;;  %2513 = vst [vmem:[#allocation2 + $0x1ae8] sm:$0xff] %v2385_v21  ;;  %v8715_v20 = vld [vmem:[#allocation8 + $0xe60] sm:$0xff]  ;;  %v2620_v21 = vunpack.c.h.s8.bf16 %v8686_v52 }
 0x24a   : > { %2514 = vst [vmem:[#allocation2 + $0x1af0] sm:$0xff] %v2386_v22  ;;  %2515 = vst [vmem:[#allocation2 + $0x1af8] sm:$0xff] %v2387_v23  ;;  %v2621_v22 = vunpack.c.h.s8.bf16 %v8688_v53  ;;  %v2622_v23 = vunpack.c.h.s8.bf16 %v8691_v58  ;;  %v2640_v52 = vunpack.c.h.s8.bf16 %v8715_v20  ;;  %v2646_v58 = vunpack.c.l.s8.bf16 %v8731_v42 }
 0x24b   : > { %2516 = vst [vmem:[#allocation2 + $0x1b00] sm:$0xff] %v2388_v24  ;;  %2517 = vst [vmem:[#allocation2 + $0x1b08] sm:$0xff] %v2389_v25  ;;  %v2623_v24 = vunpack.c.h.s8.bf16 %v8693_v59  ;;  %v2561_v25 = vld [vmem:[#allocation8 + $0xe68] sm:$0xff]  ;;  %v2647_v59 = vunpack.c.l.s8.bf16 %v8733_v43 }
 0x24c   : > { %2518 = vst [vmem:[#allocation2 + $0x1b10] sm:$0xff] %v2390_v26  ;;  %2519 = vst [vmem:[#allocation2 + $0x1b18] sm:$0xff] %v2391_v27  ;;  %v2562_v26 = vld [vmem:[#allocation8 + $0xe70] sm:$0xff]  ;;  %v2563_v27 = vld [vmem:[#allocation8 + $0xe78] sm:$0xff]  ;;  %v2641_v53 = vunpack.c.h.s8.bf16 %v2561_v25 }
 0x24d   : > { %2520 = vst [vmem:[#allocation2 + $0x1b20] sm:$0xff] %v2392_v30  ;;  %2521 = vst [vmem:[#allocation2 + $0x1b28] sm:$0xff] %v2393_v31  ;;  %v2626_v30 = vunpack.c.h.s8.bf16 %v2554_v2  ;;  %v2627_v31 = vunpack.c.h.s8.bf16 %v2555_v3  ;;  %v2635_v41 = vunpack.c.l.s8.bf16 %v2563_v27  ;;  %v8751_v2 = vld [vmem:[#allocation8 + $0xed0] sm:$0xff]  ;;  %v8753_v3 = vld [vmem:[#allocation8 + $0xed8] sm:$0xff] }
 0x24e   : > { %2522 = vst [vmem:[#allocation2 + $0x1b30] sm:$0xff] %v2394_v32  ;;  %2523 = vst [vmem:[#allocation2 + $0x1b38] sm:$0xff] %v2395_v33  ;;  %v2628_v32 = vunpack.c.l.s8.bf16 %v8706_v12  ;;  %v2629_v33 = vunpack.c.l.s8.bf16 %v8708_v13 }
 0x24f   : > { %2524 = vst [vmem:[#allocation2 + $0x1b40] sm:$0xff] %v2396_v37  ;;  %2525 = vst [vmem:[#allocation2 + $0x1b48] sm:$0xff] %v2397_v38  ;;  %v8728_v37 = vld [vmem:[#allocation8 + $0xe88] sm:$0xff]  ;;  %v2632_v38 = vunpack.c.l.s8.bf16 %v8715_v20  ;;  %v8766_v20 = vld [vmem:[#allocation8 + $0xf00] sm:$0xff] }
 0x250   : > { %2526 = vst [vmem:[#allocation2 + $0x1b50] sm:$0xff] %v2398_v39  ;;  %2527 = vst [vmem:[#allocation2 + $0x1b58] sm:$0xff] %v2399_v40  ;;  %v2633_v39 = vunpack.c.l.s8.bf16 %v2561_v25  ;;  %v2634_v40 = vunpack.c.l.s8.bf16 %v2562_v26 }
 0x251   : > { %2528 = vst [vmem:[#allocation2 + $0x1b60] sm:$0xff] %v2400_v44  ;;  %2529 = vst [vmem:[#allocation2 + $0x1b68] sm:$0xff] %v2401_v45  ;;  %v8735_v44 = vld [vmem:[#allocation8 + $0xea0] sm:$0xff]  ;;  %v2636_v45 = vunpack.c.h.s8.bf16 %v8706_v12 }
 0x252   : > { %2530 = vst [vmem:[#allocation2 + $0x1b70] sm:$0xff] %v2402_v46  ;;  %2531 = vst [vmem:[#allocation2 + $0x1b78] sm:$0xff] %v2403_v47  ;;  %v2637_v46 = vunpack.c.h.s8.bf16 %v8708_v13  ;;  %v2638_v47 = vunpack.c.h.s8.bf16 %v8711_v18  ;;  %v2656_v12 = vunpack.c.h.s8.bf16 %v8735_v44  ;;  %v2662_v18 = vunpack.c.l.s8.bf16 %v8751_v2 }
 0x253   : > { %2532 = vst [vmem:[#allocation2 + $0x1b80] sm:$0xff] %v2404_v48  ;;  %2533 = vst [vmem:[#allocation2 + $0x1b88] sm:$0xff] %v2405_v49  ;;  %v2639_v48 = vunpack.c.h.s8.bf16 %v8713_v19  ;;  %v2569_v49 = vld [vmem:[#allocation8 + $0xea8] sm:$0xff]  ;;  %v2663_v19 = vunpack.c.l.s8.bf16 %v8753_v3 }
 0x254   : > { %2534 = vst [vmem:[#allocation2 + $0x1b90] sm:$0xff] %v2406_v50  ;;  %2535 = vst [vmem:[#allocation2 + $0x1b98] sm:$0xff] %v2407_v51  ;;  %v2570_v50 = vld [vmem:[#allocation8 + $0xeb0] sm:$0xff]  ;;  %v2571_v51 = vld [vmem:[#allocation8 + $0xeb8] sm:$0xff]  ;;  %v2657_v13 = vunpack.c.h.s8.bf16 %v2569_v49 }
 0x255   : > { %2536 = vst [vmem:[#allocation2 + $0x1ba0] sm:$0xff] %v2408_v54  ;;  %2537 = vst [vmem:[#allocation2 + $0x1ba8] sm:$0xff] %v2409_v55  ;;  %v2642_v54 = vunpack.c.h.s8.bf16 %v2562_v26  ;;  %v2643_v55 = vunpack.c.h.s8.bf16 %v2563_v27  ;;  %v2651_v1 = vunpack.c.l.s8.bf16 %v2571_v51  ;;  %v8771_v26 = vld [vmem:[#allocation8 + $0xf10] sm:$0xff]  ;;  %v8773_v27 = vld [vmem:[#allocation8 + $0xf18] sm:$0xff] }
 0x256   : > { %2538 = vst [vmem:[#allocation2 + $0x1bb0] sm:$0xff] %v2410_v56  ;;  %2539 = vst [vmem:[#allocation2 + $0x1bb8] sm:$0xff] %v2411_v57  ;;  %v2644_v56 = vunpack.c.l.s8.bf16 %v8726_v36  ;;  %v2645_v57 = vunpack.c.l.s8.bf16 %v8728_v37 }
 0x257   : > { %2540 = vst [vmem:[#allocation2 + $0x1bc0] sm:$0xff] %v2412_v61  ;;  %2541 = vst [vmem:[#allocation2 + $0x1bc8] sm:$0xff] %v2413_v62  ;;  %v8748_v61 = vld [vmem:[#allocation8 + $0xec8] sm:$0xff]  ;;  %v2648_v62 = vunpack.c.l.s8.bf16 %v8735_v44  ;;  %v8786_v44 = vld [vmem:[#allocation8 + $0xf40] sm:$0xff] }
 0x258   : > { %2542 = vst [vmem:[#allocation2 + $0x1bd0] sm:$0xff] %v2414_v63  ;;  %2543 = vst [vmem:[#allocation2 + $0x1bd8] sm:$0xff] %v2415_v0  ;;  %v2649_v63 = vunpack.c.l.s8.bf16 %v2569_v49  ;;  %v2650_v0 = vunpack.c.l.s8.bf16 %v2570_v50 }
 0x259   : > { %2544 = vst [vmem:[#allocation2 + $0x1be0] sm:$0xff] %v2416_v4  ;;  %2545 = vst [vmem:[#allocation2 + $0x1be8] sm:$0xff] %v2417_v5  ;;  %v8755_v4 = vld [vmem:[#allocation8 + $0xee0] sm:$0xff]  ;;  %v2652_v5 = vunpack.c.h.s8.bf16 %v8726_v36 }
 0x25a   : > { %2546 = vst [vmem:[#allocation2 + $0x1bf0] sm:$0xff] %v2418_v6  ;;  %2547 = vst [vmem:[#allocation2 + $0x1bf8] sm:$0xff] %v2419_v7  ;;  %v2653_v6 = vunpack.c.h.s8.bf16 %v8728_v37  ;;  %v2654_v7 = vunpack.c.h.s8.bf16 %v8731_v42  ;;  %v2672_v36 = vunpack.c.h.s8.bf16 %v8755_v4  ;;  %v2678_v42 = vunpack.c.l.s8.bf16 %v8771_v26 }
 0x25b   : > { %2740 = vst [vmem:[#allocation2 + $0x1c00] sm:$0xff] %v2612_v8  ;;  %2741 = vst [vmem:[#allocation2 + $0x1c08] sm:$0xff] %v2613_v9  ;;  %v2655_v8 = vunpack.c.h.s8.bf16 %v8733_v43  ;;  %v2577_v9 = vld [vmem:[#allocation8 + $0xee8] sm:$0xff]  ;;  %v2679_v43 = vunpack.c.l.s8.bf16 %v8773_v27 }
 0x25c   : > { %2742 = vst [vmem:[#allocation2 + $0x1c10] sm:$0xff] %v2614_v10  ;;  %2743 = vst [vmem:[#allocation2 + $0x1c18] sm:$0xff] %v2615_v11  ;;  %v2578_v10 = vld [vmem:[#allocation8 + $0xef0] sm:$0xff]  ;;  %v2579_v11 = vld [vmem:[#allocation8 + $0xef8] sm:$0xff]  ;;  %v2673_v37 = vunpack.c.h.s8.bf16 %v2577_v9 }
 0x25d   : > { %2744 = vst [vmem:[#allocation2 + $0x1c20] sm:$0xff] %v2616_v14  ;;  %2745 = vst [vmem:[#allocation2 + $0x1c28] sm:$0xff] %v2617_v15  ;;  %v2658_v14 = vunpack.c.h.s8.bf16 %v2570_v50  ;;  %v2659_v15 = vunpack.c.h.s8.bf16 %v2571_v51  ;;  %v2667_v25 = vunpack.c.l.s8.bf16 %v2579_v11  ;;  %v8791_v50 = vld [vmem:[#allocation8 + $0xf50] sm:$0xff]  ;;  %v8793_v51 = vld [vmem:[#allocation8 + $0xf58] sm:$0xff] }
 0x25e   : > { %2746 = vst [vmem:[#allocation2 + $0x1c30] sm:$0xff] %v2618_v16  ;;  %2747 = vst [vmem:[#allocation2 + $0x1c38] sm:$0xff] %v2619_v17  ;;  %v2660_v16 = vunpack.c.l.s8.bf16 %v8746_v60  ;;  %v2661_v17 = vunpack.c.l.s8.bf16 %v8748_v61 }
 0x25f   : > { %2748 = vst [vmem:[#allocation2 + $0x1c40] sm:$0xff] %v2620_v21  ;;  %2749 = vst [vmem:[#allocation2 + $0x1c48] sm:$0xff] %v2621_v22  ;;  %v8768_v21 = vld [vmem:[#allocation8 + $0xf08] sm:$0xff]  ;;  %v2664_v22 = vunpack.c.l.s8.bf16 %v8755_v4  ;;  %v8806_v4 = vld [vmem:[#allocation8 + $0xf80] sm:$0xff] }
 0x260   : > { %2750 = vst [vmem:[#allocation2 + $0x1c50] sm:$0xff] %v2622_v23  ;;  %2751 = vst [vmem:[#allocation2 + $0x1c58] sm:$0xff] %v2623_v24  ;;  %v2665_v23 = vunpack.c.l.s8.bf16 %v2577_v9  ;;  %v2666_v24 = vunpack.c.l.s8.bf16 %v2578_v10 }
 0x261   : > { %2752 = vst [vmem:[#allocation2 + $0x1c60] sm:$0xff] %v2624_v28  ;;  %2753 = vst [vmem:[#allocation2 + $0x1c68] sm:$0xff] %v2625_v29  ;;  %v8775_v28 = vld [vmem:[#allocation8 + $0xf20] sm:$0xff]  ;;  %v2668_v29 = vunpack.c.h.s8.bf16 %v8746_v60 }
 0x262   : > { %2754 = vst [vmem:[#allocation2 + $0x1c70] sm:$0xff] %v2626_v30  ;;  %2755 = vst [vmem:[#allocation2 + $0x1c78] sm:$0xff] %v2627_v31  ;;  %v2669_v30 = vunpack.c.h.s8.bf16 %v8748_v61  ;;  %v2670_v31 = vunpack.c.h.s8.bf16 %v8751_v2  ;;  %v2688_v60 = vunpack.c.h.s8.bf16 %v8775_v28  ;;  %v2694_v2 = vunpack.c.l.s8.bf16 %v8791_v50 }
 0x263   : > { %2756 = vst [vmem:[#allocation2 + $0x1c80] sm:$0xff] %v2628_v32  ;;  %2757 = vst [vmem:[#allocation2 + $0x1c88] sm:$0xff] %v2629_v33  ;;  %v2671_v32 = vunpack.c.h.s8.bf16 %v8753_v3  ;;  %v2585_v33 = vld [vmem:[#allocation8 + $0xf28] sm:$0xff]  ;;  %v2695_v3 = vunpack.c.l.s8.bf16 %v8793_v51 }
 0x264   : > { %2758 = vst [vmem:[#allocation2 + $0x1c90] sm:$0xff] %v2630_v34  ;;  %2759 = vst [vmem:[#allocation2 + $0x1c98] sm:$0xff] %v2631_v35  ;;  %v2586_v34 = vld [vmem:[#allocation8 + $0xf30] sm:$0xff]  ;;  %v2587_v35 = vld [vmem:[#allocation8 + $0xf38] sm:$0xff]  ;;  %v2689_v61 = vunpack.c.h.s8.bf16 %v2585_v33 }
 0x265   : > { %2760 = vst [vmem:[#allocation2 + $0x1ca0] sm:$0xff] %v2632_v38  ;;  %2761 = vst [vmem:[#allocation2 + $0x1ca8] sm:$0xff] %v2633_v39  ;;  %v2674_v38 = vunpack.c.h.s8.bf16 %v2578_v10  ;;  %v2675_v39 = vunpack.c.h.s8.bf16 %v2579_v11  ;;  %v2683_v49 = vunpack.c.l.s8.bf16 %v2587_v35  ;;  %v8811_v10 = vld [vmem:[#allocation8 + $0xf90] sm:$0xff]  ;;  %v8813_v11 = vld [vmem:[#allocation8 + $0xf98] sm:$0xff] }
 0x266   : > { %2762 = vst [vmem:[#allocation2 + $0x1cb0] sm:$0xff] %v2634_v40  ;;  %2763 = vst [vmem:[#allocation2 + $0x1cb8] sm:$0xff] %v2635_v41  ;;  %v2676_v40 = vunpack.c.l.s8.bf16 %v8766_v20  ;;  %v2677_v41 = vunpack.c.l.s8.bf16 %v8768_v21 }
 0x267   : > { %2764 = vst [vmem:[#allocation2 + $0x1cc0] sm:$0xff] %v2636_v45  ;;  %2765 = vst [vmem:[#allocation2 + $0x1cc8] sm:$0xff] %v2637_v46  ;;  %v8788_v45 = vld [vmem:[#allocation8 + $0xf48] sm:$0xff]  ;;  %v2680_v46 = vunpack.c.l.s8.bf16 %v8775_v28  ;;  %v8826_v28 = vld [vmem:[#allocation8 + $0xfc0] sm:$0xff] }
 0x268   : > { %2766 = vst [vmem:[#allocation2 + $0x1cd0] sm:$0xff] %v2638_v47  ;;  %2767 = vst [vmem:[#allocation2 + $0x1cd8] sm:$0xff] %v2639_v48  ;;  %v2681_v47 = vunpack.c.l.s8.bf16 %v2585_v33  ;;  %v2682_v48 = vunpack.c.l.s8.bf16 %v2586_v34 }
 0x269   : > { %2768 = vst [vmem:[#allocation2 + $0x1ce0] sm:$0xff] %v2640_v52  ;;  %2769 = vst [vmem:[#allocation2 + $0x1ce8] sm:$0xff] %v2641_v53  ;;  %v8795_v52 = vld [vmem:[#allocation8 + $0xf60] sm:$0xff]  ;;  %v2684_v53 = vunpack.c.h.s8.bf16 %v8766_v20 }
 0x26a   : > { %2770 = vst [vmem:[#allocation2 + $0x1cf0] sm:$0xff] %v2642_v54  ;;  %2771 = vst [vmem:[#allocation2 + $0x1cf8] sm:$0xff] %v2643_v55  ;;  %v2685_v54 = vunpack.c.h.s8.bf16 %v8768_v21  ;;  %v2686_v55 = vunpack.c.h.s8.bf16 %v8771_v26  ;;  %v2704_v20 = vunpack.c.h.s8.bf16 %v8795_v52  ;;  %v2710_v26 = vunpack.c.l.s8.bf16 %v8811_v10 }
 0x26b   : > { %2772 = vst [vmem:[#allocation2 + $0x1d00] sm:$0xff] %v2644_v56  ;;  %2773 = vst [vmem:[#allocation2 + $0x1d08] sm:$0xff] %v2645_v57  ;;  %v2687_v56 = vunpack.c.h.s8.bf16 %v8773_v27  ;;  %v2593_v57 = vld [vmem:[#allocation8 + $0xf68] sm:$0xff]  ;;  %v2711_v27 = vunpack.c.l.s8.bf16 %v8813_v11 }
 0x26c   : > { %2774 = vst [vmem:[#allocation2 + $0x1d10] sm:$0xff] %v2646_v58  ;;  %2775 = vst [vmem:[#allocation2 + $0x1d18] sm:$0xff] %v2647_v59  ;;  %v2594_v58 = vld [vmem:[#allocation8 + $0xf70] sm:$0xff]  ;;  %v2595_v59 = vld [vmem:[#allocation8 + $0xf78] sm:$0xff]  ;;  %v2705_v21 = vunpack.c.h.s8.bf16 %v2593_v57 }
 0x26d   : > { %2776 = vst [vmem:[#allocation2 + $0x1d20] sm:$0xff] %v2648_v62  ;;  %2777 = vst [vmem:[#allocation2 + $0x1d28] sm:$0xff] %v2649_v63  ;;  %v2690_v62 = vunpack.c.h.s8.bf16 %v2586_v34  ;;  %v2691_v63 = vunpack.c.h.s8.bf16 %v2587_v35  ;;  %v2699_v9 = vunpack.c.l.s8.bf16 %v2595_v59  ;;  %v2606_v34 = vld [vmem:[#allocation8 + $0xfd0] sm:$0xff]  ;;  %v2607_v35 = vld [vmem:[#allocation8 + $0xfd8] sm:$0xff] }
 0x26e   : > { %2778 = vst [vmem:[#allocation2 + $0x1d30] sm:$0xff] %v2650_v0  ;;  %2779 = vst [vmem:[#allocation2 + $0x1d38] sm:$0xff] %v2651_v1  ;;  %v2692_v0 = vunpack.c.l.s8.bf16 %v8786_v44  ;;  %v2693_v1 = vunpack.c.l.s8.bf16 %v8788_v45 }
 0x26f   : > { %2780 = vst [vmem:[#allocation2 + $0x1d40] sm:$0xff] %v2652_v5  ;;  %2781 = vst [vmem:[#allocation2 + $0x1d48] sm:$0xff] %v2653_v6  ;;  %v8808_v5 = vld [vmem:[#allocation8 + $0xf88] sm:$0xff]  ;;  %v2696_v6 = vunpack.c.l.s8.bf16 %v8795_v52 }
 0x270   : > { %2782 = vst [vmem:[#allocation2 + $0x1d50] sm:$0xff] %v2654_v7  ;;  %2783 = vst [vmem:[#allocation2 + $0x1d58] sm:$0xff] %v2655_v8  ;;  %v2697_v7 = vunpack.c.l.s8.bf16 %v2593_v57  ;;  %v2698_v8 = vunpack.c.l.s8.bf16 %v2594_v58  ;;  %v2869_v57 = vld [vmem:[#allocation9 + $0x8] sm:$0xff] }
 0x271   : > { %2784 = vst [vmem:[#allocation2 + $0x1d60] sm:$0xff] %v2656_v12  ;;  %2785 = vst [vmem:[#allocation2 + $0x1d68] sm:$0xff] %v2657_v13  ;;  %v8815_v12 = vld [vmem:[#allocation8 + $0xfa0] sm:$0xff]  ;;  %v2700_v13 = vunpack.c.h.s8.bf16 %v8786_v44 }
 0x272   : > { %2786 = vst [vmem:[#allocation2 + $0x1d70] sm:$0xff] %v2658_v14  ;;  %2787 = vst [vmem:[#allocation2 + $0x1d78] sm:$0xff] %v2659_v15  ;;  %v2701_v14 = vunpack.c.h.s8.bf16 %v8788_v45  ;;  %v2702_v15 = vunpack.c.h.s8.bf16 %v8791_v50  ;;  %v2720_v44 = vunpack.c.h.s8.bf16 %v8815_v12  ;;  %v2726_v50 = vunpack.c.l.s8.bf16 %v2606_v34 }
 0x273   : > { %2788 = vst [vmem:[#allocation2 + $0x1d80] sm:$0xff] %v2660_v16  ;;  %2789 = vst [vmem:[#allocation2 + $0x1d88] sm:$0xff] %v2661_v17  ;;  %v2703_v16 = vunpack.c.h.s8.bf16 %v8793_v51  ;;  %v2601_v17 = vld [vmem:[#allocation8 + $0xfa8] sm:$0xff]  ;;  %v2727_v51 = vunpack.c.l.s8.bf16 %v2607_v35 }
 0x274   : > { %2790 = vst [vmem:[#allocation2 + $0x1d90] sm:$0xff] %v2662_v18  ;;  %2791 = vst [vmem:[#allocation2 + $0x1d98] sm:$0xff] %v2663_v19  ;;  %v2602_v18 = vld [vmem:[#allocation8 + $0xfb0] sm:$0xff]  ;;  %v2603_v19 = vld [vmem:[#allocation8 + $0xfb8] sm:$0xff]  ;;  %v2721_v45 = vunpack.c.h.s8.bf16 %v2601_v17 }
 0x275   : > { %2792 = vst [vmem:[#allocation2 + $0x1da0] sm:$0xff] %v2664_v22  ;;  %2793 = vst [vmem:[#allocation2 + $0x1da8] sm:$0xff] %v2665_v23  ;;  %v2706_v22 = vunpack.c.h.s8.bf16 %v2594_v58  ;;  %v2707_v23 = vunpack.c.h.s8.bf16 %v2595_v59  ;;  %v2715_v33 = vunpack.c.l.s8.bf16 %v2603_v19  ;;  %v2732_v58 = vunpack.c.h.s8.bf16 %v8826_v28 }
 0x276   : > { %2794 = vst [vmem:[#allocation2 + $0x1db0] sm:$0xff] %v2666_v24  ;;  %2795 = vst [vmem:[#allocation2 + $0x1db8] sm:$0xff] %v2667_v25  ;;  %v2708_v24 = vunpack.c.l.s8.bf16 %v8806_v4  ;;  %v2709_v25 = vunpack.c.l.s8.bf16 %v8808_v5 }
 0x277   : > { %2796 = vst [vmem:[#allocation2 + $0x1dc0] sm:$0xff] %v2668_v29  ;;  %2797 = vst [vmem:[#allocation2 + $0x1dc8] sm:$0xff] %v2669_v30  ;;  %v8828_v29 = vld [vmem:[#allocation8 + $0xfc8] sm:$0xff]  ;;  %v2712_v30 = vunpack.c.l.s8.bf16 %v8815_v12 }
 0x278   : > { %2798 = vst [vmem:[#allocation2 + $0x1dd0] sm:$0xff] %v2670_v31  ;;  %2799 = vst [vmem:[#allocation2 + $0x1dd8] sm:$0xff] %v2671_v32  ;;  %v2713_v31 = vunpack.c.l.s8.bf16 %v2601_v17  ;;  %v2714_v32 = vunpack.c.l.s8.bf16 %v2602_v18  ;;  %v2733_v59 = vunpack.c.h.s8.bf16 %v8828_v29  ;;  %v2877_v17 = vld [vmem:[#allocation9 + $0x48] sm:$0xff] }
 0x279   : > { %2800 = vst [vmem:[#allocation2 + $0x1de0] sm:$0xff] %v2672_v36  ;;  %2801 = vst [vmem:[#allocation2 + $0x1de8] sm:$0xff] %v2673_v37  ;;  %v8831_v36 = vld [vmem:[#allocation8 + $0xfe0] sm:$0xff]  ;;  %v2716_v37 = vunpack.c.h.s8.bf16 %v8806_v4 }
 0x27a   : > { %2802 = vst [vmem:[#allocation2 + $0x1df0] sm:$0xff] %v2674_v38  ;;  %2803 = vst [vmem:[#allocation2 + $0x1df8] sm:$0xff] %v2675_v39  ;;  %v2717_v38 = vunpack.c.h.s8.bf16 %v8808_v5  ;;  %v2718_v39 = vunpack.c.h.s8.bf16 %v8811_v10  ;;  %v2728_v52 = vunpack.c.l.s8.bf16 %v8831_v36  ;;  %v2872_v4 = vld [vmem:[#allocation9 + $0x20] sm:$0xff]  ;;  %v2873_v5 = vld [vmem:[#allocation9 + $0x28] sm:$0xff] }
 0x27b   : > { %2804 = vst [vmem:[#allocation2 + $0x1e00] sm:$0xff] %v2676_v40  ;;  %2805 = vst [vmem:[#allocation2 + $0x1e08] sm:$0xff] %v2677_v41  ;;  %v2719_v40 = vunpack.c.h.s8.bf16 %v8813_v11  ;;  %v2609_v41 = vld [vmem:[#allocation8 + $0xfe8] sm:$0xff]  ;;  %v2874_v10 = vld [vmem:[#allocation9 + $0x30] sm:$0xff] }
 0x27c   : > { %2806 = vst [vmem:[#allocation2 + $0x1e10] sm:$0xff] %v2678_v42  ;;  %2807 = vst [vmem:[#allocation2 + $0x1e18] sm:$0xff] %v2679_v43  ;;  %v2610_v42 = vld [vmem:[#allocation8 + $0xff0] sm:$0xff]  ;;  %v2611_v43 = vld [vmem:[#allocation8 + $0xff8] sm:$0xff] }
 0x27d   : > { %2808 = vst [vmem:[#allocation2 + $0x1e20] sm:$0xff] %v2680_v46  ;;  %2809 = vst [vmem:[#allocation2 + $0x1e28] sm:$0xff] %v2681_v47  ;;  %v2722_v46 = vunpack.c.h.s8.bf16 %v2602_v18  ;;  %v2723_v47 = vunpack.c.h.s8.bf16 %v2603_v19  ;;  %v2875_v11 = vld [vmem:[#allocation9 + $0x38] sm:$0xff]  ;;  %v2892_v18 = vunpack.c.l.s8.bf16 %v2872_v4  ;;  %v2893_v19 = vunpack.c.l.s8.bf16 %v2873_v5 }
 0x27e   : > { %2810 = vst [vmem:[#allocation2 + $0x1e30] sm:$0xff] %v2682_v48  ;;  %2811 = vst [vmem:[#allocation2 + $0x1e38] sm:$0xff] %v2683_v49  ;;  %v2724_v48 = vunpack.c.l.s8.bf16 %v8826_v28  ;;  %v2725_v49 = vunpack.c.l.s8.bf16 %v8828_v29  ;;  %v2880_v28 = vld [vmem:[#allocation9 + $0x60] sm:$0xff]  ;;  %v2881_v29 = vld [vmem:[#allocation9 + $0x68] sm:$0xff] }
 0x27f   : > { %2812 = vst [vmem:[#allocation2 + $0x1e40] sm:$0xff] %v2684_v53  ;;  %2813 = vst [vmem:[#allocation2 + $0x1e48] sm:$0xff] %v2685_v54  ;;  %v2729_v53 = vunpack.c.l.s8.bf16 %v2609_v41  ;;  %v2730_v54 = vunpack.c.l.s8.bf16 %v2610_v42 }
 0x280   : > { %2814 = vst [vmem:[#allocation2 + $0x1e50] sm:$0xff] %v2686_v55  ;;  %2815 = vst [vmem:[#allocation2 + $0x1e58] sm:$0xff] %v2687_v56  ;;  %v2731_v55 = vunpack.c.l.s8.bf16 %v2611_v43  ;;  %v2868_v56 = vld [vmem:[#allocation9] sm:$0xff] }
 0x281   : > { %2816 = vst [vmem:[#allocation2 + $0x1e60] sm:$0xff] %v2688_v60  ;;  %2817 = vst [vmem:[#allocation2 + $0x1e68] sm:$0xff] %v2689_v61  ;;  %v2734_v60 = vunpack.c.h.s8.bf16 %v2606_v34  ;;  %v2735_v61 = vunpack.c.h.s8.bf16 %v2607_v35  ;;  %v2882_v34 = vld [vmem:[#allocation9 + $0x70] sm:$0xff]  ;;  %v2883_v35 = vld [vmem:[#allocation9 + $0x78] sm:$0xff] }
 0x282   : > { %2818 = vst [vmem:[#allocation2 + $0x1e70] sm:$0xff] %v2690_v62  ;;  %2819 = vst [vmem:[#allocation2 + $0x1e78] sm:$0xff] %v2691_v63  ;;  %v2870_v62 = vld [vmem:[#allocation9 + $0x10] sm:$0xff]  ;;  %v2871_v63 = vld [vmem:[#allocation9 + $0x18] sm:$0xff] }
 0x283   : > { %2820 = vst [vmem:[#allocation2 + $0x1e80] sm:$0xff] %v2692_v0  ;;  %2821 = vst [vmem:[#allocation2 + $0x1e88] sm:$0xff] %v2693_v1  ;;  %v2736_v0 = vunpack.c.h.s8.bf16 %v8831_v36  ;;  %v2737_v1 = vunpack.c.h.s8.bf16 %v2609_v41  ;;  %v2888_v12 = vunpack.c.l.s8.bf16 %v2870_v62  ;;  %v2949_v41 = vld [vmem:[#allocation9 + $0x88] sm:$0xff] }
 0x284   : > { %2822 = vst [vmem:[#allocation2 + $0x1e90] sm:$0xff] %v2694_v2  ;;  %2823 = vst [vmem:[#allocation2 + $0x1e98] sm:$0xff] %v2695_v3  ;;  %v2738_v2 = vunpack.c.h.s8.bf16 %v2610_v42  ;;  %v2739_v3 = vunpack.c.h.s8.bf16 %v2611_v43  ;;  %v2908_v42 = vunpack.c.l.s8.bf16 %v2880_v28  ;;  %v2909_v43 = vunpack.c.l.s8.bf16 %v2881_v29 }
 0x285   : > { %2824 = vst [vmem:[#allocation2 + $0x1ea0] sm:$0xff] %v2696_v6  ;;  %2825 = vst [vmem:[#allocation2 + $0x1ea8] sm:$0xff] %v2697_v7  ;;  %v2884_v6 = vunpack.c.l.s8.bf16 %v2868_v56  ;;  %v2885_v7 = vunpack.c.l.s8.bf16 %v2869_v57 }
 0x286   : > { %2826 = vst [vmem:[#allocation2 + $0x1eb0] sm:$0xff] %v2698_v8  ;;  %2827 = vst [vmem:[#allocation2 + $0x1eb8] sm:$0xff] %v2699_v9  ;;  %v2886_v8 = vunpack.c.h.s8.bf16 %v2868_v56  ;;  %v2887_v9 = vunpack.c.h.s8.bf16 %v2869_v57  ;;  %v2967_v57 = vunpack.c.h.s8.bf16 %v2949_v41 }
 0x287   : > { %2828 = vst [vmem:[#allocation2 + $0x1ec0] sm:$0xff] %v2700_v13  ;;  %2829 = vst [vmem:[#allocation2 + $0x1ec8] sm:$0xff] %v2701_v14  ;;  %v2889_v13 = vunpack.c.l.s8.bf16 %v2871_v63  ;;  %v2890_v14 = vunpack.c.h.s8.bf16 %v2870_v62 }
 0x288   : > { %2830 = vst [vmem:[#allocation2 + $0x1ed0] sm:$0xff] %v2702_v15  ;;  %2831 = vst [vmem:[#allocation2 + $0x1ed8] sm:$0xff] %v2703_v16  ;;  %v2891_v15 = vunpack.c.h.s8.bf16 %v2871_v63  ;;  %v2876_v16 = vld [vmem:[#allocation9 + $0x40] sm:$0xff] }
 0x289   : > { %2832 = vst [vmem:[#allocation2 + $0x1ee0] sm:$0xff] %v2704_v20  ;;  %2833 = vst [vmem:[#allocation2 + $0x1ee8] sm:$0xff] %v2705_v21  ;;  %v2894_v20 = vunpack.c.h.s8.bf16 %v2872_v4  ;;  %v2895_v21 = vunpack.c.h.s8.bf16 %v2873_v5 }
 0x28a   : > { %2834 = vst [vmem:[#allocation2 + $0x1ef0] sm:$0xff] %v2706_v22  ;;  %2835 = vst [vmem:[#allocation2 + $0x1ef8] sm:$0xff] %v2707_v23  ;;  %v2878_v22 = vld [vmem:[#allocation9 + $0x50] sm:$0xff]  ;;  %v2879_v23 = vld [vmem:[#allocation9 + $0x58] sm:$0xff] }
 0x28b   : > { %2836 = vst [vmem:[#allocation2 + $0x1f00] sm:$0xff] %v2708_v24  ;;  %2837 = vst [vmem:[#allocation2 + $0x1f08] sm:$0xff] %v2709_v25  ;;  %v2896_v24 = vunpack.c.l.s8.bf16 %v2874_v10  ;;  %v2897_v25 = vunpack.c.l.s8.bf16 %v2875_v11  ;;  %v2904_v36 = vunpack.c.l.s8.bf16 %v2878_v22 }
 0x28c   : > { %2838 = vst [vmem:[#allocation2 + $0x1f10] sm:$0xff] %v2710_v26  ;;  %2839 = vst [vmem:[#allocation2 + $0x1f18] sm:$0xff] %v2711_v27  ;;  %v2898_v26 = vunpack.c.h.s8.bf16 %v2874_v10  ;;  %v2899_v27 = vunpack.c.h.s8.bf16 %v2875_v11 }
 0x28d   : > { %2840 = vst [vmem:[#allocation2 + $0x1f20] sm:$0xff] %v2712_v30  ;;  %2841 = vst [vmem:[#allocation2 + $0x1f28] sm:$0xff] %v2713_v31  ;;  %v2900_v30 = vunpack.c.l.s8.bf16 %v2876_v16  ;;  %v2901_v31 = vunpack.c.l.s8.bf16 %v2877_v17 }
 0x28e   : > { %2842 = vst [vmem:[#allocation2 + $0x1f30] sm:$0xff] %v2714_v32  ;;  %2843 = vst [vmem:[#allocation2 + $0x1f38] sm:$0xff] %v2715_v33  ;;  %v2902_v32 = vunpack.c.h.s8.bf16 %v2876_v16  ;;  %v2903_v33 = vunpack.c.h.s8.bf16 %v2877_v17 }
 0x28f   : > { %2844 = vst [vmem:[#allocation2 + $0x1f40] sm:$0xff] %v2716_v37  ;;  %2845 = vst [vmem:[#allocation2 + $0x1f48] sm:$0xff] %v2717_v38  ;;  %v2905_v37 = vunpack.c.l.s8.bf16 %v2879_v23  ;;  %v2906_v38 = vunpack.c.h.s8.bf16 %v2878_v22 }
 0x290   : > { %2846 = vst [vmem:[#allocation2 + $0x1f50] sm:$0xff] %v2718_v39  ;;  %2847 = vst [vmem:[#allocation2 + $0x1f58] sm:$0xff] %v2719_v40  ;;  %v2907_v39 = vunpack.c.h.s8.bf16 %v2879_v23  ;;  %v2948_v40 = vld [vmem:[#allocation9 + $0x80] sm:$0xff] }
 0x291   : > { %2848 = vst [vmem:[#allocation2 + $0x1f60] sm:$0xff] %v2720_v44  ;;  %2849 = vst [vmem:[#allocation2 + $0x1f68] sm:$0xff] %v2721_v45  ;;  %v2910_v44 = vunpack.c.h.s8.bf16 %v2880_v28  ;;  %v2911_v45 = vunpack.c.h.s8.bf16 %v2881_v29  ;;  %v2966_v56 = vunpack.c.h.s8.bf16 %v2948_v40 }
 0x292   : > { %2850 = vst [vmem:[#allocation2 + $0x1f70] sm:$0xff] %v2722_v46  ;;  %2851 = vst [vmem:[#allocation2 + $0x1f78] sm:$0xff] %v2723_v47  ;;  %v2950_v46 = vld [vmem:[#allocation9 + $0x90] sm:$0xff]  ;;  %v2951_v47 = vld [vmem:[#allocation9 + $0x98] sm:$0xff] }
 0x293   : > { %2852 = vst [vmem:[#allocation2 + $0x1f80] sm:$0xff] %v2724_v48  ;;  %2853 = vst [vmem:[#allocation2 + $0x1f88] sm:$0xff] %v2725_v49  ;;  %v2912_v48 = vunpack.c.l.s8.bf16 %v2882_v34  ;;  %v2913_v49 = vunpack.c.l.s8.bf16 %v2883_v35  ;;  %v2970_v62 = vunpack.c.h.s8.bf16 %v2950_v46  ;;  %v2971_v63 = vunpack.c.h.s8.bf16 %v2951_v47 }
 0x294   : > { %2854 = vst [vmem:[#allocation2 + $0x1f90] sm:$0xff] %v2726_v50  ;;  %2855 = vst [vmem:[#allocation2 + $0x1f98] sm:$0xff] %v2727_v51  ;;  %v2914_v50 = vunpack.c.h.s8.bf16 %v2882_v34  ;;  %v2915_v51 = vunpack.c.h.s8.bf16 %v2883_v35 }
 0x295   : > { %2856 = vst [vmem:[#allocation2 + $0x1fa0] sm:$0xff] %v2728_v52  ;;  %2857 = vst [vmem:[#allocation2 + $0x1fa8] sm:$0xff] %v2729_v53  ;;  %v2952_v52 = vld [vmem:[#allocation9 + $0xa0] sm:$0xff]  ;;  %v2953_v53 = vld [vmem:[#allocation9 + $0xa8] sm:$0xff] }
 0x296   : > { %2858 = vst [vmem:[#allocation2 + $0x1fb0] sm:$0xff] %v2730_v54  ;;  %2859 = vst [vmem:[#allocation2 + $0x1fb8] sm:$0xff] %v2731_v55  ;;  %v2964_v54 = vunpack.c.l.s8.bf16 %v2948_v40  ;;  %v2965_v55 = vunpack.c.l.s8.bf16 %v2949_v41  ;;  %v2974_v4 = vunpack.c.h.s8.bf16 %v2952_v52  ;;  %v2975_v5 = vunpack.c.h.s8.bf16 %v2953_v53 }
 0x297   : > { %2860 = vst [vmem:[#allocation2 + $0x1fc0] sm:$0xff] %v2732_v58  ;;  %2861 = vst [vmem:[#allocation2 + $0x1fc8] sm:$0xff] %v2733_v59  ;;  %v2954_v58 = vld [vmem:[#allocation9 + $0xb0] sm:$0xff]  ;;  %v2955_v59 = vld [vmem:[#allocation9 + $0xb8] sm:$0xff] }
 0x298   : > { %2862 = vst [vmem:[#allocation2 + $0x1fd0] sm:$0xff] %v2734_v60  ;;  %2863 = vst [vmem:[#allocation2 + $0x1fd8] sm:$0xff] %v2735_v61  ;;  %v2968_v60 = vunpack.c.l.s8.bf16 %v2950_v46  ;;  %v2969_v61 = vunpack.c.l.s8.bf16 %v2951_v47  ;;  %v2978_v10 = vunpack.c.h.s8.bf16 %v2954_v58  ;;  %v2979_v11 = vunpack.c.h.s8.bf16 %v2955_v59 }
 0x299   : > { %2864 = vst [vmem:[#allocation2 + $0x1fe0] sm:$0xff] %v2736_v0  ;;  %2865 = vst [vmem:[#allocation2 + $0x1fe8] sm:$0xff] %v2737_v1  ;;  %v2956_v0 = vld [vmem:[#allocation9 + $0xc0] sm:$0xff]  ;;  %v2957_v1 = vld [vmem:[#allocation9 + $0xc8] sm:$0xff] }
 0x29a   : > { %2866 = vst [vmem:[#allocation2 + $0x1ff0] sm:$0xff] %v2738_v2  ;;  %2867 = vst [vmem:[#allocation2 + $0x1ff8] sm:$0xff] %v2739_v3  ;;  %v2972_v2 = vunpack.c.l.s8.bf16 %v2952_v52  ;;  %v2973_v3 = vunpack.c.l.s8.bf16 %v2953_v53  ;;  %v2982_v16 = vunpack.c.h.s8.bf16 %v2956_v0  ;;  %v2983_v17 = vunpack.c.h.s8.bf16 %v2957_v1 }
 0x29b   : > { %2916 = vst [vmem:[#allocation3] sm:$0xff] %v2884_v6  ;;  %2917 = vst [vmem:[#allocation3 + $0x8] sm:$0xff] %v2885_v7  ;;  %v2958_v6 = vld [vmem:[#allocation9 + $0xd0] sm:$0xff]  ;;  %v2959_v7 = vld [vmem:[#allocation9 + $0xd8] sm:$0xff] }
 0x29c   : > { %2918 = vst [vmem:[#allocation3 + $0x10] sm:$0xff] %v2886_v8  ;;  %2919 = vst [vmem:[#allocation3 + $0x18] sm:$0xff] %v2887_v9  ;;  %v2976_v8 = vunpack.c.l.s8.bf16 %v2954_v58  ;;  %v2977_v9 = vunpack.c.l.s8.bf16 %v2955_v59  ;;  %v2986_v22 = vunpack.c.h.s8.bf16 %v2958_v6  ;;  %v2987_v23 = vunpack.c.h.s8.bf16 %v2959_v7 }
 0x29d   : > { %2920 = vst [vmem:[#allocation3 + $0x20] sm:$0xff] %v2888_v12  ;;  %2921 = vst [vmem:[#allocation3 + $0x28] sm:$0xff] %v2889_v13  ;;  %v2960_v12 = vld [vmem:[#allocation9 + $0xe0] sm:$0xff]  ;;  %v2961_v13 = vld [vmem:[#allocation9 + $0xe8] sm:$0xff] }
 0x29e   : > { %2922 = vst [vmem:[#allocation3 + $0x30] sm:$0xff] %v2890_v14  ;;  %2923 = vst [vmem:[#allocation3 + $0x38] sm:$0xff] %v2891_v15  ;;  %v2980_v14 = vunpack.c.l.s8.bf16 %v2956_v0  ;;  %v2981_v15 = vunpack.c.l.s8.bf16 %v2957_v1  ;;  %v2990_v28 = vunpack.c.h.s8.bf16 %v2960_v12  ;;  %v2991_v29 = vunpack.c.h.s8.bf16 %v2961_v13 }
 0x29f   : > { %2924 = vst [vmem:[#allocation3 + $0x40] sm:$0xff] %v2892_v18  ;;  %2925 = vst [vmem:[#allocation3 + $0x48] sm:$0xff] %v2893_v19  ;;  %v2962_v18 = vld [vmem:[#allocation9 + $0xf0] sm:$0xff]  ;;  %v2963_v19 = vld [vmem:[#allocation9 + $0xf8] sm:$0xff] }
 0x2a0   : > { %2926 = vst [vmem:[#allocation3 + $0x50] sm:$0xff] %v2894_v20  ;;  %2927 = vst [vmem:[#allocation3 + $0x58] sm:$0xff] %v2895_v21  ;;  %v2984_v20 = vunpack.c.l.s8.bf16 %v2958_v6  ;;  %v2985_v21 = vunpack.c.l.s8.bf16 %v2959_v7  ;;  %v2994_v34 = vunpack.c.h.s8.bf16 %v2962_v18  ;;  %v2995_v35 = vunpack.c.h.s8.bf16 %v2963_v19 }
 0x2a1   : > { %2928 = vst [vmem:[#allocation3 + $0x60] sm:$0xff] %v2896_v24  ;;  %2929 = vst [vmem:[#allocation3 + $0x68] sm:$0xff] %v2897_v25  ;;  %v3028_v24 = vld [vmem:[#allocation9 + $0x100] sm:$0xff]  ;;  %v3029_v25 = vld [vmem:[#allocation9 + $0x108] sm:$0xff] }
 0x2a2   : > { %2930 = vst [vmem:[#allocation3 + $0x70] sm:$0xff] %v2898_v26  ;;  %2931 = vst [vmem:[#allocation3 + $0x78] sm:$0xff] %v2899_v27  ;;  %v2988_v26 = vunpack.c.l.s8.bf16 %v2960_v12  ;;  %v2989_v27 = vunpack.c.l.s8.bf16 %v2961_v13  ;;  %v3046_v40 = vunpack.c.h.s8.bf16 %v3028_v24  ;;  %v3047_v41 = vunpack.c.h.s8.bf16 %v3029_v25 }
 0x2a3   : > { %2932 = vst [vmem:[#allocation3 + $0x80] sm:$0xff] %v2900_v30  ;;  %2933 = vst [vmem:[#allocation3 + $0x88] sm:$0xff] %v2901_v31  ;;  %v3030_v30 = vld [vmem:[#allocation9 + $0x110] sm:$0xff]  ;;  %v3031_v31 = vld [vmem:[#allocation9 + $0x118] sm:$0xff] }
 0x2a4   : > { %2934 = vst [vmem:[#allocation3 + $0x90] sm:$0xff] %v2902_v32  ;;  %2935 = vst [vmem:[#allocation3 + $0x98] sm:$0xff] %v2903_v33  ;;  %v2992_v32 = vunpack.c.l.s8.bf16 %v2962_v18  ;;  %v2993_v33 = vunpack.c.l.s8.bf16 %v2963_v19  ;;  %v3050_v46 = vunpack.c.h.s8.bf16 %v3030_v30  ;;  %v3051_v47 = vunpack.c.h.s8.bf16 %v3031_v31 }
 0x2a5   : > { %2936 = vst [vmem:[#allocation3 + $0xa0] sm:$0xff] %v2904_v36  ;;  %2937 = vst [vmem:[#allocation3 + $0xa8] sm:$0xff] %v2905_v37  ;;  %v3032_v36 = vld [vmem:[#allocation9 + $0x120] sm:$0xff]  ;;  %v3033_v37 = vld [vmem:[#allocation9 + $0x128] sm:$0xff] }
 0x2a6   : > { %2938 = vst [vmem:[#allocation3 + $0xb0] sm:$0xff] %v2906_v38  ;;  %2939 = vst [vmem:[#allocation3 + $0xb8] sm:$0xff] %v2907_v39  ;;  %v3044_v38 = vunpack.c.l.s8.bf16 %v3028_v24  ;;  %v3045_v39 = vunpack.c.l.s8.bf16 %v3029_v25  ;;  %v3054_v52 = vunpack.c.h.s8.bf16 %v3032_v36  ;;  %v3055_v53 = vunpack.c.h.s8.bf16 %v3033_v37 }
 0x2a7   : > { %2940 = vst [vmem:[#allocation3 + $0xc0] sm:$0xff] %v2908_v42  ;;  %2941 = vst [vmem:[#allocation3 + $0xc8] sm:$0xff] %v2909_v43  ;;  %v3034_v42 = vld [vmem:[#allocation9 + $0x130] sm:$0xff]  ;;  %v3035_v43 = vld [vmem:[#allocation9 + $0x138] sm:$0xff] }
 0x2a8   : > { %2942 = vst [vmem:[#allocation3 + $0xd0] sm:$0xff] %v2910_v44  ;;  %2943 = vst [vmem:[#allocation3 + $0xd8] sm:$0xff] %v2911_v45  ;;  %v3048_v44 = vunpack.c.l.s8.bf16 %v3030_v30  ;;  %v3049_v45 = vunpack.c.l.s8.bf16 %v3031_v31  ;;  %v3058_v58 = vunpack.c.h.s8.bf16 %v3034_v42  ;;  %v3059_v59 = vunpack.c.h.s8.bf16 %v3035_v43 }
 0x2a9   : > { %2944 = vst [vmem:[#allocation3 + $0xe0] sm:$0xff] %v2912_v48  ;;  %2945 = vst [vmem:[#allocation3 + $0xe8] sm:$0xff] %v2913_v49  ;;  %v3036_v48 = vld [vmem:[#allocation9 + $0x140] sm:$0xff]  ;;  %v3037_v49 = vld [vmem:[#allocation9 + $0x148] sm:$0xff] }
 0x2aa   : > { %2946 = vst [vmem:[#allocation3 + $0xf0] sm:$0xff] %v2914_v50  ;;  %2947 = vst [vmem:[#allocation3 + $0xf8] sm:$0xff] %v2915_v51  ;;  %v3052_v50 = vunpack.c.l.s8.bf16 %v3032_v36  ;;  %v3053_v51 = vunpack.c.l.s8.bf16 %v3033_v37  ;;  %v3062_v0 = vunpack.c.h.s8.bf16 %v3036_v48  ;;  %v3063_v1 = vunpack.c.h.s8.bf16 %v3037_v49 }
 0x2ab   : > { %2996 = vst [vmem:[#allocation3 + $0x100] sm:$0xff] %v2964_v54  ;;  %2997 = vst [vmem:[#allocation3 + $0x108] sm:$0xff] %v2965_v55  ;;  %v3038_v54 = vld [vmem:[#allocation9 + $0x150] sm:$0xff]  ;;  %v3039_v55 = vld [vmem:[#allocation9 + $0x158] sm:$0xff] }
 0x2ac   : > { %2998 = vst [vmem:[#allocation3 + $0x110] sm:$0xff] %v2966_v56  ;;  %2999 = vst [vmem:[#allocation3 + $0x118] sm:$0xff] %v2967_v57  ;;  %v3056_v56 = vunpack.c.l.s8.bf16 %v3034_v42  ;;  %v3057_v57 = vunpack.c.l.s8.bf16 %v3035_v43  ;;  %v3066_v6 = vunpack.c.h.s8.bf16 %v3038_v54  ;;  %v3067_v7 = vunpack.c.h.s8.bf16 %v3039_v55 }
 0x2ad   : > { %3000 = vst [vmem:[#allocation3 + $0x120] sm:$0xff] %v2968_v60  ;;  %3001 = vst [vmem:[#allocation3 + $0x128] sm:$0xff] %v2969_v61  ;;  %v3040_v60 = vld [vmem:[#allocation9 + $0x160] sm:$0xff]  ;;  %v3041_v61 = vld [vmem:[#allocation9 + $0x168] sm:$0xff] }
 0x2ae   : > { %3002 = vst [vmem:[#allocation3 + $0x130] sm:$0xff] %v2970_v62  ;;  %3003 = vst [vmem:[#allocation3 + $0x138] sm:$0xff] %v2971_v63  ;;  %v3060_v62 = vunpack.c.l.s8.bf16 %v3036_v48  ;;  %v3061_v63 = vunpack.c.l.s8.bf16 %v3037_v49  ;;  %v3070_v12 = vunpack.c.h.s8.bf16 %v3040_v60  ;;  %v3071_v13 = vunpack.c.h.s8.bf16 %v3041_v61 }
 0x2af   : > { %3004 = vst [vmem:[#allocation3 + $0x140] sm:$0xff] %v2972_v2  ;;  %3005 = vst [vmem:[#allocation3 + $0x148] sm:$0xff] %v2973_v3  ;;  %v3042_v2 = vld [vmem:[#allocation9 + $0x170] sm:$0xff]  ;;  %v3043_v3 = vld [vmem:[#allocation9 + $0x178] sm:$0xff] }
 0x2b0   : > { %3006 = vst [vmem:[#allocation3 + $0x150] sm:$0xff] %v2974_v4  ;;  %3007 = vst [vmem:[#allocation3 + $0x158] sm:$0xff] %v2975_v5  ;;  %v3064_v4 = vunpack.c.l.s8.bf16 %v3038_v54  ;;  %v3065_v5 = vunpack.c.l.s8.bf16 %v3039_v55  ;;  %v3074_v18 = vunpack.c.h.s8.bf16 %v3042_v2  ;;  %v3075_v19 = vunpack.c.h.s8.bf16 %v3043_v3 }
 0x2b1   : > { %3008 = vst [vmem:[#allocation3 + $0x160] sm:$0xff] %v2976_v8  ;;  %3009 = vst [vmem:[#allocation3 + $0x168] sm:$0xff] %v2977_v9  ;;  %v3108_v8 = vld [vmem:[#allocation9 + $0x180] sm:$0xff]  ;;  %v3109_v9 = vld [vmem:[#allocation9 + $0x188] sm:$0xff] }
 0x2b2   : > { %3010 = vst [vmem:[#allocation3 + $0x170] sm:$0xff] %v2978_v10  ;;  %3011 = vst [vmem:[#allocation3 + $0x178] sm:$0xff] %v2979_v11  ;;  %v3068_v10 = vunpack.c.l.s8.bf16 %v3040_v60  ;;  %v3069_v11 = vunpack.c.l.s8.bf16 %v3041_v61  ;;  %v3126_v24 = vunpack.c.h.s8.bf16 %v3108_v8  ;;  %v3127_v25 = vunpack.c.h.s8.bf16 %v3109_v9 }
 0x2b3   : > { %3012 = vst [vmem:[#allocation3 + $0x180] sm:$0xff] %v2980_v14  ;;  %3013 = vst [vmem:[#allocation3 + $0x188] sm:$0xff] %v2981_v15  ;;  %v3110_v14 = vld [vmem:[#allocation9 + $0x190] sm:$0xff]  ;;  %v3111_v15 = vld [vmem:[#allocation9 + $0x198] sm:$0xff] }
 0x2b4   : > { %3014 = vst [vmem:[#allocation3 + $0x190] sm:$0xff] %v2982_v16  ;;  %3015 = vst [vmem:[#allocation3 + $0x198] sm:$0xff] %v2983_v17  ;;  %v3072_v16 = vunpack.c.l.s8.bf16 %v3042_v2  ;;  %v3073_v17 = vunpack.c.l.s8.bf16 %v3043_v3  ;;  %v3130_v30 = vunpack.c.h.s8.bf16 %v3110_v14  ;;  %v3131_v31 = vunpack.c.h.s8.bf16 %v3111_v15 }
 0x2b5   : > { %3016 = vst [vmem:[#allocation3 + $0x1a0] sm:$0xff] %v2984_v20  ;;  %3017 = vst [vmem:[#allocation3 + $0x1a8] sm:$0xff] %v2985_v21  ;;  %v3112_v20 = vld [vmem:[#allocation9 + $0x1a0] sm:$0xff]  ;;  %v3113_v21 = vld [vmem:[#allocation9 + $0x1a8] sm:$0xff] }
 0x2b6   : > { %3018 = vst [vmem:[#allocation3 + $0x1b0] sm:$0xff] %v2986_v22  ;;  %3019 = vst [vmem:[#allocation3 + $0x1b8] sm:$0xff] %v2987_v23  ;;  %v3124_v22 = vunpack.c.l.s8.bf16 %v3108_v8  ;;  %v3125_v23 = vunpack.c.l.s8.bf16 %v3109_v9  ;;  %v3134_v36 = vunpack.c.h.s8.bf16 %v3112_v20  ;;  %v3135_v37 = vunpack.c.h.s8.bf16 %v3113_v21 }
 0x2b7   : > { %3020 = vst [vmem:[#allocation3 + $0x1c0] sm:$0xff] %v2988_v26  ;;  %3021 = vst [vmem:[#allocation3 + $0x1c8] sm:$0xff] %v2989_v27  ;;  %v3114_v26 = vld [vmem:[#allocation9 + $0x1b0] sm:$0xff]  ;;  %v3115_v27 = vld [vmem:[#allocation9 + $0x1b8] sm:$0xff] }
 0x2b8   : > { %3022 = vst [vmem:[#allocation3 + $0x1d0] sm:$0xff] %v2990_v28  ;;  %3023 = vst [vmem:[#allocation3 + $0x1d8] sm:$0xff] %v2991_v29  ;;  %v3128_v28 = vunpack.c.l.s8.bf16 %v3110_v14  ;;  %v3129_v29 = vunpack.c.l.s8.bf16 %v3111_v15  ;;  %v3138_v42 = vunpack.c.h.s8.bf16 %v3114_v26  ;;  %v3139_v43 = vunpack.c.h.s8.bf16 %v3115_v27 }
 0x2b9   : > { %3024 = vst [vmem:[#allocation3 + $0x1e0] sm:$0xff] %v2992_v32  ;;  %3025 = vst [vmem:[#allocation3 + $0x1e8] sm:$0xff] %v2993_v33  ;;  %v3116_v32 = vld [vmem:[#allocation9 + $0x1c0] sm:$0xff]  ;;  %v3117_v33 = vld [vmem:[#allocation9 + $0x1c8] sm:$0xff] }
 0x2ba   : > { %3026 = vst [vmem:[#allocation3 + $0x1f0] sm:$0xff] %v2994_v34  ;;  %3027 = vst [vmem:[#allocation3 + $0x1f8] sm:$0xff] %v2995_v35  ;;  %v3132_v34 = vunpack.c.l.s8.bf16 %v3112_v20  ;;  %v3133_v35 = vunpack.c.l.s8.bf16 %v3113_v21  ;;  %v3142_v48 = vunpack.c.h.s8.bf16 %v3116_v32  ;;  %v3143_v49 = vunpack.c.h.s8.bf16 %v3117_v33 }
 0x2bb   : > { %3076 = vst [vmem:[#allocation3 + $0x200] sm:$0xff] %v3044_v38  ;;  %3077 = vst [vmem:[#allocation3 + $0x208] sm:$0xff] %v3045_v39  ;;  %v3118_v38 = vld [vmem:[#allocation9 + $0x1d0] sm:$0xff]  ;;  %v3119_v39 = vld [vmem:[#allocation9 + $0x1d8] sm:$0xff] }
 0x2bc   : > { %3078 = vst [vmem:[#allocation3 + $0x210] sm:$0xff] %v3046_v40  ;;  %3079 = vst [vmem:[#allocation3 + $0x218] sm:$0xff] %v3047_v41  ;;  %v3136_v40 = vunpack.c.l.s8.bf16 %v3114_v26  ;;  %v3137_v41 = vunpack.c.l.s8.bf16 %v3115_v27  ;;  %v3146_v54 = vunpack.c.h.s8.bf16 %v3118_v38  ;;  %v3147_v55 = vunpack.c.h.s8.bf16 %v3119_v39 }
 0x2bd   : > { %3080 = vst [vmem:[#allocation3 + $0x220] sm:$0xff] %v3048_v44  ;;  %3081 = vst [vmem:[#allocation3 + $0x228] sm:$0xff] %v3049_v45  ;;  %v3120_v44 = vld [vmem:[#allocation9 + $0x1e0] sm:$0xff]  ;;  %v3121_v45 = vld [vmem:[#allocation9 + $0x1e8] sm:$0xff] }
 0x2be   : > { %3082 = vst [vmem:[#allocation3 + $0x230] sm:$0xff] %v3050_v46  ;;  %3083 = vst [vmem:[#allocation3 + $0x238] sm:$0xff] %v3051_v47  ;;  %v3140_v46 = vunpack.c.l.s8.bf16 %v3116_v32  ;;  %v3141_v47 = vunpack.c.l.s8.bf16 %v3117_v33 }
 0x2bf   : > { %3084 = vst [vmem:[#allocation3 + $0x240] sm:$0xff] %v3052_v50  ;;  %3085 = vst [vmem:[#allocation3 + $0x248] sm:$0xff] %v3053_v51  ;;  %v3122_v50 = vld [vmem:[#allocation9 + $0x1f0] sm:$0xff]  ;;  %v3123_v51 = vld [vmem:[#allocation9 + $0x1f8] sm:$0xff] }
 0x2c0   : > { %3086 = vst [vmem:[#allocation3 + $0x250] sm:$0xff] %v3054_v52  ;;  %3087 = vst [vmem:[#allocation3 + $0x258] sm:$0xff] %v3055_v53  ;;  %v3144_v52 = vunpack.c.l.s8.bf16 %v3118_v38  ;;  %v3145_v53 = vunpack.c.l.s8.bf16 %v3119_v39  ;;  %v3152_v60 = vunpack.c.l.s8.bf16 %v3122_v50  ;;  %v3153_v61 = vunpack.c.l.s8.bf16 %v3123_v51 }
 0x2c1   : > { %3088 = vst [vmem:[#allocation3 + $0x260] sm:$0xff] %v3056_v56  ;;  %3089 = vst [vmem:[#allocation3 + $0x268] sm:$0xff] %v3057_v57  ;;  %v3148_v56 = vunpack.c.l.s8.bf16 %v3120_v44  ;;  %v3149_v57 = vunpack.c.l.s8.bf16 %v3121_v45 }
 0x2c2   : > { %3090 = vst [vmem:[#allocation3 + $0x270] sm:$0xff] %v3058_v58  ;;  %3091 = vst [vmem:[#allocation3 + $0x278] sm:$0xff] %v3059_v59  ;;  %v3150_v58 = vunpack.c.h.s8.bf16 %v3120_v44  ;;  %v3151_v59 = vunpack.c.h.s8.bf16 %v3121_v45 }
 0x2c3   : > { %3092 = vst [vmem:[#allocation3 + $0x280] sm:$0xff] %v3060_v62  ;;  %3093 = vst [vmem:[#allocation3 + $0x288] sm:$0xff] %v3061_v63  ;;  %v3154_v62 = vunpack.c.h.s8.bf16 %v3122_v50  ;;  %v3155_v63 = vunpack.c.h.s8.bf16 %v3123_v51 }
 0x2c4   : > { %3094 = vst [vmem:[#allocation3 + $0x290] sm:$0xff] %v3062_v0  ;;  %3095 = vst [vmem:[#allocation3 + $0x298] sm:$0xff] %v3063_v1 }
 0x2c5   : > { %3096 = vst [vmem:[#allocation3 + $0x2a0] sm:$0xff] %v3064_v4  ;;  %3097 = vst [vmem:[#allocation3 + $0x2a8] sm:$0xff] %v3065_v5 }
 0x2c6   : > { %3098 = vst [vmem:[#allocation3 + $0x2b0] sm:$0xff] %v3066_v6  ;;  %3099 = vst [vmem:[#allocation3 + $0x2b8] sm:$0xff] %v3067_v7 }
 0x2c7   : > { %3100 = vst [vmem:[#allocation3 + $0x2c0] sm:$0xff] %v3068_v10  ;;  %3101 = vst [vmem:[#allocation3 + $0x2c8] sm:$0xff] %v3069_v11 }
 0x2c8   : > { %3102 = vst [vmem:[#allocation3 + $0x2d0] sm:$0xff] %v3070_v12  ;;  %3103 = vst [vmem:[#allocation3 + $0x2d8] sm:$0xff] %v3071_v13 }
 0x2c9   : > { %3104 = vst [vmem:[#allocation3 + $0x2e0] sm:$0xff] %v3072_v16  ;;  %3105 = vst [vmem:[#allocation3 + $0x2e8] sm:$0xff] %v3073_v17 }
 0x2ca   : > { %3106 = vst [vmem:[#allocation3 + $0x2f0] sm:$0xff] %v3074_v18  ;;  %3107 = vst [vmem:[#allocation3 + $0x2f8] sm:$0xff] %v3075_v19 }
 0x2cb   : > { %3156 = vst [vmem:[#allocation3 + $0x300] sm:$0xff] %v3124_v22  ;;  %3157 = vst [vmem:[#allocation3 + $0x308] sm:$0xff] %v3125_v23 }
 0x2cc   : > { %3158 = vst [vmem:[#allocation3 + $0x310] sm:$0xff] %v3126_v24  ;;  %3159 = vst [vmem:[#allocation3 + $0x318] sm:$0xff] %v3127_v25 }
 0x2cd   : > { %3160 = vst [vmem:[#allocation3 + $0x320] sm:$0xff] %v3128_v28  ;;  %3161 = vst [vmem:[#allocation3 + $0x328] sm:$0xff] %v3129_v29 }
 0x2ce   : > { %3162 = vst [vmem:[#allocation3 + $0x330] sm:$0xff] %v3130_v30  ;;  %3163 = vst [vmem:[#allocation3 + $0x338] sm:$0xff] %v3131_v31 }
 0x2cf   : > { %3164 = vst [vmem:[#allocation3 + $0x340] sm:$0xff] %v3132_v34  ;;  %3165 = vst [vmem:[#allocation3 + $0x348] sm:$0xff] %v3133_v35 }
 0x2d0   : > { %3166 = vst [vmem:[#allocation3 + $0x350] sm:$0xff] %v3134_v36  ;;  %3167 = vst [vmem:[#allocation3 + $0x358] sm:$0xff] %v3135_v37 }
 0x2d1   : > { %3168 = vst [vmem:[#allocation3 + $0x360] sm:$0xff] %v3136_v40  ;;  %3169 = vst [vmem:[#allocation3 + $0x368] sm:$0xff] %v3137_v41 }
 0x2d2   : > { %3170 = vst [vmem:[#allocation3 + $0x370] sm:$0xff] %v3138_v42  ;;  %3171 = vst [vmem:[#allocation3 + $0x378] sm:$0xff] %v3139_v43 }
 0x2d3   : > { %3172 = vst [vmem:[#allocation3 + $0x380] sm:$0xff] %v3140_v46  ;;  %3173 = vst [vmem:[#allocation3 + $0x388] sm:$0xff] %v3141_v47 }
 0x2d4   : > { %3174 = vst [vmem:[#allocation3 + $0x390] sm:$0xff] %v3142_v48  ;;  %3175 = vst [vmem:[#allocation3 + $0x398] sm:$0xff] %v3143_v49 }
 0x2d5   : > { %3176 = vst [vmem:[#allocation3 + $0x3a0] sm:$0xff] %v3144_v52  ;;  %3177 = vst [vmem:[#allocation3 + $0x3a8] sm:$0xff] %v3145_v53 }
 0x2d6   : > { %3178 = vst [vmem:[#allocation3 + $0x3b0] sm:$0xff] %v3146_v54  ;;  %3179 = vst [vmem:[#allocation3 + $0x3b8] sm:$0xff] %v3147_v55 }
 0x2d7   : > { %3180 = vst [vmem:[#allocation3 + $0x3c0] sm:$0xff] %v3148_v56  ;;  %3181 = vst [vmem:[#allocation3 + $0x3c8] sm:$0xff] %v3149_v57 }
 0x2d8   : > { %3182 = vst [vmem:[#allocation3 + $0x3d0] sm:$0xff] %v3150_v58  ;;  %3183 = vst [vmem:[#allocation3 + $0x3d8] sm:$0xff] %v3151_v59 }
 0x2d9   : > { %3184 = vst [vmem:[#allocation3 + $0x3e0] sm:$0xff] %v3152_v60  ;;  %3185 = vst [vmem:[#allocation3 + $0x3e8] sm:$0xff] %v3153_v61 }
 0x2da   : > { %3186 = vst [vmem:[#allocation3 + $0x3f0] sm:$0xff] %v3154_v62  ;;  %3187 = vst [vmem:[#allocation3 + $0x3f8] sm:$0xff] %v3155_v63 }
 0x2db PF: > { %v3191_v0 = vld [vmem:[#allocation6] sm:$0xff]  ;;  %v7354_v6 = vmov 0   ;;  %v3193_v8 = vld [vmem:[#allocation6 + $0x10] sm:$0xff]  ;;  %v3192_v11 = vld [vmem:[#allocation6 + $0x8] sm:$0xff]  ;;  %vm3467_vm0 = vcmask 261120   ;;  %vm6770_vm1 = vcmask 7168  }
 0x2dc   : > { %v3199_v1 = vld [vmem:[#allocation6 + $0x40] sm:$0xff]  ;;  %3503 = vmatprep.mubr.bf16.mxu0 %v7354_v6  ;;  %3546 = vmatprep.mubr.bf16.mxu1 %v7354_v6  ;;  %v3201_v9 = vld [vmem:[#allocation6 + $0x50] sm:$0xff]  ;;  %v3200_v12 = vld [vmem:[#allocation6 + $0x48] sm:$0xff] }
 0x2dd   : > { %v3207_v2 = vld [vmem:[#allocation6 + $0x80] sm:$0xff]  ;;  %v6899_v3 = vcombine.high %v3191_v0, %v3199_v1  ;;  %v6898_v4 = vcombine.low %v3191_v0, %v3199_v1  ;;  %v3189_v14 = vld [vmem:[%s253_s7 + $0x8] sm:$0xff]  ;;  %v6901_v15 = vcombine.high %v3192_v11, %v3200_v12  ;;  %v6900_v16 = vcombine.low %v3192_v11, %v3200_v12  ;;  %v3209_v20 = vld [vmem:[#allocation6 + $0x90] sm:$0xff] }
 0x2de   : > { %v3215_v5 = vld [vmem:[#allocation6 + $0xc0] sm:$0xff]  ;;  %v3208_v17 = vld [vmem:[#allocation6 + $0x88] sm:$0xff]  ;;  %v6903_v19 = vcombine.high %v3193_v8, %v3201_v9  ;;  %v3217_v22 = vld [vmem:[#allocation6 + $0xd0] sm:$0xff]  ;;  %v6902_v27 = vcombine.low %v3193_v8, %v3201_v9 }
 0x2df   : > { %v6915_v7 = vcombine.high %v3207_v2, %v3215_v5  ;;  %3471 = vmatprep.subr.bf16.mxu0 %v6899_v3  ;;  %v3188_v10 = vld [vmem:[%s253_s7] sm:$0xff]  ;;  %v6914_v13 = vcombine.low %v3207_v2, %v3215_v5  ;;  %v3216_v18 = vld [vmem:[#allocation6 + $0xc8] sm:$0xff]  ;;  %3514 = vmatprep.subr.bf16.mxu1 %v6901_v15  ;;  %v3194_v23 = vld [vmem:[#allocation6 + $0x18] sm:$0xff]  ;;  %v6919_v28 = vcombine.high %v3209_v20, %v3217_v22 }
 0x2e0   : > { %3472 = vmatpush1.bf16.msra.mxu0 %v6898_v4  ;;  %v6917_v21 = vcombine.high %v3208_v17, %v3216_v18  ;;  %v3202_v24 = vld [vmem:[#allocation6 + $0x58] sm:$0xff]  ;;  %v8850_v25 = vpack.c.bf16 %v3189_v14, %v3188_v10  ;;  %3515 = vmatpush1.bf16.msra.mxu1 %v6900_v16  ;;  %v6916_v26 = vcombine.low %v3208_v17, %v3216_v18  ;;  %v3195_v32 = vld [vmem:[#allocation6 + $0x20] sm:$0xff]  ;;  %v3196_v40 = vld [vmem:[#allocation6 + $0x28] sm:$0xff] }
 0x2e1   : > { %3473 = vmatprep.subr.bf16.mxu0 %v6915_v7  ;;  %v6905_v29 = vcombine.high %v3194_v23, %v3202_v24  ;;  %v3210_v30 = vld [vmem:[#allocation6 + $0x98] sm:$0xff]  ;;  %v3203_v33 = vld [vmem:[#allocation6 + $0x60] sm:$0xff]  ;;  %v6904_v34 = vcombine.low %v3194_v23, %v3202_v24  ;;  %v6918_v35 = vcombine.low %v3209_v20, %v3217_v22  ;;  %v3204_v41 = vld [vmem:[#allocation6 + $0x68] sm:$0xff] }
 0x2e2   : > { %3516 = vmatprep.subr.bf16.mxu1 %v6917_v21  ;;  %v3218_v31 = vld [vmem:[#allocation6 + $0xd8] sm:$0xff]  ;;  %v6907_v37 = vcombine.high %v3195_v32, %v3203_v33  ;;  %v3211_v38 = vld [vmem:[#allocation6 + $0xa0] sm:$0xff]  ;;  %v6906_v43 = vcombine.low %v3195_v32, %v3203_v33  ;;  %v6909_v45 = vcombine.high %v3196_v40, %v3204_v41  ;;  %v3212_v46 = vld [vmem:[#allocation6 + $0xa8] sm:$0xff]  ;;  %v6908_v50 = vcombine.low %v3196_v40, %v3204_v41 }
 0x2e3   : > { %v6921_v36 = vcombine.high %v3210_v30, %v3218_v31  ;;  %v3219_v39 = vld [vmem:[#allocation6 + $0xe0] sm:$0xff]  ;;  %v6920_v42 = vcombine.low %v3210_v30, %v3218_v31  ;;  %v3220_v47 = vld [vmem:[#allocation6 + $0xe8] sm:$0xff]  ;;  %v3197_v48 = vld [vmem:[#allocation6 + $0x30] sm:$0xff] }
 0x2e4   : > { %3474 = vmatpush1.bf16.msra.mxu0 %v6914_v13  ;;  %3517 = vmatpush1.bf16.msra.mxu1 %v6916_v26  ;;  %v6923_v44 = vcombine.high %v3211_v38, %v3219_v39  ;;  %v3205_v49 = vld [vmem:[#allocation6 + $0x70] sm:$0xff]  ;;  %v6922_v51 = vcombine.low %v3211_v38, %v3219_v39  ;;  %v6925_v52 = vcombine.high %v3212_v46, %v3220_v47  ;;  %v3198_v53 = vld [vmem:[#allocation6 + $0x38] sm:$0xff]  ;;  %v4120_v3 = vld [vmem:[#allocation2 + $0x808] sm:$0xff] }
 0x2e5   : > { %3557 = vmatprep.subr.bf16.mxu0 %v6903_v19  ;;  %3600 = vmatprep.subr.bf16.mxu1 %v6905_v29  ;;  %v3206_v54 = vld [vmem:[#allocation6 + $0x78] sm:$0xff]  ;;  %v6911_v55 = vcombine.high %v3197_v48, %v3205_v49  ;;  %v3213_v56 = vld [vmem:[#allocation6 + $0xb0] sm:$0xff]  ;;  %v6924_v58 = vcombine.low %v3212_v46, %v3220_v47  ;;  %v6910_v60 = vcombine.low %v3197_v48, %v3205_v49  ;;  %v3864_v5 = vld [vmem:[#allocation2 + $0x8] sm:$0xff] }
 0x2e6   : > { %v3221_v57 = vld [vmem:[#allocation6 + $0xf0] sm:$0xff]  ;;  %v6913_v59 = vcombine.high %v3198_v53, %v3206_v54  ;;  %v3214_v61 = vld [vmem:[#allocation6 + $0xb8] sm:$0xff]  ;;  %v6912_v0 = vcombine.low %v3198_v53, %v3206_v54  ;;  %v4119_v7 = vld [vmem:[#allocation2 + $0x800] sm:$0xff] }
 0x2e7   : > { %6930 = vmatmul.mubr.msk.bf16.vlgmr.msra.gmra.mrb[0].mxu0 %vm3467_vm0, %v8850_v25  ;;  %6931 = vmatmul.mubr.msk.bf16.vlgmr.msra.gmra.mrb[0].mxu1 %vm3467_vm0, %v8850_v25  ;;  %v3222_v62 = vld [vmem:[#allocation6 + $0xf8] sm:$0xff]  ;;  %v6927_v63 = vcombine.high %v3213_v56, %v3221_v57  ;;  %v6926_v2 = vcombine.low %v3213_v56, %v3221_v57  ;;  %v4128_v8 = vld [vmem:[#allocation2 + $0x848] sm:$0xff]  ;;  %v3863_v9 = vld [vmem:[#allocation2] sm:$0xff] }
 0x2e8   : > { %3558 = vmatpush1.bf16.msra.mxu0 %v6902_v27  ;;  %3589 = vmatprep.mubr.bf16.mxu0 %v7354_v6  ;;  %v6929_v1 = vcombine.high %v3214_v61, %v3222_v62  ;;  %v6928_v4 = vcombine.low %v3214_v61, %v3222_v62  ;;  %v3872_v10 = vld [vmem:[#allocation2 + $0x48] sm:$0xff]  ;;  %v4127_v11 = vld [vmem:[#allocation2 + $0x840] sm:$0xff] }
 0x2e9   : > { %3559 = vmatprep.subr.bf16.mxu0 %v6919_v28  ;;  %3601 = vmatpush1.bf16.msra.mxu1 %v6904_v34  ;;  %v3871_v12 = vld [vmem:[#allocation2 + $0x40] sm:$0xff]  ;;  %v3880_v13 = vld [vmem:[#allocation2 + $0x88] sm:$0xff] }
 0x2ea   : > { %3632 = vmatprep.mubr.bf16.mxu1 %v7354_v6  ;;  %3602 = vmatprep.subr.bf16.mxu1 %v6921_v36  ;;  %v4135_v14 = vld [vmem:[#allocation2 + $0x880] sm:$0xff]  ;;  %v4144_v15 = vld [vmem:[#allocation2 + $0x8c8] sm:$0xff] }
 0x2eb   : > { %v3879_v16 = vld [vmem:[#allocation2 + $0x80] sm:$0xff]  ;;  %v3888_v17 = vld [vmem:[#allocation2 + $0xc8] sm:$0xff] }
 0x2ec   : > { %3560 = vmatpush1.bf16.msra.mxu0 %v6918_v35  ;;  %v4143_v18 = vld [vmem:[#allocation2 + $0x8c0] sm:$0xff]  ;;  %v4152_v19 = vld [vmem:[#allocation2 + $0x908] sm:$0xff] }
 0x2ed   : > { %3643 = vmatprep.subr.bf16.mxu0 %v6907_v37  ;;  %3603 = vmatpush1.bf16.msra.mxu1 %v6920_v42  ;;  %v3887_v20 = vld [vmem:[#allocation2 + $0xc0] sm:$0xff]  ;;  %v3896_v21 = vld [vmem:[#allocation2 + $0x108] sm:$0xff] }
 0x2ee   : > { %3686 = vmatprep.subr.bf16.mxu1 %v6909_v45  ;;  %v4151_v22 = vld [vmem:[#allocation2 + $0x900] sm:$0xff]  ;;  %v4160_v23 = vld [vmem:[#allocation2 + $0x948] sm:$0xff] }
 0x2ef   : > { %6932 = vmatmul.mubr.msk.bf16.vlgmr.msra.gmra.mrb[4].mxu0 %vm3467_vm0, %v8850_v25  ;;  %v3895_v24 = vld [vmem:[#allocation2 + $0x100] sm:$0xff]  ;;  %v4168_v27 = vld [vmem:[#allocation2 + $0x988] sm:$0xff] }
 0x2f0   : > { %3644 = vmatpush1.bf16.msra.mxu0 %v6906_v43  ;;  %3675 = vmatprep.mubr.bf16.mxu0 %v7354_v6  ;;  %v4159_v26 = vld [vmem:[#allocation2 + $0x940] sm:$0xff]  ;;  %v3912_v29 = vld [vmem:[#allocation2 + $0x188] sm:$0xff] }
 0x2f1   : > { %3645 = vmatprep.subr.bf16.mxu0 %v6923_v44  ;;  %6933 = vmatmul.mubr.msk.bf16.vlgmr.msra.gmra.mrb[4].mxu1 %vm3467_vm0, %v8850_v25  ;;  %v3903_v28 = vld [vmem:[#allocation2 + $0x140] sm:$0xff]  ;;  %v4176_v31 = vld [vmem:[#allocation2 + $0x9c8] sm:$0xff] }
 0x2f2   : > { %3687 = vmatpush1.bf16.msra.mxu1 %v6908_v50  ;;  %3718 = vmatprep.mubr.bf16.mxu1 %v7354_v6  ;;  %v4167_v30 = vld [vmem:[#allocation2 + $0x980] sm:$0xff]  ;;  %v3920_v33 = vld [vmem:[#allocation2 + $0x1c8] sm:$0xff] }
 0x2f3   : > { %3688 = vmatprep.subr.bf16.mxu1 %v6925_v52  ;;  %v3911_v32 = vld [vmem:[#allocation2 + $0x180] sm:$0xff]  ;;  %v4184_v35 = vld [vmem:[#allocation2 + $0xa08] sm:$0xff] }
 0x2f4   : > { %3646 = vmatpush1.bf16.msra.mxu0 %v6922_v51  ;;  %v4175_v34 = vld [vmem:[#allocation2 + $0x9c0] sm:$0xff]  ;;  %v3928_v37 = vld [vmem:[#allocation2 + $0x208] sm:$0xff] }
 0x2f5   : > { %3729 = vmatprep.subr.bf16.mxu0 %v6911_v55  ;;  %v3919_v36 = vld [vmem:[#allocation2 + $0x1c0] sm:$0xff]  ;;  %v4192_v39 = vld [vmem:[#allocation2 + $0xa48] sm:$0xff] }
 0x2f6   : > { %3689 = vmatpush1.bf16.msra.mxu1 %v6924_v58  ;;  %v4183_v38 = vld [vmem:[#allocation2 + $0xa00] sm:$0xff]  ;;  %v3936_v41 = vld [vmem:[#allocation2 + $0x248] sm:$0xff] }
 0x2f7   : > { %6934 = vmatmul.mubr.msk.bf16.vlgmr.msra.gmra.mrb[8].mxu0 %vm3467_vm0, %v8850_v25  ;;  %3772 = vmatprep.subr.bf16.mxu1 %v6913_v59  ;;  %v3927_v40 = vld [vmem:[#allocation2 + $0x200] sm:$0xff]  ;;  %v4200_v43 = vld [vmem:[#allocation2 + $0xa88] sm:$0xff] }
 0x2f8   : > { %3730 = vmatpush1.bf16.msra.mxu0 %v6910_v60  ;;  %3761 = vmatprep.mubr.bf16.mxu0 %v7354_v6  ;;  %v4191_v42 = vld [vmem:[#allocation2 + $0xa40] sm:$0xff]  ;;  %v3944_v45 = vld [vmem:[#allocation2 + $0x288] sm:$0xff] }
 0x2f9   : > { %3731 = vmatprep.subr.bf16.mxu0 %v6927_v63  ;;  %6935 = vmatmul.mubr.msk.bf16.vlgmr.msra.gmra.mrb[8].mxu1 %vm3467_vm0, %v8850_v25  ;;  %v3935_v44 = vld [vmem:[#allocation2 + $0x240] sm:$0xff]  ;;  %v4208_v47 = vld [vmem:[#allocation2 + $0xac8] sm:$0xff] }
 0x2fa   : > { %3773 = vmatpush1.bf16.msra.mxu1 %v6912_v0  ;;  %3804 = vmatprep.mubr.bf16.mxu1 %v7354_v6  ;;  %v4136_v6 = vld [vmem:[#allocation2 + $0x888] sm:$0xff]  ;;  %v4199_v46 = vld [vmem:[#allocation2 + $0xa80] sm:$0xff] }
 0x2fb   : > { %3774 = vmatprep.subr.bf16.mxu1 %v6929_v1  ;;  %v3943_v48 = vld [vmem:[#allocation2 + $0x280] sm:$0xff]  ;;  %v3952_v49 = vld [vmem:[#allocation2 + $0x2c8] sm:$0xff] }
 0x2fc   : > { %3732 = vmatpush1.bf16.msra.mxu0 %v6926_v2  ;;  %v4207_v50 = vld [vmem:[#allocation2 + $0xac0] sm:$0xff]  ;;  %v3960_v52 = vld [vmem:[#allocation2 + $0x308] sm:$0xff] }
 0x2fd   : > { %4973 = vmatprep.subr.bf16.mxu0 %v4120_v3  ;;  %v3951_v51 = vld [vmem:[#allocation2 + $0x2c0] sm:$0xff]  ;;  %v3968_v54 = vld [vmem:[#allocation2 + $0x348] sm:$0xff] }
 0x2fe   : > { %3775 = vmatpush1.bf16.msra.mxu1 %v6928_v4  ;;  %v3959_v53 = vld [vmem:[#allocation2 + $0x300] sm:$0xff]  ;;  %v3976_v56 = vld [vmem:[#allocation2 + $0x388] sm:$0xff] }
 0x2ff   : > { %6936 = vmatmul.mubr.msk.bf16.vlgmr.msra.gmra.mrb[12].mxu0 %vm3467_vm0, %v8850_v25  ;;  %4887 = vmatprep.subr.bf16.mxu1 %v3864_v5  ;;  %v3967_v55 = vld [vmem:[#allocation2 + $0x340] sm:$0xff]  ;;  %v4216_v57 = vld [vmem:[#allocation2 + $0xb08] sm:$0xff] }
 0x300   : > { %4974 = vmatpush1.bf16.msra.mxu0 %v4119_v7  ;;  %v3975_v58 = vld [vmem:[#allocation2 + $0x380] sm:$0xff]  ;;  %v3984_v60 = vld [vmem:[#allocation2 + $0x3c8] sm:$0xff]  ;;  %v3227_v7 = vlaneseq }
 0x301   : > { %4975 = vmatprep.subr.bf16.mxu0 %v4128_v8  ;;  %6937 = vmatmul.mubr.msk.bf16.vlgmr.msra.gmra.mrb[12].mxu1 %vm3467_vm0, %v8850_v25  ;;  %v3904_v25 = vld [vmem:[#allocation2 + $0x148] sm:$0xff]  ;;  %v4215_v59 = vld [vmem:[#allocation2 + $0xb00] sm:$0xff] }
 0x302   : > { %4888 = vmatpush1.bf16.msra.mxu1 %v3863_v9  ;;  %v4224_v61 = vld [vmem:[#allocation2 + $0xb48] sm:$0xff]  ;;  %v3983_v62 = vld [vmem:[#allocation2 + $0x3c0] sm:$0xff]  ;;  %v3228_v8 = vshrl.u32 %v3227_v7, 7 }
 0x303   : > { %4889 = vmatprep.subr.bf16.mxu1 %v3872_v10  ;;  %v4223_v63 = vld [vmem:[#allocation2 + $0xb40] sm:$0xff]  ;;  %v3992_v0 = vld [vmem:[#allocation2 + $0x408] sm:$0xff] }
 0x304   : > { %4976 = vmatpush1.bf16.msra.mxu0 %v4127_v11  ;;  %v4232_v1 = vld [vmem:[#allocation2 + $0xb88] sm:$0xff]  ;;  %v4231_v2 = vld [vmem:[#allocation2 + $0xb80] sm:$0xff]  ;;  %v8874_v9 = vsub.s32 0, %v3228_v8  ;;  %v8876_v11 = vsub.s32 1, %v3228_v8 }
 0x305   : > { %4977 = vmatprep.subr.bf16.mxu0 %v4136_v6  ;;  %v4240_v3 = vld [vmem:[#allocation2 + $0xbc8] sm:$0xff]  ;;  %v4239_v4 = vld [vmem:[#allocation2 + $0xbc0] sm:$0xff]  ;;  %v8878_v6 = vsub.s32 2, %v3228_v8 }
 0x306   : > { %4890 = vmatpush1.bf16.msra.mxu1 %v3871_v12  ;;  %v4248_v5 = vld [vmem:[#allocation2 + $0xc08] sm:$0xff]  ;;  %v3223_v10 = vld [vmem:[#allocation11] sm:$0xff] }
 0x307   : > { %4891 = vmatprep.subr.bf16.mxu1 %v3880_v13  ;;  %v3230_v12 = vrot.slane %v3223_v10, %v8874_v9  ;;  %v8881_v13 = vsub.s32 3, %v3228_v8  ;;  %v3999_v7 = vld [vmem:[#allocation2 + $0x440] sm:$0xff] }
 0x308   : > { %4978 = vmatpush1.bf16.msra.mxu0 %v4135_v14  ;;  %v3234_v14 = vrot.slane %v3223_v10, %v8876_v11 }
 0x309   : > { %4979 = vmatprep.subr.bf16.mxu0 %v4144_v15  ;;  %v8884_v15 = vsub.s32 4, %v3228_v8 }
 0x30a   : > { %4892 = vmatpush1.bf16.msra.mxu1 %v3879_v16 }
 0x30b   : > { %4893 = vmatprep.subr.bf16.mxu1 %v3888_v17  ;;  %v8886_v17 = vsub.s32 5, %v3228_v8 }
 0x30c   : > { %4980 = vmatpush1.bf16.msra.mxu0 %v4143_v18  ;;  %v3238_v18 = vrot.slane %v3223_v10, %v8878_v6 }
 0x30d   : > { %4981 = vmatprep.subr.bf16.mxu0 %v4152_v19 }
 0x30e   : > { %4894 = vmatpush1.bf16.msra.mxu1 %v3887_v20 }
 0x30f   : > { %4895 = vmatprep.subr.bf16.mxu1 %v3896_v21  ;;  %v3242_v21 = vrot.slane %v3223_v10, %v8881_v13 }
 0x310   : > { %4982 = vmatpush1.bf16.msra.mxu0 %v4151_v22 }
 0x311   : > { %4983 = vmatprep.subr.bf16.mxu0 %v4160_v23 }
 0x312   : > { %4896 = vmatpush1.bf16.msra.mxu1 %v3895_v24 }
 0x313   : > { %4897 = vmatprep.subr.bf16.mxu1 %v3904_v25 }
 0x314   : > { %4984 = vmatpush1.bf16.msra.mxu0 %v4159_v26  ;;  %v3246_v26 = vrot.slane %v3223_v10, %v8884_v15 }
 0x315   : > { %4985 = vmatprep.subr.bf16.mxu0 %v4168_v27 }
 0x316   : > { %4898 = vmatpush1.bf16.msra.mxu1 %v3903_v28 }
 0x317   : > { %4899 = vmatprep.subr.bf16.mxu1 %v3912_v29  ;;  %v3250_v29 = vrot.slane %v3223_v10, %v8886_v17 }
 0x318   : > { %4986 = vmatpush1.bf16.msra.mxu0 %v4167_v30 }
 0x319   : > { %4987 = vmatprep.subr.bf16.mxu0 %v4176_v31 }
 0x31a   : > { %4900 = vmatpush1.bf16.msra.mxu1 %v3911_v32  ;;  %v8892_v32 = vsub.s32 6, %v3228_v8 }
 0x31b   : > { %4901 = vmatprep.subr.bf16.mxu1 %v3920_v33 }
 0x31c   : > { %4988 = vmatpush1.bf16.msra.mxu0 %v4175_v34 }
 0x31d   : > { %4989 = vmatprep.subr.bf16.mxu0 %v4184_v35 }
 0x31e   : > { %4902 = vmatpush1.bf16.msra.mxu1 %v3919_v36 }
 0x31f   : > { %4903 = vmatprep.subr.bf16.mxu1 %v3928_v37  ;;  %v8894_v37 = vsub.s32 7, %v3228_v8 }
 0x320   : > { %4990 = vmatpush1.bf16.msra.mxu0 %v4183_v38 }
 0x321   : > { %4991 = vmatprep.subr.bf16.mxu0 %v4192_v39 }
 0x322   : > { %4904 = vmatpush1.bf16.msra.mxu1 %v3927_v40 }
 0x323   : > { %4905 = vmatprep.subr.bf16.mxu1 %v3936_v41 }
 0x324   : > { %4992 = vmatpush1.bf16.msra.mxu0 %v4191_v42 }
 0x325   : > { %4993 = vmatprep.subr.bf16.mxu0 %v4200_v43 }
 0x326   : > { %4906 = vmatpush1.bf16.msra.mxu1 %v3935_v44 }
 0x327   : > { %4907 = vmatprep.subr.bf16.mxu1 %v3944_v45 }
 0x328   : > { %4994 = vmatpush1.bf16.msra.mxu0 %v4199_v46 }
 0x329   : > { %4995 = vmatprep.subr.bf16.mxu0 %v4208_v47 }
 0x32a   : > { %4908 = vmatpush1.bf16.msra.mxu1 %v3943_v48 }
 0x32b   : > { %4909 = vmatprep.subr.bf16.mxu1 %v3952_v49  ;;  %v3254_v49 = vrot.slane %v3223_v10, %v8892_v32 }
 0x32c   : > { %4996 = vmatpush1.bf16.msra.mxu0 %v4207_v50 }
 0x32d   : > { %4997 = vmatprep.subr.bf16.mxu0 %v4216_v57  ;;  %v4000_v57 = vld [vmem:[#allocation2 + $0x448] sm:$0xff] }
 0x32e   : > { %4910 = vmatpush1.bf16.msra.mxu1 %v3951_v51 }
 0x32f   : > { %4911 = vmatprep.subr.bf16.mxu1 %v3960_v52  ;;  %v3991_v52 = vld [vmem:[#allocation2 + $0x400] sm:$0xff] }
 0x330   : > { %4998 = vmatpush1.bf16.msra.mxu0 %v4215_v59  ;;  %v8905_v59 = vld [vmem:[#allocation11 + $0x8] sm:$0xff] }
 0x331   : > { %4999 = vmatprep.subr.bf16.mxu0 %v4224_v61 }
 0x332   : > { %4912 = vmatpush1.bf16.msra.mxu1 %v3959_v53 }
 0x333   : > { %4913 = vmatprep.subr.bf16.mxu1 %v3968_v54  ;;  %v3258_v54 = vrot.slane %v3223_v10, %v8894_v37 }
 0x334   : > { %5000 = vmatpush1.bf16.msra.mxu0 %v4223_v63 }
 0x335   : > { %5001 = vmatprep.subr.bf16.mxu0 %v4232_v1 }
 0x336   : > { %4914 = vmatpush1.bf16.msra.mxu1 %v3967_v55 }
 0x337   : > { %4915 = vmatprep.subr.bf16.mxu1 %v3976_v56 }
 0x338   : > { %5002 = vmatpush1.bf16.msra.mxu0 %v4231_v2 }
 0x339   : > { %5003 = vmatprep.subr.bf16.mxu0 %v4240_v3 }
 0x33a   : > { %4916 = vmatpush1.bf16.msra.mxu1 %v3975_v58 }
 0x33b   : > { %4917 = vmatprep.subr.bf16.mxu1 %v3984_v60 }
 0x33c   : > { %5004 = vmatpush1.bf16.msra.mxu0 %v4239_v4 }
 0x33d   : > { %5016 = vmatprep.subr.bf16.mxu0 %v4248_v5 }
 0x33e   : > { %4918 = vmatpush1.bf16.msra.mxu1 %v3983_v62 }
 0x33f   : > { %4930 = vmatprep.subr.bf16.mxu1 %v3992_v0 }
 0x3ba   : > { %v3505_v16 = vpop.f32.mrb[0].mxu0  ;;  %v3548_v27 = vpop.f32.mrb[0].mxu1 }
 0x3bb   : > { %v3506_v19 = vadd.f32 %v3505_v16, %v3230_v12  ;;  %v3507_v20 = vpop.f32.mrb[1].mxu0  ;;  %v3549_v30 = vadd.f32 %v3548_v27, %v3238_v18  ;;  %v3550_v31 = vpop.f32.mrb[1].mxu1  ;;  %v4008_v16 = vld [vmem:[#allocation2 + $0x488] sm:$0xff] }
 0x3bc   : > { %v3508_v22 = vadd.f32 %v3507_v20, %v3234_v14  ;;  %v3509_v23 = vpop.f32.mrb[2].mxu0  ;;  %v3551_v35 = vadd.f32 %v3550_v31, %v3242_v21  ;;  %v3552_v36 = vpop.f32.mrb[2].mxu1 }
 0x3bd   : > { %v3510_v24 = vadd.f32 %v3509_v23, %v3230_v12  ;;  %v3511_v25 = vpop.f32.mrb[3].mxu0  ;;  %v3815_v33 = vmax.f32 %v3506_v19, 0.0  ;;  %v3817_v40 = vmax.f32 %v3549_v30, 0.0  ;;  %v3553_v41 = vadd.f32 %v3552_v36, %v3238_v18  ;;  %v3554_v42 = vpop.f32.mrb[3].mxu1  ;;  %v4256_v36 = vld [vmem:[#allocation2 + $0xc48] sm:$0xff] }
 0x3be   : > { %v3512_v28 = vadd.f32 %v3511_v25, %v3234_v14  ;;  %v3816_v38 = vmax.f32 %v3508_v22, 0.0  ;;  %v3818_v44 = vmax.f32 %v3551_v35, 0.0  ;;  %v3555_v45 = vadd.f32 %v3554_v42, %v3242_v21  ;;  %v4016_v35 = vld [vmem:[#allocation2 + $0x4c8] sm:$0xff] }
 0x3bf   : > { %v3831_v34 = vmax.f32 %v3510_v24, 0.0  ;;  %v3833_v48 = vmax.f32 %v3553_v41, 0.0  ;;  %v3262_v12 = vrot.slane %v8905_v59, %v8874_v9  ;;  %v3266_v21 = vrot.slane %v8905_v59, %v8876_v11 }
 0x3c0   : > { %v3832_v39 = vmax.f32 %v3512_v28, 0.0  ;;  %v3834_v53 = vmax.f32 %v3555_v45, 0.0  ;;  %v4007_v28 = vld [vmem:[#allocation2 + $0x480] sm:$0xff] }
 0x3c1   : > { %v8896_v43 = vpack.c.bf16 %v3831_v34, %v3815_v33  ;;  %v8903_v58 = vpack.c.bf16 %v3833_v48, %v3817_v40  ;;  %v3270_v34 = vrot.slane %v8905_v59, %v8878_v6 }
 0x3c2   : > { %v8898_v46 = vpack.c.bf16 %v3832_v39, %v3816_v38  ;;  %v3591_v47 = vpop.f32.mrb[4].mxu0  ;;  %v8908_v63 = vpack.c.bf16 %v3834_v53, %v3818_v44  ;;  %v4015_v53 = vld [vmem:[#allocation2 + $0x4c0] sm:$0xff] }
 0x3c3   : > { %v3592_v50 = vadd.f32 %v3591_v47, %v3246_v26  ;;  %v3593_v51 = vpop.f32.mrb[5].mxu0 }
 0x3c4   : > { %v3594_v55 = vadd.f32 %v3593_v51, %v3250_v29  ;;  %v3595_v56 = vpop.f32.mrb[6].mxu0  ;;  %4919 = vmatprep.mubr.bf16.mxu1 %v8898_v46  ;;  %v3634_v0 = vpop.f32.mrb[4].mxu1  ;;  %v3274_v51 = vrot.slane %v8905_v59, %v8881_v13 }
 0x3c5   : > { %v3819_v60 = vmax.f32 %v3592_v50, 0.0  ;;  %v3596_v61 = vadd.f32 %v3595_v56, %v3246_v26  ;;  %v3597_v62 = vpop.f32.mrb[7].mxu0  ;;  %4920 = vmatmul.mubr.bf16.vlgmr.msra.gmra.mrb[16].mxu1 %v8896_v43  ;;  %v3635_v3 = vadd.f32 %v3634_v0, %v3254_v49  ;;  %v3636_v4 = vpop.f32.mrb[5].mxu1 }
 0x3c6   : > { %v3820_v1 = vmax.f32 %v3594_v55, 0.0  ;;  %v3598_v2 = vadd.f32 %v3597_v62, %v3250_v29  ;;  %4931 = vmatpush1.bf16.msra.mxu1 %v3991_v52  ;;  %4962 = vmatprep.mubr.bf16.mxu1 %v8908_v63  ;;  %v3637_v8 = vadd.f32 %v3636_v4, %v3258_v54  ;;  %v3638_v10 = vpop.f32.mrb[6].mxu1  ;;  %v4247_v29 = vld [vmem:[#allocation2 + $0xc00] sm:$0xff] }
 0x3c7   : > { %v3835_v5 = vmax.f32 %v3596_v61, 0.0  ;;  %4932 = vmatprep.subr.bf16.mxu1 %v4000_v57  ;;  %v3821_v18 = vmax.f32 %v3635_v3, 0.0  ;;  %v3639_v19 = vadd.f32 %v3638_v10, %v3254_v49  ;;  %v3640_v20 = vpop.f32.mrb[7].mxu1  ;;  %v4024_v57 = vld [vmem:[#allocation2 + $0x508] sm:$0xff]  ;;  %v4023_v10 = vld [vmem:[#allocation2 + $0x500] sm:$0xff] }
 0x3c8   : > { %v3836_v14 = vmax.f32 %v3598_v2, 0.0  ;;  %v3822_v23 = vmax.f32 %v3637_v8, 0.0  ;;  %v3641_v24 = vadd.f32 %v3640_v20, %v3258_v54  ;;  %v4255_v54 = vld [vmem:[#allocation2 + $0xc40] sm:$0xff] }
 0x3c9   : > { %v8915_v22 = vpack.c.bf16 %v3835_v5, %v3819_v60  ;;  %v3837_v26 = vmax.f32 %v3639_v19, 0.0  ;;  %v4264_v60 = vld [vmem:[#allocation2 + $0xc88] sm:$0xff] }
 0x3ca   : > { %v8917_v25 = vpack.c.bf16 %v3836_v14, %v3820_v1  ;;  %4933 = vmatpush1.bf16.msra.mxu1 %v3999_v7  ;;  %v3677_v27 = vpop.f32.mrb[8].mxu0  ;;  %v3838_v30 = vmax.f32 %v3641_v24, 0.0  ;;  %v4272_v19 = vld [vmem:[#allocation2 + $0xcc8] sm:$0xff] }
 0x3cb   : > { %4934 = vmatprep.subr.bf16.mxu1 %v4008_v16  ;;  %v3678_v31 = vadd.f32 %v3677_v27, %v3262_v12  ;;  %v3679_v33 = vpop.f32.mrb[9].mxu0  ;;  %v8922_v38 = vpack.c.bf16 %v3837_v26, %v3821_v18  ;;  %v3286_v16 = vrot.slane %v8905_v59, %v8892_v32  ;;  %v4032_v18 = vld [vmem:[#allocation2 + $0x548] sm:$0xff]  ;;  %v3290_v26 = vrot.slane %v8905_v59, %v8894_v37 }
 0x3cc   : > { %5005 = vmatprep.mubr.bf16.mxu0 %v8917_v25  ;;  %v3680_v39 = vadd.f32 %v3679_v33, %v3266_v21  ;;  %v3681_v40 = vpop.f32.mrb[10].mxu0  ;;  %v8925_v41 = vpack.c.bf16 %v3838_v30, %v3822_v23  ;;  %v3720_v47 = vpop.f32.mrb[8].mxu1  ;;  %v4280_v33 = vld [vmem:[#allocation2 + $0xd08] sm:$0xff] }
 0x3cd   : > { %5006 = vmatmul.mubr.bf16.vlgmr.msra.gmra.mrb[16].mxu0 %v8915_v22  ;;  %v3823_v42 = vmax.f32 %v3678_v31, 0.0  ;;  %v3682_v44 = vadd.f32 %v3681_v40, %v3262_v12  ;;  %v3683_v45 = vpop.f32.mrb[11].mxu0  ;;  %v3721_v50 = vadd.f32 %v3720_v47, %v3270_v34  ;;  %v3722_v52 = vpop.f32.mrb[9].mxu1  ;;  %v4263_v12 = vld [vmem:[#allocation2 + $0xc80] sm:$0xff]  ;;  %v4040_v31 = vld [vmem:[#allocation2 + $0x588] sm:$0xff] }
 0x3ce   : > { %4935 = vmatpush1.bf16.msra.mxu1 %v4007_v28  ;;  %5017 = vmatpush1.bf16.msra.mxu0 %v4247_v29  ;;  %v3824_v48 = vmax.f32 %v3680_v39, 0.0  ;;  %v3684_v49 = vadd.f32 %v3683_v45, %v3266_v21  ;;  %v3724_v56 = vpop.f32.mrb[10].mxu1  ;;  %v3723_v0 = vadd.f32 %v3722_v52, %v3274_v51  ;;  %v4031_v28 = vld [vmem:[#allocation2 + $0x540] sm:$0xff] }
 0x3cf   : > { %4936 = vmatprep.subr.bf16.mxu1 %v4016_v35  ;;  %5018 = vmatprep.subr.bf16.mxu0 %v4256_v36  ;;  %v3839_v55 = vmax.f32 %v3682_v44, 0.0  ;;  %v3825_v62 = vmax.f32 %v3721_v50, 0.0  ;;  %v3725_v1 = vadd.f32 %v3724_v56, %v3270_v34  ;;  %v3726_v2 = vpop.f32.mrb[11].mxu1  ;;  %v4271_v29 = vld [vmem:[#allocation2 + $0xcc0] sm:$0xff]  ;;  %v4288_v50 = vld [vmem:[#allocation2 + $0xd48] sm:$0xff] }
 0x3d0   : > { %5048 = vmatprep.mubr.bf16.mxu0 %v8925_v41  ;;  %v3840_v61 = vmax.f32 %v3684_v49, 0.0  ;;  %v3727_v4 = vadd.f32 %v3726_v2, %v3274_v51  ;;  %v3826_v7 = vmax.f32 %v3723_v0, 0.0  ;;  %v4039_v45 = vld [vmem:[#allocation2 + $0x580] sm:$0xff]  ;;  %v4048_v49 = vld [vmem:[#allocation2 + $0x5c8] sm:$0xff] }
 0x3d1   : > { %v8930_v3 = vpack.c.bf16 %v3839_v55, %v3823_v42  ;;  %v3841_v8 = vmax.f32 %v3725_v1, 0.0  ;;  %v4279_v47 = vld [vmem:[#allocation2 + $0xd00] sm:$0xff]  ;;  %v4056_v55 = vld [vmem:[#allocation2 + $0x608] sm:$0xff] }
 0x3d2   : > { %4937 = vmatpush1.bf16.msra.mxu1 %v4015_v53  ;;  %5019 = vmatpush1.bf16.msra.mxu0 %v4255_v54  ;;  %v8932_v5 = vpack.c.bf16 %v3840_v61, %v3824_v48  ;;  %v3842_v14 = vmax.f32 %v3727_v4, 0.0  ;;  %v4047_v53 = vld [vmem:[#allocation2 + $0x5c0] sm:$0xff]  ;;  %v4296_v56 = vld [vmem:[#allocation2 + $0xd88] sm:$0xff] }
 0x3d3   : > { %4938 = vmatprep.subr.bf16.mxu1 %v4024_v57  ;;  %5020 = vmatprep.subr.bf16.mxu0 %v4264_v60  ;;  %v8936_v20 = vpack.c.bf16 %v3841_v8, %v3825_v62  ;;  %v4287_v54 = vld [vmem:[#allocation2 + $0xd40] sm:$0xff]  ;;  %v4064_v61 = vld [vmem:[#allocation2 + $0x648] sm:$0xff] }
 0x3d4   : > { %v8938_v21 = vpack.c.bf16 %v3842_v14, %v3826_v7  ;;  %v3806_v23 = vpop.f32.mrb[12].mxu1  ;;  %v4055_v57 = vld [vmem:[#allocation2 + $0x600] sm:$0xff]  ;;  %v4304_v62 = vld [vmem:[#allocation2 + $0xdc8] sm:$0xff] }
 0x3d5   : > { %v3807_v24 = vadd.f32 %v3806_v23, %v3286_v16  ;;  %v3808_v27 = vpop.f32.mrb[13].mxu1  ;;  %v4295_v60 = vld [vmem:[#allocation2 + $0xd80] sm:$0xff]  ;;  %v4072_v2 = vld [vmem:[#allocation2 + $0x688] sm:$0xff] }
 0x3d6   : > { %4939 = vmatpush1.bf16.msra.mxu1 %v4023_v10  ;;  %5021 = vmatpush1.bf16.msra.mxu0 %v4263_v12  ;;  %v3810_v30 = vpop.f32.mrb[14].mxu1  ;;  %v3809_v35 = vadd.f32 %v3808_v27, %v3290_v26  ;;  %v4063_v0 = vld [vmem:[#allocation2 + $0x640] sm:$0xff]  ;;  %v4312_v4 = vld [vmem:[#allocation2 + $0xe08] sm:$0xff] }
 0x3d7   : > { %4940 = vmatprep.subr.bf16.mxu1 %v4032_v18  ;;  %5022 = vmatprep.subr.bf16.mxu0 %v4272_v19  ;;  %v3829_v34 = vmax.f32 %v3807_v24, 0.0  ;;  %v3811_v36 = vadd.f32 %v3810_v30, %v3286_v16  ;;  %v3812_v39 = vpop.f32.mrb[15].mxu1  ;;  %v4303_v1 = vld [vmem:[#allocation2 + $0xdc0] sm:$0xff]  ;;  %v4080_v10 = vld [vmem:[#allocation2 + $0x6c8] sm:$0xff] }
 0x3d8   : > { %v3813_v40 = vadd.f32 %v3812_v39, %v3290_v26  ;;  %v3830_v42 = vmax.f32 %v3809_v35, 0.0  ;;  %v4071_v7 = vld [vmem:[#allocation2 + $0x680] sm:$0xff]  ;;  %v4320_v12 = vld [vmem:[#allocation2 + $0xe48] sm:$0xff] }
 0x3d9   : > { %v3845_v44 = vmax.f32 %v3811_v36, 0.0  ;;  %v4311_v8 = vld [vmem:[#allocation2 + $0xe00] sm:$0xff]  ;;  %v4088_v18 = vld [vmem:[#allocation2 + $0x708] sm:$0xff] }
 0x3da   : > { %4941 = vmatpush1.bf16.msra.mxu1 %v4031_v28  ;;  %5023 = vmatpush1.bf16.msra.mxu0 %v4271_v29  ;;  %v3846_v48 = vmax.f32 %v3813_v40, 0.0  ;;  %v4079_v14 = vld [vmem:[#allocation2 + $0x6c0] sm:$0xff]  ;;  %v4328_v19 = vld [vmem:[#allocation2 + $0xe88] sm:$0xff] }
 0x3db   : > { %4942 = vmatprep.subr.bf16.mxu1 %v4040_v31  ;;  %5024 = vmatprep.subr.bf16.mxu0 %v4280_v33  ;;  %v8942_v51 = vpack.c.bf16 %v3845_v44, %v3829_v34  ;;  %v4319_v16 = vld [vmem:[#allocation2 + $0xe40] sm:$0xff]  ;;  %v4096_v26 = vld [vmem:[#allocation2 + $0x748] sm:$0xff]  ;;  %v3866_v44 = vld [vmem:[#allocation2 + $0x18] sm:$0xff] }
 0x3dc   : > { %v8944_v52 = vpack.c.bf16 %v3846_v48, %v3830_v42  ;;  %v4087_v23 = vld [vmem:[#allocation2 + $0x700] sm:$0xff]  ;;  %v4336_v27 = vld [vmem:[#allocation2 + $0xec8] sm:$0xff] }
 0x3dd   : > { %v4327_v24 = vld [vmem:[#allocation2 + $0xe80] sm:$0xff]  ;;  %v4104_v30 = vld [vmem:[#allocation2 + $0x788] sm:$0xff] }
 0x3de   : > { %4943 = vmatpush1.bf16.msra.mxu1 %v4039_v45  ;;  %5025 = vmatpush1.bf16.msra.mxu0 %v4279_v47  ;;  %v4095_v28 = vld [vmem:[#allocation2 + $0x740] sm:$0xff]  ;;  %v4344_v31 = vld [vmem:[#allocation2 + $0xf08] sm:$0xff]  ;;  %v3865_v47 = vld [vmem:[#allocation2 + $0x10] sm:$0xff] }
 0x3df   : > { %4944 = vmatprep.subr.bf16.mxu1 %v4048_v49  ;;  %5026 = vmatprep.subr.bf16.mxu0 %v4288_v50  ;;  %v4335_v29 = vld [vmem:[#allocation2 + $0xec0] sm:$0xff]  ;;  %v4112_v35 = vld [vmem:[#allocation2 + $0x7c8] sm:$0xff]  ;;  %v3874_v49 = vld [vmem:[#allocation2 + $0x58] sm:$0xff] }
 0x3e0   : > { %v4103_v33 = vld [vmem:[#allocation2 + $0x780] sm:$0xff]  ;;  %v4352_v36 = vld [vmem:[#allocation2 + $0xf48] sm:$0xff] }
 0x3e1   : > { %v4343_v34 = vld [vmem:[#allocation2 + $0xf00] sm:$0xff]  ;;  %v4360_v42 = vld [vmem:[#allocation2 + $0xf88] sm:$0xff] }
 0x3e2   : > { %4945 = vmatpush1.bf16.msra.mxu1 %v4047_v53  ;;  %5027 = vmatpush1.bf16.msra.mxu0 %v4287_v54  ;;  %v4111_v39 = vld [vmem:[#allocation2 + $0x7c0] sm:$0xff]  ;;  %v4368_v48 = vld [vmem:[#allocation2 + $0xfc8] sm:$0xff]  ;;  %v3873_v53 = vld [vmem:[#allocation2 + $0x50] sm:$0xff] }
 0x3e3   : > { %4946 = vmatprep.subr.bf16.mxu1 %v4056_v55  ;;  %5028 = vmatprep.subr.bf16.mxu0 %v4296_v56  ;;  %v4351_v40 = vld [vmem:[#allocation2 + $0xf40] sm:$0xff]  ;;  %v4376_v54 = vld [vmem:[#allocation2 + $0x1008] sm:$0xff]  ;;  %v3882_v55 = vld [vmem:[#allocation2 + $0x98] sm:$0xff] }
 0x3e4   : > { %v4359_v45 = vld [vmem:[#allocation2 + $0xf80] sm:$0xff] }
 0x3e5   : > { %v4367_v50 = vld [vmem:[#allocation2 + $0xfc0] sm:$0xff] }
 0x3e6   : > { %4947 = vmatpush1.bf16.msra.mxu1 %v4055_v57  ;;  %5029 = vmatpush1.bf16.msra.mxu0 %v4295_v60  ;;  %v4375_v56 = vld [vmem:[#allocation2 + $0x1000] sm:$0xff]  ;;  %v3881_v57 = vld [vmem:[#allocation2 + $0x90] sm:$0xff]  ;;  %v4384_v60 = vld [vmem:[#allocation2 + $0x1048] sm:$0xff] }
 0x3e7   : > { %4948 = vmatprep.subr.bf16.mxu1 %v4064_v61  ;;  %5030 = vmatprep.subr.bf16.mxu0 %v4304_v62  ;;  %v3890_v61 = vld [vmem:[#allocation2 + $0xd8] sm:$0xff]  ;;  %v4383_v62 = vld [vmem:[#allocation2 + $0x1040] sm:$0xff] }
 0x3ea   : > { %4949 = vmatpush1.bf16.msra.mxu1 %v4063_v0  ;;  %5031 = vmatpush1.bf16.msra.mxu0 %v4303_v1  ;;  %v3889_v0 = vld [vmem:[#allocation2 + $0xd0] sm:$0xff]  ;;  %v4392_v1 = vld [vmem:[#allocation2 + $0x1088] sm:$0xff] }
 0x3eb   : > { %4950 = vmatprep.subr.bf16.mxu1 %v4072_v2  ;;  %5032 = vmatprep.subr.bf16.mxu0 %v4312_v4  ;;  %v3898_v2 = vld [vmem:[#allocation2 + $0x118] sm:$0xff]  ;;  %v4391_v4 = vld [vmem:[#allocation2 + $0x1080] sm:$0xff] }
 0x3ee   : > { %4951 = vmatpush1.bf16.msra.mxu1 %v4071_v7  ;;  %5033 = vmatpush1.bf16.msra.mxu0 %v4311_v8  ;;  %v3897_v7 = vld [vmem:[#allocation2 + $0x110] sm:$0xff]  ;;  %v4400_v8 = vld [vmem:[#allocation2 + $0x10c8] sm:$0xff] }
 0x3ef   : > { %4952 = vmatprep.subr.bf16.mxu1 %v4080_v10  ;;  %5034 = vmatprep.subr.bf16.mxu0 %v4320_v12  ;;  %v3906_v10 = vld [vmem:[#allocation2 + $0x158] sm:$0xff]  ;;  %v4399_v12 = vld [vmem:[#allocation2 + $0x10c0] sm:$0xff] }
 0x3f2   : > { %4953 = vmatpush1.bf16.msra.mxu1 %v4079_v14  ;;  %5035 = vmatpush1.bf16.msra.mxu0 %v4319_v16  ;;  %v3905_v14 = vld [vmem:[#allocation2 + $0x150] sm:$0xff]  ;;  %v4408_v16 = vld [vmem:[#allocation2 + $0x1108] sm:$0xff] }
 0x3f3   : > { %4954 = vmatprep.subr.bf16.mxu1 %v4088_v18  ;;  %5036 = vmatprep.subr.bf16.mxu0 %v4328_v19  ;;  %v3914_v18 = vld [vmem:[#allocation2 + $0x198] sm:$0xff]  ;;  %v4407_v19 = vld [vmem:[#allocation2 + $0x1100] sm:$0xff] }
 0x3f6   : > { %4955 = vmatpush1.bf16.msra.mxu1 %v4087_v23  ;;  %5037 = vmatpush1.bf16.msra.mxu0 %v4327_v24  ;;  %v3913_v23 = vld [vmem:[#allocation2 + $0x190] sm:$0xff]  ;;  %v4416_v24 = vld [vmem:[#allocation2 + $0x1148] sm:$0xff] }
 0x3f7   : > { %4956 = vmatprep.subr.bf16.mxu1 %v4096_v26  ;;  %5038 = vmatprep.subr.bf16.mxu0 %v4336_v27  ;;  %v3922_v26 = vld [vmem:[#allocation2 + $0x1d8] sm:$0xff]  ;;  %v4415_v27 = vld [vmem:[#allocation2 + $0x1140] sm:$0xff] }
 0x3fa   : > { %4957 = vmatpush1.bf16.msra.mxu1 %v4095_v28  ;;  %5039 = vmatpush1.bf16.msra.mxu0 %v4335_v29  ;;  %v3921_v28 = vld [vmem:[#allocation2 + $0x1d0] sm:$0xff]  ;;  %v4424_v29 = vld [vmem:[#allocation2 + $0x1188] sm:$0xff] }
 0x3fb   : > { %4958 = vmatprep.subr.bf16.mxu1 %v4104_v30  ;;  %5040 = vmatprep.subr.bf16.mxu0 %v4344_v31  ;;  %v3930_v30 = vld [vmem:[#allocation2 + $0x218] sm:$0xff]  ;;  %v4423_v31 = vld [vmem:[#allocation2 + $0x1180] sm:$0xff] }
 0x3fe   : > { %4959 = vmatpush1.bf16.msra.mxu1 %v4103_v33  ;;  %5041 = vmatpush1.bf16.msra.mxu0 %v4343_v34  ;;  %v3929_v33 = vld [vmem:[#allocation2 + $0x210] sm:$0xff]  ;;  %v4432_v34 = vld [vmem:[#allocation2 + $0x11c8] sm:$0xff] }
 0x3ff   : > { %4960 = vmatprep.subr.bf16.mxu1 %v4112_v35  ;;  %5042 = vmatprep.subr.bf16.mxu0 %v4352_v36  ;;  %v3938_v35 = vld [vmem:[#allocation2 + $0x258] sm:$0xff]  ;;  %v4431_v36 = vld [vmem:[#allocation2 + $0x11c0] sm:$0xff] }
 0x402   : > { %4961 = vmatpush1.bf16.msra.mxu1 %v4111_v39  ;;  %5043 = vmatpush1.bf16.msra.mxu0 %v4351_v40  ;;  %v3937_v39 = vld [vmem:[#allocation2 + $0x250] sm:$0xff]  ;;  %v4440_v40 = vld [vmem:[#allocation2 + $0x1208] sm:$0xff] }
 0x403   : > { %5044 = vmatprep.subr.bf16.mxu0 %v4360_v42  ;;  %5231 = vmatprep.subr.bf16.mxu1 %v3866_v44  ;;  %v3946_v42 = vld [vmem:[#allocation2 + $0x298] sm:$0xff]  ;;  %v4439_v44 = vld [vmem:[#allocation2 + $0x1200] sm:$0xff] }
 0x405   : > { %4963 = vmatmul.mubr.bf16.vlgmr.msra.gmra.mrb[16].mxu1 %v8903_v58 }
 0x406   : > { %5045 = vmatpush1.bf16.msra.mxu0 %v4359_v45  ;;  %5232 = vmatpush1.bf16.msra.mxu1 %v3865_v47  ;;  %v3945_v45 = vld [vmem:[#allocation2 + $0x290] sm:$0xff]  ;;  %v4448_v47 = vld [vmem:[#allocation2 + $0x1248] sm:$0xff] }
 0x407   : > { %5263 = vmatprep.mubr.bf16.mxu1 %v8898_v46  ;;  %5046 = vmatprep.subr.bf16.mxu0 %v4368_v48  ;;  %v3954_v48 = vld [vmem:[#allocation2 + $0x2d8] sm:$0xff] }
 0x408   : > { %5233 = vmatprep.subr.bf16.mxu1 %v3874_v49  ;;  %v4447_v49 = vld [vmem:[#allocation2 + $0x1240] sm:$0xff] }
 0x40a   : > { %5047 = vmatpush1.bf16.msra.mxu0 %v4367_v50  ;;  %5234 = vmatpush1.bf16.msra.mxu1 %v3873_v53  ;;  %v3953_v50 = vld [vmem:[#allocation2 + $0x2d0] sm:$0xff]  ;;  %v4456_v53 = vld [vmem:[#allocation2 + $0x1288] sm:$0xff] }
 0x40b   : > { %5059 = vmatprep.subr.bf16.mxu0 %v4376_v54  ;;  %5235 = vmatprep.subr.bf16.mxu1 %v3882_v55  ;;  %v3962_v54 = vld [vmem:[#allocation2 + $0x318] sm:$0xff]  ;;  %v4455_v55 = vld [vmem:[#allocation2 + $0x1280] sm:$0xff] }
 0x40d   : > { %5049 = vmatmul.mubr.bf16.vlgmr.msra.gmra.mrb[16].mxu0 %v8922_v38 }
 0x40e   : > { %5060 = vmatpush1.bf16.msra.mxu0 %v4375_v56  ;;  %5236 = vmatpush1.bf16.msra.mxu1 %v3881_v57  ;;  %v3961_v56 = vld [vmem:[#allocation2 + $0x310] sm:$0xff]  ;;  %v4464_v57 = vld [vmem:[#allocation2 + $0x12c8] sm:$0xff] }
 0x40f   : > { %5061 = vmatprep.subr.bf16.mxu0 %v4384_v60  ;;  %5237 = vmatprep.subr.bf16.mxu1 %v3890_v61  ;;  %v3970_v60 = vld [vmem:[#allocation2 + $0x358] sm:$0xff]  ;;  %v4463_v61 = vld [vmem:[#allocation2 + $0x12c0] sm:$0xff] }
 0x410   : > { %5091 = vmatprep.mubr.bf16.mxu0 %v8932_v5 }
 0x412   : > { %5062 = vmatpush1.bf16.msra.mxu0 %v4383_v62  ;;  %5238 = vmatpush1.bf16.msra.mxu1 %v3889_v0  ;;  %v3969_v62 = vld [vmem:[#allocation2 + $0x350] sm:$0xff]  ;;  %v4472_v0 = vld [vmem:[#allocation2 + $0x1308] sm:$0xff] }
 0x413   : > { %5063 = vmatprep.subr.bf16.mxu0 %v4392_v1  ;;  %5239 = vmatprep.subr.bf16.mxu1 %v3898_v2  ;;  %v3978_v1 = vld [vmem:[#allocation2 + $0x398] sm:$0xff]  ;;  %v4471_v2 = vld [vmem:[#allocation2 + $0x1300] sm:$0xff] }
 0x416   : > { %5064 = vmatpush1.bf16.msra.mxu0 %v4391_v4  ;;  %5240 = vmatpush1.bf16.msra.mxu1 %v3897_v7  ;;  %v3977_v4 = vld [vmem:[#allocation2 + $0x390] sm:$0xff]  ;;  %v4480_v7 = vld [vmem:[#allocation2 + $0x1348] sm:$0xff] }
 0x417   : > { %5065 = vmatprep.subr.bf16.mxu0 %v4400_v8  ;;  %5241 = vmatprep.subr.bf16.mxu1 %v3906_v10  ;;  %v3986_v8 = vld [vmem:[#allocation2 + $0x3d8] sm:$0xff]  ;;  %v4479_v10 = vld [vmem:[#allocation2 + $0x1340] sm:$0xff] }
 0x41a   : > { %5066 = vmatpush1.bf16.msra.mxu0 %v4399_v12  ;;  %5242 = vmatpush1.bf16.msra.mxu1 %v3905_v14  ;;  %v3985_v12 = vld [vmem:[#allocation2 + $0x3d0] sm:$0xff]  ;;  %v3278_v14 = vrot.slane %v8905_v59, %v8884_v15 }
 0x41b   : > { %5067 = vmatprep.subr.bf16.mxu0 %v4408_v16  ;;  %5243 = vmatprep.subr.bf16.mxu1 %v3914_v18  ;;  %v3763_v16 = vpop.f32.mrb[12].mxu0  ;;  %v4488_v18 = vld [vmem:[#allocation2 + $0x1388] sm:$0xff] }
 0x41e   : > { %5068 = vmatpush1.bf16.msra.mxu0 %v4407_v19  ;;  %5244 = vmatpush1.bf16.msra.mxu1 %v3913_v23  ;;  %v3994_v19 = vld [vmem:[#allocation2 + $0x418] sm:$0xff]  ;;  %v3764_v23 = vadd.f32 %v3763_v16, %v3278_v14  ;;  %v4041_v16 = vld [vmem:[#allocation2 + $0x590] sm:$0xff] }
 0x41f   : > { %5069 = vmatprep.subr.bf16.mxu0 %v4416_v24  ;;  %5245 = vmatprep.subr.bf16.mxu1 %v3922_v26  ;;  %v3282_v24 = vrot.slane %v8905_v59, %v8886_v17  ;;  %v3765_v26 = vpop.f32.mrb[13].mxu0  ;;  %v4495_v59 = vld [vmem:[#allocation2 + $0x13c0] sm:$0xff] }
 0x422   : > { %5070 = vmatpush1.bf16.msra.mxu0 %v4415_v27  ;;  %5246 = vmatpush1.bf16.msra.mxu1 %v3921_v28  ;;  %v4487_v27 = vld [vmem:[#allocation2 + $0x1380] sm:$0xff]  ;;  %v3993_v28 = vld [vmem:[#allocation2 + $0x410] sm:$0xff] }
 0x423   : > { %5071 = vmatprep.subr.bf16.mxu0 %v4424_v29  ;;  %5247 = vmatprep.subr.bf16.mxu1 %v3930_v30  ;;  %v3767_v29 = vpop.f32.mrb[14].mxu0  ;;  %v4496_v30 = vld [vmem:[#allocation2 + $0x13c8] sm:$0xff] }
 0x426   : > { %5072 = vmatpush1.bf16.msra.mxu0 %v4423_v31  ;;  %5248 = vmatpush1.bf16.msra.mxu1 %v3929_v33  ;;  %v3827_v31 = vmax.f32 %v3764_v23, 0.0  ;;  %v3766_v33 = vadd.f32 %v3765_v26, %v3282_v24  ;;  %v4543_v23 = vld [vmem:[#allocation2 + $0x1540] sm:$0xff]  ;;  %v4552_v26 = vld [vmem:[#allocation2 + $0x1588] sm:$0xff] }
 0x427   : > { %5073 = vmatprep.subr.bf16.mxu0 %v4432_v34  ;;  %5249 = vmatprep.subr.bf16.mxu1 %v3938_v35  ;;  %v3768_v34 = vadd.f32 %v3767_v29, %v3278_v14  ;;  %v3769_v35 = vpop.f32.mrb[15].mxu0  ;;  %v4535_v14 = vld [vmem:[#allocation2 + $0x1500] sm:$0xff]  ;;  %v4057_v29 = vld [vmem:[#allocation2 + $0x610] sm:$0xff] }
 0x42a   : > { %5074 = vmatpush1.bf16.msra.mxu0 %v4431_v36  ;;  %5250 = vmatpush1.bf16.msra.mxu1 %v3937_v39  ;;  %v4002_v36 = vld [vmem:[#allocation2 + $0x458] sm:$0xff]  ;;  %v3770_v39 = vadd.f32 %v3769_v35, %v3282_v24  ;;  %v4049_v24 = vld [vmem:[#allocation2 + $0x5d0] sm:$0xff]  ;;  %v4568_v35 = vld [vmem:[#allocation2 + $0x1608] sm:$0xff] }
 0x42b   : > { %5075 = vmatprep.subr.bf16.mxu0 %v4440_v40  ;;  %5251 = vmatprep.subr.bf16.mxu1 %v3946_v42  ;;  %v3828_v40 = vmax.f32 %v3766_v33, 0.0  ;;  %v3843_v42 = vmax.f32 %v3768_v34, 0.0  ;;  %v4559_v33 = vld [vmem:[#allocation2 + $0x15c0] sm:$0xff]  ;;  %v4065_v34 = vld [vmem:[#allocation2 + $0x650] sm:$0xff] }
 0x42e   : > { %5076 = vmatpush1.bf16.msra.mxu0 %v4439_v44  ;;  %5252 = vmatpush1.bf16.msra.mxu1 %v3945_v45  ;;  %v4001_v44 = vld [vmem:[#allocation2 + $0x450] sm:$0xff]  ;;  %v3844_v45 = vmax.f32 %v3770_v39, 0.0  ;;  %v4567_v39 = vld [vmem:[#allocation2 + $0x1600] sm:$0xff] }
 0x42f   : > { %5077 = vmatprep.subr.bf16.mxu0 %v4448_v47  ;;  %5253 = vmatprep.subr.bf16.mxu1 %v3954_v48  ;;  %v4504_v47 = vld [vmem:[#allocation2 + $0x1408] sm:$0xff]  ;;  %v4010_v48 = vld [vmem:[#allocation2 + $0x498] sm:$0xff] }
 0x432   : > { %5078 = vmatpush1.bf16.msra.mxu0 %v4447_v49  ;;  %5254 = vmatpush1.bf16.msra.mxu1 %v3953_v50  ;;  %v8956_v49 = vpack.c.bf16 %v3843_v42, %v3827_v31  ;;  %v8958_v50 = vpack.c.bf16 %v3844_v45, %v3828_v40  ;;  %v4066_v31 = vld [vmem:[#allocation2 + $0x658] sm:$0xff]  ;;  %v4073_v40 = vld [vmem:[#allocation2 + $0x690] sm:$0xff]  ;;  %v4576_v42 = vld [vmem:[#allocation2 + $0x1648] sm:$0xff] }
 0x433   : > { %5079 = vmatprep.subr.bf16.mxu0 %v4456_v53  ;;  %5255 = vmatprep.subr.bf16.mxu1 %v3962_v54  ;;  %v4503_v53 = vld [vmem:[#allocation2 + $0x1400] sm:$0xff]  ;;  %v4009_v54 = vld [vmem:[#allocation2 + $0x490] sm:$0xff] }
 0x434   : > { %v4081_v45 = vld [vmem:[#allocation2 + $0x6d0] sm:$0xff] }
 0x436   : > { %5080 = vmatpush1.bf16.msra.mxu0 %v4455_v55  ;;  %5256 = vmatpush1.bf16.msra.mxu1 %v3961_v56  ;;  %v4512_v55 = vld [vmem:[#allocation2 + $0x1448] sm:$0xff]  ;;  %v4018_v56 = vld [vmem:[#allocation2 + $0x4d8] sm:$0xff] }
 0x437   : > { %5081 = vmatprep.subr.bf16.mxu0 %v4464_v57  ;;  %5257 = vmatprep.subr.bf16.mxu1 %v3970_v60  ;;  %v4511_v57 = vld [vmem:[#allocation2 + $0x1440] sm:$0xff]  ;;  %v4017_v60 = vld [vmem:[#allocation2 + $0x4d0] sm:$0xff] }
 0x43a   : > { %5082 = vmatpush1.bf16.msra.mxu0 %v4463_v61  ;;  %5258 = vmatpush1.bf16.msra.mxu1 %v3969_v62  ;;  %v4520_v61 = vld [vmem:[#allocation2 + $0x1488] sm:$0xff]  ;;  %v4026_v62 = vld [vmem:[#allocation2 + $0x518] sm:$0xff] }
 0x43b   : > { %5083 = vmatprep.subr.bf16.mxu0 %v4472_v0  ;;  %5259 = vmatprep.subr.bf16.mxu1 %v3978_v1  ;;  %v4519_v0 = vld [vmem:[#allocation2 + $0x1480] sm:$0xff]  ;;  %v4025_v1 = vld [vmem:[#allocation2 + $0x510] sm:$0xff] }
 0x43e   : > { %5084 = vmatpush1.bf16.msra.mxu0 %v4471_v2  ;;  %5260 = vmatpush1.bf16.msra.mxu1 %v3977_v4  ;;  %v4528_v2 = vld [vmem:[#allocation2 + $0x14c8] sm:$0xff]  ;;  %v4034_v4 = vld [vmem:[#allocation2 + $0x558] sm:$0xff] }
 0x43f   : > { %5085 = vmatprep.subr.bf16.mxu0 %v4480_v7  ;;  %5261 = vmatprep.subr.bf16.mxu1 %v3986_v8  ;;  %v4527_v7 = vld [vmem:[#allocation2 + $0x14c0] sm:$0xff]  ;;  %v4033_v8 = vld [vmem:[#allocation2 + $0x550] sm:$0xff] }
 0x442   : > { %5086 = vmatpush1.bf16.msra.mxu0 %v4479_v10  ;;  %5262 = vmatpush1.bf16.msra.mxu1 %v3985_v12  ;;  %v4536_v10 = vld [vmem:[#allocation2 + $0x1508] sm:$0xff]  ;;  %v4042_v12 = vld [vmem:[#allocation2 + $0x598] sm:$0xff] }
 0x443   : > { %5087 = vmatprep.subr.bf16.mxu0 %v4488_v18  ;;  %5274 = vmatprep.subr.bf16.mxu1 %v3994_v19  ;;  %v4544_v18 = vld [vmem:[#allocation2 + $0x1548] sm:$0xff]  ;;  %v4050_v19 = vld [vmem:[#allocation2 + $0x5d8] sm:$0xff] }
 0x445   : > { %5264 = vmatmul.mubr.bf16.vlgmr.msra.gmra.mrb[20].mxu1 %v8896_v43 }
 0x446   : > { %5088 = vmatpush1.bf16.msra.mxu0 %v4487_v27  ;;  %5275 = vmatpush1.bf16.msra.mxu1 %v3993_v28  ;;  %v4058_v27 = vld [vmem:[#allocation2 + $0x618] sm:$0xff]  ;;  %v4551_v28 = vld [vmem:[#allocation2 + $0x1580] sm:$0xff] }
 0x447   : > { %5306 = vmatprep.mubr.bf16.mxu1 %v8908_v63  ;;  %5089 = vmatprep.subr.bf16.mxu0 %v4496_v30  ;;  %v4560_v30 = vld [vmem:[#allocation2 + $0x15c8] sm:$0xff] }
 0x448   : > { %5276 = vmatprep.subr.bf16.mxu1 %v4002_v36  ;;  %v4074_v36 = vld [vmem:[#allocation2 + $0x698] sm:$0xff] }
 0x44a   : > { %5090 = vmatpush1.bf16.msra.mxu0 %v4495_v59  ;;  %5277 = vmatpush1.bf16.msra.mxu1 %v4001_v44  ;;  %v4082_v59 = vld [vmem:[#allocation2 + $0x6d8] sm:$0xff]  ;;  %v4575_v44 = vld [vmem:[#allocation2 + $0x1640] sm:$0xff] }
 0x44b   : > { %5102 = vmatprep.subr.bf16.mxu0 %v4504_v47  ;;  %5278 = vmatprep.subr.bf16.mxu1 %v4010_v48  ;;  %v4584_v47 = vld [vmem:[#allocation2 + $0x1688] sm:$0xff]  ;;  %v4090_v48 = vld [vmem:[#allocation2 + $0x718] sm:$0xff] }
 0x44d   : > { %5092 = vmatmul.mubr.bf16.vlgmr.msra.gmra.mrb[16].mxu0 %v8930_v3 }
 0x44e   : > { %5103 = vmatpush1.bf16.msra.mxu0 %v4503_v53  ;;  %5279 = vmatpush1.bf16.msra.mxu1 %v4009_v54  ;;  %v4583_v53 = vld [vmem:[#allocation2 + $0x1680] sm:$0xff]  ;;  %v4089_v54 = vld [vmem:[#allocation2 + $0x710] sm:$0xff] }
 0x44f   : > { %5104 = vmatprep.subr.bf16.mxu0 %v4512_v55  ;;  %5280 = vmatprep.subr.bf16.mxu1 %v4018_v56  ;;  %v4592_v55 = vld [vmem:[#allocation2 + $0x16c8] sm:$0xff]  ;;  %v4098_v56 = vld [vmem:[#allocation2 + $0x758] sm:$0xff] }
 0x450   : > { %5134 = vmatprep.mubr.bf16.mxu0 %v8938_v21 }
 0x452   : > { %5105 = vmatpush1.bf16.msra.mxu0 %v4511_v57  ;;  %5281 = vmatpush1.bf16.msra.mxu1 %v4017_v60  ;;  %v4591_v57 = vld [vmem:[#allocation2 + $0x16c0] sm:$0xff]  ;;  %v4097_v60 = vld [vmem:[#allocation2 + $0x750] sm:$0xff] }
 0x453   : > { %5106 = vmatprep.subr.bf16.mxu0 %v4520_v61  ;;  %5282 = vmatprep.subr.bf16.mxu1 %v4026_v62  ;;  %v4600_v61 = vld [vmem:[#allocation2 + $0x1708] sm:$0xff]  ;;  %v4106_v62 = vld [vmem:[#allocation2 + $0x798] sm:$0xff] }
 0x456   : > { %5107 = vmatpush1.bf16.msra.mxu0 %v4519_v0  ;;  %5283 = vmatpush1.bf16.msra.mxu1 %v4025_v1  ;;  %v4599_v0 = vld [vmem:[#allocation2 + $0x1700] sm:$0xff]  ;;  %v4105_v1 = vld [vmem:[#allocation2 + $0x790] sm:$0xff] }
 0x457   : > { %5108 = vmatprep.subr.bf16.mxu0 %v4528_v2  ;;  %5284 = vmatprep.subr.bf16.mxu1 %v4034_v4  ;;  %v4608_v2 = vld [vmem:[#allocation2 + $0x1748] sm:$0xff]  ;;  %v4114_v4 = vld [vmem:[#allocation2 + $0x7d8] sm:$0xff] }
 0x45a   : > { %5109 = vmatpush1.bf16.msra.mxu0 %v4527_v7  ;;  %5285 = vmatpush1.bf16.msra.mxu1 %v4033_v8  ;;  %v4607_v7 = vld [vmem:[#allocation2 + $0x1740] sm:$0xff]  ;;  %v4113_v8 = vld [vmem:[#allocation2 + $0x7d0] sm:$0xff] }
 0x45b   : > { %5110 = vmatprep.subr.bf16.mxu0 %v4536_v10  ;;  %5286 = vmatprep.subr.bf16.mxu1 %v4042_v12  ;;  %v4616_v10 = vld [vmem:[#allocation2 + $0x1788] sm:$0xff]  ;;  %v4122_v12 = vld [vmem:[#allocation2 + $0x818] sm:$0xff] }
 0x45e   : > { %5111 = vmatpush1.bf16.msra.mxu0 %v4535_v14  ;;  %5287 = vmatpush1.bf16.msra.mxu1 %v4041_v16  ;;  %v4615_v14 = vld [vmem:[#allocation2 + $0x1780] sm:$0xff]  ;;  %v4121_v16 = vld [vmem:[#allocation2 + $0x810] sm:$0xff] }
 0x45f   : > { %5112 = vmatprep.subr.bf16.mxu0 %v4544_v18  ;;  %5288 = vmatprep.subr.bf16.mxu1 %v4050_v19  ;;  %v4624_v18 = vld [vmem:[#allocation2 + $0x17c8] sm:$0xff]  ;;  %v4130_v19 = vld [vmem:[#allocation2 + $0x858] sm:$0xff] }
 0x462   : > { %5113 = vmatpush1.bf16.msra.mxu0 %v4543_v23  ;;  %5289 = vmatpush1.bf16.msra.mxu1 %v4049_v24  ;;  %v4623_v23 = vld [vmem:[#allocation2 + $0x17c0] sm:$0xff]  ;;  %v4129_v24 = vld [vmem:[#allocation2 + $0x850] sm:$0xff] }
 0x463   : > { %5114 = vmatprep.subr.bf16.mxu0 %v4552_v26  ;;  %5290 = vmatprep.subr.bf16.mxu1 %v4058_v27  ;;  %v4632_v26 = vld [vmem:[#allocation2 + $0x1808] sm:$0xff]  ;;  %v4138_v27 = vld [vmem:[#allocation2 + $0x898] sm:$0xff] }
 0x466   : > { %5115 = vmatpush1.bf16.msra.mxu0 %v4551_v28  ;;  %5291 = vmatpush1.bf16.msra.mxu1 %v4057_v29  ;;  %v4631_v28 = vld [vmem:[#allocation2 + $0x1800] sm:$0xff]  ;;  %v4137_v29 = vld [vmem:[#allocation2 + $0x890] sm:$0xff] }
 0x467   : > { %5116 = vmatprep.subr.bf16.mxu0 %v4560_v30  ;;  %5292 = vmatprep.subr.bf16.mxu1 %v4066_v31  ;;  %v4640_v30 = vld [vmem:[#allocation2 + $0x1848] sm:$0xff]  ;;  %v4146_v31 = vld [vmem:[#allocation2 + $0x8d8] sm:$0xff] }
 0x46a   : > { %5117 = vmatpush1.bf16.msra.mxu0 %v4559_v33  ;;  %5293 = vmatpush1.bf16.msra.mxu1 %v4065_v34  ;;  %v4639_v33 = vld [vmem:[#allocation2 + $0x1840] sm:$0xff]  ;;  %v4145_v34 = vld [vmem:[#allocation2 + $0x8d0] sm:$0xff] }
 0x46b   : > { %5118 = vmatprep.subr.bf16.mxu0 %v4568_v35  ;;  %5294 = vmatprep.subr.bf16.mxu1 %v4074_v36  ;;  %v4648_v35 = vld [vmem:[#allocation2 + $0x1888] sm:$0xff]  ;;  %v4154_v36 = vld [vmem:[#allocation2 + $0x918] sm:$0xff] }
 0x46e   : > { %5119 = vmatpush1.bf16.msra.mxu0 %v4567_v39  ;;  %5295 = vmatpush1.bf16.msra.mxu1 %v4073_v40  ;;  %v4647_v39 = vld [vmem:[#allocation2 + $0x1880] sm:$0xff]  ;;  %v4153_v40 = vld [vmem:[#allocation2 + $0x910] sm:$0xff] }
 0x46f   : > { %5120 = vmatprep.subr.bf16.mxu0 %v4576_v42  ;;  %5296 = vmatprep.subr.bf16.mxu1 %v4082_v59  ;;  %v4656_v42 = vld [vmem:[#allocation2 + $0x18c8] sm:$0xff]  ;;  %v4162_v59 = vld [vmem:[#allocation2 + $0x958] sm:$0xff] }
 0x472   : > { %5121 = vmatpush1.bf16.msra.mxu0 %v4575_v44  ;;  %5297 = vmatpush1.bf16.msra.mxu1 %v4081_v45  ;;  %v4655_v44 = vld [vmem:[#allocation2 + $0x18c0] sm:$0xff]  ;;  %v4161_v45 = vld [vmem:[#allocation2 + $0x950] sm:$0xff] }
 0x473   : > { %5122 = vmatprep.subr.bf16.mxu0 %v4584_v47  ;;  %5298 = vmatprep.subr.bf16.mxu1 %v4090_v48  ;;  %v4664_v47 = vld [vmem:[#allocation2 + $0x1908] sm:$0xff]  ;;  %v4170_v48 = vld [vmem:[#allocation2 + $0x998] sm:$0xff] }
 0x476   : > { %5123 = vmatpush1.bf16.msra.mxu0 %v4583_v53  ;;  %5299 = vmatpush1.bf16.msra.mxu1 %v4089_v54  ;;  %v4663_v53 = vld [vmem:[#allocation2 + $0x1900] sm:$0xff]  ;;  %v4169_v54 = vld [vmem:[#allocation2 + $0x990] sm:$0xff] }
 0x477   : > { %5124 = vmatprep.subr.bf16.mxu0 %v4592_v55  ;;  %5300 = vmatprep.subr.bf16.mxu1 %v4098_v56  ;;  %v4672_v55 = vld [vmem:[#allocation2 + $0x1948] sm:$0xff]  ;;  %v4178_v56 = vld [vmem:[#allocation2 + $0x9d8] sm:$0xff] }
 0x47a   : > { %5125 = vmatpush1.bf16.msra.mxu0 %v4591_v57  ;;  %5301 = vmatpush1.bf16.msra.mxu1 %v4097_v60  ;;  %v4671_v57 = vld [vmem:[#allocation2 + $0x1940] sm:$0xff]  ;;  %v4177_v60 = vld [vmem:[#allocation2 + $0x9d0] sm:$0xff] }
 0x47b   : > { %5126 = vmatprep.subr.bf16.mxu0 %v4600_v61  ;;  %5302 = vmatprep.subr.bf16.mxu1 %v4106_v62  ;;  %v4680_v61 = vld [vmem:[#allocation2 + $0x1988] sm:$0xff]  ;;  %v4186_v62 = vld [vmem:[#allocation2 + $0xa18] sm:$0xff] }
 0x47e   : > { %5127 = vmatpush1.bf16.msra.mxu0 %v4599_v0  ;;  %5303 = vmatpush1.bf16.msra.mxu1 %v4105_v1  ;;  %v4679_v0 = vld [vmem:[#allocation2 + $0x1980] sm:$0xff]  ;;  %v4185_v1 = vld [vmem:[#allocation2 + $0xa10] sm:$0xff] }
 0x47f   : > { %5128 = vmatprep.subr.bf16.mxu0 %v4608_v2  ;;  %5304 = vmatprep.subr.bf16.mxu1 %v4114_v4  ;;  %v4688_v2 = vld [vmem:[#allocation2 + $0x19c8] sm:$0xff]  ;;  %v4194_v4 = vld [vmem:[#allocation2 + $0xa58] sm:$0xff] }
 0x482   : > { %5129 = vmatpush1.bf16.msra.mxu0 %v4607_v7  ;;  %5305 = vmatpush1.bf16.msra.mxu1 %v4113_v8  ;;  %v4687_v7 = vld [vmem:[#allocation2 + $0x19c0] sm:$0xff]  ;;  %v4193_v8 = vld [vmem:[#allocation2 + $0xa50] sm:$0xff] }
 0x483   : > { %5130 = vmatprep.subr.bf16.mxu0 %v4616_v10  ;;  %5317 = vmatprep.subr.bf16.mxu1 %v4122_v12  ;;  %v4696_v10 = vld [vmem:[#allocation2 + $0x1a08] sm:$0xff]  ;;  %v4202_v12 = vld [vmem:[#allocation2 + $0xa98] sm:$0xff] }
 0x485   : > { %5307 = vmatmul.mubr.bf16.vlgmr.msra.gmra.mrb[20].mxu1 %v8903_v58 }
 0x486   : > { %5131 = vmatpush1.bf16.msra.mxu0 %v4615_v14  ;;  %5318 = vmatpush1.bf16.msra.mxu1 %v4121_v16  ;;  %v4695_v14 = vld [vmem:[#allocation2 + $0x1a00] sm:$0xff]  ;;  %v4201_v16 = vld [vmem:[#allocation2 + $0xa90] sm:$0xff] }
 0x487   : > { %5349 = vmatprep.mubr.bf16.mxu1 %v8917_v25  ;;  %5132 = vmatprep.subr.bf16.mxu0 %v4624_v18  ;;  %v4704_v18 = vld [vmem:[#allocation2 + $0x1a48] sm:$0xff] }
 0x488   : > { %5319 = vmatprep.subr.bf16.mxu1 %v4130_v19  ;;  %v4210_v19 = vld [vmem:[#allocation2 + $0xad8] sm:$0xff] }
 0x48a   : > { %5133 = vmatpush1.bf16.msra.mxu0 %v4623_v23  ;;  %5320 = vmatpush1.bf16.msra.mxu1 %v4129_v24  ;;  %v4703_v23 = vld [vmem:[#allocation2 + $0x1a40] sm:$0xff]  ;;  %v4209_v24 = vld [vmem:[#allocation2 + $0xad0] sm:$0xff] }
 0x48b   : > { %5145 = vmatprep.subr.bf16.mxu0 %v4632_v26  ;;  %5321 = vmatprep.subr.bf16.mxu1 %v4138_v27  ;;  %v4712_v26 = vld [vmem:[#allocation2 + $0x1a88] sm:$0xff]  ;;  %v4218_v27 = vld [vmem:[#allocation2 + $0xb18] sm:$0xff] }
 0x48d   : > { %5135 = vmatmul.mubr.bf16.vlgmr.msra.gmra.mrb[16].mxu0 %v8936_v20 }
 0x48e   : > { %5146 = vmatpush1.bf16.msra.mxu0 %v4631_v28  ;;  %5322 = vmatpush1.bf16.msra.mxu1 %v4137_v29  ;;  %v4711_v28 = vld [vmem:[#allocation2 + $0x1a80] sm:$0xff]  ;;  %v4217_v29 = vld [vmem:[#allocation2 + $0xb10] sm:$0xff] }
 0x48f   : > { %5147 = vmatprep.subr.bf16.mxu0 %v4640_v30  ;;  %5323 = vmatprep.subr.bf16.mxu1 %v4146_v31  ;;  %v4720_v30 = vld [vmem:[#allocation2 + $0x1ac8] sm:$0xff]  ;;  %v4226_v31 = vld [vmem:[#allocation2 + $0xb58] sm:$0xff] }
 0x490   : > { %5177 = vmatprep.mubr.bf16.mxu0 %v8958_v50 }
 0x492   : > { %5148 = vmatpush1.bf16.msra.mxu0 %v4639_v33  ;;  %5324 = vmatpush1.bf16.msra.mxu1 %v4145_v34  ;;  %v4719_v33 = vld [vmem:[#allocation2 + $0x1ac0] sm:$0xff]  ;;  %v4225_v34 = vld [vmem:[#allocation2 + $0xb50] sm:$0xff] }
 0x493   : > { %5149 = vmatprep.subr.bf16.mxu0 %v4648_v35  ;;  %5325 = vmatprep.subr.bf16.mxu1 %v4154_v36  ;;  %v4728_v35 = vld [vmem:[#allocation2 + $0x1b08] sm:$0xff]  ;;  %v4234_v36 = vld [vmem:[#allocation2 + $0xb98] sm:$0xff] }
 0x496   : > { %5150 = vmatpush1.bf16.msra.mxu0 %v4647_v39  ;;  %5326 = vmatpush1.bf16.msra.mxu1 %v4153_v40  ;;  %v4727_v39 = vld [vmem:[#allocation2 + $0x1b00] sm:$0xff]  ;;  %v4233_v40 = vld [vmem:[#allocation2 + $0xb90] sm:$0xff] }
 0x497   : > { %5151 = vmatprep.subr.bf16.mxu0 %v4656_v42  ;;  %5327 = vmatprep.subr.bf16.mxu1 %v4162_v59  ;;  %v4736_v42 = vld [vmem:[#allocation2 + $0x1b48] sm:$0xff]  ;;  %v4242_v59 = vld [vmem:[#allocation2 + $0xbd8] sm:$0xff] }
 0x49a   : > { %5152 = vmatpush1.bf16.msra.mxu0 %v4655_v44  ;;  %5328 = vmatpush1.bf16.msra.mxu1 %v4161_v45  ;;  %v4735_v44 = vld [vmem:[#allocation2 + $0x1b40] sm:$0xff]  ;;  %v4241_v45 = vld [vmem:[#allocation2 + $0xbd0] sm:$0xff] }
 0x49b   : > { %5153 = vmatprep.subr.bf16.mxu0 %v4664_v47  ;;  %5329 = vmatprep.subr.bf16.mxu1 %v4170_v48  ;;  %v4744_v47 = vld [vmem:[#allocation2 + $0x1b88] sm:$0xff]  ;;  %v4250_v48 = vld [vmem:[#allocation2 + $0xc18] sm:$0xff] }
 0x49e   : > { %5154 = vmatpush1.bf16.msra.mxu0 %v4663_v53  ;;  %5330 = vmatpush1.bf16.msra.mxu1 %v4169_v54  ;;  %v4743_v53 = vld [vmem:[#allocation2 + $0x1b80] sm:$0xff]  ;;  %v4249_v54 = vld [vmem:[#allocation2 + $0xc10] sm:$0xff] }
 0x49f   : > { %5155 = vmatprep.subr.bf16.mxu0 %v4672_v55  ;;  %5331 = vmatprep.subr.bf16.mxu1 %v4178_v56  ;;  %v4752_v55 = vld [vmem:[#allocation2 + $0x1bc8] sm:$0xff]  ;;  %v4258_v56 = vld [vmem:[#allocation2 + $0xc58] sm:$0xff] }
 0x4a2   : > { %5156 = vmatpush1.bf16.msra.mxu0 %v4671_v57  ;;  %5332 = vmatpush1.bf16.msra.mxu1 %v4177_v60  ;;  %v4751_v57 = vld [vmem:[#allocation2 + $0x1bc0] sm:$0xff]  ;;  %v4257_v60 = vld [vmem:[#allocation2 + $0xc50] sm:$0xff] }
 0x4a3   : > { %5157 = vmatprep.subr.bf16.mxu0 %v4680_v61  ;;  %5333 = vmatprep.subr.bf16.mxu1 %v4186_v62  ;;  %v4760_v61 = vld [vmem:[#allocation2 + $0x1c08] sm:$0xff]  ;;  %v4266_v62 = vld [vmem:[#allocation2 + $0xc98] sm:$0xff] }
 0x4a6   : > { %5158 = vmatpush1.bf16.msra.mxu0 %v4679_v0  ;;  %5334 = vmatpush1.bf16.msra.mxu1 %v4185_v1  ;;  %v4759_v0 = vld [vmem:[#allocation2 + $0x1c00] sm:$0xff]  ;;  %v4265_v1 = vld [vmem:[#allocation2 + $0xc90] sm:$0xff] }
 0x4a7   : > { %5159 = vmatprep.subr.bf16.mxu0 %v4688_v2  ;;  %5335 = vmatprep.subr.bf16.mxu1 %v4194_v4  ;;  %v4768_v2 = vld [vmem:[#allocation2 + $0x1c48] sm:$0xff]  ;;  %v4274_v4 = vld [vmem:[#allocation2 + $0xcd8] sm:$0xff] }
 0x4aa   : > { %5160 = vmatpush1.bf16.msra.mxu0 %v4687_v7  ;;  %5336 = vmatpush1.bf16.msra.mxu1 %v4193_v8  ;;  %v4767_v7 = vld [vmem:[#allocation2 + $0x1c40] sm:$0xff]  ;;  %v4273_v8 = vld [vmem:[#allocation2 + $0xcd0] sm:$0xff] }
 0x4ab   : > { %5161 = vmatprep.subr.bf16.mxu0 %v4696_v10  ;;  %5337 = vmatprep.subr.bf16.mxu1 %v4202_v12  ;;  %v4776_v10 = vld [vmem:[#allocation2 + $0x1c88] sm:$0xff]  ;;  %v4282_v12 = vld [vmem:[#allocation2 + $0xd18] sm:$0xff] }
 0x4ae   : > { %5162 = vmatpush1.bf16.msra.mxu0 %v4695_v14  ;;  %5338 = vmatpush1.bf16.msra.mxu1 %v4201_v16  ;;  %v4775_v14 = vld [vmem:[#allocation2 + $0x1c80] sm:$0xff]  ;;  %v4281_v16 = vld [vmem:[#allocation2 + $0xd10] sm:$0xff] }
 0x4af   : > { %5163 = vmatprep.subr.bf16.mxu0 %v4704_v18  ;;  %5339 = vmatprep.subr.bf16.mxu1 %v4210_v19  ;;  %v4784_v18 = vld [vmem:[#allocation2 + $0x1cc8] sm:$0xff]  ;;  %v4290_v19 = vld [vmem:[#allocation2 + $0xd58] sm:$0xff] }
 0x4b2   : > { %5164 = vmatpush1.bf16.msra.mxu0 %v4703_v23  ;;  %5340 = vmatpush1.bf16.msra.mxu1 %v4209_v24  ;;  %v4783_v23 = vld [vmem:[#allocation2 + $0x1cc0] sm:$0xff] }
 0x4b3   : > { %5165 = vmatprep.subr.bf16.mxu0 %v4712_v26  ;;  %5341 = vmatprep.subr.bf16.mxu1 %v4218_v27  ;;  %v4289_v26 = vld [vmem:[#allocation2 + $0xd50] sm:$0xff]  ;;  %v4792_v27 = vld [vmem:[#allocation2 + $0x1d08] sm:$0xff] }
 0x4b6   : > { %5166 = vmatpush1.bf16.msra.mxu0 %v4711_v28  ;;  %5342 = vmatpush1.bf16.msra.mxu1 %v4217_v29  ;;  %v4298_v29 = vld [vmem:[#allocation2 + $0xd98] sm:$0xff] }
 0x4b7   : > { %5167 = vmatprep.subr.bf16.mxu0 %v4720_v30  ;;  %5343 = vmatprep.subr.bf16.mxu1 %v4226_v31 }
 0x4ba   : > { %5168 = vmatpush1.bf16.msra.mxu0 %v4719_v33  ;;  %5344 = vmatpush1.bf16.msra.mxu1 %v4225_v34  ;;  %v4791_v33 = vld [vmem:[#allocation2 + $0x1d00] sm:$0xff]  ;;  %v4297_v34 = vld [vmem:[#allocation2 + $0xd90] sm:$0xff] }
 0x4bb   : > { %5169 = vmatprep.subr.bf16.mxu0 %v4728_v35  ;;  %5345 = vmatprep.subr.bf16.mxu1 %v4234_v36  ;;  %v4800_v35 = vld [vmem:[#allocation2 + $0x1d48] sm:$0xff]  ;;  %v4306_v36 = vld [vmem:[#allocation2 + $0xdd8] sm:$0xff] }
 0x4be   : > { %5170 = vmatpush1.bf16.msra.mxu0 %v4727_v39  ;;  %5346 = vmatpush1.bf16.msra.mxu1 %v4233_v40  ;;  %v4799_v39 = vld [vmem:[#allocation2 + $0x1d40] sm:$0xff]  ;;  %v4305_v40 = vld [vmem:[#allocation2 + $0xdd0] sm:$0xff] }
 0x4bf   : > { %5171 = vmatprep.subr.bf16.mxu0 %v4736_v42  ;;  %5347 = vmatprep.subr.bf16.mxu1 %v4242_v59  ;;  %v4808_v42 = vld [vmem:[#allocation2 + $0x1d88] sm:$0xff]  ;;  %v4314_v59 = vld [vmem:[#allocation2 + $0xe18] sm:$0xff] }
 0x4c2   : > { %5172 = vmatpush1.bf16.msra.mxu0 %v4735_v44  ;;  %5348 = vmatpush1.bf16.msra.mxu1 %v4241_v45  ;;  %v4807_v44 = vld [vmem:[#allocation2 + $0x1d80] sm:$0xff]  ;;  %v4313_v45 = vld [vmem:[#allocation2 + $0xe10] sm:$0xff] }
 0x4c3   : > { %5173 = vmatprep.subr.bf16.mxu0 %v4744_v47  ;;  %5360 = vmatprep.subr.bf16.mxu1 %v4250_v48  ;;  %v4816_v47 = vld [vmem:[#allocation2 + $0x1dc8] sm:$0xff]  ;;  %v4322_v48 = vld [vmem:[#allocation2 + $0xe58] sm:$0xff] }
 0x4c5   : > { %5350 = vmatmul.mubr.bf16.vlgmr.msra.gmra.mrb[20].mxu1 %v8915_v22 }
 0x4c6   : > { %5174 = vmatpush1.bf16.msra.mxu0 %v4743_v53  ;;  %5361 = vmatpush1.bf16.msra.mxu1 %v4249_v54  ;;  %v4815_v53 = vld [vmem:[#allocation2 + $0x1dc0] sm:$0xff]  ;;  %v4321_v54 = vld [vmem:[#allocation2 + $0xe50] sm:$0xff] }
 0x4c7   : > { %5392 = vmatprep.mubr.bf16.mxu1 %v8925_v41  ;;  %5175 = vmatprep.subr.bf16.mxu0 %v4752_v55  ;;  %v4824_v55 = vld [vmem:[#allocation2 + $0x1e08] sm:$0xff] }
 0x4c8   : > { %5362 = vmatprep.subr.bf16.mxu1 %v4258_v56  ;;  %v4330_v56 = vld [vmem:[#allocation2 + $0xe98] sm:$0xff] }
 0x4ca   : > { %5176 = vmatpush1.bf16.msra.mxu0 %v4751_v57  ;;  %5363 = vmatpush1.bf16.msra.mxu1 %v4257_v60  ;;  %v4823_v57 = vld [vmem:[#allocation2 + $0x1e00] sm:$0xff]  ;;  %v4329_v60 = vld [vmem:[#allocation2 + $0xe90] sm:$0xff] }
 0x4cb   : > { %5188 = vmatprep.subr.bf16.mxu0 %v4760_v61  ;;  %5364 = vmatprep.subr.bf16.mxu1 %v4266_v62  ;;  %v4832_v61 = vld [vmem:[#allocation2 + $0x1e48] sm:$0xff]  ;;  %v4338_v62 = vld [vmem:[#allocation2 + $0xed8] sm:$0xff] }
 0x4cd   : > { %5178 = vmatmul.mubr.bf16.vlgmr.msra.gmra.mrb[16].mxu0 %v8956_v49 }
 0x4ce   : > { %5189 = vmatpush1.bf16.msra.mxu0 %v4759_v0  ;;  %5220 = vmatprep.mubr.bf16.mxu0 %v8944_v52  ;;  %v4831_v0 = vld [vmem:[#allocation2 + $0x1e40] sm:$0xff] }
 0x4cf   : > { %5365 = vmatpush1.bf16.msra.mxu1 %v4265_v1  ;;  %5190 = vmatprep.subr.bf16.mxu0 %v4768_v2  ;;  %v4337_v1 = vld [vmem:[#allocation2 + $0xed0] sm:$0xff]  ;;  %v4840_v2 = vld [vmem:[#allocation2 + $0x1e88] sm:$0xff] }
 0x4d0   : > { %5366 = vmatprep.subr.bf16.mxu1 %v4274_v4  ;;  %v4346_v4 = vld [vmem:[#allocation2 + $0xf18] sm:$0xff] }
 0x4d2   : > { %5191 = vmatpush1.bf16.msra.mxu0 %v4767_v7  ;;  %v4839_v7 = vld [vmem:[#allocation2 + $0x1e80] sm:$0xff] }
 0x4d3   : > { %5367 = vmatpush1.bf16.msra.mxu1 %v4273_v8  ;;  %5192 = vmatprep.subr.bf16.mxu0 %v4776_v10  ;;  %v4345_v8 = vld [vmem:[#allocation2 + $0xf10] sm:$0xff]  ;;  %v4848_v10 = vld [vmem:[#allocation2 + $0x1ec8] sm:$0xff] }
 0x4d4   : > { %5368 = vmatprep.subr.bf16.mxu1 %v4282_v12  ;;  %v4354_v12 = vld [vmem:[#allocation2 + $0xf58] sm:$0xff] }
 0x4d6   : > { %5193 = vmatpush1.bf16.msra.mxu0 %v4775_v14  ;;  %v4847_v14 = vld [vmem:[#allocation2 + $0x1ec0] sm:$0xff] }
 0x4d7   : > { %5369 = vmatpush1.bf16.msra.mxu1 %v4281_v16  ;;  %5194 = vmatprep.subr.bf16.mxu0 %v4784_v18  ;;  %v4353_v16 = vld [vmem:[#allocation2 + $0xf50] sm:$0xff]  ;;  %v4856_v18 = vld [vmem:[#allocation2 + $0x1f08] sm:$0xff] }
 0x4d8   : > { %v8970_v24 = vpop.f32.mrb[16].mxu1  ;;  %5370 = vmatprep.subr.bf16.mxu1 %v4290_v19  ;;  %v4362_v19 = vld [vmem:[#allocation2 + $0xf98] sm:$0xff] }
 0x4d9   : > { %v8972_v28 = vpop.f32.mrb[17].mxu1 }
 0x4da   : > { %v8974_v30 = vpop.f32.mrb[18].mxu1  ;;  %5195 = vmatpush1.bf16.msra.mxu0 %v4783_v23  ;;  %v4855_v23 = vld [vmem:[#allocation2 + $0x1f00] sm:$0xff] }
 0x4db   : > { %5371 = vmatpush1.bf16.msra.mxu1 %v4289_v26  ;;  %v8976_v31 = vpop.f32.mrb[19].mxu1  ;;  %5196 = vmatprep.subr.bf16.mxu0 %v4792_v27  ;;  %v4361_v26 = vld [vmem:[#allocation2 + $0xf90] sm:$0xff]  ;;  %v4864_v27 = vld [vmem:[#allocation2 + $0x1f48] sm:$0xff] }
 0x4dc   : > { %5372 = vmatprep.subr.bf16.mxu1 %v4298_v29  ;;  %v4370_v29 = vld [vmem:[#allocation2 + $0xfd8] sm:$0xff] }
 0x4de   : > { %5197 = vmatpush1.bf16.msra.mxu0 %v4791_v33  ;;  %v4863_v33 = vld [vmem:[#allocation2 + $0x1f40] sm:$0xff] }
 0x4df   : > { %5373 = vmatpush1.bf16.msra.mxu1 %v4297_v34  ;;  %5198 = vmatprep.subr.bf16.mxu0 %v4800_v35  ;;  %v4369_v34 = vld [vmem:[#allocation2 + $0xfd0] sm:$0xff]  ;;  %v4872_v35 = vld [vmem:[#allocation2 + $0x1f88] sm:$0xff] }
 0x4e0   : > { %5374 = vmatprep.subr.bf16.mxu1 %v4306_v36  ;;  %v4378_v36 = vld [vmem:[#allocation2 + $0x1018] sm:$0xff] }
 0x4e2   : > { %5199 = vmatpush1.bf16.msra.mxu0 %v4799_v39  ;;  %v4871_v39 = vld [vmem:[#allocation2 + $0x1f80] sm:$0xff] }
 0x4e3   : > { %5375 = vmatpush1.bf16.msra.mxu1 %v4305_v40  ;;  %5200 = vmatprep.subr.bf16.mxu0 %v4808_v42  ;;  %v4377_v40 = vld [vmem:[#allocation2 + $0x1010] sm:$0xff]  ;;  %v4880_v42 = vld [vmem:[#allocation2 + $0x1fc8] sm:$0xff] }
 0x4e4   : > { %5376 = vmatprep.subr.bf16.mxu1 %v4314_v59  ;;  %v4386_v59 = vld [vmem:[#allocation2 + $0x1058] sm:$0xff] }
 0x4e6   : > { %5201 = vmatpush1.bf16.msra.mxu0 %v4807_v44  ;;  %v4879_v44 = vld [vmem:[#allocation2 + $0x1fc0] sm:$0xff] }
 0x4e7   : > { %5377 = vmatpush1.bf16.msra.mxu1 %v4313_v45  ;;  %5202 = vmatprep.subr.bf16.mxu0 %v4816_v47  ;;  %v4385_v45 = vld [vmem:[#allocation2 + $0x1050] sm:$0xff]  ;;  %v3868_v47 = vld [vmem:[#allocation2 + $0x28] sm:$0xff] }
 0x4e8   : > { %5378 = vmatprep.subr.bf16.mxu1 %v4322_v48  ;;  %v4394_v48 = vld [vmem:[#allocation2 + $0x1098] sm:$0xff] }
 0x4ea   : > { %5203 = vmatpush1.bf16.msra.mxu0 %v4815_v53  ;;  %v3867_v53 = vld [vmem:[#allocation2 + $0x20] sm:$0xff] }
 0x4eb   : > { %5379 = vmatpush1.bf16.msra.mxu1 %v4321_v54  ;;  %5204 = vmatprep.subr.bf16.mxu0 %v4824_v55  ;;  %v4393_v54 = vld [vmem:[#allocation2 + $0x1090] sm:$0xff]  ;;  %v3876_v55 = vld [vmem:[#allocation2 + $0x68] sm:$0xff] }
 0x4ec   : > { %5380 = vmatprep.subr.bf16.mxu1 %v4330_v56  ;;  %v4402_v56 = vld [vmem:[#allocation2 + $0x10d8] sm:$0xff] }
 0x4ee   : > { %5205 = vmatpush1.bf16.msra.mxu0 %v4823_v57  ;;  %v3875_v57 = vld [vmem:[#allocation2 + $0x60] sm:$0xff] }
 0x4ef   : > { %5381 = vmatpush1.bf16.msra.mxu1 %v4329_v60  ;;  %5206 = vmatprep.subr.bf16.mxu0 %v4832_v61  ;;  %v4401_v60 = vld [vmem:[#allocation2 + $0x10d0] sm:$0xff]  ;;  %v3884_v61 = vld [vmem:[#allocation2 + $0xa8] sm:$0xff] }
 0x4f0   : > { %5382 = vmatprep.subr.bf16.mxu1 %v4338_v62  ;;  %v4410_v62 = vld [vmem:[#allocation2 + $0x1118] sm:$0xff] }
 0x4f2   : > { %5207 = vmatpush1.bf16.msra.mxu0 %v4831_v0  ;;  %v3883_v0 = vld [vmem:[#allocation2 + $0xa0] sm:$0xff] }
 0x4f3   : > { %5383 = vmatpush1.bf16.msra.mxu1 %v4337_v1  ;;  %5208 = vmatprep.subr.bf16.mxu0 %v4840_v2  ;;  %v4409_v1 = vld [vmem:[#allocation2 + $0x1110] sm:$0xff]  ;;  %v3892_v2 = vld [vmem:[#allocation2 + $0xe8] sm:$0xff] }
 0x4f4   : > { %5384 = vmatprep.subr.bf16.mxu1 %v4346_v4  ;;  %v4418_v4 = vld [vmem:[#allocation2 + $0x1158] sm:$0xff] }
 0x4f6   : > { %5209 = vmatpush1.bf16.msra.mxu0 %v4839_v7  ;;  %v3891_v7 = vld [vmem:[#allocation2 + $0xe0] sm:$0xff] }
 0x4f7   : > { %5385 = vmatpush1.bf16.msra.mxu1 %v4345_v8  ;;  %5210 = vmatprep.subr.bf16.mxu0 %v4848_v10  ;;  %v4417_v8 = vld [vmem:[#allocation2 + $0x1150] sm:$0xff]  ;;  %v3900_v10 = vld [vmem:[#allocation2 + $0x128] sm:$0xff] }
 0x4f8   : > { %5386 = vmatprep.subr.bf16.mxu1 %v4354_v12  ;;  %v4426_v12 = vld [vmem:[#allocation2 + $0x1198] sm:$0xff] }
 0x4fa   : > { %5211 = vmatpush1.bf16.msra.mxu0 %v4847_v14  ;;  %v3899_v14 = vld [vmem:[#allocation2 + $0x120] sm:$0xff] }
 0x4fb   : > { %5387 = vmatpush1.bf16.msra.mxu1 %v4353_v16  ;;  %5212 = vmatprep.subr.bf16.mxu0 %v4856_v18  ;;  %v4425_v16 = vld [vmem:[#allocation2 + $0x1190] sm:$0xff]  ;;  %v3908_v18 = vld [vmem:[#allocation2 + $0x168] sm:$0xff] }
 0x4fc   : > { %5388 = vmatprep.subr.bf16.mxu1 %v4362_v19  ;;  %v4434_v19 = vld [vmem:[#allocation2 + $0x11d8] sm:$0xff] }
 0x4fe   : > { %5213 = vmatpush1.bf16.msra.mxu0 %v4855_v23  ;;  %v3907_v23 = vld [vmem:[#allocation2 + $0x160] sm:$0xff] }
 0x4ff   : > { %5389 = vmatpush1.bf16.msra.mxu1 %v4361_v26  ;;  %5214 = vmatprep.subr.bf16.mxu0 %v4864_v27  ;;  %v4433_v26 = vld [vmem:[#allocation2 + $0x11d0] sm:$0xff]  ;;  %v3916_v27 = vld [vmem:[#allocation2 + $0x1a8] sm:$0xff] }
 0x500   : > { %5390 = vmatprep.subr.bf16.mxu1 %v4370_v29  ;;  %v4442_v29 = vld [vmem:[#allocation2 + $0x1218] sm:$0xff] }
 0x502   : > { %5215 = vmatpush1.bf16.msra.mxu0 %v4863_v33  ;;  %v3915_v33 = vld [vmem:[#allocation2 + $0x1a0] sm:$0xff] }
 0x503   : > { %5391 = vmatpush1.bf16.msra.mxu1 %v4369_v34  ;;  %5216 = vmatprep.subr.bf16.mxu0 %v4872_v35  ;;  %v4441_v34 = vld [vmem:[#allocation2 + $0x1210] sm:$0xff]  ;;  %v3924_v35 = vld [vmem:[#allocation2 + $0x1e8] sm:$0xff] }
 0x504   : > { %5403 = vmatprep.subr.bf16.mxu1 %v4378_v36  ;;  %v4450_v36 = vld [vmem:[#allocation2 + $0x1258] sm:$0xff] }
 0x506   : > { %5393 = vmatmul.mubr.bf16.vlgmr.msra.gmra.mrb[20].mxu1 %v8922_v38  ;;  %5217 = vmatpush1.bf16.msra.mxu0 %v4871_v39  ;;  %v3923_v39 = vld [vmem:[#allocation2 + $0x1e0] sm:$0xff] }
 0x507   : > { %5404 = vmatpush1.bf16.msra.mxu1 %v4377_v40  ;;  %5435 = vmatprep.mubr.bf16.mxu1 %v8932_v5  ;;  %v4449_v40 = vld [vmem:[#allocation2 + $0x1250] sm:$0xff] }
 0x508   : > { %5218 = vmatprep.subr.bf16.mxu0 %v4880_v42  ;;  %5405 = vmatprep.subr.bf16.mxu1 %v4386_v59  ;;  %v3932_v42 = vld [vmem:[#allocation2 + $0x228] sm:$0xff]  ;;  %v4458_v59 = vld [vmem:[#allocation2 + $0x1298] sm:$0xff] }
 0x50a   : > { %5219 = vmatpush1.bf16.msra.mxu0 %v4879_v44  ;;  %v3931_v44 = vld [vmem:[#allocation2 + $0x220] sm:$0xff] }
 0x50b   : > { %5406 = vmatpush1.bf16.msra.mxu1 %v4385_v45  ;;  %5575 = vmatprep.subr.bf16.mxu0 %v3868_v47  ;;  %v4457_v45 = vld [vmem:[#allocation2 + $0x1290] sm:$0xff]  ;;  %v3940_v47 = vld [vmem:[#allocation2 + $0x268] sm:$0xff] }
 0x50c   : > { %5407 = vmatprep.subr.bf16.mxu1 %v4394_v48  ;;  %v4466_v48 = vld [vmem:[#allocation2 + $0x12d8] sm:$0xff] }
 0x50d   : > { %5221 = vmatmul.mubr.bf16.vlgmr.msra.gmra.mrb[16].mxu0 %v8942_v51 }
 0x50e   : > { %5576 = vmatpush1.bf16.msra.mxu0 %v3867_v53  ;;  %5607 = vmatprep.mubr.bf16.mxu0 %v8898_v46  ;;  %v3939_v53 = vld [vmem:[#allocation2 + $0x260] sm:$0xff] }
 0x50f   : > { %5408 = vmatpush1.bf16.msra.mxu1 %v4393_v54  ;;  %5577 = vmatprep.subr.bf16.mxu0 %v3876_v55  ;;  %v4465_v54 = vld [vmem:[#allocation2 + $0x12d0] sm:$0xff]  ;;  %v3948_v55 = vld [vmem:[#allocation2 + $0x2a8] sm:$0xff] }
 0x510   : > { %5409 = vmatprep.subr.bf16.mxu1 %v4402_v56  ;;  %v4474_v56 = vld [vmem:[#allocation2 + $0x1318] sm:$0xff] }
 0x512   : > { %5578 = vmatpush1.bf16.msra.mxu0 %v3875_v57  ;;  %v3947_v57 = vld [vmem:[#allocation2 + $0x2a0] sm:$0xff] }
 0x513   : > { %5410 = vmatpush1.bf16.msra.mxu1 %v4401_v60  ;;  %5579 = vmatprep.subr.bf16.mxu0 %v3884_v61  ;;  %v4473_v60 = vld [vmem:[#allocation2 + $0x1310] sm:$0xff]  ;;  %v3956_v61 = vld [vmem:[#allocation2 + $0x2e8] sm:$0xff] }
 0x514   : > { %5411 = vmatprep.subr.bf16.mxu1 %v4410_v62  ;;  %v4482_v62 = vld [vmem:[#allocation2 + $0x1358] sm:$0xff] }
 0x516   : > { %5580 = vmatpush1.bf16.msra.mxu0 %v3883_v0  ;;  %v3955_v0 = vld [vmem:[#allocation2 + $0x2e0] sm:$0xff] }
 0x517   : > { %5412 = vmatpush1.bf16.msra.mxu1 %v4409_v1  ;;  %5581 = vmatprep.subr.bf16.mxu0 %v3892_v2  ;;  %v4481_v1 = vld [vmem:[#allocation2 + $0x1350] sm:$0xff]  ;;  %v3964_v2 = vld [vmem:[#allocation2 + $0x328] sm:$0xff] }
 0x518   : > { %5413 = vmatprep.subr.bf16.mxu1 %v4418_v4  ;;  %v4490_v4 = vld [vmem:[#allocation2 + $0x1398] sm:$0xff] }
 0x51a   : > { %5582 = vmatpush1.bf16.msra.mxu0 %v3891_v7  ;;  %v3963_v7 = vld [vmem:[#allocation2 + $0x320] sm:$0xff] }
 0x51b   : > { %5414 = vmatpush1.bf16.msra.mxu1 %v4417_v8  ;;  %5583 = vmatprep.subr.bf16.mxu0 %v3900_v10  ;;  %v4489_v8 = vld [vmem:[#allocation2 + $0x1390] sm:$0xff]  ;;  %v3972_v10 = vld [vmem:[#allocation2 + $0x368] sm:$0xff] }
 0x51c   : > { %5415 = vmatprep.subr.bf16.mxu1 %v4426_v12  ;;  %v4498_v12 = vld [vmem:[#allocation2 + $0x13d8] sm:$0xff] }
 0x51e   : > { %5584 = vmatpush1.bf16.msra.mxu0 %v3899_v14  ;;  %v3971_v14 = vld [vmem:[#allocation2 + $0x360] sm:$0xff] }
 0x51f   : > { %5416 = vmatpush1.bf16.msra.mxu1 %v4425_v16  ;;  %5585 = vmatprep.subr.bf16.mxu0 %v3908_v18  ;;  %v4497_v16 = vld [vmem:[#allocation2 + $0x13d0] sm:$0xff]  ;;  %v3980_v18 = vld [vmem:[#allocation2 + $0x3a8] sm:$0xff] }
 0x520   : > { %5417 = vmatprep.subr.bf16.mxu1 %v4434_v19  ;;  %v4506_v19 = vld [vmem:[#allocation2 + $0x1418] sm:$0xff] }
 0x522   : > { %5586 = vmatpush1.bf16.msra.mxu0 %v3907_v23  ;;  %v3979_v23 = vld [vmem:[#allocation2 + $0x3a0] sm:$0xff] }
 0x523   : > { %5418 = vmatpush1.bf16.msra.mxu1 %v4433_v26  ;;  %5587 = vmatprep.subr.bf16.mxu0 %v3916_v27  ;;  %v4505_v26 = vld [vmem:[#allocation2 + $0x1410] sm:$0xff]  ;;  %v4514_v27 = vld [vmem:[#allocation2 + $0x1458] sm:$0xff] }
 0x524   : > { %5419 = vmatprep.subr.bf16.mxu1 %v4442_v29  ;;  %v3988_v29 = vld [vmem:[#allocation2 + $0x3e8] sm:$0xff] }
 0x526   : > { %5588 = vmatpush1.bf16.msra.mxu0 %v3915_v33  ;;  %v3987_v33 = vld [vmem:[#allocation2 + $0x3e0] sm:$0xff] }
 0x527   : > { %5420 = vmatpush1.bf16.msra.mxu1 %v4441_v34  ;;  %5589 = vmatprep.subr.bf16.mxu0 %v3924_v35  ;;  %v4513_v34 = vld [vmem:[#allocation2 + $0x1450] sm:$0xff]  ;;  %v3996_v35 = vld [vmem:[#allocation2 + $0x428] sm:$0xff] }
 0x528   : > { %5421 = vmatprep.subr.bf16.mxu1 %v4450_v36  ;;  %v4522_v36 = vld [vmem:[#allocation2 + $0x1498] sm:$0xff] }
 0x52a   : > { %5590 = vmatpush1.bf16.msra.mxu0 %v3923_v39  ;;  %v3995_v39 = vld [vmem:[#allocation2 + $0x420] sm:$0xff] }
 0x52b   : > { %5422 = vmatpush1.bf16.msra.mxu1 %v4449_v40  ;;  %5591 = vmatprep.subr.bf16.mxu0 %v3932_v42  ;;  %v4521_v40 = vld [vmem:[#allocation2 + $0x1490] sm:$0xff]  ;;  %v4004_v42 = vld [vmem:[#allocation2 + $0x468] sm:$0xff] }
 0x52c   : > { %5423 = vmatprep.subr.bf16.mxu1 %v4458_v59  ;;  %v4530_v59 = vld [vmem:[#allocation2 + $0x14d8] sm:$0xff] }
 0x52e   : > { %5592 = vmatpush1.bf16.msra.mxu0 %v3931_v44  ;;  %v4003_v44 = vld [vmem:[#allocation2 + $0x460] sm:$0xff] }
 0x52f   : > { %5424 = vmatpush1.bf16.msra.mxu1 %v4457_v45  ;;  %5593 = vmatprep.subr.bf16.mxu0 %v3940_v47  ;;  %v4529_v45 = vld [vmem:[#allocation2 + $0x14d0] sm:$0xff]  ;;  %v4012_v47 = vld [vmem:[#allocation2 + $0x4a8] sm:$0xff] }
 0x530   : > { %5425 = vmatprep.subr.bf16.mxu1 %v4466_v48  ;;  %v4538_v48 = vld [vmem:[#allocation2 + $0x1518] sm:$0xff] }
 0x532   : > { %5594 = vmatpush1.bf16.msra.mxu0 %v3939_v53  ;;  %v4011_v53 = vld [vmem:[#allocation2 + $0x4a0] sm:$0xff] }
 0x533   : > { %5426 = vmatpush1.bf16.msra.mxu1 %v4465_v54  ;;  %5595 = vmatprep.subr.bf16.mxu0 %v3948_v55  ;;  %v4537_v54 = vld [vmem:[#allocation2 + $0x1510] sm:$0xff]  ;;  %v4020_v55 = vld [vmem:[#allocation2 + $0x4e8] sm:$0xff] }
 0x534   : > { %5427 = vmatprep.subr.bf16.mxu1 %v4474_v56  ;;  %v4546_v56 = vld [vmem:[#allocation2 + $0x1558] sm:$0xff] }
 0x536   : > { %5596 = vmatpush1.bf16.msra.mxu0 %v3947_v57  ;;  %v4019_v57 = vld [vmem:[#allocation2 + $0x4e0] sm:$0xff] }
 0x537   : > { %5428 = vmatpush1.bf16.msra.mxu1 %v4473_v60  ;;  %5597 = vmatprep.subr.bf16.mxu0 %v3956_v61  ;;  %v4545_v60 = vld [vmem:[#allocation2 + $0x1550] sm:$0xff]  ;;  %v4028_v61 = vld [vmem:[#allocation2 + $0x528] sm:$0xff] }
 0x538   : > { %5429 = vmatprep.subr.bf16.mxu1 %v4482_v62  ;;  %v4554_v62 = vld [vmem:[#allocation2 + $0x1598] sm:$0xff] }
 0x53a   : > { %5598 = vmatpush1.bf16.msra.mxu0 %v3955_v0  ;;  %v4027_v0 = vld [vmem:[#allocation2 + $0x520] sm:$0xff] }
 0x53b   : > { %5430 = vmatpush1.bf16.msra.mxu1 %v4481_v1  ;;  %5599 = vmatprep.subr.bf16.mxu0 %v3964_v2  ;;  %v4553_v1 = vld [vmem:[#allocation2 + $0x1590] sm:$0xff]  ;;  %v4036_v2 = vld [vmem:[#allocation2 + $0x568] sm:$0xff] }
 0x53c   : > { %5431 = vmatprep.subr.bf16.mxu1 %v4490_v4  ;;  %v4562_v4 = vld [vmem:[#allocation2 + $0x15d8] sm:$0xff] }
 0x53e   : > { %5600 = vmatpush1.bf16.msra.mxu0 %v3963_v7  ;;  %v4035_v7 = vld [vmem:[#allocation2 + $0x560] sm:$0xff] }
 0x53f   : > { %5432 = vmatpush1.bf16.msra.mxu1 %v4489_v8  ;;  %5601 = vmatprep.subr.bf16.mxu0 %v3972_v10  ;;  %v4561_v8 = vld [vmem:[#allocation2 + $0x15d0] sm:$0xff]  ;;  %v4044_v10 = vld [vmem:[#allocation2 + $0x5a8] sm:$0xff] }
 0x540   : > { %5433 = vmatprep.subr.bf16.mxu1 %v4498_v12  ;;  %v4570_v12 = vld [vmem:[#allocation2 + $0x1618] sm:$0xff] }
 0x542   : > { %5602 = vmatpush1.bf16.msra.mxu0 %v3971_v14  ;;  %v4043_v14 = vld [vmem:[#allocation2 + $0x5a0] sm:$0xff] }
 0x543   : > { %5434 = vmatpush1.bf16.msra.mxu1 %v4497_v16  ;;  %5603 = vmatprep.subr.bf16.mxu0 %v3980_v18  ;;  %v4569_v16 = vld [vmem:[#allocation2 + $0x1610] sm:$0xff]  ;;  %v4052_v18 = vld [vmem:[#allocation2 + $0x5e8] sm:$0xff] }
 0x544   : > { %5446 = vmatprep.subr.bf16.mxu1 %v4506_v19  ;;  %v4578_v19 = vld [vmem:[#allocation2 + $0x1658] sm:$0xff] }
 0x546   : > { %5436 = vmatmul.mubr.bf16.vlgmr.msra.gmra.mrb[20].mxu1 %v8930_v3  ;;  %5604 = vmatpush1.bf16.msra.mxu0 %v3979_v23  ;;  %v4051_v23 = vld [vmem:[#allocation2 + $0x5e0] sm:$0xff] }
 0x547   : > { %5447 = vmatpush1.bf16.msra.mxu1 %v4505_v26  ;;  %5478 = vmatprep.mubr.bf16.mxu1 %v8938_v21  ;;  %v4577_v26 = vld [vmem:[#allocation2 + $0x1650] sm:$0xff] }
 0x548   : > { %5448 = vmatprep.subr.bf16.mxu1 %v4514_v27  ;;  %5605 = vmatprep.subr.bf16.mxu0 %v3988_v29  ;;  %v4060_v27 = vld [vmem:[#allocation2 + $0x628] sm:$0xff]  ;;  %v4586_v29 = vld [vmem:[#allocation2 + $0x1698] sm:$0xff] }
 0x54a   : > { %5606 = vmatpush1.bf16.msra.mxu0 %v3987_v33  ;;  %v4059_v33 = vld [vmem:[#allocation2 + $0x620] sm:$0xff] }
 0x54b   : > { %5449 = vmatpush1.bf16.msra.mxu1 %v4513_v34  ;;  %5618 = vmatprep.subr.bf16.mxu0 %v3996_v35  ;;  %v4585_v34 = vld [vmem:[#allocation2 + $0x1690] sm:$0xff]  ;;  %v4068_v35 = vld [vmem:[#allocation2 + $0x668] sm:$0xff] }
 0x54c   : > { %5450 = vmatprep.subr.bf16.mxu1 %v4522_v36  ;;  %v4594_v36 = vld [vmem:[#allocation2 + $0x16d8] sm:$0xff] }
 0x54d   : > { %5608 = vmatmul.mubr.bf16.vlgmr.msra.gmra.mrb[20].mxu0 %v8896_v43 }
 0x54e   : > { %5619 = vmatpush1.bf16.msra.mxu0 %v3995_v39  ;;  %5650 = vmatprep.mubr.bf16.mxu0 %v8908_v63  ;;  %v4067_v39 = vld [vmem:[#allocation2 + $0x660] sm:$0xff] }
 0x54f   : > { %5451 = vmatpush1.bf16.msra.mxu1 %v4521_v40  ;;  %5620 = vmatprep.subr.bf16.mxu0 %v4004_v42  ;;  %v4593_v40 = vld [vmem:[#allocation2 + $0x16d0] sm:$0xff]  ;;  %v4076_v42 = vld [vmem:[#allocation2 + $0x6a8] sm:$0xff] }
 0x550   : > { %5452 = vmatprep.subr.bf16.mxu1 %v4530_v59  ;;  %v4602_v59 = vld [vmem:[#allocation2 + $0x1718] sm:$0xff] }
 0x552   : > { %5621 = vmatpush1.bf16.msra.mxu0 %v4003_v44  ;;  %v4075_v44 = vld [vmem:[#allocation2 + $0x6a0] sm:$0xff] }
 0x553   : > { %5453 = vmatpush1.bf16.msra.mxu1 %v4529_v45  ;;  %5622 = vmatprep.subr.bf16.mxu0 %v4012_v47  ;;  %v4601_v45 = vld [vmem:[#allocation2 + $0x1710] sm:$0xff]  ;;  %v4084_v47 = vld [vmem:[#allocation2 + $0x6e8] sm:$0xff] }
 0x554   : > { %5454 = vmatprep.subr.bf16.mxu1 %v4538_v48  ;;  %v4610_v48 = vld [vmem:[#allocation2 + $0x1758] sm:$0xff] }
 0x556   : > { %5623 = vmatpush1.bf16.msra.mxu0 %v4011_v53  ;;  %v4083_v53 = vld [vmem:[#allocation2 + $0x6e0] sm:$0xff] }
 0x557   : > { %5455 = vmatpush1.bf16.msra.mxu1 %v4537_v54  ;;  %5624 = vmatprep.subr.bf16.mxu0 %v4020_v55  ;;  %v4609_v54 = vld [vmem:[#allocation2 + $0x1750] sm:$0xff]  ;;  %v4092_v55 = vld [vmem:[#allocation2 + $0x728] sm:$0xff] }
 0x558   : > { %5456 = vmatprep.subr.bf16.mxu1 %v4546_v56  ;;  %v4618_v56 = vld [vmem:[#allocation2 + $0x1798] sm:$0xff] }
 0x55a   : > { %5625 = vmatpush1.bf16.msra.mxu0 %v4019_v57  ;;  %v4091_v57 = vld [vmem:[#allocation2 + $0x720] sm:$0xff] }
 0x55b   : > { %5457 = vmatpush1.bf16.msra.mxu1 %v4545_v60  ;;  %5626 = vmatprep.subr.bf16.mxu0 %v4028_v61  ;;  %v4617_v60 = vld [vmem:[#allocation2 + $0x1790] sm:$0xff]  ;;  %v4100_v61 = vld [vmem:[#allocation2 + $0x768] sm:$0xff] }
 0x55c   : > { %5458 = vmatprep.subr.bf16.mxu1 %v4554_v62  ;;  %v4626_v62 = vld [vmem:[#allocation2 + $0x17d8] sm:$0xff] }
 0x55e   : > { %5627 = vmatpush1.bf16.msra.mxu0 %v4027_v0  ;;  %v4099_v0 = vld [vmem:[#allocation2 + $0x760] sm:$0xff] }
 0x55f   : > { %5459 = vmatpush1.bf16.msra.mxu1 %v4553_v1  ;;  %5628 = vmatprep.subr.bf16.mxu0 %v4036_v2  ;;  %v4625_v1 = vld [vmem:[#allocation2 + $0x17d0] sm:$0xff]  ;;  %v4108_v2 = vld [vmem:[#allocation2 + $0x7a8] sm:$0xff] }
 0x560   : > { %5460 = vmatprep.subr.bf16.mxu1 %v4562_v4  ;;  %v4634_v4 = vld [vmem:[#allocation2 + $0x1818] sm:$0xff] }
 0x562   : > { %5629 = vmatpush1.bf16.msra.mxu0 %v4035_v7  ;;  %v4107_v7 = vld [vmem:[#allocation2 + $0x7a0] sm:$0xff] }
 0x563   : > { %5461 = vmatpush1.bf16.msra.mxu1 %v4561_v8  ;;  %5630 = vmatprep.subr.bf16.mxu0 %v4044_v10  ;;  %v4633_v8 = vld [vmem:[#allocation2 + $0x1810] sm:$0xff]  ;;  %v4642_v10 = vld [vmem:[#allocation2 + $0x1858] sm:$0xff] }
 0x564   : > { %5462 = vmatprep.subr.bf16.mxu1 %v4570_v12  ;;  %v4116_v12 = vld [vmem:[#allocation2 + $0x7e8] sm:$0xff] }
 0x566   : > { %5631 = vmatpush1.bf16.msra.mxu0 %v4043_v14  ;;  %v4115_v14 = vld [vmem:[#allocation2 + $0x7e0] sm:$0xff] }
 0x567   : > { %5463 = vmatpush1.bf16.msra.mxu1 %v4569_v16  ;;  %5632 = vmatprep.subr.bf16.mxu0 %v4052_v18  ;;  %v4641_v16 = vld [vmem:[#allocation2 + $0x1850] sm:$0xff]  ;;  %v4124_v18 = vld [vmem:[#allocation2 + $0x828] sm:$0xff] }
 0x568   : > { %5464 = vmatprep.subr.bf16.mxu1 %v4578_v19  ;;  %v4650_v19 = vld [vmem:[#allocation2 + $0x1898] sm:$0xff] }
 0x56a   : > { %5633 = vmatpush1.bf16.msra.mxu0 %v4051_v23  ;;  %v4123_v23 = vld [vmem:[#allocation2 + $0x820] sm:$0xff] }
 0x56b   : > { %5465 = vmatpush1.bf16.msra.mxu1 %v4577_v26  ;;  %5634 = vmatprep.subr.bf16.mxu0 %v4060_v27  ;;  %v4649_v26 = vld [vmem:[#allocation2 + $0x1890] sm:$0xff]  ;;  %v4132_v27 = vld [vmem:[#allocation2 + $0x868] sm:$0xff] }
 0x56c   : > { %5466 = vmatprep.subr.bf16.mxu1 %v4586_v29  ;;  %v4658_v29 = vld [vmem:[#allocation2 + $0x18d8] sm:$0xff] }
 0x56e   : > { %5635 = vmatpush1.bf16.msra.mxu0 %v4059_v33  ;;  %v4131_v33 = vld [vmem:[#allocation2 + $0x860] sm:$0xff] }
 0x56f   : > { %5467 = vmatpush1.bf16.msra.mxu1 %v4585_v34  ;;  %5636 = vmatprep.subr.bf16.mxu0 %v4068_v35  ;;  %v4657_v34 = vld [vmem:[#allocation2 + $0x18d0] sm:$0xff]  ;;  %v4140_v35 = vld [vmem:[#allocation2 + $0x8a8] sm:$0xff] }
 0x570   : > { %5468 = vmatprep.subr.bf16.mxu1 %v4594_v36  ;;  %v4666_v36 = vld [vmem:[#allocation2 + $0x1918] sm:$0xff] }
 0x572   : > { %5637 = vmatpush1.bf16.msra.mxu0 %v4067_v39  ;;  %v4139_v39 = vld [vmem:[#allocation2 + $0x8a0] sm:$0xff] }
 0x573   : > { %5469 = vmatpush1.bf16.msra.mxu1 %v4593_v40  ;;  %5638 = vmatprep.subr.bf16.mxu0 %v4076_v42  ;;  %v4665_v40 = vld [vmem:[#allocation2 + $0x1910] sm:$0xff]  ;;  %v4148_v42 = vld [vmem:[#allocation2 + $0x8e8] sm:$0xff] }
 0x574   : > { %5470 = vmatprep.subr.bf16.mxu1 %v4602_v59  ;;  %v4674_v59 = vld [vmem:[#allocation2 + $0x1958] sm:$0xff] }
 0x576   : > { %5639 = vmatpush1.bf16.msra.mxu0 %v4075_v44  ;;  %v4147_v44 = vld [vmem:[#allocation2 + $0x8e0] sm:$0xff] }
 0x577   : > { %5471 = vmatpush1.bf16.msra.mxu1 %v4601_v45  ;;  %5640 = vmatprep.subr.bf16.mxu0 %v4084_v47  ;;  %v4673_v45 = vld [vmem:[#allocation2 + $0x1950] sm:$0xff]  ;;  %v4156_v47 = vld [vmem:[#allocation2 + $0x928] sm:$0xff] }
 0x578   : > { %5472 = vmatprep.subr.bf16.mxu1 %v4610_v48  ;;  %v4682_v48 = vld [vmem:[#allocation2 + $0x1998] sm:$0xff] }
 0x57a   : > { %5641 = vmatpush1.bf16.msra.mxu0 %v4083_v53  ;;  %v4155_v53 = vld [vmem:[#allocation2 + $0x920] sm:$0xff] }
 0x57b   : > { %5473 = vmatpush1.bf16.msra.mxu1 %v4609_v54  ;;  %5642 = vmatprep.subr.bf16.mxu0 %v4092_v55  ;;  %v4681_v54 = vld [vmem:[#allocation2 + $0x1990] sm:$0xff]  ;;  %v4164_v55 = vld [vmem:[#allocation2 + $0x968] sm:$0xff] }
 0x57c   : > { %5474 = vmatprep.subr.bf16.mxu1 %v4618_v56  ;;  %v4690_v56 = vld [vmem:[#allocation2 + $0x19d8] sm:$0xff] }
 0x57e   : > { %5643 = vmatpush1.bf16.msra.mxu0 %v4091_v57  ;;  %v4163_v57 = vld [vmem:[#allocation2 + $0x960] sm:$0xff] }
 0x57f   : > { %5475 = vmatpush1.bf16.msra.mxu1 %v4617_v60  ;;  %5644 = vmatprep.subr.bf16.mxu0 %v4100_v61  ;;  %v4689_v60 = vld [vmem:[#allocation2 + $0x19d0] sm:$0xff]  ;;  %v4172_v61 = vld [vmem:[#allocation2 + $0x9a8] sm:$0xff] }
 0x580   : > { %5476 = vmatprep.subr.bf16.mxu1 %v4626_v62  ;;  %v4698_v62 = vld [vmem:[#allocation2 + $0x1a18] sm:$0xff] }
 0x582   : > { %5645 = vmatpush1.bf16.msra.mxu0 %v4099_v0  ;;  %v4171_v0 = vld [vmem:[#allocation2 + $0x9a0] sm:$0xff] }
 0x583   : > { %5477 = vmatpush1.bf16.msra.mxu1 %v4625_v1  ;;  %5646 = vmatprep.subr.bf16.mxu0 %v4108_v2  ;;  %v4697_v1 = vld [vmem:[#allocation2 + $0x1a10] sm:$0xff]  ;;  %v4180_v2 = vld [vmem:[#allocation2 + $0x9e8] sm:$0xff] }
 0x584   : > { %5489 = vmatprep.subr.bf16.mxu1 %v4634_v4  ;;  %v4706_v4 = vld [vmem:[#allocation2 + $0x1a58] sm:$0xff] }
 0x586   : > { %5479 = vmatmul.mubr.bf16.vlgmr.msra.gmra.mrb[20].mxu1 %v8936_v20  ;;  %5647 = vmatpush1.bf16.msra.mxu0 %v4107_v7  ;;  %v4179_v7 = vld [vmem:[#allocation2 + $0x9e0] sm:$0xff] }
 0x587   : > { %5490 = vmatpush1.bf16.msra.mxu1 %v4633_v8  ;;  %5521 = vmatprep.mubr.bf16.mxu1 %v8958_v50  ;;  %v4705_v8 = vld [vmem:[#allocation2 + $0x1a50] sm:$0xff] }
 0x588   : > { %5491 = vmatprep.subr.bf16.mxu1 %v4642_v10  ;;  %5648 = vmatprep.subr.bf16.mxu0 %v4116_v12  ;;  %v4188_v10 = vld [vmem:[#allocation2 + $0xa28] sm:$0xff]  ;;  %v4714_v12 = vld [vmem:[#allocation2 + $0x1a98] sm:$0xff] }
 0x58a   : > { %5649 = vmatpush1.bf16.msra.mxu0 %v4115_v14  ;;  %v4187_v14 = vld [vmem:[#allocation2 + $0xa20] sm:$0xff] }
 0x58b   : > { %5492 = vmatpush1.bf16.msra.mxu1 %v4641_v16  ;;  %5661 = vmatprep.subr.bf16.mxu0 %v4124_v18  ;;  %v4713_v16 = vld [vmem:[#allocation2 + $0x1a90] sm:$0xff]  ;;  %v4196_v18 = vld [vmem:[#allocation2 + $0xa68] sm:$0xff] }
 0x58c   : > { %5493 = vmatprep.subr.bf16.mxu1 %v4650_v19  ;;  %v4722_v19 = vld [vmem:[#allocation2 + $0x1ad8] sm:$0xff] }
 0x58d   : > { %5651 = vmatmul.mubr.bf16.vlgmr.msra.gmra.mrb[20].mxu0 %v8903_v58 }
 0x58e   : > { %5662 = vmatpush1.bf16.msra.mxu0 %v4123_v23  ;;  %5693 = vmatprep.mubr.bf16.mxu0 %v8917_v25  ;;  %v4195_v23 = vld [vmem:[#allocation2 + $0xa60] sm:$0xff] }
 0x58f   : > { %5494 = vmatpush1.bf16.msra.mxu1 %v4649_v26  ;;  %5663 = vmatprep.subr.bf16.mxu0 %v4132_v27  ;;  %v4721_v26 = vld [vmem:[#allocation2 + $0x1ad0] sm:$0xff]  ;;  %v4204_v27 = vld [vmem:[#allocation2 + $0xaa8] sm:$0xff] }
 0x590   : > { %5495 = vmatprep.subr.bf16.mxu1 %v4658_v29  ;;  %v4730_v29 = vld [vmem:[#allocation2 + $0x1b18] sm:$0xff] }
 0x592   : > { %5664 = vmatpush1.bf16.msra.mxu0 %v4131_v33  ;;  %v4203_v33 = vld [vmem:[#allocation2 + $0xaa0] sm:$0xff] }
 0x593   : > { %5496 = vmatpush1.bf16.msra.mxu1 %v4657_v34  ;;  %5665 = vmatprep.subr.bf16.mxu0 %v4140_v35  ;;  %v4729_v34 = vld [vmem:[#allocation2 + $0x1b10] sm:$0xff]  ;;  %v4212_v35 = vld [vmem:[#allocation2 + $0xae8] sm:$0xff] }
 0x594   : > { %5497 = vmatprep.subr.bf16.mxu1 %v4666_v36  ;;  %v4738_v36 = vld [vmem:[#allocation2 + $0x1b58] sm:$0xff] }
 0x596   : > { %5666 = vmatpush1.bf16.msra.mxu0 %v4139_v39  ;;  %v4211_v39 = vld [vmem:[#allocation2 + $0xae0] sm:$0xff] }
 0x597   : > { %5498 = vmatpush1.bf16.msra.mxu1 %v4665_v40  ;;  %5667 = vmatprep.subr.bf16.mxu0 %v4148_v42  ;;  %v4737_v40 = vld [vmem:[#allocation2 + $0x1b50] sm:$0xff]  ;;  %v4220_v42 = vld [vmem:[#allocation2 + $0xb28] sm:$0xff] }
 0x598   : > { %5499 = vmatprep.subr.bf16.mxu1 %v4674_v59  ;;  %v4746_v59 = vld [vmem:[#allocation2 + $0x1b98] sm:$0xff] }
 0x59a   : > { %5668 = vmatpush1.bf16.msra.mxu0 %v4147_v44  ;;  %v4219_v44 = vld [vmem:[#allocation2 + $0xb20] sm:$0xff] }
 0x59b   : > { %5500 = vmatpush1.bf16.msra.mxu1 %v4673_v45  ;;  %5669 = vmatprep.subr.bf16.mxu0 %v4156_v47  ;;  %v4745_v45 = vld [vmem:[#allocation2 + $0x1b90] sm:$0xff]  ;;  %v4228_v47 = vld [vmem:[#allocation2 + $0xb68] sm:$0xff] }
 0x59c   : > { %5501 = vmatprep.subr.bf16.mxu1 %v4682_v48  ;;  %v4754_v48 = vld [vmem:[#allocation2 + $0x1bd8] sm:$0xff] }
 0x59e   : > { %5670 = vmatpush1.bf16.msra.mxu0 %v4155_v53  ;;  %v4227_v53 = vld [vmem:[#allocation2 + $0xb60] sm:$0xff] }
 0x59f   : > { %5502 = vmatpush1.bf16.msra.mxu1 %v4681_v54  ;;  %5671 = vmatprep.subr.bf16.mxu0 %v4164_v55  ;;  %v4753_v54 = vld [vmem:[#allocation2 + $0x1bd0] sm:$0xff]  ;;  %v4236_v55 = vld [vmem:[#allocation2 + $0xba8] sm:$0xff] }
 0x5a0   : > { %5503 = vmatprep.subr.bf16.mxu1 %v4690_v56  ;;  %v4762_v56 = vld [vmem:[#allocation2 + $0x1c18] sm:$0xff] }
 0x5a2   : > { %5672 = vmatpush1.bf16.msra.mxu0 %v4163_v57  ;;  %v4235_v57 = vld [vmem:[#allocation2 + $0xba0] sm:$0xff] }
 0x5a3   : > { %5504 = vmatpush1.bf16.msra.mxu1 %v4689_v60  ;;  %5673 = vmatprep.subr.bf16.mxu0 %v4172_v61  ;;  %v4761_v60 = vld [vmem:[#allocation2 + $0x1c10] sm:$0xff]  ;;  %v4770_v61 = vld [vmem:[#allocation2 + $0x1c58] sm:$0xff] }
 0x5a4   : > { %5505 = vmatprep.subr.bf16.mxu1 %v4698_v62  ;;  %v4244_v62 = vld [vmem:[#allocation2 + $0xbe8] sm:$0xff] }
 0x5a6   : > { %5674 = vmatpush1.bf16.msra.mxu0 %v4171_v0  ;;  %v4243_v0 = vld [vmem:[#allocation2 + $0xbe0] sm:$0xff] }
 0x5a7   : > { %5506 = vmatpush1.bf16.msra.mxu1 %v4697_v1  ;;  %5675 = vmatprep.subr.bf16.mxu0 %v4180_v2  ;;  %v4769_v1 = vld [vmem:[#allocation2 + $0x1c50] sm:$0xff]  ;;  %v4252_v2 = vld [vmem:[#allocation2 + $0xc28] sm:$0xff] }
 0x5a8   : > { %5507 = vmatprep.subr.bf16.mxu1 %v4706_v4  ;;  %v4778_v4 = vld [vmem:[#allocation2 + $0x1c98] sm:$0xff] }
 0x5aa   : > { %5676 = vmatpush1.bf16.msra.mxu0 %v4179_v7  ;;  %v4251_v7 = vld [vmem:[#allocation2 + $0xc20] sm:$0xff] }
 0x5ab   : > { %5508 = vmatpush1.bf16.msra.mxu1 %v4705_v8  ;;  %5677 = vmatprep.subr.bf16.mxu0 %v4188_v10  ;;  %v4777_v8 = vld [vmem:[#allocation2 + $0x1c90] sm:$0xff]  ;;  %v4260_v10 = vld [vmem:[#allocation2 + $0xc68] sm:$0xff] }
 0x5ac   : > { %5509 = vmatprep.subr.bf16.mxu1 %v4714_v12  ;;  %v4786_v12 = vld [vmem:[#allocation2 + $0x1cd8] sm:$0xff] }
 0x5ae   : > { %5678 = vmatpush1.bf16.msra.mxu0 %v4187_v14  ;;  %v4259_v14 = vld [vmem:[#allocation2 + $0xc60] sm:$0xff] }
 0x5af   : > { %5510 = vmatpush1.bf16.msra.mxu1 %v4713_v16  ;;  %5679 = vmatprep.subr.bf16.mxu0 %v4196_v18  ;;  %v4785_v16 = vld [vmem:[#allocation2 + $0x1cd0] sm:$0xff]  ;;  %v4268_v18 = vld [vmem:[#allocation2 + $0xca8] sm:$0xff] }
 0x5b0   : > { %5511 = vmatprep.subr.bf16.mxu1 %v4722_v19  ;;  %v4794_v19 = vld [vmem:[#allocation2 + $0x1d18] sm:$0xff] }
 0x5b2   : > { %5680 = vmatpush1.bf16.msra.mxu0 %v4195_v23  ;;  %v4267_v23 = vld [vmem:[#allocation2 + $0xca0] sm:$0xff] }
 0x5b3   : > { %5512 = vmatpush1.bf16.msra.mxu1 %v4721_v26  ;;  %5681 = vmatprep.subr.bf16.mxu0 %v4204_v27  ;;  %v4793_v26 = vld [vmem:[#allocation2 + $0x1d10] sm:$0xff]  ;;  %v4276_v27 = vld [vmem:[#allocation2 + $0xce8] sm:$0xff] }
 0x5b4   : > { %5513 = vmatprep.subr.bf16.mxu1 %v4730_v29  ;;  %v4802_v29 = vld [vmem:[#allocation2 + $0x1d58] sm:$0xff] }
 0x5b6   : > { %5682 = vmatpush1.bf16.msra.mxu0 %v4203_v33  ;;  %v4275_v33 = vld [vmem:[#allocation2 + $0xce0] sm:$0xff] }
 0x5b7   : > { %5514 = vmatpush1.bf16.msra.mxu1 %v4729_v34  ;;  %5683 = vmatprep.subr.bf16.mxu0 %v4212_v35  ;;  %v4801_v34 = vld [vmem:[#allocation2 + $0x1d50] sm:$0xff]  ;;  %v4284_v35 = vld [vmem:[#allocation2 + $0xd28] sm:$0xff] }
 0x5b8   : > { %5515 = vmatprep.subr.bf16.mxu1 %v4738_v36  ;;  %v4810_v36 = vld [vmem:[#allocation2 + $0x1d98] sm:$0xff] }
 0x5ba   : > { %5684 = vmatpush1.bf16.msra.mxu0 %v4211_v39  ;;  %v4283_v39 = vld [vmem:[#allocation2 + $0xd20] sm:$0xff] }
 0x5bb   : > { %5516 = vmatpush1.bf16.msra.mxu1 %v4737_v40  ;;  %5685 = vmatprep.subr.bf16.mxu0 %v4220_v42  ;;  %v4809_v40 = vld [vmem:[#allocation2 + $0x1d90] sm:$0xff] }
 0x5bc   : > { %5517 = vmatprep.subr.bf16.mxu1 %v4746_v59  ;;  %v6263_v42 = vld [vmem:[#allocation11 + $0x10] sm:$0xff]  ;;  %v4292_v59 = vld [vmem:[#allocation2 + $0xd68] sm:$0xff] }
 0x5be   : > { %5686 = vmatpush1.bf16.msra.mxu0 %v4219_v44  ;;  %v4818_v44 = vld [vmem:[#allocation2 + $0x1dd8] sm:$0xff] }
 0x5bf   : > { %5518 = vmatpush1.bf16.msra.mxu1 %v4745_v45  ;;  %5687 = vmatprep.subr.bf16.mxu0 %v4228_v47  ;;  %v6321_v45 = vld [vmem:[#allocation11 + $0x18] sm:$0xff]  ;;  %v6268_v47 = vrot.slane %v6263_v42, %v8874_v9 }
 0x5c0   : > { %5519 = vmatprep.subr.bf16.mxu1 %v4754_v48  ;;  %v4291_v48 = vld [vmem:[#allocation2 + $0xd60] sm:$0xff] }
 0x5c2   : > { %5688 = vmatpush1.bf16.msra.mxu0 %v4227_v53 }
 0x5c3   : > { %5520 = vmatpush1.bf16.msra.mxu1 %v4753_v54  ;;  %5689 = vmatprep.subr.bf16.mxu0 %v4236_v55  ;;  %v6272_v54 = vrot.slane %v6263_v42, %v8876_v11  ;;  %v4817_v55 = vld [vmem:[#allocation2 + $0x1dd0] sm:$0xff] }
 0x5c4   : > { %5532 = vmatprep.subr.bf16.mxu1 %v4762_v56  ;;  %v4300_v56 = vld [vmem:[#allocation2 + $0xda8] sm:$0xff] }
 0x5c6   : > { %5522 = vmatmul.mubr.bf16.vlgmr.msra.gmra.mrb[20].mxu1 %v8956_v49  ;;  %5690 = vmatpush1.bf16.msra.mxu0 %v4235_v57 }
 0x5c7   : > { %5533 = vmatpush1.bf16.msra.mxu1 %v4761_v60  ;;  %5564 = vmatprep.mubr.bf16.mxu1 %v8944_v52  ;;  %v6326_v60 = vrot.slane %v6321_v45, %v8874_v9 }
 0x5c8   : > { %5534 = vmatprep.subr.bf16.mxu1 %v4770_v61  ;;  %5691 = vmatprep.subr.bf16.mxu0 %v4244_v62  ;;  %v4826_v62 = vld [vmem:[#allocation2 + $0x1e18] sm:$0xff] }
 0x5ca   : > { %5692 = vmatpush1.bf16.msra.mxu0 %v4243_v0 }
 0x5cb   : > { %5535 = vmatpush1.bf16.msra.mxu1 %v4769_v1  ;;  %5704 = vmatprep.subr.bf16.mxu0 %v4252_v2  ;;  %v6330_v1 = vrot.slane %v6321_v45, %v8876_v11  ;;  %v4324_v45 = vld [vmem:[#allocation2 + $0xe68] sm:$0xff] }
 0x5cc   : > { %5536 = vmatprep.subr.bf16.mxu1 %v4778_v4 }
 0x5cd   : > { %5694 = vmatmul.mubr.bf16.vlgmr.msra.gmra.mrb[20].mxu0 %v8915_v22 }
 0x5ce   : > { %5705 = vmatpush1.bf16.msra.mxu0 %v4251_v7  ;;  %5736 = vmatprep.mubr.bf16.mxu0 %v8925_v41 }
 0x5cf   : > { %5537 = vmatpush1.bf16.msra.mxu1 %v4777_v8  ;;  %5706 = vmatprep.subr.bf16.mxu0 %v4260_v10  ;;  %v4299_v10 = vld [vmem:[#allocation2 + $0xda0] sm:$0xff] }
 0x5d0   : > { %5538 = vmatprep.subr.bf16.mxu1 %v4786_v12 }
 0x5d2   : > { %5707 = vmatpush1.bf16.msra.mxu0 %v4259_v14  ;;  %v4825_v14 = vld [vmem:[#allocation2 + $0x1e10] sm:$0xff] }
 0x5d3   : > { %5539 = vmatpush1.bf16.msra.mxu1 %v4785_v16  ;;  %5708 = vmatprep.subr.bf16.mxu0 %v4268_v18  ;;  %v4308_v16 = vld [vmem:[#allocation2 + $0xde8] sm:$0xff] }
 0x5d4   : > { %5540 = vmatprep.subr.bf16.mxu1 %v4794_v19 }
 0x5d6   : > { %5709 = vmatpush1.bf16.msra.mxu0 %v4267_v23 }
 0x5d7   : > { %5541 = vmatpush1.bf16.msra.mxu1 %v4793_v26  ;;  %5710 = vmatprep.subr.bf16.mxu0 %v4276_v27 }
 0x5d8   : > { %5542 = vmatprep.subr.bf16.mxu1 %v4802_v29 }
 0x5da   : > { %5711 = vmatpush1.bf16.msra.mxu0 %v4275_v33  ;;  %v4833_v33 = vld [vmem:[#allocation2 + $0x1e50] sm:$0xff] }
 0x5db   : > { %5543 = vmatpush1.bf16.msra.mxu1 %v4801_v34  ;;  %5712 = vmatprep.subr.bf16.mxu0 %v4284_v35  ;;  %v4316_v34 = vld [vmem:[#allocation2 + $0xe28] sm:$0xff] }
 0x5dc   : > { %5544 = vmatprep.subr.bf16.mxu1 %v4810_v36 }
 0x5de   : > { %5713 = vmatpush1.bf16.msra.mxu0 %v4283_v39 }
 0x5df   : > { %5545 = vmatpush1.bf16.msra.mxu1 %v4809_v40  ;;  %5714 = vmatprep.subr.bf16.mxu0 %v4292_v59  ;;  %v4315_v59 = vld [vmem:[#allocation2 + $0xe20] sm:$0xff] }
 0x5e0   : > { %v5222_v53 = vpop.f32.mrb[16].mxu0  ;;  %5546 = vmatprep.subr.bf16.mxu1 %v4818_v44  ;;  %v4841_v44 = vld [vmem:[#allocation2 + $0x1e90] sm:$0xff] }
 0x5e1   : > { %v6942_v57 = vadd.f32 %v5222_v53, %v8970_v24  ;;  %v5224_v61 = vpop.f32.mrb[17].mxu0  ;;  %v4323_v53 = vld [vmem:[#allocation2 + $0xe60] sm:$0xff] }
 0x5e2   : > { %v6943_v0 = vadd.f32 %v5224_v61, %v8972_v28  ;;  %v5226_v2 = vpop.f32.mrb[18].mxu0  ;;  %5715 = vmatpush1.bf16.msra.mxu0 %v4291_v48  ;;  %v4834_v28 = vld [vmem:[#allocation2 + $0x1e58] sm:$0xff]  ;;  %v4340_v61 = vld [vmem:[#allocation2 + $0xee8] sm:$0xff] }
 0x5e3   : > { %v6305_v4 = vmul.f32 %v6942_v57, %v6268_v47  ;;  %v6944_v7 = vadd.f32 %v5226_v2, %v8974_v30  ;;  %5547 = vmatpush1.bf16.msra.mxu1 %v4817_v55  ;;  %v5228_v8 = vpop.f32.mrb[19].mxu0  ;;  %5716 = vmatprep.subr.bf16.mxu0 %v4300_v56  ;;  %v4307_v30 = vld [vmem:[#allocation2 + $0xde0] sm:$0xff]  ;;  %v4850_v48 = vld [vmem:[#allocation2 + $0x1ed8] sm:$0xff]  ;;  %v4332_v55 = vld [vmem:[#allocation2 + $0xea8] sm:$0xff] }
 0x5e4   : > { %v6306_v12 = vmul.f32 %v6943_v0, %v6272_v54  ;;  %v6945_v24 = vadd.f32 %v5228_v8, %v8976_v31  ;;  %5548 = vmatprep.subr.bf16.mxu1 %v4826_v62  ;;  %v4842_v31 = vld [vmem:[#allocation2 + $0x1e98] sm:$0xff]  ;;  %v4331_v57 = vld [vmem:[#allocation2 + $0xea0] sm:$0xff]  ;;  %v4348_v2 = vld [vmem:[#allocation2 + $0xf28] sm:$0xff] }
 0x5e5   : > { %v6363_v18 = vadd.f32 %v6326_v60, %v6305_v4  ;;  %v6313_v19 = vmul.f32 %v6944_v7, %v6268_v47  ;;  %v4858_v56 = vld [vmem:[#allocation2 + $0x1f18] sm:$0xff]  ;;  %v4339_v0 = vld [vmem:[#allocation2 + $0xee0] sm:$0xff]  ;;  %v4873_v8 = vld [vmem:[#allocation2 + $0x1f90] sm:$0xff] }
 0x5e6   : > { %v6364_v23 = vadd.f32 %v6330_v1, %v6306_v12  ;;  %v6314_v26 = vmul.f32 %v6945_v24, %v6272_v54  ;;  %5717 = vmatpush1.bf16.msra.mxu0 %v4299_v10  ;;  %v4849_v54 = vld [vmem:[#allocation2 + $0x1ed0] sm:$0xff]  ;;  %v4866_v62 = vld [vmem:[#allocation2 + $0x1f58] sm:$0xff]  ;;  %v4347_v7 = vld [vmem:[#allocation2 + $0xf20] sm:$0xff] }
 0x5e7   : > { %v6371_v27 = vadd.f32 %v6326_v60, %v6313_v19  ;;  %5549 = vmatpush1.bf16.msra.mxu1 %v4825_v14  ;;  %5718 = vmatprep.subr.bf16.mxu0 %v4308_v16  ;;  %v6379_v35 = vmax.f32 %v6363_v18, 0.0  ;;  %v4857_v60 = vld [vmem:[#allocation2 + $0x1f10] sm:$0xff]  ;;  %v4874_v4 = vld [vmem:[#allocation2 + $0x1f98] sm:$0xff]  ;;  %v4356_v10 = vld [vmem:[#allocation2 + $0xf68] sm:$0xff] }
 0x5e8   : > { %v6372_v29 = vadd.f32 %v6330_v1, %v6314_v26  ;;  %5550 = vmatprep.subr.bf16.mxu1 %v4834_v28  ;;  %v6380_v39 = vmax.f32 %v6364_v23, 0.0  ;;  %v4865_v1 = vld [vmem:[#allocation2 + $0x1f50] sm:$0xff]  ;;  %v4882_v12 = vld [vmem:[#allocation2 + $0x1fd8] sm:$0xff]  ;;  %v4355_v24 = vld [vmem:[#allocation2 + $0xf60] sm:$0xff] }
 0x5e9   : > { %v6387_v36 = vmax.f32 %v6371_v27, 0.0  ;;  %v4881_v14 = vld [vmem:[#allocation2 + $0x1fd0] sm:$0xff]  ;;  %v4364_v16 = vld [vmem:[#allocation2 + $0xfa8] sm:$0xff]  ;;  %v3870_v18 = vld [vmem:[#allocation2 + $0x38] sm:$0xff] }
 0x5ea   : > { %v6388_v40 = vmax.f32 %v6372_v29, 0.0  ;;  %5719 = vmatpush1.bf16.msra.mxu0 %v4307_v30  ;;  %v4363_v19 = vld [vmem:[#allocation2 + $0xfa0] sm:$0xff]  ;;  %v3869_v28 = vld [vmem:[#allocation2 + $0x30] sm:$0xff]  ;;  %v4372_v23 = vld [vmem:[#allocation2 + $0xfe8] sm:$0xff] }
 0x5eb   : > { %v9002_v42 = vpack.c.bf16 %v6387_v36, %v6379_v35  ;;  %5551 = vmatpush1.bf16.msra.mxu1 %v4833_v33  ;;  %5720 = vmatprep.subr.bf16.mxu0 %v4316_v34  ;;  %v3878_v26 = vld [vmem:[#allocation2 + $0x78] sm:$0xff]  ;;  %v4371_v27 = vld [vmem:[#allocation2 + $0xfe0] sm:$0xff]  ;;  %v3877_v30 = vld [vmem:[#allocation2 + $0x70] sm:$0xff] }
 0x5ec   : > { %5552 = vmatprep.subr.bf16.mxu1 %v4842_v31  ;;  %v9004_v47 = vpack.c.bf16 %v6388_v40, %v6380_v39  ;;  %v4380_v29 = vld [vmem:[#allocation2 + $0x1028] sm:$0xff]  ;;  %v3886_v33 = vld [vmem:[#allocation2 + $0xb8] sm:$0xff]  ;;  %v4379_v34 = vld [vmem:[#allocation2 + $0x1020] sm:$0xff] }
 0x5ed   : > { %v3885_v35 = vld [vmem:[#allocation2 + $0xb0] sm:$0xff]  ;;  %v4388_v36 = vld [vmem:[#allocation2 + $0x1068] sm:$0xff]  ;;  %v3894_v31 = vld [vmem:[#allocation2 + $0xf8] sm:$0xff] }
 0x5ee   : > { %5721 = vmatpush1.bf16.msra.mxu0 %v4315_v59  ;;  %v3893_v39 = vld [vmem:[#allocation2 + $0xf0] sm:$0xff]  ;;  %v4396_v40 = vld [vmem:[#allocation2 + $0x10a8] sm:$0xff]  ;;  %v3902_v59 = vld [vmem:[#allocation2 + $0x138] sm:$0xff] }
 0x5ef   : > { %5553 = vmatpush1.bf16.msra.mxu1 %v4841_v44  ;;  %5722 = vmatprep.subr.bf16.mxu0 %v4324_v45  ;;  %v4395_v44 = vld [vmem:[#allocation2 + $0x10a0] sm:$0xff]  ;;  %v3901_v45 = vld [vmem:[#allocation2 + $0x130] sm:$0xff] }
 0x5f0   : > { %5554 = vmatprep.subr.bf16.mxu1 %v4850_v48  ;;  %v4404_v48 = vld [vmem:[#allocation2 + $0x10e8] sm:$0xff] }
 0x5f2   : > { %5723 = vmatpush1.bf16.msra.mxu0 %v4323_v53  ;;  %v3910_v53 = vld [vmem:[#allocation2 + $0x178] sm:$0xff] }
 0x5f3   : > { %5555 = vmatpush1.bf16.msra.mxu1 %v4849_v54  ;;  %5724 = vmatprep.subr.bf16.mxu0 %v4332_v55  ;;  %v4403_v54 = vld [vmem:[#allocation2 + $0x10e0] sm:$0xff]  ;;  %v3909_v55 = vld [vmem:[#allocation2 + $0x170] sm:$0xff] }
 0x5f4   : > { %5556 = vmatprep.subr.bf16.mxu1 %v4858_v56  ;;  %v4412_v56 = vld [vmem:[#allocation2 + $0x1128] sm:$0xff] }
 0x5f6   : > { %5725 = vmatpush1.bf16.msra.mxu0 %v4331_v57  ;;  %v3918_v57 = vld [vmem:[#allocation2 + $0x1b8] sm:$0xff] }
 0x5f7   : > { %5557 = vmatpush1.bf16.msra.mxu1 %v4857_v60  ;;  %5726 = vmatprep.subr.bf16.mxu0 %v4340_v61  ;;  %v4411_v60 = vld [vmem:[#allocation2 + $0x1120] sm:$0xff]  ;;  %v3917_v61 = vld [vmem:[#allocation2 + $0x1b0] sm:$0xff] }
 0x5f8   : > { %5558 = vmatprep.subr.bf16.mxu1 %v4866_v62  ;;  %v4420_v62 = vld [vmem:[#allocation2 + $0x1168] sm:$0xff] }
 0x5fa   : > { %5727 = vmatpush1.bf16.msra.mxu0 %v4339_v0  ;;  %v3926_v0 = vld [vmem:[#allocation2 + $0x1f8] sm:$0xff] }
 0x5fb   : > { %5559 = vmatpush1.bf16.msra.mxu1 %v4865_v1  ;;  %5728 = vmatprep.subr.bf16.mxu0 %v4348_v2  ;;  %v4419_v1 = vld [vmem:[#allocation2 + $0x1160] sm:$0xff]  ;;  %v3925_v2 = vld [vmem:[#allocation2 + $0x1f0] sm:$0xff] }
 0x5fc   : > { %5560 = vmatprep.subr.bf16.mxu1 %v4874_v4  ;;  %v4428_v4 = vld [vmem:[#allocation2 + $0x11a8] sm:$0xff] }
 0x5fe   : > { %5729 = vmatpush1.bf16.msra.mxu0 %v4347_v7  ;;  %v3934_v7 = vld [vmem:[#allocation2 + $0x238] sm:$0xff] }
 0x5ff   : > { %5561 = vmatpush1.bf16.msra.mxu1 %v4873_v8  ;;  %5730 = vmatprep.subr.bf16.mxu0 %v4356_v10  ;;  %v4427_v8 = vld [vmem:[#allocation2 + $0x11a0] sm:$0xff]  ;;  %v3933_v10 = vld [vmem:[#allocation2 + $0x230] sm:$0xff] }
 0x600   : > { %5562 = vmatprep.subr.bf16.mxu1 %v4882_v12  ;;  %v4436_v12 = vld [vmem:[#allocation2 + $0x11e8] sm:$0xff] }
 0x602   : > { %5731 = vmatpush1.bf16.msra.mxu0 %v4355_v24  ;;  %v3942_v24 = vld [vmem:[#allocation2 + $0x278] sm:$0xff] }
 0x603   : > { %5563 = vmatpush1.bf16.msra.mxu1 %v4881_v14  ;;  %5732 = vmatprep.subr.bf16.mxu0 %v4364_v16  ;;  %v4435_v14 = vld [vmem:[#allocation2 + $0x11e0] sm:$0xff]  ;;  %v3941_v16 = vld [vmem:[#allocation2 + $0x270] sm:$0xff] }
 0x604   : > { %5919 = vmatprep.subr.bf16.mxu1 %v3870_v18  ;;  %v4444_v18 = vld [vmem:[#allocation2 + $0x1228] sm:$0xff] }
 0x606   : > { %5565 = vmatmul.mubr.bf16.vlgmr.msra.gmra.mrb[20].mxu1 %v8942_v51  ;;  %5733 = vmatpush1.bf16.msra.mxu0 %v4363_v19  ;;  %v3950_v19 = vld [vmem:[#allocation2 + $0x2b8] sm:$0xff] }
 0x607   : > { %5920 = vmatpush1.bf16.msra.mxu1 %v3869_v28  ;;  %5951 = vmatprep.mubr.bf16.mxu1 %v8898_v46  ;;  %v4387_v46 = vld [vmem:[#allocation2 + $0x1060] sm:$0xff] }
 0x608   : > { %5734 = vmatprep.subr.bf16.mxu0 %v4372_v23  ;;  %5921 = vmatprep.subr.bf16.mxu1 %v3878_v26  ;;  %v4443_v28 = vld [vmem:[#allocation2 + $0x1220] sm:$0xff]  ;;  %v3949_v23 = vld [vmem:[#allocation2 + $0x2b0] sm:$0xff]  ;;  %v4452_v26 = vld [vmem:[#allocation2 + $0x1268] sm:$0xff] }
 0x60a   : > { %5735 = vmatpush1.bf16.msra.mxu0 %v4371_v27  ;;  %v3958_v27 = vld [vmem:[#allocation2 + $0x2f8] sm:$0xff] }
 0x60b   : > { %5922 = vmatpush1.bf16.msra.mxu1 %v3877_v30  ;;  %5747 = vmatprep.subr.bf16.mxu0 %v4380_v29  ;;  %v4451_v30 = vld [vmem:[#allocation2 + $0x1260] sm:$0xff]  ;;  %v3957_v29 = vld [vmem:[#allocation2 + $0x2f0] sm:$0xff] }
 0x60c   : > { %5923 = vmatprep.subr.bf16.mxu1 %v3886_v33  ;;  %v4460_v33 = vld [vmem:[#allocation2 + $0x12a8] sm:$0xff] }
 0x60d   : > { %5737 = vmatmul.mubr.bf16.vlgmr.msra.gmra.mrb[20].mxu0 %v8922_v38 }
 0x60e   : > { %5748 = vmatpush1.bf16.msra.mxu0 %v4379_v34  ;;  %5779 = vmatprep.mubr.bf16.mxu0 %v8932_v5  ;;  %v3966_v34 = vld [vmem:[#allocation2 + $0x338] sm:$0xff] }
 0x60f   : > { %5924 = vmatpush1.bf16.msra.mxu1 %v3885_v35  ;;  %5749 = vmatprep.subr.bf16.mxu0 %v4388_v36  ;;  %v4459_v35 = vld [vmem:[#allocation2 + $0x12a0] sm:$0xff]  ;;  %v3965_v36 = vld [vmem:[#allocation2 + $0x330] sm:$0xff] }
 0x610   : > { %5925 = vmatprep.subr.bf16.mxu1 %v3894_v31  ;;  %v4468_v31 = vld [vmem:[#allocation2 + $0x12e8] sm:$0xff] }
 0x612   : > { %5750 = vmatpush1.bf16.msra.mxu0 %v4387_v46  ;;  %v3974_v46 = vld [vmem:[#allocation2 + $0x378] sm:$0xff] }
 0x613   : > { %5926 = vmatpush1.bf16.msra.mxu1 %v3893_v39  ;;  %5751 = vmatprep.subr.bf16.mxu0 %v4396_v40  ;;  %v4467_v39 = vld [vmem:[#allocation2 + $0x12e0] sm:$0xff]  ;;  %v3973_v40 = vld [vmem:[#allocation2 + $0x370] sm:$0xff] }
 0x614   : > { %5927 = vmatprep.subr.bf16.mxu1 %v3902_v59  ;;  %v4476_v59 = vld [vmem:[#allocation2 + $0x1328] sm:$0xff] }
 0x616   : > { %5752 = vmatpush1.bf16.msra.mxu0 %v4395_v44  ;;  %v3982_v44 = vld [vmem:[#allocation2 + $0x3b8] sm:$0xff] }
 0x617   : > { %5928 = vmatpush1.bf16.msra.mxu1 %v3901_v45  ;;  %5753 = vmatprep.subr.bf16.mxu0 %v4404_v48  ;;  %v4475_v45 = vld [vmem:[#allocation2 + $0x1320] sm:$0xff]  ;;  %v3981_v48 = vld [vmem:[#allocation2 + $0x3b0] sm:$0xff] }
 0x618   : > { %5929 = vmatprep.subr.bf16.mxu1 %v3910_v53  ;;  %v4484_v53 = vld [vmem:[#allocation2 + $0x1368] sm:$0xff] }
 0x61a   : > { %5754 = vmatpush1.bf16.msra.mxu0 %v4403_v54  ;;  %v3990_v54 = vld [vmem:[#allocation2 + $0x3f8] sm:$0xff] }
 0x61b   : > { %5930 = vmatpush1.bf16.msra.mxu1 %v3909_v55  ;;  %5755 = vmatprep.subr.bf16.mxu0 %v4412_v56  ;;  %v4483_v55 = vld [vmem:[#allocation2 + $0x1360] sm:$0xff]  ;;  %v3989_v56 = vld [vmem:[#allocation2 + $0x3f0] sm:$0xff] }
 0x61c   : > { %5931 = vmatprep.subr.bf16.mxu1 %v3918_v57  ;;  %v4492_v57 = vld [vmem:[#allocation2 + $0x13a8] sm:$0xff] }
 0x61e   : > { %5756 = vmatpush1.bf16.msra.mxu0 %v4411_v60  ;;  %v3998_v60 = vld [vmem:[#allocation2 + $0x438] sm:$0xff] }
 0x61f   : > { %5932 = vmatpush1.bf16.msra.mxu1 %v3917_v61  ;;  %5757 = vmatprep.subr.bf16.mxu0 %v4420_v62  ;;  %v4491_v61 = vld [vmem:[#allocation2 + $0x13a0] sm:$0xff]  ;;  %v3997_v62 = vld [vmem:[#allocation2 + $0x430] sm:$0xff] }
 0x620   : > { %5933 = vmatprep.subr.bf16.mxu1 %v3926_v0  ;;  %v4500_v0 = vld [vmem:[#allocation2 + $0x13e8] sm:$0xff] }
 0x622   : > { %5758 = vmatpush1.bf16.msra.mxu0 %v4419_v1  ;;  %v4006_v1 = vld [vmem:[#allocation2 + $0x478] sm:$0xff] }
 0x623   : > { %5934 = vmatpush1.bf16.msra.mxu1 %v3925_v2  ;;  %5759 = vmatprep.subr.bf16.mxu0 %v4428_v4  ;;  %v4499_v2 = vld [vmem:[#allocation2 + $0x13e0] sm:$0xff]  ;;  %v4005_v4 = vld [vmem:[#allocation2 + $0x470] sm:$0xff] }
 0x624   : > { %5935 = vmatprep.subr.bf16.mxu1 %v3934_v7  ;;  %v4508_v7 = vld [vmem:[#allocation2 + $0x1428] sm:$0xff] }
 0x626   : > { %5760 = vmatpush1.bf16.msra.mxu0 %v4427_v8  ;;  %v4014_v8 = vld [vmem:[#allocation2 + $0x4b8] sm:$0xff] }
 0x627   : > { %5936 = vmatpush1.bf16.msra.mxu1 %v3933_v10  ;;  %5761 = vmatprep.subr.bf16.mxu0 %v4436_v12  ;;  %v4507_v10 = vld [vmem:[#allocation2 + $0x1420] sm:$0xff]  ;;  %v4013_v12 = vld [vmem:[#allocation2 + $0x4b0] sm:$0xff] }
 0x628   : > { %5937 = vmatprep.subr.bf16.mxu1 %v3942_v24  ;;  %v4516_v24 = vld [vmem:[#allocation2 + $0x1468] sm:$0xff] }
 0x62a   : > { %5762 = vmatpush1.bf16.msra.mxu0 %v4435_v14  ;;  %v4021_v14 = vld [vmem:[#allocation2 + $0x4f0] sm:$0xff] }
 0x62b   : > { %5938 = vmatpush1.bf16.msra.mxu1 %v3941_v16  ;;  %5763 = vmatprep.subr.bf16.mxu0 %v4444_v18  ;;  %v4524_v16 = vld [vmem:[#allocation2 + $0x14a8] sm:$0xff]  ;;  %v4030_v18 = vld [vmem:[#allocation2 + $0x538] sm:$0xff] }
 0x62c   : > { %5939 = vmatprep.subr.bf16.mxu1 %v3950_v19  ;;  %v4523_v19 = vld [vmem:[#allocation2 + $0x14a0] sm:$0xff] }
 0x62e   : > { %5764 = vmatpush1.bf16.msra.mxu0 %v4443_v28  ;;  %v4029_v28 = vld [vmem:[#allocation2 + $0x530] sm:$0xff] }
 0x62f   : > { %5940 = vmatpush1.bf16.msra.mxu1 %v3949_v23  ;;  %5765 = vmatprep.subr.bf16.mxu0 %v4452_v26  ;;  %v4532_v23 = vld [vmem:[#allocation2 + $0x14e8] sm:$0xff]  ;;  %v4038_v26 = vld [vmem:[#allocation2 + $0x578] sm:$0xff] }
 0x630   : > { %5941 = vmatprep.subr.bf16.mxu1 %v3958_v27  ;;  %v4531_v27 = vld [vmem:[#allocation2 + $0x14e0] sm:$0xff] }
 0x632   : > { %5766 = vmatpush1.bf16.msra.mxu0 %v4451_v30  ;;  %v4037_v30 = vld [vmem:[#allocation2 + $0x570] sm:$0xff] }
 0x633   : > { %5942 = vmatpush1.bf16.msra.mxu1 %v3957_v29  ;;  %5767 = vmatprep.subr.bf16.mxu0 %v4460_v33  ;;  %v4540_v29 = vld [vmem:[#allocation2 + $0x1528] sm:$0xff]  ;;  %v4046_v33 = vld [vmem:[#allocation2 + $0x5b8] sm:$0xff] }
 0x634   : > { %5943 = vmatprep.subr.bf16.mxu1 %v3966_v34  ;;  %v4539_v34 = vld [vmem:[#allocation2 + $0x1520] sm:$0xff] }
 0x636   : > { %5768 = vmatpush1.bf16.msra.mxu0 %v4459_v35  ;;  %v4045_v35 = vld [vmem:[#allocation2 + $0x5b0] sm:$0xff] }
 0x637   : > { %5944 = vmatpush1.bf16.msra.mxu1 %v3965_v36  ;;  %5769 = vmatprep.subr.bf16.mxu0 %v4468_v31  ;;  %v4548_v36 = vld [vmem:[#allocation2 + $0x1568] sm:$0xff]  ;;  %v4054_v31 = vld [vmem:[#allocation2 + $0x5f8] sm:$0xff] }
 0x638   : > { %5945 = vmatprep.subr.bf16.mxu1 %v3974_v46  ;;  %v4547_v46 = vld [vmem:[#allocation2 + $0x1560] sm:$0xff] }
 0x63a   : > { %5770 = vmatpush1.bf16.msra.mxu0 %v4467_v39  ;;  %v4053_v39 = vld [vmem:[#allocation2 + $0x5f0] sm:$0xff] }
 0x63b   : > { %5946 = vmatpush1.bf16.msra.mxu1 %v3973_v40  ;;  %5771 = vmatprep.subr.bf16.mxu0 %v4476_v59  ;;  %v4556_v40 = vld [vmem:[#allocation2 + $0x15a8] sm:$0xff]  ;;  %v4062_v59 = vld [vmem:[#allocation2 + $0x638] sm:$0xff] }
 0x63c   : > { %5947 = vmatprep.subr.bf16.mxu1 %v3982_v44  ;;  %v4555_v44 = vld [vmem:[#allocation2 + $0x15a0] sm:$0xff] }
 0x63e   : > { %5772 = vmatpush1.bf16.msra.mxu0 %v4475_v45  ;;  %v4061_v45 = vld [vmem:[#allocation2 + $0x630] sm:$0xff] }
 0x63f   : > { %5948 = vmatpush1.bf16.msra.mxu1 %v3981_v48  ;;  %5773 = vmatprep.subr.bf16.mxu0 %v4484_v53  ;;  %v4564_v48 = vld [vmem:[#allocation2 + $0x15e8] sm:$0xff]  ;;  %v4070_v53 = vld [vmem:[#allocation2 + $0x678] sm:$0xff] }
 0x640   : > { %5949 = vmatprep.subr.bf16.mxu1 %v3990_v54  ;;  %v4563_v54 = vld [vmem:[#allocation2 + $0x15e0] sm:$0xff] }
 0x642   : > { %5774 = vmatpush1.bf16.msra.mxu0 %v4483_v55  ;;  %v4069_v55 = vld [vmem:[#allocation2 + $0x670] sm:$0xff] }
 0x643   : > { %5950 = vmatpush1.bf16.msra.mxu1 %v3989_v56  ;;  %5775 = vmatprep.subr.bf16.mxu0 %v4492_v57  ;;  %v4572_v56 = vld [vmem:[#allocation2 + $0x1628] sm:$0xff]  ;;  %v4078_v57 = vld [vmem:[#allocation2 + $0x6b8] sm:$0xff] }
 0x644   : > { %5962 = vmatprep.subr.bf16.mxu1 %v3998_v60  ;;  %v4571_v60 = vld [vmem:[#allocation2 + $0x1620] sm:$0xff] }
 0x646   : > { %5952 = vmatmul.mubr.bf16.vlgmr.msra.gmra.mrb[24].mxu1 %v8896_v43  ;;  %5776 = vmatpush1.bf16.msra.mxu0 %v4491_v61  ;;  %v4022_v43 = vld [vmem:[#allocation2 + $0x4f8] sm:$0xff]  ;;  %v4077_v61 = vld [vmem:[#allocation2 + $0x6b0] sm:$0xff] }
 0x647   : > { %5963 = vmatpush1.bf16.msra.mxu1 %v3997_v62  ;;  %5994 = vmatprep.mubr.bf16.mxu1 %v8908_v63  ;;  %v4515_v63 = vld [vmem:[#allocation2 + $0x1460] sm:$0xff]  ;;  %v4580_v62 = vld [vmem:[#allocation2 + $0x1668] sm:$0xff] }
 0x648   : > { %5777 = vmatprep.subr.bf16.mxu0 %v4500_v0  ;;  %5964 = vmatprep.subr.bf16.mxu1 %v4006_v1  ;;  %v4086_v0 = vld [vmem:[#allocation2 + $0x6f8] sm:$0xff]  ;;  %v4579_v1 = vld [vmem:[#allocation2 + $0x1660] sm:$0xff] }
 0x64a   : > { %5778 = vmatpush1.bf16.msra.mxu0 %v4499_v2  ;;  %v4085_v2 = vld [vmem:[#allocation2 + $0x6f0] sm:$0xff] }
 0x64b   : > { %5965 = vmatpush1.bf16.msra.mxu1 %v4005_v4  ;;  %5790 = vmatprep.subr.bf16.mxu0 %v4508_v7  ;;  %v4588_v4 = vld [vmem:[#allocation2 + $0x16a8] sm:$0xff]  ;;  %v4094_v7 = vld [vmem:[#allocation2 + $0x738] sm:$0xff] }
 0x64c   : > { %5966 = vmatprep.subr.bf16.mxu1 %v4014_v8  ;;  %v4587_v8 = vld [vmem:[#allocation2 + $0x16a0] sm:$0xff] }
 0x64d   : > { %5780 = vmatmul.mubr.bf16.vlgmr.msra.gmra.mrb[20].mxu0 %v8930_v3 }
 0x64e   : > { %5791 = vmatpush1.bf16.msra.mxu0 %v4507_v10  ;;  %5822 = vmatprep.mubr.bf16.mxu0 %v8938_v21  ;;  %v4093_v10 = vld [vmem:[#allocation2 + $0x730] sm:$0xff] }
 0x64f   : > { %5967 = vmatpush1.bf16.msra.mxu1 %v4013_v12  ;;  %5792 = vmatprep.subr.bf16.mxu0 %v4516_v24  ;;  %v4596_v12 = vld [vmem:[#allocation2 + $0x16e8] sm:$0xff]  ;;  %v4102_v24 = vld [vmem:[#allocation2 + $0x778] sm:$0xff] }
 0x650   : > { %5968 = vmatprep.subr.bf16.mxu1 %v4022_v43  ;;  %v4595_v43 = vld [vmem:[#allocation2 + $0x16e0] sm:$0xff] }
 0x652   : > { %5793 = vmatpush1.bf16.msra.mxu0 %v4515_v63  ;;  %v4101_v63 = vld [vmem:[#allocation2 + $0x770] sm:$0xff] }
 0x653   : > { %5969 = vmatpush1.bf16.msra.mxu1 %v4021_v14  ;;  %5794 = vmatprep.subr.bf16.mxu0 %v4524_v16  ;;  %v4604_v14 = vld [vmem:[#allocation2 + $0x1728] sm:$0xff]  ;;  %v4110_v16 = vld [vmem:[#allocation2 + $0x7b8] sm:$0xff] }
 0x654   : > { %5970 = vmatprep.subr.bf16.mxu1 %v4030_v18  ;;  %v4603_v18 = vld [vmem:[#allocation2 + $0x1720] sm:$0xff] }
 0x656   : > { %5795 = vmatpush1.bf16.msra.mxu0 %v4523_v19  ;;  %v4109_v19 = vld [vmem:[#allocation2 + $0x7b0] sm:$0xff] }
 0x657   : > { %5971 = vmatpush1.bf16.msra.mxu1 %v4029_v28  ;;  %5796 = vmatprep.subr.bf16.mxu0 %v4532_v23  ;;  %v4612_v28 = vld [vmem:[#allocation2 + $0x1768] sm:$0xff]  ;;  %v4118_v23 = vld [vmem:[#allocation2 + $0x7f8] sm:$0xff] }
 0x658   : > { %5972 = vmatprep.subr.bf16.mxu1 %v4038_v26  ;;  %v4611_v26 = vld [vmem:[#allocation2 + $0x1760] sm:$0xff] }
 0x65a   : > { %5797 = vmatpush1.bf16.msra.mxu0 %v4531_v27  ;;  %v4117_v27 = vld [vmem:[#allocation2 + $0x7f0] sm:$0xff] }
 0x65b   : > { %5973 = vmatpush1.bf16.msra.mxu1 %v4037_v30  ;;  %5798 = vmatprep.subr.bf16.mxu0 %v4540_v29  ;;  %v4620_v30 = vld [vmem:[#allocation2 + $0x17a8] sm:$0xff]  ;;  %v4126_v29 = vld [vmem:[#allocation2 + $0x838] sm:$0xff] }
 0x65c   : > { %5974 = vmatprep.subr.bf16.mxu1 %v4046_v33  ;;  %v4619_v33 = vld [vmem:[#allocation2 + $0x17a0] sm:$0xff] }
 0x65e   : > { %5799 = vmatpush1.bf16.msra.mxu0 %v4539_v34  ;;  %v4125_v34 = vld [vmem:[#allocation2 + $0x830] sm:$0xff] }
 0x65f   : > { %5975 = vmatpush1.bf16.msra.mxu1 %v4045_v35  ;;  %5800 = vmatprep.subr.bf16.mxu0 %v4548_v36  ;;  %v4628_v35 = vld [vmem:[#allocation2 + $0x17e8] sm:$0xff]  ;;  %v4134_v36 = vld [vmem:[#allocation2 + $0x878] sm:$0xff] }
 0x660   : > { %5976 = vmatprep.subr.bf16.mxu1 %v4054_v31  ;;  %v4627_v31 = vld [vmem:[#allocation2 + $0x17e0] sm:$0xff] }
 0x662   : > { %5801 = vmatpush1.bf16.msra.mxu0 %v4547_v46  ;;  %v4133_v46 = vld [vmem:[#allocation2 + $0x870] sm:$0xff] }
 0x663   : > { %5977 = vmatpush1.bf16.msra.mxu1 %v4053_v39  ;;  %5802 = vmatprep.subr.bf16.mxu0 %v4556_v40  ;;  %v4636_v39 = vld [vmem:[#allocation2 + $0x1828] sm:$0xff]  ;;  %v4142_v40 = vld [vmem:[#allocation2 + $0x8b8] sm:$0xff] }
 0x664   : > { %5978 = vmatprep.subr.bf16.mxu1 %v4062_v59  ;;  %v4635_v59 = vld [vmem:[#allocation2 + $0x1820] sm:$0xff] }
 0x666   : > { %5803 = vmatpush1.bf16.msra.mxu0 %v4555_v44  ;;  %v4141_v44 = vld [vmem:[#allocation2 + $0x8b0] sm:$0xff] }
 0x667   : > { %5979 = vmatpush1.bf16.msra.mxu1 %v4061_v45  ;;  %5804 = vmatprep.subr.bf16.mxu0 %v4564_v48  ;;  %v4644_v45 = vld [vmem:[#allocation2 + $0x1868] sm:$0xff]  ;;  %v4149_v48 = vld [vmem:[#allocation2 + $0x8f0] sm:$0xff] }
 0x668   : > { %5980 = vmatprep.subr.bf16.mxu1 %v4070_v53  ;;  %v4652_v53 = vld [vmem:[#allocation2 + $0x18a8] sm:$0xff] }
 0x66a   : > { %5805 = vmatpush1.bf16.msra.mxu0 %v4563_v54  ;;  %v4158_v54 = vld [vmem:[#allocation2 + $0x938] sm:$0xff] }
 0x66b   : > { %5981 = vmatpush1.bf16.msra.mxu1 %v4069_v55  ;;  %5806 = vmatprep.subr.bf16.mxu0 %v4572_v56  ;;  %v4651_v55 = vld [vmem:[#allocation2 + $0x18a0] sm:$0xff]  ;;  %v4157_v56 = vld [vmem:[#allocation2 + $0x930] sm:$0xff] }
 0x66c   : > { %5982 = vmatprep.subr.bf16.mxu1 %v4078_v57  ;;  %v4660_v57 = vld [vmem:[#allocation2 + $0x18e8] sm:$0xff] }
 0x66e   : > { %5807 = vmatpush1.bf16.msra.mxu0 %v4571_v60  ;;  %v4166_v60 = vld [vmem:[#allocation2 + $0x978] sm:$0xff] }
 0x66f   : > { %5983 = vmatpush1.bf16.msra.mxu1 %v4077_v61  ;;  %5808 = vmatprep.subr.bf16.mxu0 %v4580_v62  ;;  %v4659_v61 = vld [vmem:[#allocation2 + $0x18e0] sm:$0xff]  ;;  %v4165_v62 = vld [vmem:[#allocation2 + $0x970] sm:$0xff] }
 0x670   : > { %5984 = vmatprep.subr.bf16.mxu1 %v4086_v0  ;;  %v4668_v0 = vld [vmem:[#allocation2 + $0x1928] sm:$0xff] }
 0x672   : > { %5809 = vmatpush1.bf16.msra.mxu0 %v4579_v1  ;;  %v4174_v1 = vld [vmem:[#allocation2 + $0x9b8] sm:$0xff] }
 0x673   : > { %5985 = vmatpush1.bf16.msra.mxu1 %v4085_v2  ;;  %5810 = vmatprep.subr.bf16.mxu0 %v4588_v4  ;;  %v4667_v2 = vld [vmem:[#allocation2 + $0x1920] sm:$0xff]  ;;  %v4173_v4 = vld [vmem:[#allocation2 + $0x9b0] sm:$0xff] }
 0x674   : > { %5986 = vmatprep.subr.bf16.mxu1 %v4094_v7  ;;  %v4676_v7 = vld [vmem:[#allocation2 + $0x1968] sm:$0xff] }
 0x676   : > { %5811 = vmatpush1.bf16.msra.mxu0 %v4587_v8  ;;  %v4182_v8 = vld [vmem:[#allocation2 + $0x9f8] sm:$0xff] }
 0x677   : > { %5987 = vmatpush1.bf16.msra.mxu1 %v4093_v10  ;;  %5812 = vmatprep.subr.bf16.mxu0 %v4596_v12  ;;  %v4675_v10 = vld [vmem:[#allocation2 + $0x1960] sm:$0xff]  ;;  %v4181_v12 = vld [vmem:[#allocation2 + $0x9f0] sm:$0xff] }
 0x678   : > { %5988 = vmatprep.subr.bf16.mxu1 %v4102_v24  ;;  %v4684_v24 = vld [vmem:[#allocation2 + $0x19a8] sm:$0xff] }
 0x67a   : > { %5813 = vmatpush1.bf16.msra.mxu0 %v4595_v43  ;;  %v4190_v43 = vld [vmem:[#allocation2 + $0xa38] sm:$0xff] }
 0x67b   : > { %5989 = vmatpush1.bf16.msra.mxu1 %v4101_v63  ;;  %5814 = vmatprep.subr.bf16.mxu0 %v4604_v14  ;;  %v4683_v63 = vld [vmem:[#allocation2 + $0x19a0] sm:$0xff]  ;;  %v4189_v14 = vld [vmem:[#allocation2 + $0xa30] sm:$0xff] }
 0x67c   : > { %5990 = vmatprep.subr.bf16.mxu1 %v4110_v16  ;;  %v4692_v16 = vld [vmem:[#allocation2 + $0x19e8] sm:$0xff] }
 0x67e   : > { %5815 = vmatpush1.bf16.msra.mxu0 %v4603_v18  ;;  %v4198_v18 = vld [vmem:[#allocation2 + $0xa78] sm:$0xff] }
 0x67f   : > { %5991 = vmatpush1.bf16.msra.mxu1 %v4109_v19  ;;  %5816 = vmatprep.subr.bf16.mxu0 %v4612_v28  ;;  %v4691_v19 = vld [vmem:[#allocation2 + $0x19e0] sm:$0xff]  ;;  %v4197_v28 = vld [vmem:[#allocation2 + $0xa70] sm:$0xff] }
 0x680   : > { %5992 = vmatprep.subr.bf16.mxu1 %v4118_v23  ;;  %v4700_v23 = vld [vmem:[#allocation2 + $0x1a28] sm:$0xff] }
 0x682   : > { %5817 = vmatpush1.bf16.msra.mxu0 %v4611_v26  ;;  %v4206_v26 = vld [vmem:[#allocation2 + $0xab8] sm:$0xff] }
 0x683   : > { %5993 = vmatpush1.bf16.msra.mxu1 %v4117_v27  ;;  %5818 = vmatprep.subr.bf16.mxu0 %v4620_v30  ;;  %v4699_v27 = vld [vmem:[#allocation2 + $0x1a20] sm:$0xff]  ;;  %v4205_v30 = vld [vmem:[#allocation2 + $0xab0] sm:$0xff] }
 0x684   : > { %6005 = vmatprep.subr.bf16.mxu1 %v4126_v29  ;;  %v4708_v29 = vld [vmem:[#allocation2 + $0x1a68] sm:$0xff] }
 0x686   : > { %5995 = vmatmul.mubr.bf16.vlgmr.msra.gmra.mrb[24].mxu1 %v8903_v58  ;;  %5819 = vmatpush1.bf16.msra.mxu0 %v4619_v33  ;;  %v4150_v58 = vld [vmem:[#allocation2 + $0x8f8] sm:$0xff] }
 0x687   : > { %6006 = vmatpush1.bf16.msra.mxu1 %v4125_v34  ;;  %6037 = vmatprep.mubr.bf16.mxu1 %v8917_v25  ;;  %v4643_v25 = vld [vmem:[#allocation2 + $0x1860] sm:$0xff]  ;;  %v4214_v33 = vld [vmem:[#allocation2 + $0xaf8] sm:$0xff] }
 0x688   : > { %5820 = vmatprep.subr.bf16.mxu0 %v4628_v35  ;;  %6007 = vmatprep.subr.bf16.mxu1 %v4134_v36  ;;  %v4707_v34 = vld [vmem:[#allocation2 + $0x1a60] sm:$0xff]  ;;  %v4213_v35 = vld [vmem:[#allocation2 + $0xaf0] sm:$0xff]  ;;  %v4716_v36 = vld [vmem:[#allocation2 + $0x1aa8] sm:$0xff] }
 0x68a   : > { %5821 = vmatpush1.bf16.msra.mxu0 %v4627_v31  ;;  %v4222_v31 = vld [vmem:[#allocation2 + $0xb38] sm:$0xff] }
 0x68b   : > { %6008 = vmatpush1.bf16.msra.mxu1 %v4133_v46  ;;  %5833 = vmatprep.subr.bf16.mxu0 %v4636_v39  ;;  %v4715_v46 = vld [vmem:[#allocation2 + $0x1aa0] sm:$0xff]  ;;  %v4221_v39 = vld [vmem:[#allocation2 + $0xb30] sm:$0xff] }
 0x68c   : > { %6009 = vmatprep.subr.bf16.mxu1 %v4142_v40  ;;  %v4724_v40 = vld [vmem:[#allocation2 + $0x1ae8] sm:$0xff] }
 0x68d   : > { %5823 = vmatmul.mubr.bf16.vlgmr.msra.gmra.mrb[20].mxu0 %v8936_v20 }
 0x68e   : > { %5834 = vmatpush1.bf16.msra.mxu0 %v4635_v59  ;;  %5865 = vmatprep.mubr.bf16.mxu0 %v8958_v50  ;;  %v4230_v59 = vld [vmem:[#allocation2 + $0xb78] sm:$0xff] }
 0x68f   : > { %6010 = vmatpush1.bf16.msra.mxu1 %v4141_v44  ;;  %5835 = vmatprep.subr.bf16.mxu0 %v4644_v45  ;;  %v4723_v44 = vld [vmem:[#allocation2 + $0x1ae0] sm:$0xff]  ;;  %v4229_v45 = vld [vmem:[#allocation2 + $0xb70] sm:$0xff] }
 0x690   : > { %6011 = vmatprep.subr.bf16.mxu1 %v4150_v58  ;;  %v4732_v58 = vld [vmem:[#allocation2 + $0x1b28] sm:$0xff] }
 0x692   : > { %5836 = vmatpush1.bf16.msra.mxu0 %v4643_v25  ;;  %v4238_v25 = vld [vmem:[#allocation2 + $0xbb8] sm:$0xff] }
 0x693   : > { %6012 = vmatpush1.bf16.msra.mxu1 %v4149_v48  ;;  %5837 = vmatprep.subr.bf16.mxu0 %v4652_v53  ;;  %v4731_v48 = vld [vmem:[#allocation2 + $0x1b20] sm:$0xff]  ;;  %v4237_v53 = vld [vmem:[#allocation2 + $0xbb0] sm:$0xff] }
 0x694   : > { %6013 = vmatprep.subr.bf16.mxu1 %v4158_v54  ;;  %v4740_v54 = vld [vmem:[#allocation2 + $0x1b68] sm:$0xff] }
 0x696   : > { %5838 = vmatpush1.bf16.msra.mxu0 %v4651_v55  ;;  %v4246_v55 = vld [vmem:[#allocation2 + $0xbf8] sm:$0xff] }
 0x697   : > { %6014 = vmatpush1.bf16.msra.mxu1 %v4157_v56  ;;  %5839 = vmatprep.subr.bf16.mxu0 %v4660_v57  ;;  %v4739_v56 = vld [vmem:[#allocation2 + $0x1b60] sm:$0xff]  ;;  %v4245_v57 = vld [vmem:[#allocation2 + $0xbf0] sm:$0xff] }
 0x698   : > { %6015 = vmatprep.subr.bf16.mxu1 %v4166_v60  ;;  %v4748_v60 = vld [vmem:[#allocation2 + $0x1ba8] sm:$0xff] }
 0x69a   : > { %5840 = vmatpush1.bf16.msra.mxu0 %v4659_v61  ;;  %v4254_v61 = vld [vmem:[#allocation2 + $0xc38] sm:$0xff] }
 0x69b   : > { %6016 = vmatpush1.bf16.msra.mxu1 %v4165_v62  ;;  %5841 = vmatprep.subr.bf16.mxu0 %v4668_v0  ;;  %v4747_v62 = vld [vmem:[#allocation2 + $0x1ba0] sm:$0xff]  ;;  %v4253_v0 = vld [vmem:[#allocation2 + $0xc30] sm:$0xff] }
 0x69c   : > { %6017 = vmatprep.subr.bf16.mxu1 %v4174_v1  ;;  %v4756_v1 = vld [vmem:[#allocation2 + $0x1be8] sm:$0xff] }
 0x69e   : > { %5842 = vmatpush1.bf16.msra.mxu0 %v4667_v2  ;;  %v4262_v2 = vld [vmem:[#allocation2 + $0xc78] sm:$0xff] }
 0x69f   : > { %6018 = vmatpush1.bf16.msra.mxu1 %v4173_v4  ;;  %5843 = vmatprep.subr.bf16.mxu0 %v4676_v7  ;;  %v4755_v4 = vld [vmem:[#allocation2 + $0x1be0] sm:$0xff]  ;;  %v4261_v7 = vld [vmem:[#allocation2 + $0xc70] sm:$0xff] }
 0x6a0   : > { %6019 = vmatprep.subr.bf16.mxu1 %v4182_v8  ;;  %v4764_v8 = vld [vmem:[#allocation2 + $0x1c28] sm:$0xff] }
 0x6a2   : > { %5844 = vmatpush1.bf16.msra.mxu0 %v4675_v10  ;;  %v4270_v10 = vld [vmem:[#allocation2 + $0xcb8] sm:$0xff] }
 0x6a3   : > { %6020 = vmatpush1.bf16.msra.mxu1 %v4181_v12  ;;  %5845 = vmatprep.subr.bf16.mxu0 %v4684_v24  ;;  %v4763_v12 = vld [vmem:[#allocation2 + $0x1c20] sm:$0xff]  ;;  %v4269_v24 = vld [vmem:[#allocation2 + $0xcb0] sm:$0xff] }
 0x6a4   : > { %6021 = vmatprep.subr.bf16.mxu1 %v4190_v43  ;;  %v4772_v43 = vld [vmem:[#allocation2 + $0x1c68] sm:$0xff] }
 0x6a6   : > { %5846 = vmatpush1.bf16.msra.mxu0 %v4683_v63  ;;  %v4277_v63 = vld [vmem:[#allocation2 + $0xcf0] sm:$0xff] }
 0x6a7   : > { %6022 = vmatpush1.bf16.msra.mxu1 %v4189_v14  ;;  %5847 = vmatprep.subr.bf16.mxu0 %v4692_v16  ;;  %v4780_v14 = vld [vmem:[#allocation2 + $0x1ca8] sm:$0xff]  ;;  %v4286_v16 = vld [vmem:[#allocation2 + $0xd38] sm:$0xff] }
 0x6a8   : > { %6023 = vmatprep.subr.bf16.mxu1 %v4198_v18  ;;  %v4779_v18 = vld [vmem:[#allocation2 + $0x1ca0] sm:$0xff] }
 0x6aa   : > { %5848 = vmatpush1.bf16.msra.mxu0 %v4691_v19  ;;  %v4285_v19 = vld [vmem:[#allocation2 + $0xd30] sm:$0xff] }
 0x6ab   : > { %6024 = vmatpush1.bf16.msra.mxu1 %v4197_v28  ;;  %5849 = vmatprep.subr.bf16.mxu0 %v4700_v23  ;;  %v4788_v28 = vld [vmem:[#allocation2 + $0x1ce8] sm:$0xff]  ;;  %v4294_v23 = vld [vmem:[#allocation2 + $0xd78] sm:$0xff] }
 0x6ac   : > { %6025 = vmatprep.subr.bf16.mxu1 %v4206_v26  ;;  %v7153_v26 = vld [vmem:[#allocation11 + $0x10] sm:$0xff] }
 0x6ae   : > { %5850 = vmatpush1.bf16.msra.mxu0 %v4699_v27  ;;  %v6276_v27 = vrot.slane %v7153_v26, %v8878_v6 }
 0x6af   : > { %6026 = vmatpush1.bf16.msra.mxu1 %v4205_v30  ;;  %5851 = vmatprep.subr.bf16.mxu0 %v4708_v29  ;;  %v6280_v30 = vrot.slane %v7153_v26, %v8881_v13  ;;  %v4787_v29 = vld [vmem:[#allocation2 + $0x1ce0] sm:$0xff]  ;;  %v4342_v26 = vld [vmem:[#allocation2 + $0xef8] sm:$0xff] }
 0x6b0   : > { %6027 = vmatprep.subr.bf16.mxu1 %v4214_v33  ;;  %v7154_v33 = vld [vmem:[#allocation11 + $0x18] sm:$0xff] }
 0x6b2   : > { %5852 = vmatpush1.bf16.msra.mxu0 %v4707_v34  ;;  %v6334_v34 = vrot.slane %v7154_v33, %v8878_v6  ;;  %v4301_v6 = vld [vmem:[#allocation2 + $0xdb0] sm:$0xff] }
 0x6b3   : > { %6028 = vmatpush1.bf16.msra.mxu1 %v4213_v35  ;;  %5853 = vmatprep.subr.bf16.mxu0 %v4716_v36  ;;  %v4293_v35 = vld [vmem:[#allocation2 + $0xd70] sm:$0xff]  ;;  %v4796_v36 = vld [vmem:[#allocation2 + $0x1d28] sm:$0xff] }
 0x6b4   : > { %6029 = vmatprep.subr.bf16.mxu1 %v4222_v31 }
 0x6b6   : > { %5854 = vmatpush1.bf16.msra.mxu0 %v4715_v46  ;;  %v6338_v46 = vrot.slane %v7154_v33, %v8881_v13  ;;  %v4350_v33 = vld [vmem:[#allocation2 + $0xf38] sm:$0xff] }
 0x6b7   : > { %6030 = vmatpush1.bf16.msra.mxu1 %v4221_v39  ;;  %5855 = vmatprep.subr.bf16.mxu0 %v4724_v40  ;;  %v4302_v39 = vld [vmem:[#allocation2 + $0xdb8] sm:$0xff] }
 0x6b8   : > { %6031 = vmatprep.subr.bf16.mxu1 %v4230_v59 }
 0x6ba   : > { %5856 = vmatpush1.bf16.msra.mxu0 %v4723_v44 }
 0x6bb   : > { %6032 = vmatpush1.bf16.msra.mxu1 %v4229_v45  ;;  %5857 = vmatprep.subr.bf16.mxu0 %v4732_v58  ;;  %v4795_v58 = vld [vmem:[#allocation2 + $0x1d20] sm:$0xff] }
 0x6bc   : > { %6033 = vmatprep.subr.bf16.mxu1 %v4238_v25 }
 0x6be   : > { %5858 = vmatpush1.bf16.msra.mxu0 %v4731_v48 }
 0x6bf   : > { %6034 = vmatpush1.bf16.msra.mxu1 %v4237_v53  ;;  %5859 = vmatprep.subr.bf16.mxu0 %v4740_v54  ;;  %v4804_v54 = vld [vmem:[#allocation2 + $0x1d68] sm:$0xff] }
 0x6c0   : > { %6035 = vmatprep.subr.bf16.mxu1 %v4246_v55 }
 0x6c2   : > { %5860 = vmatpush1.bf16.msra.mxu0 %v4739_v56 }
 0x6c3   : > { %6036 = vmatpush1.bf16.msra.mxu1 %v4245_v57  ;;  %5861 = vmatprep.subr.bf16.mxu0 %v4748_v60  ;;  %v4310_v57 = vld [vmem:[#allocation2 + $0xdf8] sm:$0xff] }
 0x6c4   : > { %6048 = vmatprep.subr.bf16.mxu1 %v4254_v61  ;;  %v4803_v61 = vld [vmem:[#allocation2 + $0x1d60] sm:$0xff] }
 0x6c6   : > { %6038 = vmatmul.mubr.bf16.vlgmr.msra.gmra.mrb[24].mxu1 %v8915_v22  ;;  %5862 = vmatpush1.bf16.msra.mxu0 %v4747_v62  ;;  %v4278_v22 = vld [vmem:[#allocation2 + $0xcf8] sm:$0xff] }
 0x6c7   : > { %6049 = vmatpush1.bf16.msra.mxu1 %v4253_v0  ;;  %6080 = vmatprep.mubr.bf16.mxu1 %v8925_v41  ;;  %v4771_v41 = vld [vmem:[#allocation2 + $0x1c60] sm:$0xff] }
 0x6c8   : > { %5863 = vmatprep.subr.bf16.mxu0 %v4756_v1  ;;  %6050 = vmatprep.subr.bf16.mxu1 %v4262_v2  ;;  %v4309_v1 = vld [vmem:[#allocation2 + $0xdf0] sm:$0xff]  ;;  %v4812_v2 = vld [vmem:[#allocation2 + $0x1da8] sm:$0xff] }
 0x6ca   : > { %5864 = vmatpush1.bf16.msra.mxu0 %v4755_v4 }
 0x6cb   : > { %6051 = vmatpush1.bf16.msra.mxu1 %v4261_v7  ;;  %5876 = vmatprep.subr.bf16.mxu0 %v4764_v8  ;;  %v4318_v8 = vld [vmem:[#allocation2 + $0xe38] sm:$0xff] }
 0x6cc   : > { %6052 = vmatprep.subr.bf16.mxu1 %v4270_v10 }
 0x6cd   : > { %5866 = vmatmul.mubr.bf16.vlgmr.msra.gmra.mrb[20].mxu0 %v8956_v49 }
 0x6ce   : > { %5877 = vmatpush1.bf16.msra.mxu0 %v4763_v12  ;;  %5908 = vmatprep.mubr.bf16.mxu0 %v8944_v52  ;;  %v4811_v12 = vld [vmem:[#allocation2 + $0x1da0] sm:$0xff] }
 0x6cf   : > { %6053 = vmatpush1.bf16.msra.mxu1 %v4269_v24  ;;  %5878 = vmatprep.subr.bf16.mxu0 %v4772_v43  ;;  %v4317_v43 = vld [vmem:[#allocation2 + $0xe30] sm:$0xff] }
 0x6d0   : > { %6054 = vmatprep.subr.bf16.mxu1 %v4278_v22  ;;  %v4820_v22 = vld [vmem:[#allocation2 + $0x1de8] sm:$0xff] }
 0x6d2   : > { %5879 = vmatpush1.bf16.msra.mxu0 %v4771_v41  ;;  %v4326_v41 = vld [vmem:[#allocation2 + $0xe78] sm:$0xff] }
 0x6d3   : > { %6055 = vmatpush1.bf16.msra.mxu1 %v4277_v63  ;;  %5880 = vmatprep.subr.bf16.mxu0 %v4780_v14  ;;  %v4819_v63 = vld [vmem:[#allocation2 + $0x1de0] sm:$0xff]  ;;  %v4325_v14 = vld [vmem:[#allocation2 + $0xe70] sm:$0xff] }
 0x6d4   : > { %6056 = vmatprep.subr.bf16.mxu1 %v4286_v16  ;;  %v4828_v16 = vld [vmem:[#allocation2 + $0x1e28] sm:$0xff] }
 0x6d6   : > { %5881 = vmatpush1.bf16.msra.mxu0 %v4779_v18  ;;  %v4334_v18 = vld [vmem:[#allocation2 + $0xeb8] sm:$0xff] }
 0x6d7   : > { %6057 = vmatpush1.bf16.msra.mxu1 %v4285_v19  ;;  %5882 = vmatprep.subr.bf16.mxu0 %v4788_v28  ;;  %v4827_v19 = vld [vmem:[#allocation2 + $0x1e20] sm:$0xff]  ;;  %v4333_v28 = vld [vmem:[#allocation2 + $0xeb0] sm:$0xff] }
 0x6d8   : > { %6058 = vmatprep.subr.bf16.mxu1 %v4294_v23  ;;  %v4836_v23 = vld [vmem:[#allocation2 + $0x1e68] sm:$0xff] }
 0x6d9   : > { %v5566_v31 = vpop.f32.mrb[20].mxu1 }
 0x6da   : > { %v6307_v40 = vmul.f32 %v6276_v27, %v5566_v31  ;;  %v5568_v59 = vpop.f32.mrb[21].mxu1  ;;  %5883 = vmatpush1.bf16.msra.mxu0 %v4787_v29  ;;  %v4844_v29 = vld [vmem:[#allocation2 + $0x1ea8] sm:$0xff]  ;;  %v4358_v31 = vld [vmem:[#allocation2 + $0xf78] sm:$0xff] }
 0x6db   : > { %v6308_v44 = vmul.f32 %v6280_v30, %v5568_v59  ;;  %v5570_v45 = vpop.f32.mrb[22].mxu1  ;;  %6059 = vmatpush1.bf16.msra.mxu1 %v4293_v35  ;;  %5884 = vmatprep.subr.bf16.mxu0 %v4796_v36  ;;  %v4349_v35 = vld [vmem:[#allocation2 + $0xf30] sm:$0xff]  ;;  %v4852_v36 = vld [vmem:[#allocation2 + $0x1ee8] sm:$0xff]  ;;  %v4366_v59 = vld [vmem:[#allocation2 + $0xfb8] sm:$0xff] }
 0x6dc   : > { %v6365_v25 = vadd.f32 %v6334_v34, %v6307_v40  ;;  %v6315_v48 = vmul.f32 %v6276_v27, %v5570_v45  ;;  %v5572_v53 = vpop.f32.mrb[23].mxu1  ;;  %6060 = vmatprep.subr.bf16.mxu1 %v4302_v39  ;;  %v4835_v27 = vld [vmem:[#allocation2 + $0x1e60] sm:$0xff]  ;;  %v4357_v39 = vld [vmem:[#allocation2 + $0xf70] sm:$0xff]  ;;  %v4860_v40 = vld [vmem:[#allocation2 + $0x1f28] sm:$0xff] }
 0x6dd   : > { %v6366_v55 = vadd.f32 %v6338_v46, %v6308_v44  ;;  %v6316_v56 = vmul.f32 %v6280_v30, %v5572_v53  ;;  %v4341_v30 = vld [vmem:[#allocation2 + $0xef0] sm:$0xff]  ;;  %v4859_v44 = vld [vmem:[#allocation2 + $0x1f20] sm:$0xff] }
 0x6de   : > { %v6373_v60 = vadd.f32 %v6334_v34, %v6315_v48  ;;  %5885 = vmatpush1.bf16.msra.mxu0 %v4795_v58  ;;  %v6381_v62 = vmax.f32 %v6365_v25, 0.0  ;;  %v4843_v34 = vld [vmem:[#allocation2 + $0x1ea0] sm:$0xff]  ;;  %v4365_v45 = vld [vmem:[#allocation2 + $0xfb0] sm:$0xff]  ;;  %v4868_v58 = vld [vmem:[#allocation2 + $0x1f68] sm:$0xff] }
 0x6df   : > { %v6374_v13 = vadd.f32 %v6338_v46, %v6316_v56  ;;  %6061 = vmatpush1.bf16.msra.mxu1 %v4301_v6  ;;  %5886 = vmatprep.subr.bf16.mxu0 %v4804_v54  ;;  %v6382_v4 = vmax.f32 %v6366_v55, 0.0  ;;  %v4851_v46 = vld [vmem:[#allocation2 + $0x1ee0] sm:$0xff]  ;;  %v4374_v25 = vld [vmem:[#allocation2 + $0xff8] sm:$0xff]  ;;  %v4373_v53 = vld [vmem:[#allocation2 + $0xff0] sm:$0xff] }
 0x6e0   : > { %v6389_v0 = vmax.f32 %v6373_v60, 0.0  ;;  %6062 = vmatprep.subr.bf16.mxu1 %v4310_v57  ;;  %v4867_v48 = vld [vmem:[#allocation2 + $0x1f60] sm:$0xff]  ;;  %v4876_v6 = vld [vmem:[#allocation2 + $0x1fa8] sm:$0xff]  ;;  %v4382_v54 = vld [vmem:[#allocation2 + $0x1038] sm:$0xff] }
 0x6e1   : > { %v6390_v7 = vmax.f32 %v6374_v13, 0.0  ;;  %v4875_v55 = vld [vmem:[#allocation2 + $0x1fa0] sm:$0xff]  ;;  %v4381_v56 = vld [vmem:[#allocation2 + $0x1030] sm:$0xff]  ;;  %v4884_v57 = vld [vmem:[#allocation2 + $0x1fe8] sm:$0xff] }
 0x6e2   : > { %v9026_v10 = vpack.c.bf16 %v6389_v0, %v6381_v62  ;;  %5887 = vmatpush1.bf16.msra.mxu0 %v4803_v61  ;;  %v4390_v60 = vld [vmem:[#allocation2 + $0x1078] sm:$0xff]  ;;  %v4883_v13 = vld [vmem:[#allocation2 + $0x1fe0] sm:$0xff]  ;;  %v4389_v61 = vld [vmem:[#allocation2 + $0x1070] sm:$0xff] }
 0x6e3   : > { %6063 = vmatpush1.bf16.msra.mxu1 %v4309_v1  ;;  %5888 = vmatprep.subr.bf16.mxu0 %v4812_v2  ;;  %v9028_v24 = vpack.c.bf16 %v6390_v7, %v6382_v4  ;;  %v6404_v62 = vld [vmem:[#allocation3 + $0x8] sm:$0xff]  ;;  %v4398_v0 = vld [vmem:[#allocation2 + $0x10b8] sm:$0xff]  ;;  %v6403_v1 = vld [vmem:[#allocation3] sm:$0xff] }
 0x6e4   : > { %6064 = vmatprep.subr.bf16.mxu1 %v4318_v8  ;;  %v4397_v2 = vld [vmem:[#allocation2 + $0x10b0] sm:$0xff]  ;;  %v6406_v4 = vld [vmem:[#allocation3 + $0x18] sm:$0xff]  ;;  %v6408_v8 = vld [vmem:[#allocation3 + $0x28] sm:$0xff] }
 0x6e5   : > { %v4405_v7 = vld [vmem:[#allocation2 + $0x10f0] sm:$0xff] }
 0x6e6   : > { %5889 = vmatpush1.bf16.msra.mxu0 %v4811_v12  ;;  %v4414_v12 = vld [vmem:[#allocation2 + $0x1138] sm:$0xff] }
 0x6e7   : > { %6065 = vmatpush1.bf16.msra.mxu1 %v4317_v43  ;;  %5890 = vmatprep.subr.bf16.mxu0 %v4820_v22  ;;  %v6407_v43 = vld [vmem:[#allocation3 + $0x20] sm:$0xff]  ;;  %v4413_v22 = vld [vmem:[#allocation2 + $0x1130] sm:$0xff] }
 0x6e8   : > { %6066 = vmatprep.subr.bf16.mxu1 %v4326_v41  ;;  %v6410_v41 = vld [vmem:[#allocation3 + $0x38] sm:$0xff] }
 0x6ea   : > { %5891 = vmatpush1.bf16.msra.mxu0 %v4819_v63  ;;  %v4422_v63 = vld [vmem:[#allocation2 + $0x1178] sm:$0xff] }
 0x6eb   : > { %6067 = vmatpush1.bf16.msra.mxu1 %v4325_v14  ;;  %5892 = vmatprep.subr.bf16.mxu0 %v4828_v16  ;;  %v6409_v14 = vld [vmem:[#allocation3 + $0x30] sm:$0xff]  ;;  %v6412_v16 = vld [vmem:[#allocation3 + $0x48] sm:$0xff] }
 0x6ec   : > { %6068 = vmatprep.subr.bf16.mxu1 %v4334_v18  ;;  %v4430_v18 = vld [vmem:[#allocation2 + $0x11b8] sm:$0xff] }
 0x6ee   : > { %5893 = vmatpush1.bf16.msra.mxu0 %v4827_v19  ;;  %v6411_v19 = vld [vmem:[#allocation3 + $0x40] sm:$0xff] }
 0x6ef   : > { %6069 = vmatpush1.bf16.msra.mxu1 %v4333_v28  ;;  %5894 = vmatprep.subr.bf16.mxu0 %v4836_v23  ;;  %v4429_v28 = vld [vmem:[#allocation2 + $0x11b0] sm:$0xff]  ;;  %v6414_v23 = vld [vmem:[#allocation3 + $0x58] sm:$0xff] }
 0x6f0   : > { %6070 = vmatprep.subr.bf16.mxu1 %v4342_v26  ;;  %v4438_v26 = vld [vmem:[#allocation2 + $0x11f8] sm:$0xff] }
 0x6f2   : > { %5895 = vmatpush1.bf16.msra.mxu0 %v4835_v27  ;;  %v6413_v27 = vld [vmem:[#allocation3 + $0x50] sm:$0xff] }
 0x6f3   : > { %6071 = vmatpush1.bf16.msra.mxu1 %v4341_v30  ;;  %5896 = vmatprep.subr.bf16.mxu0 %v4844_v29  ;;  %v4437_v30 = vld [vmem:[#allocation2 + $0x11f0] sm:$0xff]  ;;  %v6416_v29 = vld [vmem:[#allocation3 + $0x68] sm:$0xff] }
 0x6f4   : > { %6072 = vmatprep.subr.bf16.mxu1 %v4350_v33  ;;  %v4446_v33 = vld [vmem:[#allocation2 + $0x1238] sm:$0xff] }
 0x6f6   : > { %5897 = vmatpush1.bf16.msra.mxu0 %v4843_v34  ;;  %v6415_v34 = vld [vmem:[#allocation3 + $0x60] sm:$0xff] }
 0x6f7   : > { %6073 = vmatpush1.bf16.msra.mxu1 %v4349_v35  ;;  %5898 = vmatprep.subr.bf16.mxu0 %v4852_v36  ;;  %v4445_v35 = vld [vmem:[#allocation2 + $0x1230] sm:$0xff]  ;;  %v6418_v36 = vld [vmem:[#allocation3 + $0x78] sm:$0xff] }
 0x6f8   : > { %6074 = vmatprep.subr.bf16.mxu1 %v4358_v31  ;;  %v4454_v31 = vld [vmem:[#allocation2 + $0x1278] sm:$0xff] }
 0x6fa   : > { %5899 = vmatpush1.bf16.msra.mxu0 %v4851_v46  ;;  %v6417_v46 = vld [vmem:[#allocation3 + $0x70] sm:$0xff] }
 0x6fb   : > { %6075 = vmatpush1.bf16.msra.mxu1 %v4357_v39  ;;  %5900 = vmatprep.subr.bf16.mxu0 %v4860_v40  ;;  %v4453_v39 = vld [vmem:[#allocation2 + $0x1270] sm:$0xff]  ;;  %v6420_v40 = vld [vmem:[#allocation3 + $0x88] sm:$0xff] }
 0x6fc   : > { %6076 = vmatprep.subr.bf16.mxu1 %v4366_v59  ;;  %v4462_v59 = vld [vmem:[#allocation2 + $0x12b8] sm:$0xff] }
 0x6fe   : > { %5901 = vmatpush1.bf16.msra.mxu0 %v4859_v44  ;;  %v6419_v44 = vld [vmem:[#allocation3 + $0x80] sm:$0xff] }
 0x6ff   : > { %6077 = vmatpush1.bf16.msra.mxu1 %v4365_v45  ;;  %5902 = vmatprep.subr.bf16.mxu0 %v4868_v58  ;;  %v4461_v45 = vld [vmem:[#allocation2 + $0x12b0] sm:$0xff]  ;;  %v6422_v58 = vld [vmem:[#allocation3 + $0x98] sm:$0xff] }
 0x700   : > { %6078 = vmatprep.subr.bf16.mxu1 %v4374_v25  ;;  %v4470_v25 = vld [vmem:[#allocation2 + $0x12f8] sm:$0xff] }
 0x702   : > { %5903 = vmatpush1.bf16.msra.mxu0 %v4867_v48  ;;  %v6421_v48 = vld [vmem:[#allocation3 + $0x90] sm:$0xff] }
 0x703   : > { %6079 = vmatpush1.bf16.msra.mxu1 %v4373_v53  ;;  %5904 = vmatprep.subr.bf16.mxu0 %v4876_v6  ;;  %v4469_v53 = vld [vmem:[#allocation2 + $0x12f0] sm:$0xff]  ;;  %v6424_v6 = vld [vmem:[#allocation3 + $0xa8] sm:$0xff] }
 0x704   : > { %6091 = vmatprep.subr.bf16.mxu1 %v4382_v54  ;;  %v4478_v54 = vld [vmem:[#allocation2 + $0x1338] sm:$0xff] }
 0x706   : > { %6081 = vmatmul.mubr.bf16.vlgmr.msra.gmra.mrb[24].mxu1 %v8922_v38  ;;  %5905 = vmatpush1.bf16.msra.mxu0 %v4875_v55  ;;  %v4406_v38 = vld [vmem:[#allocation2 + $0x10f8] sm:$0xff]  ;;  %v6423_v55 = vld [vmem:[#allocation3 + $0xa0] sm:$0xff] }
 0x707   : > { %6092 = vmatpush1.bf16.msra.mxu1 %v4381_v56  ;;  %6123 = vmatprep.mubr.bf16.mxu1 %v8932_v5  ;;  %v6405_v5 = vld [vmem:[#allocation3 + $0x10] sm:$0xff] }
 0x708   : > { %5906 = vmatprep.subr.bf16.mxu0 %v4884_v57  ;;  %6093 = vmatprep.subr.bf16.mxu1 %v4390_v60  ;;  %v4477_v56 = vld [vmem:[#allocation2 + $0x1330] sm:$0xff]  ;;  %v6426_v57 = vld [vmem:[#allocation3 + $0xb8] sm:$0xff] }
 0x709   : > { %v4486_v60 = vld [vmem:[#allocation2 + $0x1378] sm:$0xff] }
 0x70a   : > { %5907 = vmatpush1.bf16.msra.mxu0 %v4883_v13  ;;  %v6425_v13 = vld [vmem:[#allocation3 + $0xb0] sm:$0xff] }
 0x70b   : > { %6094 = vmatpush1.bf16.msra.mxu1 %v4389_v61  ;;  %6531 = vmatprep.subr.bf16.mxu0 %v6404_v62  ;;  %v4485_v61 = vld [vmem:[#allocation2 + $0x1370] sm:$0xff]  ;;  %v6428_v62 = vld [vmem:[#allocation3 + $0xc8] sm:$0xff] }
 0x70c   : > { %6095 = vmatprep.subr.bf16.mxu1 %v4398_v0  ;;  %v4494_v0 = vld [vmem:[#allocation2 + $0x13b8] sm:$0xff] }
 0x70d   : > { %5909 = vmatmul.mubr.bf16.vlgmr.msra.gmra.mrb[20].mxu0 %v8942_v51 }
 0x70e   : > { %6532 = vmatpush1.bf16.msra.mxu0 %v6403_v1  ;;  %6563 = vmatprep.mubr.bf16.mxu0 %v9004_v47  ;;  %v4421_v47 = vld [vmem:[#allocation2 + $0x1170] sm:$0xff]  ;;  %v6427_v1 = vld [vmem:[#allocation3 + $0xc0] sm:$0xff] }
 0x70f   : > { %6096 = vmatpush1.bf16.msra.mxu1 %v4397_v2  ;;  %6533 = vmatprep.subr.bf16.mxu0 %v6406_v4  ;;  %v4493_v2 = vld [vmem:[#allocation2 + $0x13b0] sm:$0xff]  ;;  %v6430_v4 = vld [vmem:[#allocation3 + $0xd8] sm:$0xff] }
 0x710   : > { %6097 = vmatprep.subr.bf16.mxu1 %v4406_v38  ;;  %v4502_v38 = vld [vmem:[#allocation2 + $0x13f8] sm:$0xff] }
 0x712   : > { %6534 = vmatpush1.bf16.msra.mxu0 %v6405_v5  ;;  %v6429_v5 = vld [vmem:[#allocation3 + $0xd0] sm:$0xff] }
 0x713   : > { %6098 = vmatpush1.bf16.msra.mxu1 %v4405_v7  ;;  %6535 = vmatprep.subr.bf16.mxu0 %v6408_v8  ;;  %v4501_v7 = vld [vmem:[#allocation2 + $0x13f0] sm:$0xff]  ;;  %v6432_v8 = vld [vmem:[#allocation3 + $0xe8] sm:$0xff] }
 0x714   : > { %6099 = vmatprep.subr.bf16.mxu1 %v4414_v12  ;;  %v4510_v12 = vld [vmem:[#allocation2 + $0x1438] sm:$0xff] }
 0x716   : > { %6536 = vmatpush1.bf16.msra.mxu0 %v6407_v43  ;;  %v6431_v43 = vld [vmem:[#allocation3 + $0xe0] sm:$0xff] }
 0x717   : > { %6100 = vmatpush1.bf16.msra.mxu1 %v4413_v22  ;;  %6537 = vmatprep.subr.bf16.mxu0 %v6410_v41  ;;  %v4509_v22 = vld [vmem:[#allocation2 + $0x1430] sm:$0xff]  ;;  %v4518_v41 = vld [vmem:[#allocation2 + $0x1478] sm:$0xff] }
 0x718   : > { %6101 = vmatprep.subr.bf16.mxu1 %v4422_v63  ;;  %v6434_v63 = vld [vmem:[#allocation3 + $0xf8] sm:$0xff] }
 0x71a   : > { %6538 = vmatpush1.bf16.msra.mxu0 %v6409_v14  ;;  %v6433_v14 = vld [vmem:[#allocation3 + $0xf0] sm:$0xff] }
 0x71b   : > { %6102 = vmatpush1.bf16.msra.mxu1 %v4421_v47  ;;  %6539 = vmatprep.subr.bf16.mxu0 %v6412_v16  ;;  %v4517_v47 = vld [vmem:[#allocation2 + $0x1470] sm:$0xff]  ;;  %v6436_v16 = vld [vmem:[#allocation3 + $0x108] sm:$0xff] }
 0x71c   : > { %6103 = vmatprep.subr.bf16.mxu1 %v4430_v18  ;;  %v4526_v18 = vld [vmem:[#allocation2 + $0x14b8] sm:$0xff] }
 0x71e   : > { %6540 = vmatpush1.bf16.msra.mxu0 %v6411_v19  ;;  %v6435_v19 = vld [vmem:[#allocation3 + $0x100] sm:$0xff] }
 0x71f   : > { %6104 = vmatpush1.bf16.msra.mxu1 %v4429_v28  ;;  %6541 = vmatprep.subr.bf16.mxu0 %v6414_v23  ;;  %v4525_v28 = vld [vmem:[#allocation2 + $0x14b0] sm:$0xff]  ;;  %v6438_v23 = vld [vmem:[#allocation3 + $0x118] sm:$0xff] }
 0x720   : > { %6105 = vmatprep.subr.bf16.mxu1 %v4438_v26  ;;  %v4533_v26 = vld [vmem:[#allocation2 + $0x14f0] sm:$0xff] }
 0x722   : > { %6542 = vmatpush1.bf16.msra.mxu0 %v6413_v27  ;;  %v6440_v27 = vld [vmem:[#allocation3 + $0x128] sm:$0xff] }
 0x723   : > { %6106 = vmatpush1.bf16.msra.mxu1 %v4437_v30  ;;  %6543 = vmatprep.subr.bf16.mxu0 %v6416_v29  ;;  %v4542_v30 = vld [vmem:[#allocation2 + $0x1538] sm:$0xff]  ;;  %v6439_v29 = vld [vmem:[#allocation3 + $0x120] sm:$0xff] }
 0x724   : > { %6107 = vmatprep.subr.bf16.mxu1 %v4446_v33  ;;  %v4541_v33 = vld [vmem:[#allocation2 + $0x1530] sm:$0xff] }
 0x726   : > { %6544 = vmatpush1.bf16.msra.mxu0 %v6415_v34  ;;  %v6442_v34 = vld [vmem:[#allocation3 + $0x138] sm:$0xff] }
 0x727   : > { %6108 = vmatpush1.bf16.msra.mxu1 %v4445_v35  ;;  %6545 = vmatprep.subr.bf16.mxu0 %v6418_v36  ;;  %v4550_v35 = vld [vmem:[#allocation2 + $0x1578] sm:$0xff]  ;;  %v6444_v36 = vld [vmem:[#allocation3 + $0x148] sm:$0xff] }
 0x728   : > { %6109 = vmatprep.subr.bf16.mxu1 %v4454_v31  ;;  %v4558_v31 = vld [vmem:[#allocation2 + $0x15b8] sm:$0xff] }
 0x72a   : > { %6546 = vmatpush1.bf16.msra.mxu0 %v6417_v46  ;;  %v6443_v46 = vld [vmem:[#allocation3 + $0x140] sm:$0xff] }
 0x72b   : > { %6110 = vmatpush1.bf16.msra.mxu1 %v4453_v39  ;;  %6547 = vmatprep.subr.bf16.mxu0 %v6420_v40  ;;  %v4557_v39 = vld [vmem:[#allocation2 + $0x15b0] sm:$0xff]  ;;  %v6446_v40 = vld [vmem:[#allocation3 + $0x158] sm:$0xff] }
 0x72c   : > { %6111 = vmatprep.subr.bf16.mxu1 %v4462_v59  ;;  %v4566_v59 = vld [vmem:[#allocation2 + $0x15f8] sm:$0xff] }
 0x72e   : > { %6548 = vmatpush1.bf16.msra.mxu0 %v6419_v44  ;;  %v6445_v44 = vld [vmem:[#allocation3 + $0x150] sm:$0xff] }
 0x72f   : > { %6112 = vmatpush1.bf16.msra.mxu1 %v4461_v45  ;;  %6549 = vmatprep.subr.bf16.mxu0 %v6422_v58  ;;  %v4565_v45 = vld [vmem:[#allocation2 + $0x15f0] sm:$0xff]  ;;  %v6448_v58 = vld [vmem:[#allocation3 + $0x168] sm:$0xff] }
 0x730   : > { %6113 = vmatprep.subr.bf16.mxu1 %v4470_v25  ;;  %v4574_v25 = vld [vmem:[#allocation2 + $0x1638] sm:$0xff] }
 0x732   : > { %6550 = vmatpush1.bf16.msra.mxu0 %v6421_v48  ;;  %v6447_v48 = vld [vmem:[#allocation3 + $0x160] sm:$0xff] }
 0x733   : > { %6114 = vmatpush1.bf16.msra.mxu1 %v4469_v53  ;;  %6551 = vmatprep.subr.bf16.mxu0 %v6424_v6  ;;  %v4573_v53 = vld [vmem:[#allocation2 + $0x1630] sm:$0xff]  ;;  %v6450_v6 = vld [vmem:[#allocation3 + $0x178] sm:$0xff] }
 0x734   : > { %6115 = vmatprep.subr.bf16.mxu1 %v4478_v54  ;;  %v4582_v54 = vld [vmem:[#allocation2 + $0x1678] sm:$0xff] }
 0x736   : > { %6552 = vmatpush1.bf16.msra.mxu0 %v6423_v55  ;;  %v6449_v55 = vld [vmem:[#allocation3 + $0x170] sm:$0xff] }
 0x737   : > { %6116 = vmatpush1.bf16.msra.mxu1 %v4477_v56  ;;  %6553 = vmatprep.subr.bf16.mxu0 %v6426_v57  ;;  %v4581_v56 = vld [vmem:[#allocation2 + $0x1670] sm:$0xff]  ;;  %v6452_v57 = vld [vmem:[#allocation3 + $0x188] sm:$0xff] }
 0x738   : > { %6117 = vmatprep.subr.bf16.mxu1 %v4486_v60  ;;  %v4590_v60 = vld [vmem:[#allocation2 + $0x16b8] sm:$0xff] }
 0x73a   : > { %6554 = vmatpush1.bf16.msra.mxu0 %v6425_v13  ;;  %v6451_v13 = vld [vmem:[#allocation3 + $0x180] sm:$0xff] }
 0x73b   : > { %6118 = vmatpush1.bf16.msra.mxu1 %v4485_v61  ;;  %6555 = vmatprep.subr.bf16.mxu0 %v6428_v62  ;;  %v4589_v61 = vld [vmem:[#allocation2 + $0x16b0] sm:$0xff]  ;;  %v6454_v62 = vld [vmem:[#allocation3 + $0x198] sm:$0xff] }
 0x73c   : > { %6119 = vmatprep.subr.bf16.mxu1 %v4494_v0  ;;  %v4598_v0 = vld [vmem:[#allocation2 + $0x16f8] sm:$0xff] }
 0x73e   : > { %6556 = vmatpush1.bf16.msra.mxu0 %v6427_v1  ;;  %v6453_v1 = vld [vmem:[#allocation3 + $0x190] sm:$0xff] }
 0x73f   : > { %6120 = vmatpush1.bf16.msra.mxu1 %v4493_v2  ;;  %6557 = vmatprep.subr.bf16.mxu0 %v6430_v4  ;;  %v4597_v2 = vld [vmem:[#allocation2 + $0x16f0] sm:$0xff]  ;;  %v6456_v4 = vld [vmem:[#allocation3 + $0x1a8] sm:$0xff] }
 0x740   : > { %6121 = vmatprep.subr.bf16.mxu1 %v4502_v38  ;;  %v4606_v38 = vld [vmem:[#allocation2 + $0x1738] sm:$0xff] }
 0x742   : > { %6558 = vmatpush1.bf16.msra.mxu0 %v6429_v5  ;;  %v6455_v5 = vld [vmem:[#allocation3 + $0x1a0] sm:$0xff] }
 0x743   : > { %6122 = vmatpush1.bf16.msra.mxu1 %v4501_v7  ;;  %6559 = vmatprep.subr.bf16.mxu0 %v6432_v8  ;;  %v4605_v7 = vld [vmem:[#allocation2 + $0x1730] sm:$0xff]  ;;  %v6458_v8 = vld [vmem:[#allocation3 + $0x1b8] sm:$0xff] }
 0x744   : > { %6134 = vmatprep.subr.bf16.mxu1 %v4510_v12  ;;  %v4614_v12 = vld [vmem:[#allocation2 + $0x1778] sm:$0xff] }
 0x746   : > { %6124 = vmatmul.mubr.bf16.vlgmr.msra.gmra.mrb[24].mxu1 %v8930_v3  ;;  %6560 = vmatpush1.bf16.msra.mxu0 %v6431_v43  ;;  %v4534_v3 = vld [vmem:[#allocation2 + $0x14f8] sm:$0xff]  ;;  %v6457_v43 = vld [vmem:[#allocation3 + $0x1b0] sm:$0xff] }
 0x747   : > { %6135 = vmatpush1.bf16.msra.mxu1 %v4509_v22  ;;  %6166 = vmatprep.mubr.bf16.mxu1 %v8938_v21  ;;  %v6437_v21 = vld [vmem:[#allocation3 + $0x110] sm:$0xff] }
 0x748   : > { %6136 = vmatprep.subr.bf16.mxu1 %v4518_v41  ;;  %6561 = vmatprep.subr.bf16.mxu0 %v6434_v63  ;;  %v4613_v22 = vld [vmem:[#allocation2 + $0x1770] sm:$0xff]  ;;  %v6460_v41 = vld [vmem:[#allocation3 + $0x1c8] sm:$0xff]  ;;  %v4622_v63 = vld [vmem:[#allocation2 + $0x17b8] sm:$0xff] }
 0x74a   : > { %6562 = vmatpush1.bf16.msra.mxu0 %v6433_v14  ;;  %v6459_v14 = vld [vmem:[#allocation3 + $0x1c0] sm:$0xff] }
 0x74b   : > { %6137 = vmatpush1.bf16.msra.mxu1 %v4517_v47  ;;  %6574 = vmatprep.subr.bf16.mxu0 %v6436_v16  ;;  %v4621_v47 = vld [vmem:[#allocation2 + $0x17b0] sm:$0xff]  ;;  %v6462_v16 = vld [vmem:[#allocation3 + $0x1d8] sm:$0xff] }
 0x74c   : > { %6138 = vmatprep.subr.bf16.mxu1 %v4526_v18  ;;  %v4630_v18 = vld [vmem:[#allocation2 + $0x17f8] sm:$0xff] }
 0x74d   : > { %6564 = vmatmul.mubr.bf16.vlgmr.msra.gmra.mrb[24].mxu0 %v9002_v42  ;;  %v6441_v42 = vld [vmem:[#allocation3 + $0x130] sm:$0xff] }
 0x74e   : > { %6575 = vmatpush1.bf16.msra.mxu0 %v6435_v19  ;;  %6606 = vmatprep.mubr.bf16.mxu0 %v9028_v24  ;;  %v4549_v24 = vld [vmem:[#allocation2 + $0x1570] sm:$0xff] }
 0x74f   : > { %6139 = vmatpush1.bf16.msra.mxu1 %v4525_v28  ;;  %6576 = vmatprep.subr.bf16.mxu0 %v6438_v23  ;;  %v6461_v19 = vld [vmem:[#allocation3 + $0x1d0] sm:$0xff]  ;;  %v6464_v23 = vld [vmem:[#allocation3 + $0x1e8] sm:$0xff] }
 0x750   : > { %6140 = vmatprep.subr.bf16.mxu1 %v4534_v3  ;;  %v4629_v28 = vld [vmem:[#allocation2 + $0x17f0] sm:$0xff]  ;;  %v4638_v3 = vld [vmem:[#allocation2 + $0x1838] sm:$0xff] }
 0x752   : > { %6577 = vmatpush1.bf16.msra.mxu0 %v6437_v21  ;;  %v6463_v21 = vld [vmem:[#allocation3 + $0x1e0] sm:$0xff] }
 0x753   : > { %6141 = vmatpush1.bf16.msra.mxu1 %v4533_v26  ;;  %6578 = vmatprep.subr.bf16.mxu0 %v6440_v27  ;;  %v4637_v26 = vld [vmem:[#allocation2 + $0x1830] sm:$0xff]  ;;  %v4646_v27 = vld [vmem:[#allocation2 + $0x1878] sm:$0xff] }
 0x754   : > { %6142 = vmatprep.subr.bf16.mxu1 %v4542_v30  ;;  %v6466_v30 = vld [vmem:[#allocation3 + $0x1f8] sm:$0xff] }
 0x756   : > { %6579 = vmatpush1.bf16.msra.mxu0 %v6439_v29  ;;  %v6465_v29 = vld [vmem:[#allocation3 + $0x1f0] sm:$0xff] }
 0x757   : > { %6143 = vmatpush1.bf16.msra.mxu1 %v4541_v33  ;;  %6580 = vmatprep.subr.bf16.mxu0 %v6442_v34  ;;  %v4645_v33 = vld [vmem:[#allocation2 + $0x1870] sm:$0xff]  ;;  %v6468_v34 = vld [vmem:[#allocation3 + $0x208] sm:$0xff] }
 0x758   : > { %6144 = vmatprep.subr.bf16.mxu1 %v4550_v35  ;;  %v4654_v35 = vld [vmem:[#allocation2 + $0x18b8] sm:$0xff] }
 0x75a   : > { %6581 = vmatpush1.bf16.msra.mxu0 %v6441_v42  ;;  %v6467_v42 = vld [vmem:[#allocation3 + $0x200] sm:$0xff] }
 0x75b   : > { %6145 = vmatpush1.bf16.msra.mxu1 %v4549_v24  ;;  %6582 = vmatprep.subr.bf16.mxu0 %v6444_v36  ;;  %v4653_v24 = vld [vmem:[#allocation2 + $0x18b0] sm:$0xff]  ;;  %v6470_v36 = vld [vmem:[#allocation3 + $0x218] sm:$0xff] }
 0x75c   : > { %6146 = vmatprep.subr.bf16.mxu1 %v4558_v31  ;;  %v4661_v31 = vld [vmem:[#allocation2 + $0x18f0] sm:$0xff] }
 0x75e   : > { %6583 = vmatpush1.bf16.msra.mxu0 %v6443_v46  ;;  %v6472_v46 = vld [vmem:[#allocation3 + $0x228] sm:$0xff] }
 0x75f   : > { %6147 = vmatpush1.bf16.msra.mxu1 %v4557_v39  ;;  %6584 = vmatprep.subr.bf16.mxu0 %v6446_v40  ;;  %v4670_v39 = vld [vmem:[#allocation2 + $0x1938] sm:$0xff]  ;;  %v6471_v40 = vld [vmem:[#allocation3 + $0x220] sm:$0xff] }
 0x760   : > { %6148 = vmatprep.subr.bf16.mxu1 %v4566_v59  ;;  %v4669_v59 = vld [vmem:[#allocation2 + $0x1930] sm:$0xff] }
 0x762   : > { %6585 = vmatpush1.bf16.msra.mxu0 %v6445_v44  ;;  %v6474_v44 = vld [vmem:[#allocation3 + $0x238] sm:$0xff] }
 0x763   : > { %6149 = vmatpush1.bf16.msra.mxu1 %v4565_v45  ;;  %6586 = vmatprep.subr.bf16.mxu0 %v6448_v58  ;;  %v4678_v45 = vld [vmem:[#allocation2 + $0x1978] sm:$0xff]  ;;  %v4677_v58 = vld [vmem:[#allocation2 + $0x1970] sm:$0xff] }
 0x764   : > { %6150 = vmatprep.subr.bf16.mxu1 %v4574_v25  ;;  %v6476_v25 = vld [vmem:[#allocation3 + $0x248] sm:$0xff] }
 0x766   : > { %6587 = vmatpush1.bf16.msra.mxu0 %v6447_v48  ;;  %v4686_v48 = vld [vmem:[#allocation2 + $0x19b8] sm:$0xff] }
 0x767   : > { %6151 = vmatpush1.bf16.msra.mxu1 %v4573_v53  ;;  %6588 = vmatprep.subr.bf16.mxu0 %v6450_v6  ;;  %v6475_v53 = vld [vmem:[#allocation3 + $0x240] sm:$0xff]  ;;  %v4685_v6 = vld [vmem:[#allocation2 + $0x19b0] sm:$0xff] }
 0x768   : > { %6152 = vmatprep.subr.bf16.mxu1 %v4582_v54  ;;  %v6478_v54 = vld [vmem:[#allocation3 + $0x258] sm:$0xff] }
 0x76a   : > { %6589 = vmatpush1.bf16.msra.mxu0 %v6449_v55  ;;  %v4694_v55 = vld [vmem:[#allocation2 + $0x19f8] sm:$0xff] }
 0x76b   : > { %6153 = vmatpush1.bf16.msra.mxu1 %v4581_v56  ;;  %6590 = vmatprep.subr.bf16.mxu0 %v6452_v57  ;;  %v6477_v56 = vld [vmem:[#allocation3 + $0x250] sm:$0xff] }
 0x76c   : > { %6154 = vmatprep.subr.bf16.mxu1 %v4590_v60  ;;  %v4693_v57 = vld [vmem:[#allocation2 + $0x19f0] sm:$0xff]  ;;  %v6480_v60 = vld [vmem:[#allocation3 + $0x268] sm:$0xff] }
 0x76e   : > { %6591 = vmatpush1.bf16.msra.mxu0 %v6451_v13  ;;  %v4702_v13 = vld [vmem:[#allocation2 + $0x1a38] sm:$0xff] }
 0x76f   : > { %6155 = vmatpush1.bf16.msra.mxu1 %v4589_v61  ;;  %6592 = vmatprep.subr.bf16.mxu0 %v6454_v62  ;;  %v6479_v61 = vld [vmem:[#allocation3 + $0x260] sm:$0xff]  ;;  %v4701_v62 = vld [vmem:[#allocation2 + $0x1a30] sm:$0xff] }
 0x770   : > { %6156 = vmatprep.subr.bf16.mxu1 %v4598_v0  ;;  %v6482_v0 = vld [vmem:[#allocation3 + $0x278] sm:$0xff] }
 0x772   : > { %6593 = vmatpush1.bf16.msra.mxu0 %v6453_v1  ;;  %v4710_v1 = vld [vmem:[#allocation2 + $0x1a78] sm:$0xff] }
 0x773   : > { %6157 = vmatpush1.bf16.msra.mxu1 %v4597_v2  ;;  %6594 = vmatprep.subr.bf16.mxu0 %v6456_v4  ;;  %v6481_v2 = vld [vmem:[#allocation3 + $0x270] sm:$0xff] }
 0x774   : > { %6158 = vmatprep.subr.bf16.mxu1 %v4606_v38  ;;  %v4709_v4 = vld [vmem:[#allocation2 + $0x1a70] sm:$0xff]  ;;  %v6484_v38 = vld [vmem:[#allocation3 + $0x288] sm:$0xff] }
 0x776   : > { %6595 = vmatpush1.bf16.msra.mxu0 %v6455_v5  ;;  %v4718_v5 = vld [vmem:[#allocation2 + $0x1ab8] sm:$0xff] }
 0x777   : > { %6159 = vmatpush1.bf16.msra.mxu1 %v4605_v7  ;;  %6596 = vmatprep.subr.bf16.mxu0 %v6458_v8  ;;  %v6483_v7 = vld [vmem:[#allocation3 + $0x280] sm:$0xff]  ;;  %v4717_v8 = vld [vmem:[#allocation2 + $0x1ab0] sm:$0xff] }
 0x778   : > { %6160 = vmatprep.subr.bf16.mxu1 %v4614_v12  ;;  %v6486_v12 = vld [vmem:[#allocation3 + $0x298] sm:$0xff] }
 0x77a   : > { %6597 = vmatpush1.bf16.msra.mxu0 %v6457_v43  ;;  %v4726_v43 = vld [vmem:[#allocation2 + $0x1af8] sm:$0xff] }
 0x77b   : > { %6161 = vmatpush1.bf16.msra.mxu1 %v4613_v22  ;;  %6598 = vmatprep.subr.bf16.mxu0 %v6460_v41  ;;  %v6485_v22 = vld [vmem:[#allocation3 + $0x290] sm:$0xff] }
 0x77c   : > { %6162 = vmatprep.subr.bf16.mxu1 %v4622_v63  ;;  %v4725_v41 = vld [vmem:[#allocation2 + $0x1af0] sm:$0xff]  ;;  %v6488_v63 = vld [vmem:[#allocation3 + $0x2a8] sm:$0xff] }
 0x77e   : > { %6599 = vmatpush1.bf16.msra.mxu0 %v6459_v14  ;;  %v4734_v14 = vld [vmem:[#allocation2 + $0x1b38] sm:$0xff] }
 0x77f   : > { %6163 = vmatpush1.bf16.msra.mxu1 %v4621_v47  ;;  %6600 = vmatprep.subr.bf16.mxu0 %v6462_v16  ;;  %v6487_v47 = vld [vmem:[#allocation3 + $0x2a0] sm:$0xff]  ;;  %v4733_v16 = vld [vmem:[#allocation2 + $0x1b30] sm:$0xff] }
 0x780   : > { %6164 = vmatprep.subr.bf16.mxu1 %v4630_v18  ;;  %v6490_v18 = vld [vmem:[#allocation3 + $0x2b8] sm:$0xff] }
 0x782   : > { %6601 = vmatpush1.bf16.msra.mxu0 %v6461_v19  ;;  %v4742_v19 = vld [vmem:[#allocation2 + $0x1b78] sm:$0xff] }
 0x783   : > { %6165 = vmatpush1.bf16.msra.mxu1 %v4629_v28  ;;  %6602 = vmatprep.subr.bf16.mxu0 %v6464_v23  ;;  %v6489_v28 = vld [vmem:[#allocation3 + $0x2b0] sm:$0xff] }
 0x784   : > { %6177 = vmatprep.subr.bf16.mxu1 %v4638_v3  ;;  %v4741_v23 = vld [vmem:[#allocation2 + $0x1b70] sm:$0xff]  ;;  %v6492_v3 = vld [vmem:[#allocation3 + $0x2c8] sm:$0xff] }
 0x786   : > { %6167 = vmatmul.mubr.bf16.vlgmr.msra.gmra.mrb[24].mxu1 %v8936_v20  ;;  %6603 = vmatpush1.bf16.msra.mxu0 %v6463_v21  ;;  %v4662_v20 = vld [vmem:[#allocation2 + $0x18f8] sm:$0xff] }
 0x787   : > { %6178 = vmatpush1.bf16.msra.mxu1 %v4637_v26  ;;  %6209 = vmatprep.mubr.bf16.mxu1 %v8958_v50  ;;  %v6469_v50 = vld [vmem:[#allocation3 + $0x210] sm:$0xff]  ;;  %v4750_v21 = vld [vmem:[#allocation2 + $0x1bb8] sm:$0xff]  ;;  %v6491_v26 = vld [vmem:[#allocation3 + $0x2c0] sm:$0xff] }
 0x788   : > { %6179 = vmatprep.subr.bf16.mxu1 %v4646_v27  ;;  %6604 = vmatprep.subr.bf16.mxu0 %v6466_v30  ;;  %v4749_v27 = vld [vmem:[#allocation2 + $0x1bb0] sm:$0xff]  ;;  %v6494_v30 = vld [vmem:[#allocation3 + $0x2d8] sm:$0xff] }
 0x78a   : > { %6605 = vmatpush1.bf16.msra.mxu0 %v6465_v29  ;;  %v4758_v29 = vld [vmem:[#allocation2 + $0x1bf8] sm:$0xff] }
 0x78b   : > { %6180 = vmatpush1.bf16.msra.mxu1 %v4645_v33  ;;  %6617 = vmatprep.subr.bf16.mxu0 %v6468_v34  ;;  %v6493_v33 = vld [vmem:[#allocation3 + $0x2d0] sm:$0xff] }
 0x78c   : > { %6181 = vmatprep.subr.bf16.mxu1 %v4654_v35  ;;  %v4757_v34 = vld [vmem:[#allocation2 + $0x1bf0] sm:$0xff]  ;;  %v6496_v35 = vld [vmem:[#allocation3 + $0x2e8] sm:$0xff] }
 0x78d   : > { %6607 = vmatmul.mubr.bf16.vlgmr.msra.gmra.mrb[24].mxu0 %v9026_v10  ;;  %v6473_v10 = vld [vmem:[#allocation3 + $0x230] sm:$0xff] }
 0x78e   : > { %6618 = vmatpush1.bf16.msra.mxu0 %v6467_v42  ;;  %v4766_v42 = vld [vmem:[#allocation2 + $0x1c38] sm:$0xff] }
 0x78f   : > { %6182 = vmatpush1.bf16.msra.mxu1 %v4653_v24  ;;  %6619 = vmatprep.subr.bf16.mxu0 %v6470_v36  ;;  %v6495_v24 = vld [vmem:[#allocation3 + $0x2e0] sm:$0xff]  ;;  %v4765_v36 = vld [vmem:[#allocation2 + $0x1c30] sm:$0xff] }
 0x790   : > { %6183 = vmatprep.subr.bf16.mxu1 %v4662_v20  ;;  %v4774_v20 = vld [vmem:[#allocation2 + $0x1c78] sm:$0xff] }
 0x792   : > { %6620 = vmatpush1.bf16.msra.mxu0 %v6469_v50  ;;  %v6498_v50 = vld [vmem:[#allocation3 + $0x2f8] sm:$0xff] }
 0x793   : > { %6184 = vmatpush1.bf16.msra.mxu1 %v4661_v31  ;;  %6621 = vmatprep.subr.bf16.mxu0 %v6472_v46  ;;  %v6497_v31 = vld [vmem:[#allocation3 + $0x2f0] sm:$0xff] }
 0x794   : > { %6185 = vmatprep.subr.bf16.mxu1 %v4670_v39  ;;  %v4773_v46 = vld [vmem:[#allocation2 + $0x1c70] sm:$0xff]  ;;  %v6500_v39 = vld [vmem:[#allocation3 + $0x308] sm:$0xff] }
 0x796   : > { %6622 = vmatpush1.bf16.msra.mxu0 %v6471_v40  ;;  %v4782_v40 = vld [vmem:[#allocation2 + $0x1cb8] sm:$0xff] }
 0x797   : > { %6186 = vmatpush1.bf16.msra.mxu1 %v4669_v59  ;;  %6623 = vmatprep.subr.bf16.mxu0 %v6474_v44  ;;  %v4781_v59 = vld [vmem:[#allocation2 + $0x1cb0] sm:$0xff]  ;;  %v4790_v44 = vld [vmem:[#allocation2 + $0x1cf8] sm:$0xff] }
 0x798   : > { %6187 = vmatprep.subr.bf16.mxu1 %v4678_v45  ;;  %v4789_v45 = vld [vmem:[#allocation2 + $0x1cf0] sm:$0xff] }
 0x79a   : > { %6624 = vmatpush1.bf16.msra.mxu0 %v6473_v10  ;;  %v4797_v10 = vld [vmem:[#allocation2 + $0x1d30] sm:$0xff] }
 0x79b   : > { %6188 = vmatpush1.bf16.msra.mxu1 %v4677_v58  ;;  %6625 = vmatprep.subr.bf16.mxu0 %v6476_v25  ;;  %v4805_v58 = vld [vmem:[#allocation2 + $0x1d70] sm:$0xff]  ;;  %v4814_v25 = vld [vmem:[#allocation2 + $0x1db8] sm:$0xff] }
 0x79c   : > { %6189 = vmatprep.subr.bf16.mxu1 %v4686_v48  ;;  %v4813_v48 = vld [vmem:[#allocation2 + $0x1db0] sm:$0xff] }
 0x79e   : > { %6626 = vmatpush1.bf16.msra.mxu0 %v6475_v53  ;;  %v9043_v53 = vld [vmem:[#allocation11 + $0x10] sm:$0xff] }
 0x79f   : > { %6190 = vmatpush1.bf16.msra.mxu1 %v4685_v6  ;;  %6627 = vmatprep.subr.bf16.mxu0 %v6478_v54  ;;  %v6284_v6 = vrot.slane %v9043_v53, %v8884_v15  ;;  %v4822_v54 = vld [vmem:[#allocation2 + $0x1df8] sm:$0xff] }
 0x7a0   : > { %6191 = vmatprep.subr.bf16.mxu1 %v4694_v55  ;;  %v6288_v55 = vrot.slane %v9043_v53, %v8886_v17 }
 0x7a2   : > { %6628 = vmatpush1.bf16.msra.mxu0 %v6477_v56  ;;  %v9049_v56 = vld [vmem:[#allocation11 + $0x18] sm:$0xff] }
 0x7a3   : > { %6192 = vmatpush1.bf16.msra.mxu1 %v4693_v57  ;;  %6629 = vmatprep.subr.bf16.mxu0 %v6480_v60  ;;  %v6342_v57 = vrot.slane %v9049_v56, %v8884_v15 }
 0x7a4   : > { %6193 = vmatprep.subr.bf16.mxu1 %v4702_v13  ;;  %v6346_v13 = vrot.slane %v9049_v56, %v8886_v17 }
 0x7a6   : > { %6630 = vmatpush1.bf16.msra.mxu0 %v6479_v61  ;;  %v4821_v61 = vld [vmem:[#allocation2 + $0x1df0] sm:$0xff] }
 0x7a7   : > { %6194 = vmatpush1.bf16.msra.mxu1 %v4701_v62  ;;  %6631 = vmatprep.subr.bf16.mxu0 %v6482_v0 }
 0x7a8   : > { %6195 = vmatprep.subr.bf16.mxu1 %v4710_v1  ;;  %v4830_v1 = vld [vmem:[#allocation2 + $0x1e38] sm:$0xff] }
 0x7aa   : > { %6632 = vmatpush1.bf16.msra.mxu0 %v6481_v2 }
 0x7ab   : > { %6196 = vmatpush1.bf16.msra.mxu1 %v4709_v4  ;;  %6633 = vmatprep.subr.bf16.mxu0 %v6484_v38 }
 0x7ac   : > { %6197 = vmatprep.subr.bf16.mxu1 %v4718_v5 }
 0x7ae   : > { %6634 = vmatpush1.bf16.msra.mxu0 %v6483_v7 }
 0x7af   : > { %6198 = vmatpush1.bf16.msra.mxu1 %v4717_v8  ;;  %6635 = vmatprep.subr.bf16.mxu0 %v6486_v12 }
 0x7b0   : > { %6199 = vmatprep.subr.bf16.mxu1 %v4726_v43  ;;  %v4829_v43 = vld [vmem:[#allocation2 + $0x1e30] sm:$0xff] }
 0x7b2   : > { %6636 = vmatpush1.bf16.msra.mxu0 %v6485_v22  ;;  %v4838_v22 = vld [vmem:[#allocation2 + $0x1e78] sm:$0xff] }
 0x7b3   : > { %6200 = vmatpush1.bf16.msra.mxu1 %v4725_v41  ;;  %6637 = vmatprep.subr.bf16.mxu0 %v6488_v63 }
 0x7b4   : > { %6201 = vmatprep.subr.bf16.mxu1 %v4734_v14 }
 0x7b6   : > { %6638 = vmatpush1.bf16.msra.mxu0 %v6487_v47 }
 0x7b7   : > { %6202 = vmatpush1.bf16.msra.mxu1 %v4733_v16  ;;  %6639 = vmatprep.subr.bf16.mxu0 %v6490_v18  ;;  %v4837_v16 = vld [vmem:[#allocation2 + $0x1e70] sm:$0xff] }
 0x7b8   : > { %6203 = vmatprep.subr.bf16.mxu1 %v4742_v19  ;;  %v4846_v19 = vld [vmem:[#allocation2 + $0x1eb8] sm:$0xff] }
 0x7ba   : > { %6640 = vmatpush1.bf16.msra.mxu0 %v6489_v28 }
 0x7bb   : > { %6204 = vmatpush1.bf16.msra.mxu1 %v4741_v23  ;;  %6641 = vmatprep.subr.bf16.mxu0 %v6492_v3  ;;  %v6499_v23 = vld [vmem:[#allocation3 + $0x300] sm:$0xff]  ;;  %v4845_v3 = vld [vmem:[#allocation2 + $0x1eb0] sm:$0xff] }
 0x7bc   : > { %6205 = vmatprep.subr.bf16.mxu1 %v4750_v21  ;;  %v6502_v21 = vld [vmem:[#allocation3 + $0x318] sm:$0xff] }
 0x7be   : > { %6642 = vmatpush1.bf16.msra.mxu0 %v6491_v26  ;;  %v4854_v26 = vld [vmem:[#allocation2 + $0x1ef8] sm:$0xff] }
 0x7bf   : > { %6206 = vmatpush1.bf16.msra.mxu1 %v4749_v27  ;;  %6643 = vmatprep.subr.bf16.mxu0 %v6494_v30  ;;  %v6501_v27 = vld [vmem:[#allocation3 + $0x310] sm:$0xff] }
 0x7c0   : > { %6207 = vmatprep.subr.bf16.mxu1 %v4758_v29  ;;  %v4853_v30 = vld [vmem:[#allocation2 + $0x1ef0] sm:$0xff]  ;;  %v6504_v29 = vld [vmem:[#allocation3 + $0x328] sm:$0xff] }
 0x7c2   : > { %6644 = vmatpush1.bf16.msra.mxu0 %v6493_v33  ;;  %v4862_v33 = vld [vmem:[#allocation2 + $0x1f38] sm:$0xff] }
 0x7c3   : > { %6208 = vmatpush1.bf16.msra.mxu1 %v4757_v34  ;;  %6645 = vmatprep.subr.bf16.mxu0 %v6496_v35  ;;  %v6503_v34 = vld [vmem:[#allocation3 + $0x320] sm:$0xff]  ;;  %v4861_v35 = vld [vmem:[#allocation2 + $0x1f30] sm:$0xff] }
 0x7c4   : > { %6220 = vmatprep.subr.bf16.mxu1 %v4766_v42  ;;  %v6506_v42 = vld [vmem:[#allocation3 + $0x338] sm:$0xff] }
 0x7c6   : > { %6210 = vmatmul.mubr.bf16.vlgmr.msra.gmra.mrb[24].mxu1 %v8956_v49  ;;  %6646 = vmatpush1.bf16.msra.mxu0 %v6495_v24  ;;  %v4798_v49 = vld [vmem:[#allocation2 + $0x1d38] sm:$0xff] }
 0x7c7   : > { %6221 = vmatpush1.bf16.msra.mxu1 %v4765_v36  ;;  %6252 = vmatprep.mubr.bf16.mxu1 %v8944_v52  ;;  %v4806_v52 = vld [vmem:[#allocation2 + $0x1d78] sm:$0xff]  ;;  %v6505_v36 = vld [vmem:[#allocation3 + $0x330] sm:$0xff] }
 0x7c8   : > { %6222 = vmatprep.subr.bf16.mxu1 %v4774_v20  ;;  %6647 = vmatprep.subr.bf16.mxu0 %v6498_v50  ;;  %v4870_v24 = vld [vmem:[#allocation2 + $0x1f78] sm:$0xff]  ;;  %v4869_v20 = vld [vmem:[#allocation2 + $0x1f70] sm:$0xff]  ;;  %v6508_v50 = vld [vmem:[#allocation3 + $0x348] sm:$0xff] }
 0x7ca   : > { %6648 = vmatpush1.bf16.msra.mxu0 %v6497_v31  ;;  %v4878_v31 = vld [vmem:[#allocation2 + $0x1fb8] sm:$0xff] }
 0x7cb   : > { %6223 = vmatpush1.bf16.msra.mxu1 %v4773_v46  ;;  %6660 = vmatprep.subr.bf16.mxu0 %v6500_v39  ;;  %v6507_v46 = vld [vmem:[#allocation3 + $0x340] sm:$0xff]  ;;  %v4877_v39 = vld [vmem:[#allocation2 + $0x1fb0] sm:$0xff] }
 0x7cc   : > { %6224 = vmatprep.subr.bf16.mxu1 %v4782_v40  ;;  %v6510_v40 = vld [vmem:[#allocation3 + $0x358] sm:$0xff] }
 0x7cf   : > { %6225 = vmatpush1.bf16.msra.mxu1 %v4781_v59  ;;  %v4886_v59 = vld [vmem:[#allocation2 + $0x1ff8] sm:$0xff] }
 0x7d0   : > { %6226 = vmatprep.subr.bf16.mxu1 %v4790_v44  ;;  %v6509_v44 = vld [vmem:[#allocation3 + $0x350] sm:$0xff] }
 0x7d3   : > { %6227 = vmatpush1.bf16.msra.mxu1 %v4789_v45  ;;  %v4885_v45 = vld [vmem:[#allocation2 + $0x1ff0] sm:$0xff] }
 0x7d4   : > { %6228 = vmatprep.subr.bf16.mxu1 %v4798_v49  ;;  %v6512_v49 = vld [vmem:[#allocation3 + $0x368] sm:$0xff] }
 0x7d7   : > { %6229 = vmatpush1.bf16.msra.mxu1 %v4797_v10  ;;  %v6511_v10 = vld [vmem:[#allocation3 + $0x360] sm:$0xff] }
 0x7d8   : > { %6230 = vmatprep.subr.bf16.mxu1 %v4806_v52  ;;  %v6514_v52 = vld [vmem:[#allocation3 + $0x378] sm:$0xff] }
 0x7db   : > { %6231 = vmatpush1.bf16.msra.mxu1 %v4805_v58  ;;  %v6513_v58 = vld [vmem:[#allocation3 + $0x370] sm:$0xff] }
 0x7dc   : > { %6232 = vmatprep.subr.bf16.mxu1 %v4814_v25  ;;  %v6516_v25 = vld [vmem:[#allocation3 + $0x388] sm:$0xff] }
 0x7df   : > { %6233 = vmatpush1.bf16.msra.mxu1 %v4813_v48  ;;  %v6515_v48 = vld [vmem:[#allocation3 + $0x380] sm:$0xff] }
 0x7e0   : > { %v5910_v60 = vpop.f32.mrb[20].mxu0  ;;  %6234 = vmatprep.subr.bf16.mxu1 %v4822_v54  ;;  %v6517_v54 = vld [vmem:[#allocation3 + $0x390] sm:$0xff] }
 0x7e1   : > { %v6309_v62 = vmul.f32 %v6284_v6, %v5910_v60  ;;  %v5912_v0 = vpop.f32.mrb[21].mxu0  ;;  %v6522_v60 = vld [vmem:[#allocation3 + $0x3b8] sm:$0xff] }
 0x7e2   : > { %v6310_v2 = vmul.f32 %v6288_v55, %v5912_v0  ;;  %v5914_v4 = vpop.f32.mrb[22].mxu0  ;;  %v6525_v0 = vld [vmem:[#allocation3 + $0x3d0] sm:$0xff] }
 0x7e3   : > { %v6367_v38 = vadd.f32 %v6342_v57, %v6309_v62  ;;  %v6317_v5 = vmul.f32 %v6284_v6, %v5914_v4  ;;  %6235 = vmatpush1.bf16.msra.mxu1 %v4821_v61  ;;  %v5916_v7 = vpop.f32.mrb[23].mxu0  ;;  %v6518_v6 = vld [vmem:[#allocation3 + $0x398] sm:$0xff]  ;;  %v6523_v61 = vld [vmem:[#allocation3 + $0x3c0] sm:$0xff] }
 0x7e4   : > { %v6368_v8 = vadd.f32 %v6346_v13, %v6310_v2  ;;  %v6318_v12 = vmul.f32 %v6288_v55, %v5916_v7  ;;  %6236 = vmatprep.subr.bf16.mxu1 %v4830_v1  ;;  %v6520_v55 = vld [vmem:[#allocation3 + $0x3a8] sm:$0xff]  ;;  %v6526_v62 = vld [vmem:[#allocation3 + $0x3d8] sm:$0xff]  ;;  %v6527_v2 = vld [vmem:[#allocation3 + $0x3e0] sm:$0xff]  ;;  %v6296_v7 = vrot.slane %v9043_v53, %v8894_v37 }
 0x7e5   : > { %v6375_v15 = vadd.f32 %v6342_v57, %v6317_v5  ;;  %v6383_v63 = vmax.f32 %v6367_v38, 0.0  ;;  %v6519_v57 = vld [vmem:[#allocation3 + $0x3a0] sm:$0xff]  ;;  %v6528_v1 = vld [vmem:[#allocation3 + $0x3e8] sm:$0xff]  ;;  %v6530_v4 = vld [vmem:[#allocation3 + $0x3f8] sm:$0xff]  ;;  %v6292_v5 = vrot.slane %v9043_v53, %v8892_v32 }
 0x7e6   : > { %v6376_v41 = vadd.f32 %v6346_v13, %v6318_v12  ;;  %v6384_v14 = vmax.f32 %v6368_v8, 0.0  ;;  %v6521_v13 = vld [vmem:[#allocation3 + $0x3b0] sm:$0xff]  ;;  %v6350_v8 = vrot.slane %v9049_v56, %v8892_v32 }
 0x7e7   : > { %v6391_v17 = vmax.f32 %v6375_v15, 0.0  ;;  %6237 = vmatpush1.bf16.msra.mxu1 %v4829_v43  ;;  %v6529_v38 = vld [vmem:[#allocation3 + $0x3f0] sm:$0xff]  ;;  %v6354_v43 = vrot.slane %v9049_v56, %v8894_v37  ;;  %v6703_v37 = vld [vmem:[#allocation11 + $0x20] sm:$0x3]  ;;  %v6719_v56 = vld [vmem:[#allocation11 + $0x22] sm:$0x3] }
 0x7e8   : > { %v6392_v47 = vmax.f32 %v6376_v41, 0.0  ;;  %6238 = vmatprep.subr.bf16.mxu1 %v4838_v22 }
 0x7e9   : > { %v6399_v18 = vpack.c.bf16 %v6391_v17, %v6383_v63 }
 0x7ea   : > { %v6400_v28 = vpack.c.bf16 %v6392_v47, %v6384_v14 }
 0x7eb   : > { %6239 = vmatpush1.bf16.msra.mxu1 %v4837_v16 }
 0x7ec   : > { %6649 = vmatprep.mubr.bf16.mxu0 %v6400_v28  ;;  %6240 = vmatprep.subr.bf16.mxu1 %v4846_v19 }
 0x7ed   : > { %6650 = vmatmul.mubr.bf16.vlgmr.msra.gmra.mrb[24].mxu0 %v6399_v18 }
 0x7ee   : > { %6661 = vmatpush1.bf16.msra.mxu0 %v6499_v23 }
 0x7ef   : > { %6241 = vmatpush1.bf16.msra.mxu1 %v4845_v3  ;;  %6662 = vmatprep.subr.bf16.mxu0 %v6502_v21 }
 0x7f0   : > { %6242 = vmatprep.subr.bf16.mxu1 %v4854_v26 }
 0x7f2   : > { %6663 = vmatpush1.bf16.msra.mxu0 %v6501_v27  ;;  %v6708_v27 = vrot.slane %v6703_v37, %v8874_v9 }
 0x7f3   : > { %6243 = vmatpush1.bf16.msra.mxu1 %v4853_v30  ;;  %6664 = vmatprep.subr.bf16.mxu0 %v6504_v29  ;;  %v6712_v30 = vrot.slane %v6703_v37, %v8876_v11  ;;  %v6724_v29 = vrot.slane %v6719_v56, %v8874_v9 }
 0x7f4   : > { %6244 = vmatprep.subr.bf16.mxu1 %v4862_v33 }
 0x7f6   : > { %6665 = vmatpush1.bf16.msra.mxu0 %v6503_v34  ;;  %v6728_v34 = vrot.slane %v6719_v56, %v8876_v11 }
 0x7f7   : > { %6245 = vmatpush1.bf16.msra.mxu1 %v4861_v35  ;;  %6666 = vmatprep.subr.bf16.mxu0 %v6506_v42  ;;  %v6739_v35 = vld [vmem:[#allocation11 + $0x24] sm:$0x3] }
 0x7f8   : > { %6246 = vmatprep.subr.bf16.mxu1 %v4870_v24 }
 0x7fa   : > { %6667 = vmatpush1.bf16.msra.mxu0 %v6505_v36 }
 0x7fb   : > { %6247 = vmatpush1.bf16.msra.mxu1 %v4869_v20  ;;  %6668 = vmatprep.subr.bf16.mxu0 %v6508_v50 }
 0x7fc   : > { %6248 = vmatprep.subr.bf16.mxu1 %v4878_v31 }
 0x7fe   : > { %6669 = vmatpush1.bf16.msra.mxu0 %v6507_v46 }
 0x7ff   : > { %6249 = vmatpush1.bf16.msra.mxu1 %v4877_v39  ;;  %6670 = vmatprep.subr.bf16.mxu0 %v6510_v40  ;;  %v6744_v39 = vrot.slane %v6739_v35, %v8874_v9  ;;  %v6938_v9 = vld [vmem:[#allocation11 + $0x26] ss:$0 sm:$0xff] }
 0x800   : > { %6250 = vmatprep.subr.bf16.mxu1 %v4886_v59 }
 0x802   : > { %6671 = vmatpush1.bf16.msra.mxu0 %v6509_v44  ;;  %v6748_v44 = vrot.slane %v6739_v35, %v8876_v11 }
 0x803   : > { %6251 = vmatpush1.bf16.msra.mxu1 %v4885_v45  ;;  %6672 = vmatprep.subr.bf16.mxu0 %v6512_v49 }
 0x806   : > { %6253 = vmatmul.mubr.bf16.vlgmr.msra.gmra.mrb[24].mxu1 %v8942_v51  ;;  %6673 = vmatpush1.bf16.msra.mxu0 %v6511_v10  ;;  %v6524_v51 = vld [vmem:[#allocation3 + $0x3c8] sm:$0xff] }
 0x807   : > { %6674 = vmatprep.subr.bf16.mxu0 %v6514_v52 }
 0x80a   : > { %6675 = vmatpush1.bf16.msra.mxu0 %v6513_v58 }
 0x80b   : > { %6676 = vmatprep.subr.bf16.mxu0 %v6516_v25 }
 0x80e   : > { %6677 = vmatpush1.bf16.msra.mxu0 %v6515_v48 }
 0x80f   : > { %6678 = vmatprep.subr.bf16.mxu0 %v6518_v6 }
 0x812   : > { %6679 = vmatpush1.bf16.msra.mxu0 %v6517_v54 }
 0x813   : > { %6680 = vmatprep.subr.bf16.mxu0 %v6520_v55 }
 0x816   : > { %6681 = vmatpush1.bf16.msra.mxu0 %v6519_v57 }
 0x817   : > { %6682 = vmatprep.subr.bf16.mxu0 %v6522_v60 }
 0x81a   : > { %6683 = vmatpush1.bf16.msra.mxu0 %v6521_v13 }
 0x81b   : > { %6684 = vmatprep.subr.bf16.mxu0 %v6524_v51 }
 0x81e   : > { %6685 = vmatpush1.bf16.msra.mxu0 %v6523_v61 }
 0x81f   : > { %6686 = vmatprep.subr.bf16.mxu0 %v6526_v62 }
 0x822   : > { %6687 = vmatpush1.bf16.msra.mxu0 %v6525_v0 }
 0x823   : > { %6688 = vmatprep.subr.bf16.mxu0 %v6528_v1 }
 0x826   : > { %6689 = vmatpush1.bf16.msra.mxu0 %v6527_v2 }
 0x827   : > { %6690 = vmatprep.subr.bf16.mxu0 %v6530_v4 }
 0x82a   : > { %6691 = vmatpush1.bf16.msra.mxu0 %v6529_v38 }
 0x8d9   : > { %v6254_v12 = vpop.f32.mrb[24].mxu1 }
 0x8da   : > { %v6311_v15 = vmul.f32 %v6292_v5, %v6254_v12  ;;  %v6256_v22 = vpop.f32.mrb[25].mxu1 }
 0x8db   : > { %v6312_v41 = vmul.f32 %v6296_v7, %v6256_v22  ;;  %v6258_v63 = vpop.f32.mrb[26].mxu1 }
 0x8dc   : > { %v6369_v17 = vadd.f32 %v6350_v8, %v6311_v15  ;;  %v6319_v14 = vmul.f32 %v6292_v5, %v6258_v63  ;;  %v6260_v47 = vpop.f32.mrb[27].mxu1 }
 0x8dd   : > { %v6370_v16 = vadd.f32 %v6354_v43, %v6312_v41  ;;  %v6320_v18 = vmul.f32 %v6296_v7, %v6260_v47 }
 0x8de   : > { %v6377_v19 = vadd.f32 %v6350_v8, %v6319_v14  ;;  %v6385_v23 = vmax.f32 %v6369_v17, 0.0 }
 0x8df   : > { %v6378_v28 = vadd.f32 %v6354_v43, %v6320_v18  ;;  %v6386_v3 = vmax.f32 %v6370_v16, 0.0 }
 0x8e0   : > { %v6393_v53 = vmax.f32 %v6377_v19, 0.0 }
 0x8e1   : > { %v6394_v21 = vmax.f32 %v6378_v28, 0.0 }
 0x8e2   : > { %v6401_v32 = vpack.c.bf16 %v6393_v53, %v6385_v23 }
 0x8e3   : > { %v6402_v26 = vpack.c.bf16 %v6394_v21, %v6386_v3 }
 0x8e5   : > { %6692 = vmatprep.mubr.bf16.mxu0 %v6402_v26 }
 0x8e6   : > { %6693 = vmatmul.mubr.bf16.vlgmr.msra.gmra.mrb[24].mxu0 %v6401_v32 }
 0x9b9   : > { %v6694_v33 = vpop.f32.mrb[24].mxu0 }
 0x9ba   : > { %v6715_v42 = vmul.f32 %v6708_v27, %v6694_v33  ;;  %v6696_v24 = vpop.f32.mrb[25].mxu0 }
 0x9bb   : > { %v6716_v36 = vmul.f32 %v6712_v30, %v6696_v24  ;;  %v6698_v20 = vpop.f32.mrb[26].mxu0 }
 0x9bc   : > { %v6731_v50 = vadd.f32 %v6724_v29, %v6715_v42  ;;  %v6717_v31 = vmul.f32 %v6708_v27, %v6698_v20  ;;  %v6700_v46 = vpop.f32.mrb[27].mxu0 }
 0x9bd   : > { %v6732_v40 = vadd.f32 %v6728_v34, %v6716_v36  ;;  %v6718_v59 = vmul.f32 %v6712_v30, %v6700_v46 }
 0x9be   : > { %v6735_v45 = vmax.f32 %v6731_v50, 0.0  ;;  %v6733_v49 = vadd.f32 %v6724_v29, %v6717_v31 }
 0x9bf   : > { %v6736_v10 = vmax.f32 %v6732_v40, 0.0  ;;  %v6734_v52 = vadd.f32 %v6728_v34, %v6718_v59 }
 0x9c0   : > { %v6737_v58 = vmax.f32 %v6733_v49, 0.0  ;;  %v6751_v25 = vmul.f32 %v6744_v39, %v6735_v45 }
 0x9c1   : > { %v6738_v48 = vmax.f32 %v6734_v52, 0.0  ;;  %v6752_v6 = vmul.f32 %v6748_v44, %v6736_v10 }
 0x9c2   : > { %v6753_v54 = vmul.f32 %v6744_v39, %v6737_v58 }
 0x9c3   : > { %v6755_v55 = vadd.f32 %v6752_v6, %v6751_v25  ;;  %v6754_v57 = vmul.f32 %v6748_v44, %v6738_v48 }
 0x9c5   : > { %6756 = vadd.xlane.f32.xlu0 %v6755_v55  ;;  %v6758_v60 = vadd.f32 %v6754_v57, %v6753_v54 }
 0x9c9   : > { %6759 = vadd.xlane.f32.xlu0 %v6758_v60 }
 0xa52   : > { %v6757_v13 = vpop.xlane.xlu0 %6756 }
 0xa53   : > { %v6768_v11 = vadd.f32 %v6938_v9, %v6757_v13 }
 0xa55   : > { %6771 = vst.msk [vmem:[%s7604_s30] sm:$0xff] %vm6770_vm1, %v6768_v11 }
 0xa56   : > { %v6760_v51 = vpop.xlane.xlu0 %6759 }
 0xa57   : > { %v6769_v61 = vadd.f32 %v6938_v9, %v6760_v51 }
 0xa59   : > { %6772 = vst.msk [vmem:[%s7604_s30 + $0x8] sm:$0xff] %vm6770_vm1, %v6769_v61 }
 0xa5a PF: > { %p17_p5 = scmp.ge.s32.totalorder %s7529_s10, 4   ;;  %s9106_s18 = smov %s7333_s19 }
 0xa5b   : > { %s9107_s19 = smov %s7337_s20  ;;  %s9108_s20 = smov %s7538_s29 }
 0xa5c   : > { %s9109_s21 = smov %s7529_s10  ;;  %19 = sbr.rel (!%p17_p5) target bundleno = 5 (0x5), region = 100 }
 0xa63   :  { %6795 = vsyncpa [#allocation5], 1 }
 0xa64   :  { %6797 = vsyncpa [#allocation5 + $0x1], 1 }
 0xa65   :  { %6798 = vsyncpa [#allocation7], 1 }
 0xa66   :  { %6799 = vsyncpa [#allocation10], 1 }

</bundles_post_ra>
